<compile_context>
chip_gen: v7x
topology: tpu7x:2x2x1
jax: 0.10.0
libtpu: 0.0.40
codegen_flags: <defaults>
</compile_context>

<pallas_src>
import functools

import jax
import jax.numpy as jnp
from jax.experimental import pallas as pl
from jax.experimental.pallas import tpu as pltpu

EPS_BN = 1e-5
_VMEM = pl.BlockSpec(memory_space=pltpu.MemorySpace.VMEM)


def _ceil_div(a, b):
    return -(-a // b)


def _canvas_dims(H, W):
    # canonical canvas: rows 1..H / cols 1..W hold data, everything else is zero.
    return H + 3, W + 2


@functools.lru_cache(maxsize=1)
def _vmem_limit_bytes():
    try:
        phys = int(pltpu.get_tpu_info().vmem_capacity_bytes)
    except Exception:
        phys = 64 * 1024 * 1024
    # ~112 MiB on 128-MiB parts (v5e/v6e), 48 MiB on 64-MiB v7x, never below 32 MiB.
    return int(max(min(phys - 16 * 1024 * 1024, 112 * 1024 * 1024), 32 * 1024 * 1024))


def _cparams():
    return pltpu.CompilerParams(dimension_semantics=("parallel",),
                                vmem_limit_bytes=_vmem_limit_bytes())


# ---------------------------- in-kernel helpers ----------------------------

def _conv_accum(get_win, w_ref, groups):
    # One MXU matmul per tap group: (Cout, Kg) @ (Kg, R) -> f32 (Cout, R).
    # Kg = (#taps in group) * Cin; RHS is an in-VMEM im2col built by a sublane concat
    # of statically shifted windows (never materialized in HBM).
    acc = None
    for g, taps in enumerate(groups):
        wins = [get_win(p, off) for (p, off) in taps]
        rhs = wins[0] if len(wins) == 1 else jnp.concatenate(wins, axis=0)
        part = jnp.dot(w_ref[g], rhs, preferred_element_type=jnp.float32)
        acc = part if acc is None else acc + part
    return acc


def _write_canvas(o_ref, vals, Wc, Wo, R):
    # vals: (C, R) f32 flattened-shift rows (row stride Wc, valid cols < Wo).
    # Zero-mask the Wc-Wo garbage columns and emit the full zero-padded canvas:
    # zero head (top pad row + left pad), interior block, zero tail (remaining pad rows).
    C = o_ref.shape[0]
    lane = jax.lax.broadcasted_iota(jnp.int32, (1, R), 1)
    vals = jnp.where((lane % Wc) < Wo, vals, 0.0).astype(o_ref.dtype)
    o_ref[:, :Wc + 1] = jnp.zeros((C, Wc + 1), o_ref.dtype)
    o_ref[:, Wc + 1:Wc + 1 + R] = vals
    tail = o_ref.shape[1] - (Wc + 1) - R
    o_ref[:, Wc + 1 + R:] = jnp.zeros((C, tail), o_ref.dtype)


# ---------------------------- Pallas kernels ----------------------------

def _conv_bn_kernel(x_ref, w_ref, s_ref, b_ref, o_ref, *, groups, Wc, Wo, R, relu):
    # 3x3 stride-1 conv + folded BN (+ ReLU) over one canvas (used for the stem conv).
    acc = _conv_accum(lambda p, off: x_ref[:, off:off + R], w_ref, groups)
    out = acc * s_ref[...] + b_ref[...]
    if relu:
        out = jnp.maximum(out, 0.0)
    _write_canvas(o_ref, out, Wc, Wo, R)


def _block_s1_kernel(x_ref, w1_ref, s1_ref, b1_ref, w2_ref, s2_ref, b2_ref,
                     o_ref, h_ref, *, groups1, groups2, Wc, Wo, R):
    # Fused stride-1 BasicBlock with identity shortcut.
    h = _conv_accum(lambda p, off: x_ref[:, off:off + R], w1_ref, groups1)
    h = jnp.maximum(h * s1_ref[...] + b1_ref[...], 0.0)
    _write_canvas(h_ref, h, Wc, Wo, R)          # h stays in VMEM scratch

    out = _conv_accum(lambda p, off: h_ref[:, off:off + R], w2_ref, groups2)
    out = out * s2_ref[...] + b2_ref[...]
    out = out + x_ref[:, Wc + 1:Wc + 1 + R].astype(jnp.float32)   # identity residual
    out = jnp.maximum(out, 0.0)
    _write_canvas(o_ref, out, Wc, Wo, R)


def _block_s2_kernel(xp_ref, w1_ref, s1_ref, b1_ref, w2_ref, s2_ref, b2_ref,
                     wsc_ref, ssc_ref, bsc_ref, o_ref, h_ref,
                     *, groups1, groups2, Wc, Wo, R):
    # Fused stride-2 BasicBlock with 1x1 stride-2 projection shortcut.
    # xp_ref: 4 parity planes (4, Cin, Hq*Wq) of the padded input canvas.
    h = _conv_accum(lambda p, off: xp_ref[p, :, off:off + R], w1_ref, groups1)
    h = jnp.maximum(h * s1_ref[...] + b1_ref[...], 0.0)
    _write_canvas(h_ref, h, Wc, Wo, R)          # h stays in VMEM scratch

    out = _conv_accum(lambda p, off: h_ref[:, off:off + R], w2_ref, groups2)
    out = out * s2_ref[...] + b2_ref[...]
    # 1x1 stride-2 shortcut = parity plane (1,1) hit with a single matmul + folded BN
    sc = jnp.dot(wsc_ref[...], xp_ref[3, :, :R], preferred_element_type=jnp.float32)
    out = out + (sc * ssc_ref[...] + bsc_ref[...])
    out = jnp.maximum(out, 0.0)
    _write_canvas(o_ref, out, Wc, Wo, R)


def _tstp_kernel(x_ref, mean_ref, std_ref, *, F, T, inv_t, inv_tm1):
    # One-pass mean / unbiased-std over time; reduction runs over the lane (time) axis.
    x = x_ref[:, 1:F + 1, 1:T + 1].astype(jnp.float32)      # (C, F, T) interior only
    s = jnp.sum(x, axis=-1)
    sq = jnp.sum(x * x, axis=-1)
    mean = s * inv_t
    var = (sq - s * mean) * inv_tm1                          # torch.var (unbiased)
    mean_ref[...] = mean
    std_ref[...] = jnp.sqrt(jnp.maximum(var, 0.0) + 1e-7)


def _head_kernel(stats_ref, w1_ref, b1_ref, bns_ref, bnb_ref, w2_ref, b2_ref, o_ref):
    # seg_1 -> ReLU -> seg_bn_1 (affine=False, eval) -> seg_2, bf16 matmuls / f32 accum.
    a = jnp.dot(stats_ref[...], w1_ref[...], preferred_element_type=jnp.float32) + b1_ref[...]
    a = jnp.maximum(a, 0.0) * bns_ref[...] + bnb_ref[...]
    o_ref[...] = (jnp.dot(a.astype(jnp.bfloat16), w2_ref[...],
                          preferred_element_type=jnp.float32) + b2_ref[...])


# ---------------------------- weight packing ----------------------------

def _pack_conv3x3(w, stride, Wcols):
    """HWIO (3,3,Cin,Cout) -> (tap groups of (plane, flat offset), packed (G,Cout,Kg) bf16).

    Taps are K-packed so each group becomes one MXU matmul: all 9 taps in one group when
    9*Cin <= 256 (fills the 256-deep MXU), else one kh-row (3 taps) per group.
    """
    KH, KW, Cin, Cout = w.shape
    w_t = jnp.transpose(w, (0, 1, 3, 2))                     # (KH, KW, Cout, Cin)
    rows = [tuple(range(KH))] if KH * KW * Cin <= 256 else [(kh,) for kh in range(KH)]
    groups, packed = [], []
    for grp in rows:
        taps, wg = [], []
        for kh in grp:
            for kw in range(KW):
                if stride == 1:
                    taps.append((0, kh * Wcols + kw))
                else:  # parity-plane addressing for stride 2
                    taps.append(((kh % 2) * 2 + (kw % 2), (kh // 2) * Wcols + (kw // 2)))
                wg.append(w_t[kh, kw])                        # (Cout, Cin)
        groups.append(tuple(taps))
        packed.append(jnp.concatenate(wg, axis=-1))           # (Cout, ntaps*Cin)
    return tuple(groups), jnp.stack(packed, axis=0).astype(jnp.bfloat16)


# ---------------------------- wrappers ----------------------------

def conv_bn_relu(canvas, H, W, w, scale, bias):
    """3x3 stride-1 Conv2d(bias=False) + folded BN + ReLU, canvas -> canvas."""
    N, Cin, Lc = canvas.shape
    Cout = w.shape[-1]
    Hc, Wc = _canvas_dims(H, W)
    assert Lc == Hc * Wc
    R = H * Wc
    groups, wp = _pack_conv3x3(w, 1, Wc)
    kern = functools.partial(_conv_bn_kernel, groups=groups, Wc=Wc, Wo=W, R=R, relu=True)
    cvec = lambda v: v.reshape(Cout, 1)
    return pl.pallas_call(
        kern,
        grid=(N,),
        in_specs=[
            pl.BlockSpec((None, Cin, Lc), lambda n: (n, 0, 0)),
            pl.BlockSpec(wp.shape, lambda n: (0, 0, 0)),
            pl.BlockSpec((Cout, 1), lambda n: (0, 0)),
            pl.BlockSpec((Cout, 1), lambda n: (0, 0)),
        ],
        out_specs=pl.BlockSpec((None, Cout, Lc), lambda n: (n, 0, 0)),
        out_shape=jax.ShapeDtypeStruct((N, Cout, Lc), jnp.bfloat16),
        compiler_params=_cparams(),
    )(canvas, wp, cvec(scale), cvec(bias))


def _basic_block_s1(canvas, H, W, blk):
    N, Cin, Lc = canvas.shape
    Cout = blk['w1'].shape[-1]
    # TODO(synk): stride-1 blocks with projection shortcuts never occur in this net.
    assert Cin == Cout, "stride-1 BasicBlock expects identity shortcut"
    Hc, Wc = _canvas_dims(H, W)
    R = H * Wc
    g1, w1p = _pack_conv3x3(blk['w1'], 1, Wc)
    g2, w2p = _pack_conv3x3(blk['w2'], 1, Wc)
    cvec = lambda v: v.reshape(Cout, 1)
    kern = functools.partial(_block_s1_kernel, groups1=g1, groups2=g2, Wc=Wc, Wo=W, R=R)
    out = pl.pallas_call(
        kern,
        grid=(N,),
        in_specs=[
            pl.BlockSpec((None, Cin, Lc), lambda n: (n, 0, 0)),
            pl.BlockSpec(w1p.shape, lambda n: (0, 0, 0)),
            pl.BlockSpec((Cout, 1), lambda n: (0, 0)),
            pl.BlockSpec((Cout, 1), lambda n: (0, 0)),
            pl.BlockSpec(w2p.shape, lambda n: (0, 0, 0)),
            pl.BlockSpec((Cout, 1), lambda n: (0, 0)),
            pl.BlockSpec((Cout, 1), lambda n: (0, 0)),
        ],
        out_specs=pl.BlockSpec((None, Cout, Lc), lambda n: (n, 0, 0)),
        out_shape=jax.ShapeDtypeStruct((N, Cout, Lc), jnp.bfloat16),
        scratch_shapes=[pltpu.VMEM((Cout, Lc), jnp.bfloat16)],     # h canvas stays on-chip
        compiler_params=_cparams(),
    )(canvas, w1p, cvec(blk['scale1']), cvec(blk['bias1']),
      w2p, cvec(blk['scale2']), cvec(blk['bias2']))
    return out, H, W


def _basic_block_s2(canvas, H, W, blk):
    N, Cin, Lc = canvas.shape
    Cout = blk['w1'].shape[-1]
    Hc, Wc = _canvas_dims(H, W)
    Ho, Wo = _ceil_div(H, 2), _ceil_div(W, 2)
    Hq, Wq = Ho + 2, Wo + 2

    # Parity-plane split of the padded canvas (only at the 3 stride-2 stage transitions).
    x = canvas.reshape(N, Cin, Hc, Wc)
    x = jnp.pad(x, ((0, 0), (0, 0), (0, 2 * Hq - Hc), (0, 2 * Wq - Wc)))
    x = x.reshape(N, Cin, Hq, 2, Wq, 2)
    xp = jnp.transpose(x, (0, 3, 5, 1, 2, 4)).reshape(N, 4, Cin, Hq * Wq)

    R = Ho * Wq
    Lo = (Ho + 3) * Wq                               # output canvas: canonical (Ho+3, Wo+2)
    g1, w1p = _pack_conv3x3(blk['w1'], 2, Wq)
    g2, w2p = _pack_conv3x3(blk['w2'], 1, Wq)
    wsc = jnp.transpose(blk['sc_w'][0, 0], (1, 0)).astype(jnp.bfloat16)   # (Cout, Cin)
    cvec = lambda v: v.reshape(Cout, 1)
    kern = functools.partial(_block_s2_kernel, groups1=g1, groups2=g2, Wc=Wq, Wo=Wo, R=R)
    out = pl.pallas_call(
        kern,
        grid=(N,),
        in_specs=[
            pl.BlockSpec((None, 4, Cin, Hq * Wq), lambda n: (n, 0, 0, 0)),
            pl.BlockSpec(w1p.shape, lambda n: (0, 0, 0)),
            pl.BlockSpec((Cout, 1), lambda n: (0, 0)),
            pl.BlockSpec((Cout, 1), lambda n: (0, 0)),
            pl.BlockSpec(w2p.shape, lambda n: (0, 0, 0)),
            pl.BlockSpec((Cout, 1), lambda n: (0, 0)),
            pl.BlockSpec((Cout, 1), lambda n: (0, 0)),
            pl.BlockSpec(wsc.shape, lambda n: (0, 0)),
            pl.BlockSpec((Cout, 1), lambda n: (0, 0)),
            pl.BlockSpec((Cout, 1), lambda n: (0, 0)),
        ],
        out_specs=pl.BlockSpec((None, Cout, Lo), lambda n: (n, 0, 0)),
        out_shape=jax.ShapeDtypeStruct((N, Cout, Lo), jnp.bfloat16),
        scratch_shapes=[pltpu.VMEM((Cout, Lo), jnp.bfloat16)],     # h canvas stays on-chip
        compiler_params=_cparams(),
    )(xp, w1p, cvec(blk['scale1']), cvec(blk['bias1']),
      w2p, cvec(blk['scale2']), cvec(blk['bias2']),
      wsc, cvec(blk['sc_scale']), cvec(blk['sc_bias']))
    return out, Ho, Wo


def basic_block(canvas, H, W, blk):
    if blk['stride'] == 1:
        return _basic_block_s1(canvas, H, W, blk)
    return _basic_block_s2(canvas, H, W, blk)


def tstp_pool(canvas, H, W):
    N, C, Lc = canvas.shape
    Hc, Wc = _canvas_dims(H, W)
    x4 = canvas.reshape(N, C, Hc, Wc)                # free reshape (row-major split)
    kern = functools.partial(_tstp_kernel, F=H, T=W,
                             inv_t=1.0 / W, inv_tm1=1.0 / max(W - 1, 1))
    mean, std = pl.pallas_call(
        kern,
        grid=(N,),
        in_specs=[pl.BlockSpec((None, C, Hc, Wc), lambda n: (n, 0, 0, 0))],
        out_specs=(pl.BlockSpec((None, C, H), lambda n: (n, 0, 0)),
                   pl.BlockSpec((None, C, H), lambda n: (n, 0, 0))),
        out_shape=(jax.ShapeDtypeStruct((N, C, H), jnp.float32),
                   jax.ShapeDtypeStruct((N, C, H), jnp.float32)),
        compiler_params=_cparams(),
    )(x4)
    # (C, F) flatten already matches PyTorch's channel-major ordering.
    return jnp.concatenate([mean.reshape(N, C * H), std.reshape(N, C * H)], axis=1)


def embed_head(stats, params):
    N = stats.shape[0]
    E = params['seg1_w'].shape[1]
    return pl.pallas_call(
        _head_kernel,
        out_shape=jax.ShapeDtypeStruct((N, E), jnp.float32),
        in_specs=[_VMEM] * 7,
        out_specs=_VMEM,
    )(stats.astype(jnp.bfloat16),
      params['seg1_w'].astype(jnp.bfloat16), params['seg1_b'].reshape(1, E),
      params['segbn_scale'].reshape(1, E), params['segbn_bias'].reshape(1, E),
      params['seg2_w'].astype(jnp.bfloat16), params['seg2_b'].reshape(1, E))


# ---------------------------- full forward ----------------------------

def resnet_forward(x_btf, params):
    # PyTorch: x.permute(0,2,1).unsqueeze(1) -> NCHW (B,1,feat,T).  Channel-major canvas here.
    x = jnp.transpose(x_btf, (0, 2, 1)).astype(jnp.bfloat16)        # (B, feat, T)
    B, H, W = x.shape
    canvas = jnp.pad(x, ((0, 0), (1, 2), (1, 1)))[:, None, :, :]    # zero border canvas
    canvas = canvas.reshape(B, 1, (H + 3) * (W + 2))

    scale1, bias1 = params['bn1']
    canvas = conv_bn_relu(canvas, H, W, params['conv1_w'], scale1, bias1)
    for stage in params['layers']:
        for blk in stage:
            canvas, H, W = basic_block(canvas, H, W, blk)

    stats = tstp_pool(canvas, H, W)                  # (B, 2*C*F) f32
    return embed_head(stats, params)


# ---------------------------- parameter init ----------------------------

def _fold_bn(key, c):
    k1, k2, k3, k4 = jax.random.split(key, 4)
    gamma = jax.random.uniform(k1, (c,), minval=0.5, maxval=1.5)
    beta = 0.1 * jax.random.normal(k2, (c,))
    rmean = 0.1 * jax.random.normal(k3, (c,))
    rvar = jax.random.uniform(k4, (c,), minval=0.5, maxval=1.5)
    scale = gamma / jnp.sqrt(rvar + EPS_BN)
    bias = beta - rmean * scale
    return scale.astype(jnp.float32), bias.astype(jnp.float32)


def _conv_w(key, kh, kw, cin, cout):
    fan_in = kh * kw * cin
    return (jax.random.normal(key, (kh, kw, cin, cout))
            / jnp.sqrt(fan_in)).astype(jnp.float32)


def init_resnet_params(key, m_channels, feat_dim, embedding_size, num_blocks):
    keys = iter(jax.random.split(key, 256))
    params = {}
    params['conv1_w'] = _conv_w(next(keys), 3, 3, 1, m_channels)
    params['bn1'] = _fold_bn(next(keys), m_channels)

    in_planes = m_channels
    layers = []
    for mult, nblk, stride0 in zip((1, 2, 4, 8), num_blocks, (1, 2, 2, 2)):
        planes = m_channels * mult
        strides = [stride0] + [1] * (nblk - 1)
        blocks = []
        for s in strides:
            blk = {'stride': s}
            blk['w1'] = _conv_w(next(keys), 3, 3, in_planes, planes)
            blk['scale1'], blk['bias1'] = _fold_bn(next(keys), planes)
            blk['w2'] = _conv_w(next(keys), 3, 3, planes, planes)
            blk['scale2'], blk['bias2'] = _fold_bn(next(keys), planes)
            if s != 1 or in_planes != planes:
                blk['sc_w'] = _conv_w(next(keys), 1, 1, in_planes, planes)
                blk['sc_scale'], blk['sc_bias'] = _fold_bn(next(keys), planes)
            blocks.append(blk)
            in_planes = planes
        layers.append(blocks)
    params['layers'] = layers

    stats_dim = (feat_dim // 8) * m_channels * 8
    in_dim = stats_dim * 2                           # TSTP -> mean ++ std
    E = embedding_size
    params['seg1_w'] = (jax.random.normal(next(keys), (in_dim, E))
                        / jnp.sqrt(in_dim)).astype(jnp.float32)
    params['seg1_b'] = (0.01 * jax.random.normal(next(keys), (E,))).astype(jnp.float32)
    k1, k2 = jax.random.split(next(keys))
    rmean = 0.1 * jax.random.normal(k1, (E,))
    rvar = jax.random.uniform(k2, (E,), minval=0.5, maxval=1.5)
    bns = 1.0 / jnp.sqrt(rvar + EPS_BN)              # BatchNorm1d, affine=False
    params['segbn_scale'] = bns.astype(jnp.float32)
    params['segbn_bias'] = (-rmean * bns).astype(jnp.float32)
    params['seg2_w'] = (jax.random.normal(next(keys), (E, E))
                        / jnp.sqrt(E)).astype(jnp.float32)
    params['seg2_b'] = (0.01 * jax.random.normal(next(keys), (E,))).astype(jnp.float32)
    return params


# ---------------------------- main ----------------------------

if __name__ == "__main__":
    B, T, FEAT = 2, 32, 16          # small but structure-consistent (feat_dim % 8 == 0)
    M_CH, EMB = 8, 64
    NUM_BLOCKS = (1, 2, 1, 1)       # exercises stride-1 identity AND stride-2 projection blocks

    key = jax.random.PRNGKey(0)
    kx, kp = jax.random.split(key)
    x = jax.random.normal(kx, (B, T, FEAT), dtype=jnp.float32)
    params = init_resnet_params(kp, m_channels=M_CH, feat_dim=FEAT,
                                embedding_size=EMB, num_blocks=NUM_BLOCKS)

    fwd = jax.jit(lambda inp: resnet_forward(inp, params))
    out = fwd(x)
    jax.block_until_ready(out)
    assert out.shape == (B, EMB), out.shape
    print("KERNEL_OK")
</pallas_src>

<mosaic_0001>
module attributes {stable_mosaic.version = 11 : i64} {
  func.func @_conv_bn_kernel(%arg0: i32, %arg1: memref<1x1x646xbf16, #tpu.memory_space<vmem>>, %arg2: memref<1x8x9xbf16, #tpu.memory_space<vmem>>, %arg3: memref<8x1xf32, #tpu.memory_space<vmem>>, %arg4: memref<8x1xf32, #tpu.memory_space<vmem>>, %arg5: memref<1x8x646xbf16, #tpu.memory_space<vmem>>) attributes {dimension_semantics = [#tpu.dimension_semantics<parallel>], iteration_bounds = array<i64: 2>, scalar_prefetch = 0 : i64, scratch_operands = 0 : i64, tpu.core_type = #tpu.core_type<tc>, window_params = [{transform_indices = @transform_0, window_bounds = array<i64: 1, 1, 646>}, {pipeline_mode = #tpu.pipeline_mode<synchronous>, transform_indices = @transform_1, window_bounds = array<i64: 1, 8, 9>}, {pipeline_mode = #tpu.pipeline_mode<synchronous>, transform_indices = @transform_2, window_bounds = array<i64: 8, 1>}, {pipeline_mode = #tpu.pipeline_mode<synchronous>, transform_indices = @transform_3, window_bounds = array<i64: 8, 1>}, {transform_indices = @transform_4, window_bounds = array<i64: 1, 8, 646>}]} {
    %c0 = arith.constant 0 : index
    %c0_0 = arith.constant 0 : index
    %c0_1 = arith.constant 0 : index
    %0 = vector.load %arg1[%c0, %c0_0, %c0_1] : memref<1x1x646xbf16, #tpu.memory_space<vmem>>, vector<1x1x544xbf16>
    %1 = vector.shape_cast %0 : vector<1x1x544xbf16> to vector<1x544xbf16>
    %c0_2 = arith.constant 0 : index
    %c0_3 = arith.constant 0 : index
    %c1 = arith.constant 1 : index
    %2 = vector.load %arg1[%c0_2, %c0_3, %c1] : memref<1x1x646xbf16, #tpu.memory_space<vmem>>, vector<1x1x544xbf16>
    %3 = vector.shape_cast %2 : vector<1x1x544xbf16> to vector<1x544xbf16>
    %c0_4 = arith.constant 0 : index
    %c0_5 = arith.constant 0 : index
    %c2 = arith.constant 2 : index
    %4 = vector.load %arg1[%c0_4, %c0_5, %c2] : memref<1x1x646xbf16, #tpu.memory_space<vmem>>, vector<1x1x544xbf16>
    %5 = vector.shape_cast %4 : vector<1x1x544xbf16> to vector<1x544xbf16>
    %c0_6 = arith.constant 0 : index
    %c0_7 = arith.constant 0 : index
    %c34 = arith.constant 34 : index
    %6 = vector.load %arg1[%c0_6, %c0_7, %c34] : memref<1x1x646xbf16, #tpu.memory_space<vmem>>, vector<1x1x544xbf16>
    %7 = vector.shape_cast %6 : vector<1x1x544xbf16> to vector<1x544xbf16>
    %c0_8 = arith.constant 0 : index
    %c0_9 = arith.constant 0 : index
    %c35 = arith.constant 35 : index
    %8 = vector.load %arg1[%c0_8, %c0_9, %c35] : memref<1x1x646xbf16, #tpu.memory_space<vmem>>, vector<1x1x544xbf16>
    %9 = vector.shape_cast %8 : vector<1x1x544xbf16> to vector<1x544xbf16>
    %c0_10 = arith.constant 0 : index
    %c0_11 = arith.constant 0 : index
    %c36 = arith.constant 36 : index
    %10 = vector.load %arg1[%c0_10, %c0_11, %c36] : memref<1x1x646xbf16, #tpu.memory_space<vmem>>, vector<1x1x544xbf16>
    %11 = vector.shape_cast %10 : vector<1x1x544xbf16> to vector<1x544xbf16>
    %c0_12 = arith.constant 0 : index
    %c0_13 = arith.constant 0 : index
    %c68 = arith.constant 68 : index
    %12 = vector.load %arg1[%c0_12, %c0_13, %c68] : memref<1x1x646xbf16, #tpu.memory_space<vmem>>, vector<1x1x544xbf16>
    %13 = vector.shape_cast %12 : vector<1x1x544xbf16> to vector<1x544xbf16>
    %c0_14 = arith.constant 0 : index
    %c0_15 = arith.constant 0 : index
    %c69 = arith.constant 69 : index
    %14 = vector.load %arg1[%c0_14, %c0_15, %c69] : memref<1x1x646xbf16, #tpu.memory_space<vmem>>, vector<1x1x544xbf16>
    %15 = vector.shape_cast %14 : vector<1x1x544xbf16> to vector<1x544xbf16>
    %c0_16 = arith.constant 0 : index
    %c0_17 = arith.constant 0 : index
    %c70 = arith.constant 70 : index
    %16 = vector.load %arg1[%c0_16, %c0_17, %c70] : memref<1x1x646xbf16, #tpu.memory_space<vmem>>, vector<1x1x544xbf16>
    %17 = vector.shape_cast %16 : vector<1x1x544xbf16> to vector<1x544xbf16>
    %18 = tpu.concatenate %1, %3, %5, %7, %9, %11, %13, %15, %17 in 0 : vector<1x544xbf16>, vector<1x544xbf16>, vector<1x544xbf16>, vector<1x544xbf16>, vector<1x544xbf16>, vector<1x544xbf16>, vector<1x544xbf16>, vector<1x544xbf16>, vector<1x544xbf16> -> vector<9x544xbf16>
    %c0_18 = arith.constant 0 : index
    %c0_19 = arith.constant 0 : index
    %c0_20 = arith.constant 0 : index
    %19 = vector.load %arg2[%c0_18, %c0_19, %c0_20] : memref<1x8x9xbf16, #tpu.memory_space<vmem>>, vector<1x8x9xbf16>
    %20 = vector.shape_cast %19 : vector<1x8x9xbf16> to vector<8x9xbf16>
    %cst = arith.constant dense<0.000000e+00> : vector<8x544xf32>
    %21 = tpu.matmul %20, %18, %cst {dimension_numbers = #tpu.dot_dimension_numbers<[1], [0], [0], [1], [0, 0, 1, 1], [], []>} : vector<8x9xbf16>, vector<9x544xbf16>, vector<8x544xf32> -> vector<8x544xf32>
    %c0_21 = arith.constant 0 : index
    %c0_22 = arith.constant 0 : index
    %22 = vector.load %arg3[%c0_21, %c0_22] : memref<8x1xf32, #tpu.memory_space<vmem>>, vector<8x1xf32>
    %23 = vector.broadcast %22 : vector<8x1xf32> to vector<8x544xf32>
    %24 = arith.mulf %21, %23 : vector<8x544xf32>
    %c0_23 = arith.constant 0 : index
    %c0_24 = arith.constant 0 : index
    %25 = vector.load %arg4[%c0_23, %c0_24] : memref<8x1xf32, #tpu.memory_space<vmem>>, vector<8x1xf32>
    %26 = vector.broadcast %25 : vector<8x1xf32> to vector<8x544xf32>
    %27 = arith.addf %24, %26 : vector<8x544xf32>
    %cst_25 = arith.constant 0.000000e+00 : f32
    %28 = vector.broadcast %cst_25 : f32 to vector<8x544xf32>
    %29 = arith.maximumf %27, %28 : vector<8x544xf32>
    %30 = tpu.iota {dimensions = array<i32: 1>} : vector<1x544xi32>
    %c34_i32 = arith.constant 34 : i32
    %c0_i32 = arith.constant 0 : i32
    %31 = arith.cmpi eq, %c34_i32, %c0_i32 : i32
    %c1_i32 = arith.constant 1 : i32
    %32 = arith.select %31, %c1_i32, %c34_i32 : i32
    %33 = vector.broadcast %32 : i32 to vector<1x544xi32>
    %34 = arith.remsi %30, %33 : vector<1x544xi32>
    %c0_i32_26 = arith.constant 0 : i32
    %35 = vector.broadcast %c0_i32_26 : i32 to vector<1x544xi32>
    %36 = arith.cmpi ne, %34, %35 : vector<1x544xi32>
    %c0_i32_27 = arith.constant 0 : i32
    %37 = vector.broadcast %c0_i32_27 : i32 to vector<1x544xi32>
    %38 = arith.cmpi slt, %34, %37 : vector<1x544xi32>
    %c0_i32_28 = arith.constant 0 : i32
    %39 = arith.cmpi slt, %32, %c0_i32_28 : i32
    %40 = vector.broadcast %39 : i1 to vector<1x544xi1>
    %41 = vector.broadcast %40 : vector<1x544xi1> to vector<1x544xi1>
    %42 = arith.xori %38, %41 : vector<1x544xi1>
    %43 = arith.andi %42, %36 : vector<1x544xi1>
    %44 = vector.broadcast %32 : i32 to vector<1x544xi32>
    %45 = arith.addi %34, %44 : vector<1x544xi32>
    %46 = arith.select %43, %45, %34 : vector<1x544xi1>, vector<1x544xi32>
    %c32_i32 = arith.constant 32 : i32
    %47 = vector.broadcast %c32_i32 : i32 to vector<1x544xi32>
    %48 = arith.cmpi slt, %46, %47 : vector<1x544xi32>
    %cst_29 = arith.constant 0.000000e+00 : f32
    %49 = vector.shape_cast %48 : vector<1x544xi1> to vector<1x544xi1>
    %50 = vector.broadcast %49 : vector<1x544xi1> to vector<8x544xi1>
    %51 = vector.broadcast %cst_29 : f32 to vector<8x544xf32>
    %52 = arith.select %50, %29, %51 : vector<8x544xi1>, vector<8x544xf32>
    %53 = arith.truncf %52 : vector<8x544xf32> to vector<8x544xbf16>
    %cst_30 = arith.constant 0.000000e+00 : bf16
    %54 = vector.broadcast %cst_30 : bf16 to vector<8x35xbf16>
    %c0_31 = arith.constant 0 : index
    %c0_32 = arith.constant 0 : index
    %c0_33 = arith.constant 0 : index
    %55 = vector.load %arg5[%c0_31, %c0_32, %c0_33] : memref<1x8x646xbf16, #tpu.memory_space<vmem>>, vector<1x8x35xbf16>
    %56 = vector.shape_cast %55 : vector<1x8x35xbf16> to vector<8x35xbf16>
    %57 = vector.shape_cast %54 : vector<8x35xbf16> to vector<1x8x35xbf16>
    tpu.vector_store %arg5[%c0_31, %c0_32, %c0_33], %57 {strides = array<i32>} : memref<1x8x646xbf16, #tpu.memory_space<vmem>>, vector<1x8x35xbf16>,
    %c0_34 = arith.constant 0 : index
    %c0_35 = arith.constant 0 : index
    %c35_36 = arith.constant 35 : index
    %58 = vector.load %arg5[%c0_34, %c0_35, %c35_36] : memref<1x8x646xbf16, #tpu.memory_space<vmem>>, vector<1x8x544xbf16>
    %59 = vector.shape_cast %58 : vector<1x8x544xbf16> to vector<8x544xbf16>
    %60 = vector.shape_cast %53 : vector<8x544xbf16> to vector<1x8x544xbf16>
    tpu.vector_store %arg5[%c0_34, %c0_35, %c35_36], %60 {strides = array<i32>} : memref<1x8x646xbf16, #tpu.memory_space<vmem>>, vector<1x8x544xbf16>,
    %cst_37 = arith.constant 0.000000e+00 : bf16
    %61 = vector.broadcast %cst_37 : bf16 to vector<8x67xbf16>
    %c0_38 = arith.constant 0 : index
    %c0_39 = arith.constant 0 : index
    %c579 = arith.constant 579 : index
    %62 = vector.load %arg5[%c0_38, %c0_39, %c579] : memref<1x8x646xbf16, #tpu.memory_space<vmem>>, vector<1x8x67xbf16>
    %63 = vector.shape_cast %62 : vector<1x8x67xbf16> to vector<8x67xbf16>
    %64 = vector.shape_cast %61 : vector<8x67xbf16> to vector<1x8x67xbf16>
    tpu.vector_store %arg5[%c0_38, %c0_39, %c579], %64 {strides = array<i32>} : memref<1x8x646xbf16, #tpu.memory_space<vmem>>, vector<1x8x67xbf16>,
    return
  }
  func.func @transform_0(%arg0: i32) -> (i32, i32, i32) {
    %c0_i32 = arith.constant 0 : i32
    %c0_i32_0 = arith.constant 0 : i32
    %c0_i32_1 = arith.constant 0 : i32
    return %arg0, %c0_i32, %c0_i32_0 : i32, i32, i32
  }
  func.func @transform_1(%arg0: i32) -> (i32, i32, i32) {
    %c0_i32 = arith.constant 0 : i32
    %c0_i32_0 = arith.constant 0 : i32
    %c0_i32_1 = arith.constant 0 : i32
    %c0_i32_2 = arith.constant 0 : i32
    return %c0_i32, %c0_i32_0, %c0_i32_1 : i32, i32, i32
  }
  func.func @transform_2(%arg0: i32) -> (i32, i32) {
    %c0_i32 = arith.constant 0 : i32
    %c0_i32_0 = arith.constant 0 : i32
    %c0_i32_1 = arith.constant 0 : i32
    return %c0_i32, %c0_i32_0 : i32, i32
  }
  func.func @transform_3(%arg0: i32) -> (i32, i32) {
    %c0_i32 = arith.constant 0 : i32
    %c0_i32_0 = arith.constant 0 : i32
    %c0_i32_1 = arith.constant 0 : i32
    return %c0_i32, %c0_i32_0 : i32, i32
  }
  func.func @transform_4(%arg0: i32) -> (i32, i32, i32) {
    %c0_i32 = arith.constant 0 : i32
    %c0_i32_0 = arith.constant 0 : i32
    %c0_i32_1 = arith.constant 0 : i32
    return %arg0, %c0_i32, %c0_i32_0 : i32, i32, i32
  }
}

module attributes {stable_mosaic.version = 11 : i64} {
  func.func @_block_s1_kernel(%arg0: i32, %arg1: memref<1x8x646xbf16, #tpu.memory_space<vmem>>, %arg2: memref<1x8x72xbf16, #tpu.memory_space<vmem>>, %arg3: memref<8x1xf32, #tpu.memory_space<vmem>>, %arg4: memref<8x1xf32, #tpu.memory_space<vmem>>, %arg5: memref<1x8x72xbf16, #tpu.memory_space<vmem>>, %arg6: memref<8x1xf32, #tpu.memory_space<vmem>>, %arg7: memref<8x1xf32, #tpu.memory_space<vmem>>, %arg8: memref<1x8x646xbf16, #tpu.memory_space<vmem>>, %arg9: memref<8x646xbf16, #tpu.memory_space<vmem>>) attributes {dimension_semantics = [#tpu.dimension_semantics<parallel>], iteration_bounds = array<i64: 2>, scalar_prefetch = 0 : i64, scratch_operands = 1 : i64, tpu.core_type = #tpu.core_type<tc>, window_params = [{transform_indices = @transform_0, window_bounds = array<i64: 1, 8, 646>}, {pipeline_mode = #tpu.pipeline_mode<synchronous>, transform_indices = @transform_1, window_bounds = array<i64: 1, 8, 72>}, {pipeline_mode = #tpu.pipeline_mode<synchronous>, transform_indices = @transform_2, window_bounds = array<i64: 8, 1>}, {pipeline_mode = #tpu.pipeline_mode<synchronous>, transform_indices = @transform_3, window_bounds = array<i64: 8, 1>}, {pipeline_mode = #tpu.pipeline_mode<synchronous>, transform_indices = @transform_4, window_bounds = array<i64: 1, 8, 72>}, {pipeline_mode = #tpu.pipeline_mode<synchronous>, transform_indices = @transform_5, window_bounds = array<i64: 8, 1>}, {pipeline_mode = #tpu.pipeline_mode<synchronous>, transform_indices = @transform_6, window_bounds = array<i64: 8, 1>}, {transform_indices = @transform_7, window_bounds = array<i64: 1, 8, 646>}]} {
    %c0 = arith.constant 0 : index
    %c0_0 = arith.constant 0 : index
    %c0_1 = arith.constant 0 : index
    %0 = vector.load %arg1[%c0, %c0_0, %c0_1] : memref<1x8x646xbf16, #tpu.memory_space<vmem>>, vector<1x8x544xbf16>
    %1 = vector.shape_cast %0 : vector<1x8x544xbf16> to vector<8x544xbf16>
    %c0_2 = arith.constant 0 : index
    %c0_3 = arith.constant 0 : index
    %c1 = arith.constant 1 : index
    %2 = vector.load %arg1[%c0_2, %c0_3, %c1] : memref<1x8x646xbf16, #tpu.memory_space<vmem>>, vector<1x8x544xbf16>
    %3 = vector.shape_cast %2 : vector<1x8x544xbf16> to vector<8x544xbf16>
    %c0_4 = arith.constant 0 : index
    %c0_5 = arith.constant 0 : index
    %c2 = arith.constant 2 : index
    %4 = vector.load %arg1[%c0_4, %c0_5, %c2] : memref<1x8x646xbf16, #tpu.memory_space<vmem>>, vector<1x8x544xbf16>
    %5 = vector.shape_cast %4 : vector<1x8x544xbf16> to vector<8x544xbf16>
    %c0_6 = arith.constant 0 : index
    %c0_7 = arith.constant 0 : index
    %c34 = arith.constant 34 : index
    %6 = vector.load %arg1[%c0_6, %c0_7, %c34] : memref<1x8x646xbf16, #tpu.memory_space<vmem>>, vector<1x8x544xbf16>
    %7 = vector.shape_cast %6 : vector<1x8x544xbf16> to vector<8x544xbf16>
    %c0_8 = arith.constant 0 : index
    %c0_9 = arith.constant 0 : index
    %c35 = arith.constant 35 : index
    %8 = vector.load %arg1[%c0_8, %c0_9, %c35] : memref<1x8x646xbf16, #tpu.memory_space<vmem>>, vector<1x8x544xbf16>
    %9 = vector.shape_cast %8 : vector<1x8x544xbf16> to vector<8x544xbf16>
    %c0_10 = arith.constant 0 : index
    %c0_11 = arith.constant 0 : index
    %c36 = arith.constant 36 : index
    %10 = vector.load %arg1[%c0_10, %c0_11, %c36] : memref<1x8x646xbf16, #tpu.memory_space<vmem>>, vector<1x8x544xbf16>
    %11 = vector.shape_cast %10 : vector<1x8x544xbf16> to vector<8x544xbf16>
    %c0_12 = arith.constant 0 : index
    %c0_13 = arith.constant 0 : index
    %c68 = arith.constant 68 : index
    %12 = vector.load %arg1[%c0_12, %c0_13, %c68] : memref<1x8x646xbf16, #tpu.memory_space<vmem>>, vector<1x8x544xbf16>
    %13 = vector.shape_cast %12 : vector<1x8x544xbf16> to vector<8x544xbf16>
    %c0_14 = arith.constant 0 : index
    %c0_15 = arith.constant 0 : index
    %c69 = arith.constant 69 : index
    %14 = vector.load %arg1[%c0_14, %c0_15, %c69] : memref<1x8x646xbf16, #tpu.memory_space<vmem>>, vector<1x8x544xbf16>
    %15 = vector.shape_cast %14 : vector<1x8x544xbf16> to vector<8x544xbf16>
    %c0_16 = arith.constant 0 : index
    %c0_17 = arith.constant 0 : index
    %c70 = arith.constant 70 : index
    %16 = vector.load %arg1[%c0_16, %c0_17, %c70] : memref<1x8x646xbf16, #tpu.memory_space<vmem>>, vector<1x8x544xbf16>
    %17 = vector.shape_cast %16 : vector<1x8x544xbf16> to vector<8x544xbf16>
    %18 = tpu.concatenate %1, %3, %5, %7, %9, %11, %13, %15, %17 in 0 : vector<8x544xbf16>, vector<8x544xbf16>, vector<8x544xbf16>, vector<8x544xbf16>, vector<8x544xbf16>, vector<8x544xbf16>, vector<8x544xbf16>, vector<8x544xbf16>, vector<8x544xbf16> -> vector<72x544xbf16>
    %c0_18 = arith.constant 0 : index
    %c0_19 = arith.constant 0 : index
    %c0_20 = arith.constant 0 : index
    %19 = vector.load %arg2[%c0_18, %c0_19, %c0_20] : memref<1x8x72xbf16, #tpu.memory_space<vmem>>, vector<1x8x72xbf16>
    %20 = vector.shape_cast %19 : vector<1x8x72xbf16> to vector<8x72xbf16>
    %cst = arith.constant dense<0.000000e+00> : vector<8x544xf32>
    %21 = tpu.matmul %20, %18, %cst {dimension_numbers = #tpu.dot_dimension_numbers<[1], [0], [0], [1], [0, 0, 1, 1], [], []>} : vector<8x72xbf16>, vector<72x544xbf16>, vector<8x544xf32> -> vector<8x544xf32>
    %c0_21 = arith.constant 0 : index
    %c0_22 = arith.constant 0 : index
    %22 = vector.load %arg3[%c0_21, %c0_22] : memref<8x1xf32, #tpu.memory_space<vmem>>, vector<8x1xf32>
    %23 = vector.broadcast %22 : vector<8x1xf32> to vector<8x544xf32>
    %24 = arith.mulf %21, %23 : vector<8x544xf32>
    %c0_23 = arith.constant 0 : index
    %c0_24 = arith.constant 0 : index
    %25 = vector.load %arg4[%c0_23, %c0_24] : memref<8x1xf32, #tpu.memory_space<vmem>>, vector<8x1xf32>
    %26 = vector.broadcast %25 : vector<8x1xf32> to vector<8x544xf32>
    %27 = arith.addf %24, %26 : vector<8x544xf32>
    %cst_25 = arith.constant 0.000000e+00 : f32
    %28 = vector.broadcast %cst_25 : f32 to vector<8x544xf32>
    %29 = arith.maximumf %27, %28 : vector<8x544xf32>
    %30 = tpu.iota {dimensions = array<i32: 1>} : vector<1x544xi32>
    %c34_i32 = arith.constant 34 : i32
    %c0_i32 = arith.constant 0 : i32
    %31 = arith.cmpi eq, %c34_i32, %c0_i32 : i32
    %c1_i32 = arith.constant 1 : i32
    %32 = arith.select %31, %c1_i32, %c34_i32 : i32
    %33 = vector.broadcast %32 : i32 to vector<1x544xi32>
    %34 = arith.remsi %30, %33 : vector<1x544xi32>
    %c0_i32_26 = arith.constant 0 : i32
    %35 = vector.broadcast %c0_i32_26 : i32 to vector<1x544xi32>
    %36 = arith.cmpi ne, %34, %35 : vector<1x544xi32>
    %c0_i32_27 = arith.constant 0 : i32
    %37 = vector.broadcast %c0_i32_27 : i32 to vector<1x544xi32>
    %38 = arith.cmpi slt, %34, %37 : vector<1x544xi32>
    %c0_i32_28 = arith.constant 0 : i32
    %39 = arith.cmpi slt, %32, %c0_i32_28 : i32
    %40 = vector.broadcast %39 : i1 to vector<1x544xi1>
    %41 = vector.broadcast %40 : vector<1x544xi1> to vector<1x544xi1>
    %42 = arith.xori %38, %41 : vector<1x544xi1>
    %43 = arith.andi %42, %36 : vector<1x544xi1>
    %44 = vector.broadcast %32 : i32 to vector<1x544xi32>
    %45 = arith.addi %34, %44 : vector<1x544xi32>
    %46 = arith.select %43, %45, %34 : vector<1x544xi1>, vector<1x544xi32>
    %c32_i32 = arith.constant 32 : i32
    %47 = vector.broadcast %c32_i32 : i32 to vector<1x544xi32>
    %48 = arith.cmpi slt, %46, %47 : vector<1x544xi32>
    %cst_29 = arith.constant 0.000000e+00 : f32
    %49 = vector.shape_cast %48 : vector<1x544xi1> to vector<1x544xi1>
    %50 = vector.broadcast %49 : vector<1x544xi1> to vector<8x544xi1>
    %51 = vector.broadcast %cst_29 : f32 to vector<8x544xf32>
    %52 = arith.select %50, %29, %51 : vector<8x544xi1>, vector<8x544xf32>
    %53 = arith.truncf %52 : vector<8x544xf32> to vector<8x544xbf16>
    %cst_30 = arith.constant 0.000000e+00 : bf16
    %54 = vector.broadcast %cst_30 : bf16 to vector<8x35xbf16>
    %c0_31 = arith.constant 0 : index
    %c0_32 = arith.constant 0 : index
    %55 = vector.load %arg9[%c0_31, %c0_32] : memref<8x646xbf16, #tpu.memory_space<vmem>>, vector<8x35xbf16>
    tpu.vector_store %arg9[%c0_31, %c0_32], %54 {strides = array<i32>} : memref<8x646xbf16, #tpu.memory_space<vmem>>, vector<8x35xbf16>,
    %c0_33 = arith.constant 0 : index
    %c35_34 = arith.constant 35 : index
    %56 = vector.load %arg9[%c0_33, %c35_34] : memref<8x646xbf16, #tpu.memory_space<vmem>>, vector<8x544xbf16>
    tpu.vector_store %arg9[%c0_33, %c35_34], %53 {strides = array<i32>} : memref<8x646xbf16, #tpu.memory_space<vmem>>, vector<8x544xbf16>,
    %cst_35 = arith.constant 0.000000e+00 : bf16
    %57 = vector.broadcast %cst_35 : bf16 to vector<8x67xbf16>
    %c0_36 = arith.constant 0 : index
    %c579 = arith.constant 579 : index
    %58 = vector.load %arg9[%c0_36, %c579] : memref<8x646xbf16, #tpu.memory_space<vmem>>, vector<8x67xbf16>
    tpu.vector_store %arg9[%c0_36, %c579], %57 {strides = array<i32>} : memref<8x646xbf16, #tpu.memory_space<vmem>>, vector<8x67xbf16>,
    %c0_37 = arith.constant 0 : index
    %c0_38 = arith.constant 0 : index
    %59 = vector.load %arg9[%c0_37, %c0_38] : memref<8x646xbf16, #tpu.memory_space<vmem>>, vector<8x544xbf16>
    %c0_39 = arith.constant 0 : index
    %c1_40 = arith.constant 1 : index
    %60 = vector.load %arg9[%c0_39, %c1_40] : memref<8x646xbf16, #tpu.memory_space<vmem>>, vector<8x544xbf16>
    %c0_41 = arith.constant 0 : index
    %c2_42 = arith.constant 2 : index
    %61 = vector.load %arg9[%c0_41, %c2_42] : memref<8x646xbf16, #tpu.memory_space<vmem>>, vector<8x544xbf16>
    %c0_43 = arith.constant 0 : index
    %c34_44 = arith.constant 34 : index
    %62 = vector.load %arg9[%c0_43, %c34_44] : memref<8x646xbf16, #tpu.memory_space<vmem>>, vector<8x544xbf16>
    %c0_45 = arith.constant 0 : index
    %c35_46 = arith.constant 35 : index
    %63 = vector.load %arg9[%c0_45, %c35_46] : memref<8x646xbf16, #tpu.memory_space<vmem>>, vector<8x544xbf16>
    %c0_47 = arith.constant 0 : index
    %c36_48 = arith.constant 36 : index
    %64 = vector.load %arg9[%c0_47, %c36_48] : memref<8x646xbf16, #tpu.memory_space<vmem>>, vector<8x544xbf16>
    %c0_49 = arith.constant 0 : index
    %c68_50 = arith.constant 68 : index
    %65 = vector.load %arg9[%c0_49, %c68_50] : memref<8x646xbf16, #tpu.memory_space<vmem>>, vector<8x544xbf16>
    %c0_51 = arith.constant 0 : index
    %c69_52 = arith.constant 69 : index
    %66 = vector.load %arg9[%c0_51, %c69_52] : memref<8x646xbf16, #tpu.memory_space<vmem>>, vector<8x544xbf16>
    %c0_53 = arith.constant 0 : index
    %c70_54 = arith.constant 70 : index
    %67 = vector.load %arg9[%c0_53, %c70_54] : memref<8x646xbf16, #tpu.memory_space<vmem>>, vector<8x544xbf16>
    %68 = tpu.concatenate %59, %60, %61, %62, %63, %64, %65, %66, %67 in 0 : vector<8x544xbf16>, vector<8x544xbf16>, vector<8x544xbf16>, vector<8x544xbf16>, vector<8x544xbf16>, vector<8x544xbf16>, vector<8x544xbf16>, vector<8x544xbf16>, vector<8x544xbf16> -> vector<72x544xbf16>
    %c0_55 = arith.constant 0 : index
    %c0_56 = arith.constant 0 : index
    %c0_57 = arith.constant 0 : index
    %69 = vector.load %arg5[%c0_55, %c0_56, %c0_57] : memref<1x8x72xbf16, #tpu.memory_space<vmem>>, vector<1x8x72xbf16>
    %70 = vector.shape_cast %69 : vector<1x8x72xbf16> to vector<8x72xbf16>
    %cst_58 = arith.constant dense<0.000000e+00> : vector<8x544xf32>
    %71 = tpu.matmul %70, %68, %cst_58 {dimension_numbers = #tpu.dot_dimension_numbers<[1], [0], [0], [1], [0, 0, 1, 1], [], []>} : vector<8x72xbf16>, vector<72x544xbf16>, vector<8x544xf32> -> vector<8x544xf32>
    %c0_59 = arith.constant 0 : index
    %c0_60 = arith.constant 0 : index
    %72 = vector.load %arg6[%c0_59, %c0_60] : memref<8x1xf32, #tpu.memory_space<vmem>>, vector<8x1xf32>
    %73 = vector.broadcast %72 : vector<8x1xf32> to vector<8x544xf32>
    %74 = arith.mulf %71, %73 : vector<8x544xf32>
    %c0_61 = arith.constant 0 : index
    %c0_62 = arith.constant 0 : index
    %75 = vector.load %arg7[%c0_61, %c0_62] : memref<8x1xf32, #tpu.memory_space<vmem>>, vector<8x1xf32>
    %76 = vector.broadcast %75 : vector<8x1xf32> to vector<8x544xf32>
    %77 = arith.addf %74, %76 : vector<8x544xf32>
    %c0_63 = arith.constant 0 : index
    %c0_64 = arith.constant 0 : index
    %c35_65 = arith.constant 35 : index
    %78 = vector.load %arg1[%c0_63, %c0_64, %c35_65] : memref<1x8x646xbf16, #tpu.memory_space<vmem>>, vector<1x8x544xbf16>
    %79 = vector.shape_cast %78 : vector<1x8x544xbf16> to vector<8x544xbf16>
    %80 = arith.extf %79 : vector<8x544xbf16> to vector<8x544xf32>
    %81 = arith.addf %77, %80 : vector<8x544xf32>
    %cst_66 = arith.constant 0.000000e+00 : f32
    %82 = vector.broadcast %cst_66 : f32 to vector<8x544xf32>
    %83 = arith.maximumf %81, %82 : vector<8x544xf32>
    %84 = tpu.iota {dimensions = array<i32: 1>} : vector<1x544xi32>
    %c34_i32_67 = arith.constant 34 : i32
    %c0_i32_68 = arith.constant 0 : i32
    %85 = arith.cmpi eq, %c34_i32_67, %c0_i32_68 : i32
    %c1_i32_69 = arith.constant 1 : i32
    %86 = arith.select %85, %c1_i32_69, %c34_i32_67 : i32
    %87 = vector.broadcast %86 : i32 to vector<1x544xi32>
    %88 = arith.remsi %84, %87 : vector<1x544xi32>
    %c0_i32_70 = arith.constant 0 : i32
    %89 = vector.broadcast %c0_i32_70 : i32 to vector<1x544xi32>
    %90 = arith.cmpi ne, %88, %89 : vector<1x544xi32>
    %c0_i32_71 = arith.constant 0 : i32
    %91 = vector.broadcast %c0_i32_71 : i32 to vector<1x544xi32>
    %92 = arith.cmpi slt, %88, %91 : vector<1x544xi32>
    %c0_i32_72 = arith.constant 0 : i32
    %93 = arith.cmpi slt, %86, %c0_i32_72 : i32
    %94 = vector.broadcast %93 : i1 to vector<1x544xi1>
    %95 = vector.broadcast %94 : vector<1x544xi1> to vector<1x544xi1>
    %96 = arith.xori %92, %95 : vector<1x544xi1>
    %97 = arith.andi %96, %90 : vector<1x544xi1>
    %98 = vector.broadcast %86 : i32 to vector<1x544xi32>
    %99 = arith.addi %88, %98 : vector<1x544xi32>
    %100 = arith.select %97, %99, %88 : vector<1x544xi1>, vector<1x544xi32>
    %c32_i32_73 = arith.constant 32 : i32
    %101 = vector.broadcast %c32_i32_73 : i32 to vector<1x544xi32>
    %102 = arith.cmpi slt, %100, %101 : vector<1x544xi32>
    %cst_74 = arith.constant 0.000000e+00 : f32
    %103 = vector.shape_cast %102 : vector<1x544xi1> to vector<1x544xi1>
    %104 = vector.broadcast %103 : vector<1x544xi1> to vector<8x544xi1>
    %105 = vector.broadcast %cst_74 : f32 to vector<8x544xf32>
    %106 = arith.select %104, %83, %105 : vector<8x544xi1>, vector<8x544xf32>
    %107 = arith.truncf %106 : vector<8x544xf32> to vector<8x544xbf16>
    %cst_75 = arith.constant 0.000000e+00 : bf16
    %108 = vector.broadcast %cst_75 : bf16 to vector<8x35xbf16>
    %c0_76 = arith.constant 0 : index
    %c0_77 = arith.constant 0 : index
    %c0_78 = arith.constant 0 : index
    %109 = vector.load %arg8[%c0_76, %c0_77, %c0_78] : memref<1x8x646xbf16, #tpu.memory_space<vmem>>, vector<1x8x35xbf16>
    %110 = vector.shape_cast %109 : vector<1x8x35xbf16> to vector<8x35xbf16>
    %111 = vector.shape_cast %108 : vector<8x35xbf16> to vector<1x8x35xbf16>
    tpu.vector_store %arg8[%c0_76, %c0_77, %c0_78], %111 {strides = array<i32>} : memref<1x8x646xbf16, #tpu.memory_space<vmem>>, vector<1x8x35xbf16>,
    %c0_79 = arith.constant 0 : index
    %c0_80 = arith.constant 0 : index
    %c35_81 = arith.constant 35 : index
    %112 = vector.load %arg8[%c0_79, %c0_80, %c35_81] : memref<1x8x646xbf16, #tpu.memory_space<vmem>>, vector<1x8x544xbf16>
    %113 = vector.shape_cast %112 : vector<1x8x544xbf16> to vector<8x544xbf16>
    %114 = vector.shape_cast %107 : vector<8x544xbf16> to vector<1x8x544xbf16>
    tpu.vector_store %arg8[%c0_79, %c0_80, %c35_81], %114 {strides = array<i32>} : memref<1x8x646xbf16, #tpu.memory_space<vmem>>, vector<1x8x544xbf16>,
    %cst_82 = arith.constant 0.000000e+00 : bf16
    %115 = vector.broadcast %cst_82 : bf16 to vector<8x67xbf16>
    %c0_83 = arith.constant 0 : index
    %c0_84 = arith.constant 0 : index
    %c579_85 = arith.constant 579 : index
    %116 = vector.load %arg8[%c0_83, %c0_84, %c579_85] : memref<1x8x646xbf16, #tpu.memory_space<vmem>>, vector<1x8x67xbf16>
    %117 = vector.shape_cast %116 : vector<1x8x67xbf16> to vector<8x67xbf16>
    %118 = vector.shape_cast %115 : vector<8x67xbf16> to vector<1x8x67xbf16>
    tpu.vector_store %arg8[%c0_83, %c0_84, %c579_85], %118 {strides = array<i32>} : memref<1x8x646xbf16, #tpu.memory_space<vmem>>, vector<1x8x67xbf16>,
    return
  }
  func.func @transform_0(%arg0: i32) -> (i32, i32, i32) {
    %c0_i32 = arith.constant 0 : i32
    %c0_i32_0 = arith.constant 0 : i32
    %c0_i32_1 = arith.constant 0 : i32
    return %arg0, %c0_i32, %c0_i32_0 : i32, i32, i32
  }
  func.func @transform_1(%arg0: i32) -> (i32, i32, i32) {
    %c0_i32 = arith.constant 0 : i32
    %c0_i32_0 = arith.constant 0 : i32
    %c0_i32_1 = arith.constant 0 : i32
    %c0_i32_2 = arith.constant 0 : i32
    return %c0_i32, %c0_i32_0, %c0_i32_1 : i32, i32, i32
  }
  func.func @transform_2(%arg0: i32) -> (i32, i32) {
    %c0_i32 = arith.constant 0 : i32
    %c0_i32_0 = arith.constant 0 : i32
    %c0_i32_1 = arith.constant 0 : i32
    return %c0_i32, %c0_i32_0 : i32, i32
  }
  func.func @transform_3(%arg0: i32) -> (i32, i32) {
    %c0_i32 = arith.constant 0 : i32
    %c0_i32_0 = arith.constant 0 : i32
    %c0_i32_1 = arith.constant 0 : i32
    return %c0_i32, %c0_i32_0 : i32, i32
  }
  func.func @transform_4(%arg0: i32) -> (i32, i32, i32) {
    %c0_i32 = arith.constant 0 : i32
    %c0_i32_0 = arith.constant 0 : i32
    %c0_i32_1 = arith.constant 0 : i32
    %c0_i32_2 = arith.constant 0 : i32
    return %c0_i32, %c0_i32_0, %c0_i32_1 : i32, i32, i32
  }
  func.func @transform_5(%arg0: i32) -> (i32, i32) {
    %c0_i32 = arith.constant 0 : i32
    %c0_i32_0 = arith.constant 0 : i32
    %c0_i32_1 = arith.constant 0 : i32
    return %c0_i32, %c0_i32_0 : i32, i32
  }
  func.func @transform_6(%arg0: i32) -> (i32, i32) {
    %c0_i32 = arith.constant 0 : i32
    %c0_i32_0 = arith.constant 0 : i32
    %c0_i32_1 = arith.constant 0 : i32
    return %c0_i32, %c0_i32_0 : i32, i32
  }
  func.func @transform_7(%arg0: i32) -> (i32, i32, i32) {
    %c0_i32 = arith.constant 0 : i32
    %c0_i32_0 = arith.constant 0 : i32
    %c0_i32_1 = arith.constant 0 : i32
    return %arg0, %c0_i32, %c0_i32_0 : i32, i32, i32
  }
}

module attributes {stable_mosaic.version = 11 : i64} {
  func.func @_block_s2_kernel(%arg0: i32, %arg1: memref<1x4x8x180xbf16, #tpu.memory_space<vmem>>, %arg2: memref<1x16x72xbf16, #tpu.memory_space<vmem>>, %arg3: memref<16x1xf32, #tpu.memory_space<vmem>>, %arg4: memref<16x1xf32, #tpu.memory_space<vmem>>, %arg5: memref<1x16x144xbf16, #tpu.memory_space<vmem>>, %arg6: memref<16x1xf32, #tpu.memory_space<vmem>>, %arg7: memref<16x1xf32, #tpu.memory_space<vmem>>, %arg8: memref<16x8xbf16, #tpu.memory_space<vmem>>, %arg9: memref<16x1xf32, #tpu.memory_space<vmem>>, %arg10: memref<16x1xf32, #tpu.memory_space<vmem>>, %arg11: memref<1x16x198xbf16, #tpu.memory_space<vmem>>, %arg12: memref<16x198xbf16, #tpu.memory_space<vmem>>) attributes {dimension_semantics = [#tpu.dimension_semantics<parallel>], iteration_bounds = array<i64: 2>, scalar_prefetch = 0 : i64, scratch_operands = 1 : i64, tpu.core_type = #tpu.core_type<tc>, window_params = [{transform_indices = @transform_0, window_bounds = array<i64: 1, 4, 8, 180>}, {pipeline_mode = #tpu.pipeline_mode<synchronous>, transform_indices = @transform_1, window_bounds = array<i64: 1, 16, 72>}, {pipeline_mode = #tpu.pipeline_mode<synchronous>, transform_indices = @transform_2, window_bounds = array<i64: 16, 1>}, {pipeline_mode = #tpu.pipeline_mode<synchronous>, transform_indices = @transform_3, window_bounds = array<i64: 16, 1>}, {pipeline_mode = #tpu.pipeline_mode<synchronous>, transform_indices = @transform_4, window_bounds = array<i64: 1, 16, 144>}, {pipeline_mode = #tpu.pipeline_mode<synchronous>, transform_indices = @transform_5, window_bounds = array<i64: 16, 1>}, {pipeline_mode = #tpu.pipeline_mode<synchronous>, transform_indices = @transform_6, window_bounds = array<i64: 16, 1>}, {pipeline_mode = #tpu.pipeline_mode<synchronous>, transform_indices = @transform_7, window_bounds = array<i64: 16, 8>}, {pipeline_mode = #tpu.pipeline_mode<synchronous>, transform_indices = @transform_8, window_bounds = array<i64: 16, 1>}, {pipeline_mode = #tpu.pipeline_mode<synchronous>, transform_indices = @transform_9, window_bounds = array<i64: 16, 1>}, {transform_indices = @transform_10, window_bounds = array<i64: 1, 16, 198>}]} {
    %c0 = arith.constant 0 : index
    %c0_0 = arith.constant 0 : index
    %c0_1 = arith.constant 0 : index
    %c0_2 = arith.constant 0 : index
    %0 = vector.load %arg1[%c0, %c0_0, %c0_1, %c0_2] : memref<1x4x8x180xbf16, #tpu.memory_space<vmem>>, vector<1x1x8x144xbf16>
    %1 = vector.shape_cast %0 : vector<1x1x8x144xbf16> to vector<8x144xbf16>
    %c0_3 = arith.constant 0 : index
    %c1 = arith.constant 1 : index
    %c0_4 = arith.constant 0 : index
    %c0_5 = arith.constant 0 : index
    %2 = vector.load %arg1[%c0_3, %c1, %c0_4, %c0_5] : memref<1x4x8x180xbf16, #tpu.memory_space<vmem>>, vector<1x1x8x144xbf16>
    %3 = vector.shape_cast %2 : vector<1x1x8x144xbf16> to vector<8x144xbf16>
    %c0_6 = arith.constant 0 : index
    %c0_7 = arith.constant 0 : index
    %c0_8 = arith.constant 0 : index
    %c1_9 = arith.constant 1 : index
    %4 = vector.load %arg1[%c0_6, %c0_7, %c0_8, %c1_9] : memref<1x4x8x180xbf16, #tpu.memory_space<vmem>>, vector<1x1x8x144xbf16>
    %5 = vector.shape_cast %4 : vector<1x1x8x144xbf16> to vector<8x144xbf16>
    %c0_10 = arith.constant 0 : index
    %c2 = arith.constant 2 : index
    %c0_11 = arith.constant 0 : index
    %c0_12 = arith.constant 0 : index
    %6 = vector.load %arg1[%c0_10, %c2, %c0_11, %c0_12] : memref<1x4x8x180xbf16, #tpu.memory_space<vmem>>, vector<1x1x8x144xbf16>
    %7 = vector.shape_cast %6 : vector<1x1x8x144xbf16> to vector<8x144xbf16>
    %c0_13 = arith.constant 0 : index
    %c3 = arith.constant 3 : index
    %c0_14 = arith.constant 0 : index
    %c0_15 = arith.constant 0 : index
    %8 = vector.load %arg1[%c0_13, %c3, %c0_14, %c0_15] : memref<1x4x8x180xbf16, #tpu.memory_space<vmem>>, vector<1x1x8x144xbf16>
    %9 = vector.shape_cast %8 : vector<1x1x8x144xbf16> to vector<8x144xbf16>
    %c0_16 = arith.constant 0 : index
    %c2_17 = arith.constant 2 : index
    %c0_18 = arith.constant 0 : index
    %c1_19 = arith.constant 1 : index
    %10 = vector.load %arg1[%c0_16, %c2_17, %c0_18, %c1_19] : memref<1x4x8x180xbf16, #tpu.memory_space<vmem>>, vector<1x1x8x144xbf16>
    %11 = vector.shape_cast %10 : vector<1x1x8x144xbf16> to vector<8x144xbf16>
    %c0_20 = arith.constant 0 : index
    %c0_21 = arith.constant 0 : index
    %c0_22 = arith.constant 0 : index
    %c18 = arith.constant 18 : index
    %12 = vector.load %arg1[%c0_20, %c0_21, %c0_22, %c18] : memref<1x4x8x180xbf16, #tpu.memory_space<vmem>>, vector<1x1x8x144xbf16>
    %13 = vector.shape_cast %12 : vector<1x1x8x144xbf16> to vector<8x144xbf16>
    %c0_23 = arith.constant 0 : index
    %c1_24 = arith.constant 1 : index
    %c0_25 = arith.constant 0 : index
    %c18_26 = arith.constant 18 : index
    %14 = vector.load %arg1[%c0_23, %c1_24, %c0_25, %c18_26] : memref<1x4x8x180xbf16, #tpu.memory_space<vmem>>, vector<1x1x8x144xbf16>
    %15 = vector.shape_cast %14 : vector<1x1x8x144xbf16> to vector<8x144xbf16>
    %c0_27 = arith.constant 0 : index
    %c0_28 = arith.constant 0 : index
    %c0_29 = arith.constant 0 : index
    %c19 = arith.constant 19 : index
    %16 = vector.load %arg1[%c0_27, %c0_28, %c0_29, %c19] : memref<1x4x8x180xbf16, #tpu.memory_space<vmem>>, vector<1x1x8x144xbf16>
    %17 = vector.shape_cast %16 : vector<1x1x8x144xbf16> to vector<8x144xbf16>
    %18 = tpu.concatenate %1, %3, %5, %7, %9, %11, %13, %15, %17 in 0 : vector<8x144xbf16>, vector<8x144xbf16>, vector<8x144xbf16>, vector<8x144xbf16>, vector<8x144xbf16>, vector<8x144xbf16>, vector<8x144xbf16>, vector<8x144xbf16>, vector<8x144xbf16> -> vector<72x144xbf16>
    %c0_30 = arith.constant 0 : index
    %c0_31 = arith.constant 0 : index
    %c0_32 = arith.constant 0 : index
    %19 = vector.load %arg2[%c0_30, %c0_31, %c0_32] : memref<1x16x72xbf16, #tpu.memory_space<vmem>>, vector<1x16x72xbf16>
    %20 = vector.shape_cast %19 : vector<1x16x72xbf16> to vector<16x72xbf16>
    %cst = arith.constant dense<0.000000e+00> : vector<16x144xf32>
    %21 = tpu.matmul %20, %18, %cst {dimension_numbers = #tpu.dot_dimension_numbers<[1], [0], [0], [1], [0, 0, 1, 1], [], []>} : vector<16x72xbf16>, vector<72x144xbf16>, vector<16x144xf32> -> vector<16x144xf32>
    %c0_33 = arith.constant 0 : index
    %c0_34 = arith.constant 0 : index
    %22 = vector.load %arg3[%c0_33, %c0_34] : memref<16x1xf32, #tpu.memory_space<vmem>>, vector<16x1xf32>
    %23 = vector.broadcast %22 : vector<16x1xf32> to vector<16x144xf32>
    %24 = arith.mulf %21, %23 : vector<16x144xf32>
    %c0_35 = arith.constant 0 : index
    %c0_36 = arith.constant 0 : index
    %25 = vector.load %arg4[%c0_35, %c0_36] : memref<16x1xf32, #tpu.memory_space<vmem>>, vector<16x1xf32>
    %26 = vector.broadcast %25 : vector<16x1xf32> to vector<16x144xf32>
    %27 = arith.addf %24, %26 : vector<16x144xf32>
    %cst_37 = arith.constant 0.000000e+00 : f32
    %28 = vector.broadcast %cst_37 : f32 to vector<16x144xf32>
    %29 = arith.maximumf %27, %28 : vector<16x144xf32>
    %30 = tpu.iota {dimensions = array<i32: 1>} : vector<1x144xi32>
    %c18_i32 = arith.constant 18 : i32
    %c0_i32 = arith.constant 0 : i32
    %31 = arith.cmpi eq, %c18_i32, %c0_i32 : i32
    %c1_i32 = arith.constant 1 : i32
    %32 = arith.select %31, %c1_i32, %c18_i32 : i32
    %33 = vector.broadcast %32 : i32 to vector<1x144xi32>
    %34 = arith.remsi %30, %33 : vector<1x144xi32>
    %c0_i32_38 = arith.constant 0 : i32
    %35 = vector.broadcast %c0_i32_38 : i32 to vector<1x144xi32>
    %36 = arith.cmpi ne, %34, %35 : vector<1x144xi32>
    %c0_i32_39 = arith.constant 0 : i32
    %37 = vector.broadcast %c0_i32_39 : i32 to vector<1x144xi32>
    %38 = arith.cmpi slt, %34, %37 : vector<1x144xi32>
    %c0_i32_40 = arith.constant 0 : i32
    %39 = arith.cmpi slt, %32, %c0_i32_40 : i32
    %40 = vector.broadcast %39 : i1 to vector<1x144xi1>
    %41 = vector.broadcast %40 : vector<1x144xi1> to vector<1x144xi1>
    %42 = arith.xori %38, %41 : vector<1x144xi1>
    %43 = arith.andi %42, %36 : vector<1x144xi1>
    %44 = vector.broadcast %32 : i32 to vector<1x144xi32>
    %45 = arith.addi %34, %44 : vector<1x144xi32>
    %46 = arith.select %43, %45, %34 : vector<1x144xi1>, vector<1x144xi32>
    %c16_i32 = arith.constant 16 : i32
    %47 = vector.broadcast %c16_i32 : i32 to vector<1x144xi32>
    %48 = arith.cmpi slt, %46, %47 : vector<1x144xi32>
    %cst_41 = arith.constant 0.000000e+00 : f32
    %49 = vector.shape_cast %48 : vector<1x144xi1> to vector<1x144xi1>
    %50 = vector.broadcast %49 : vector<1x144xi1> to vector<16x144xi1>
    %51 = vector.broadcast %cst_41 : f32 to vector<16x144xf32>
    %52 = arith.select %50, %29, %51 : vector<16x144xi1>, vector<16x144xf32>
    %53 = arith.truncf %52 : vector<16x144xf32> to vector<16x144xbf16>
    %cst_42 = arith.constant 0.000000e+00 : bf16
    %54 = vector.broadcast %cst_42 : bf16 to vector<16x19xbf16>
    %c0_43 = arith.constant 0 : index
    %c0_44 = arith.constant 0 : index
    %55 = vector.load %arg12[%c0_43, %c0_44] : memref<16x198xbf16, #tpu.memory_space<vmem>>, vector<16x19xbf16>
    tpu.vector_store %arg12[%c0_43, %c0_44], %54 {strides = array<i32>} : memref<16x198xbf16, #tpu.memory_space<vmem>>, vector<16x19xbf16>,
    %c0_45 = arith.constant 0 : index
    %c19_46 = arith.constant 19 : index
    %56 = vector.load %arg12[%c0_45, %c19_46] : memref<16x198xbf16, #tpu.memory_space<vmem>>, vector<16x144xbf16>
    tpu.vector_store %arg12[%c0_45, %c19_46], %53 {strides = array<i32>} : memref<16x198xbf16, #tpu.memory_space<vmem>>, vector<16x144xbf16>,
    %cst_47 = arith.constant 0.000000e+00 : bf16
    %57 = vector.broadcast %cst_47 : bf16 to vector<16x35xbf16>
    %c0_48 = arith.constant 0 : index
    %c163 = arith.constant 163 : index
    %58 = vector.load %arg12[%c0_48, %c163] : memref<16x198xbf16, #tpu.memory_space<vmem>>, vector<16x35xbf16>
    tpu.vector_store %arg12[%c0_48, %c163], %57 {strides = array<i32>} : memref<16x198xbf16, #tpu.memory_space<vmem>>, vector<16x35xbf16>,
    %c0_49 = arith.constant 0 : index
    %c0_50 = arith.constant 0 : index
    %59 = vector.load %arg12[%c0_49, %c0_50] : memref<16x198xbf16, #tpu.memory_space<vmem>>, vector<16x144xbf16>
    %c0_51 = arith.constant 0 : index
    %c1_52 = arith.constant 1 : index
    %60 = vector.load %arg12[%c0_51, %c1_52] : memref<16x198xbf16, #tpu.memory_space<vmem>>, vector<16x144xbf16>
    %c0_53 = arith.constant 0 : index
    %c2_54 = arith.constant 2 : index
    %61 = vector.load %arg12[%c0_53, %c2_54] : memref<16x198xbf16, #tpu.memory_space<vmem>>, vector<16x144xbf16>
    %c0_55 = arith.constant 0 : index
    %c18_56 = arith.constant 18 : index
    %62 = vector.load %arg12[%c0_55, %c18_56] : memref<16x198xbf16, #tpu.memory_space<vmem>>, vector<16x144xbf16>
    %c0_57 = arith.constant 0 : index
    %c19_58 = arith.constant 19 : index
    %63 = vector.load %arg12[%c0_57, %c19_58] : memref<16x198xbf16, #tpu.memory_space<vmem>>, vector<16x144xbf16>
    %c0_59 = arith.constant 0 : index
    %c20 = arith.constant 20 : index
    %64 = vector.load %arg12[%c0_59, %c20] : memref<16x198xbf16, #tpu.memory_space<vmem>>, vector<16x144xbf16>
    %c0_60 = arith.constant 0 : index
    %c36 = arith.constant 36 : index
    %65 = vector.load %arg12[%c0_60, %c36] : memref<16x198xbf16, #tpu.memory_space<vmem>>, vector<16x144xbf16>
    %c0_61 = arith.constant 0 : index
    %c37 = arith.constant 37 : index
    %66 = vector.load %arg12[%c0_61, %c37] : memref<16x198xbf16, #tpu.memory_space<vmem>>, vector<16x144xbf16>
    %c0_62 = arith.constant 0 : index
    %c38 = arith.constant 38 : index
    %67 = vector.load %arg12[%c0_62, %c38] : memref<16x198xbf16, #tpu.memory_space<vmem>>, vector<16x144xbf16>
    %68 = tpu.concatenate %59, %60, %61, %62, %63, %64, %65, %66, %67 in 0 : vector<16x144xbf16>, vector<16x144xbf16>, vector<16x144xbf16>, vector<16x144xbf16>, vector<16x144xbf16>, vector<16x144xbf16>, vector<16x144xbf16>, vector<16x144xbf16>, vector<16x144xbf16> -> vector<144x144xbf16>
    %c0_63 = arith.constant 0 : index
    %c0_64 = arith.constant 0 : index
    %c0_65 = arith.constant 0 : index
    %69 = vector.load %arg5[%c0_63, %c0_64, %c0_65] : memref<1x16x144xbf16, #tpu.memory_space<vmem>>, vector<1x16x144xbf16>
    %70 = vector.shape_cast %69 : vector<1x16x144xbf16> to vector<16x144xbf16>
    %cst_66 = arith.constant dense<0.000000e+00> : vector<16x144xf32>
    %71 = tpu.matmul %70, %68, %cst_66 {dimension_numbers = #tpu.dot_dimension_numbers<[1], [0], [0], [1], [0, 0, 1, 1], [], []>} : vector<16x144xbf16>, vector<144x144xbf16>, vector<16x144xf32> -> vector<16x144xf32>
    %c0_67 = arith.constant 0 : index
    %c0_68 = arith.constant 0 : index
    %72 = vector.load %arg6[%c0_67, %c0_68] : memref<16x1xf32, #tpu.memory_space<vmem>>, vector<16x1xf32>
    %73 = vector.broadcast %72 : vector<16x1xf32> to vector<16x144xf32>
    %74 = arith.mulf %71, %73 : vector<16x144xf32>
    %c0_69 = arith.constant 0 : index
    %c0_70 = arith.constant 0 : index
    %75 = vector.load %arg7[%c0_69, %c0_70] : memref<16x1xf32, #tpu.memory_space<vmem>>, vector<16x1xf32>
    %76 = vector.broadcast %75 : vector<16x1xf32> to vector<16x144xf32>
    %77 = arith.addf %74, %76 : vector<16x144xf32>
    %c0_71 = arith.constant 0 : index
    %c0_72 = arith.constant 0 : index
    %78 = vector.load %arg8[%c0_71, %c0_72] : memref<16x8xbf16, #tpu.memory_space<vmem>>, vector<16x8xbf16>
    %c0_73 = arith.constant 0 : index
    %c3_74 = arith.constant 3 : index
    %c0_75 = arith.constant 0 : index
    %c0_76 = arith.constant 0 : index
    %79 = vector.load %arg1[%c0_73, %c3_74, %c0_75, %c0_76] : memref<1x4x8x180xbf16, #tpu.memory_space<vmem>>, vector<1x1x8x144xbf16>
    %80 = vector.shape_cast %79 : vector<1x1x8x144xbf16> to vector<8x144xbf16>
    %cst_77 = arith.constant dense<0.000000e+00> : vector<16x144xf32>
    %81 = tpu.matmul %78, %80, %cst_77 {dimension_numbers = #tpu.dot_dimension_numbers<[1], [0], [0], [1], [0, 0, 1, 1], [], []>} : vector<16x8xbf16>, vector<8x144xbf16>, vector<16x144xf32> -> vector<16x144xf32>
    %c0_78 = arith.constant 0 : index
    %c0_79 = arith.constant 0 : index
    %82 = vector.load %arg9[%c0_78, %c0_79] : memref<16x1xf32, #tpu.memory_space<vmem>>, vector<16x1xf32>
    %83 = vector.broadcast %82 : vector<16x1xf32> to vector<16x144xf32>
    %84 = arith.mulf %81, %83 : vector<16x144xf32>
    %c0_80 = arith.constant 0 : index
    %c0_81 = arith.constant 0 : index
    %85 = vector.load %arg10[%c0_80, %c0_81] : memref<16x1xf32, #tpu.memory_space<vmem>>, vector<16x1xf32>
    %86 = vector.broadcast %85 : vector<16x1xf32> to vector<16x144xf32>
    %87 = arith.addf %84, %86 : vector<16x144xf32>
    %88 = arith.addf %77, %87 : vector<16x144xf32>
    %cst_82 = arith.constant 0.000000e+00 : f32
    %89 = vector.broadcast %cst_82 : f32 to vector<16x144xf32>
    %90 = arith.maximumf %88, %89 : vector<16x144xf32>
    %91 = tpu.iota {dimensions = array<i32: 1>} : vector<1x144xi32>
    %c18_i32_83 = arith.constant 18 : i32
    %c0_i32_84 = arith.constant 0 : i32
    %92 = arith.cmpi eq, %c18_i32_83, %c0_i32_84 : i32
    %c1_i32_85 = arith.constant 1 : i32
    %93 = arith.select %92, %c1_i32_85, %c18_i32_83 : i32
    %94 = vector.broadcast %93 : i32 to vector<1x144xi32>
    %95 = arith.remsi %91, %94 : vector<1x144xi32>
    %c0_i32_86 = arith.constant 0 : i32
    %96 = vector.broadcast %c0_i32_86 : i32 to vector<1x144xi32>
    %97 = arith.cmpi ne, %95, %96 : vector<1x144xi32>
    %c0_i32_87 = arith.constant 0 : i32
    %98 = vector.broadcast %c0_i32_87 : i32 to vector<1x144xi32>
    %99 = arith.cmpi slt, %95, %98 : vector<1x144xi32>
    %c0_i32_88 = arith.constant 0 : i32
    %100 = arith.cmpi slt, %93, %c0_i32_88 : i32
    %101 = vector.broadcast %100 : i1 to vector<1x144xi1>
    %102 = vector.broadcast %101 : vector<1x144xi1> to vector<1x144xi1>
    %103 = arith.xori %99, %102 : vector<1x144xi1>
    %104 = arith.andi %103, %97 : vector<1x144xi1>
    %105 = vector.broadcast %93 : i32 to vector<1x144xi32>
    %106 = arith.addi %95, %105 : vector<1x144xi32>
    %107 = arith.select %104, %106, %95 : vector<1x144xi1>, vector<1x144xi32>
    %c16_i32_89 = arith.constant 16 : i32
    %108 = vector.broadcast %c16_i32_89 : i32 to vector<1x144xi32>
    %109 = arith.cmpi slt, %107, %108 : vector<1x144xi32>
    %cst_90 = arith.constant 0.000000e+00 : f32
    %110 = vector.shape_cast %109 : vector<1x144xi1> to vector<1x144xi1>
    %111 = vector.broadcast %110 : vector<1x144xi1> to vector<16x144xi1>
    %112 = vector.broadcast %cst_90 : f32 to vector<16x144xf32>
    %113 = arith.select %111, %90, %112 : vector<16x144xi1>, vector<16x144xf32>
    %114 = arith.truncf %113 : vector<16x144xf32> to vector<16x144xbf16>
    %cst_91 = arith.constant 0.000000e+00 : bf16
    %115 = vector.broadcast %cst_91 : bf16 to vector<16x19xbf16>
    %c0_92 = arith.constant 0 : index
    %c0_93 = arith.constant 0 : index
    %c0_94 = arith.constant 0 : index
    %116 = vector.load %arg11[%c0_92, %c0_93, %c0_94] : memref<1x16x198xbf16, #tpu.memory_space<vmem>>, vector<1x16x19xbf16>
    %117 = vector.shape_cast %116 : vector<1x16x19xbf16> to vector<16x19xbf16>
    %118 = vector.shape_cast %115 : vector<16x19xbf16> to vector<1x16x19xbf16>
    tpu.vector_store %arg11[%c0_92, %c0_93, %c0_94], %118 {strides = array<i32>} : memref<1x16x198xbf16, #tpu.memory_space<vmem>>, vector<1x16x19xbf16>,
    %c0_95 = arith.constant 0 : index
    %c0_96 = arith.constant 0 : index
    %c19_97 = arith.constant 19 : index
    %119 = vector.load %arg11[%c0_95, %c0_96, %c19_97] : memref<1x16x198xbf16, #tpu.memory_space<vmem>>, vector<1x16x144xbf16>
    %120 = vector.shape_cast %119 : vector<1x16x144xbf16> to vector<16x144xbf16>
    %121 = vector.shape_cast %114 : vector<16x144xbf16> to vector<1x16x144xbf16>
    tpu.vector_store %arg11[%c0_95, %c0_96, %c19_97], %121 {strides = array<i32>} : memref<1x16x198xbf16, #tpu.memory_space<vmem>>, vector<1x16x144xbf16>,
    %cst_98 = arith.constant 0.000000e+00 : bf16
    %122 = vector.broadcast %cst_98 : bf16 to vector<16x35xbf16>
    %c0_99 = arith.constant 0 : index
    %c0_100 = arith.constant 0 : index
    %c163_101 = arith.constant 163 : index
    %123 = vector.load %arg11[%c0_99, %c0_100, %c163_101] : memref<1x16x198xbf16, #tpu.memory_space<vmem>>, vector<1x16x35xbf16>
    %124 = vector.shape_cast %123 : vector<1x16x35xbf16> to vector<16x35xbf16>
    %125 = vector.shape_cast %122 : vector<16x35xbf16> to vector<1x16x35xbf16>
    tpu.vector_store %arg11[%c0_99, %c0_100, %c163_101], %125 {strides = array<i32>} : memref<1x16x198xbf16, #tpu.memory_space<vmem>>, vector<1x16x35xbf16>,
    return
  }
  func.func @transform_0(%arg0: i32) -> (i32, i32, i32, i32) {
    %c0_i32 = arith.constant 0 : i32
    %c0_i32_0 = arith.constant 0 : i32
    %c0_i32_1 = arith.constant 0 : i32
    %c0_i32_2 = arith.constant 0 : i32
    return %arg0, %c0_i32, %c0_i32_0, %c0_i32_1 : i32, i32, i32, i32
  }
  func.func @transform_1(%arg0: i32) -> (i32, i32, i32) {
    %c0_i32 = arith.constant 0 : i32
    %c0_i32_0 = arith.constant 0 : i32
    %c0_i32_1 = arith.constant 0 : i32
    %c0_i32_2 = arith.constant 0 : i32
    return %c0_i32, %c0_i32_0, %c0_i32_1 : i32, i32, i32
  }
  func.func @transform_2(%arg0: i32) -> (i32, i32) {
    %c0_i32 = arith.constant 0 : i32
    %c0_i32_0 = arith.constant 0 : i32
    %c0_i32_1 = arith.constant 0 : i32
    return %c0_i32, %c0_i32_0 : i32, i32
  }
  func.func @transform_3(%arg0: i32) -> (i32, i32) {
    %c0_i32 = arith.constant 0 : i32
    %c0_i32_0 = arith.constant 0 : i32
    %c0_i32_1 = arith.constant 0 : i32
    return %c0_i32, %c0_i32_0 : i32, i32
  }
  func.func @transform_4(%arg0: i32) -> (i32, i32, i32) {
    %c0_i32 = arith.constant 0 : i32
    %c0_i32_0 = arith.constant 0 : i32
    %c0_i32_1 = arith.constant 0 : i32
    %c0_i32_2 = arith.constant 0 : i32
    return %c0_i32, %c0_i32_0, %c0_i32_1 : i32, i32, i32
  }
  func.func @transform_5(%arg0: i32) -> (i32, i32) {
    %c0_i32 = arith.constant 0 : i32
    %c0_i32_0 = arith.constant 0 : i32
    %c0_i32_1 = arith.constant 0 : i32
    return %c0_i32, %c0_i32_0 : i32, i32
  }
  func.func @transform_6(%arg0: i32) -> (i32, i32) {
    %c0_i32 = arith.constant 0 : i32
    %c0_i32_0 = arith.constant 0 : i32
    %c0_i32_1 = arith.constant 0 : i32
    return %c0_i32, %c0_i32_0 : i32, i32
  }
  func.func @transform_7(%arg0: i32) -> (i32, i32) {
    %c0_i32 = arith.constant 0 : i32
    %c0_i32_0 = arith.constant 0 : i32
    %c0_i32_1 = arith.constant 0 : i32
    return %c0_i32, %c0_i32_0 : i32, i32
  }
  func.func @transform_8(%arg0: i32) -> (i32, i32) {
    %c0_i32 = arith.constant 0 : i32
    %c0_i32_0 = arith.constant 0 : i32
    %c0_i32_1 = arith.constant 0 : i32
    return %c0_i32, %c0_i32_0 : i32, i32
  }
  func.func @transform_9(%arg0: i32) -> (i32, i32) {
    %c0_i32 = arith.constant 0 : i32
    %c0_i32_0 = arith.constant 0 : i32
    %c0_i32_1 = arith.constant 0 : i32
    return %c0_i32, %c0_i32_0 : i32, i32
  }
  func.func @transform_10(%arg0: i32) -> (i32, i32, i32) {
    %c0_i32 = arith.constant 0 : i32
    %c0_i32_0 = arith.constant 0 : i32
    %c0_i32_1 = arith.constant 0 : i32
    return %arg0, %c0_i32, %c0_i32_0 : i32, i32, i32
  }
}

module attributes {stable_mosaic.version = 11 : i64} {
  func.func @_block_s1_kernel(%arg0: i32, %arg1: memref<1x16x198xbf16, #tpu.memory_space<vmem>>, %arg2: memref<1x16x144xbf16, #tpu.memory_space<vmem>>, %arg3: memref<16x1xf32, #tpu.memory_space<vmem>>, %arg4: memref<16x1xf32, #tpu.memory_space<vmem>>, %arg5: memref<1x16x144xbf16, #tpu.memory_space<vmem>>, %arg6: memref<16x1xf32, #tpu.memory_space<vmem>>, %arg7: memref<16x1xf32, #tpu.memory_space<vmem>>, %arg8: memref<1x16x198xbf16, #tpu.memory_space<vmem>>, %arg9: memref<16x198xbf16, #tpu.memory_space<vmem>>) attributes {dimension_semantics = [#tpu.dimension_semantics<parallel>], iteration_bounds = array<i64: 2>, scalar_prefetch = 0 : i64, scratch_operands = 1 : i64, tpu.core_type = #tpu.core_type<tc>, window_params = [{transform_indices = @transform_0, window_bounds = array<i64: 1, 16, 198>}, {pipeline_mode = #tpu.pipeline_mode<synchronous>, transform_indices = @transform_1, window_bounds = array<i64: 1, 16, 144>}, {pipeline_mode = #tpu.pipeline_mode<synchronous>, transform_indices = @transform_2, window_bounds = array<i64: 16, 1>}, {pipeline_mode = #tpu.pipeline_mode<synchronous>, transform_indices = @transform_3, window_bounds = array<i64: 16, 1>}, {pipeline_mode = #tpu.pipeline_mode<synchronous>, transform_indices = @transform_4, window_bounds = array<i64: 1, 16, 144>}, {pipeline_mode = #tpu.pipeline_mode<synchronous>, transform_indices = @transform_5, window_bounds = array<i64: 16, 1>}, {pipeline_mode = #tpu.pipeline_mode<synchronous>, transform_indices = @transform_6, window_bounds = array<i64: 16, 1>}, {transform_indices = @transform_7, window_bounds = array<i64: 1, 16, 198>}]} {
    %c0 = arith.constant 0 : index
    %c0_0 = arith.constant 0 : index
    %c0_1 = arith.constant 0 : index
    %0 = vector.load %arg1[%c0, %c0_0, %c0_1] : memref<1x16x198xbf16, #tpu.memory_space<vmem>>, vector<1x16x144xbf16>
    %1 = vector.shape_cast %0 : vector<1x16x144xbf16> to vector<16x144xbf16>
    %c0_2 = arith.constant 0 : index
    %c0_3 = arith.constant 0 : index
    %c1 = arith.constant 1 : index
    %2 = vector.load %arg1[%c0_2, %c0_3, %c1] : memref<1x16x198xbf16, #tpu.memory_space<vmem>>, vector<1x16x144xbf16>
    %3 = vector.shape_cast %2 : vector<1x16x144xbf16> to vector<16x144xbf16>
    %c0_4 = arith.constant 0 : index
    %c0_5 = arith.constant 0 : index
    %c2 = arith.constant 2 : index
    %4 = vector.load %arg1[%c0_4, %c0_5, %c2] : memref<1x16x198xbf16, #tpu.memory_space<vmem>>, vector<1x16x144xbf16>
    %5 = vector.shape_cast %4 : vector<1x16x144xbf16> to vector<16x144xbf16>
    %c0_6 = arith.constant 0 : index
    %c0_7 = arith.constant 0 : index
    %c18 = arith.constant 18 : index
    %6 = vector.load %arg1[%c0_6, %c0_7, %c18] : memref<1x16x198xbf16, #tpu.memory_space<vmem>>, vector<1x16x144xbf16>
    %7 = vector.shape_cast %6 : vector<1x16x144xbf16> to vector<16x144xbf16>
    %c0_8 = arith.constant 0 : index
    %c0_9 = arith.constant 0 : index
    %c19 = arith.constant 19 : index
    %8 = vector.load %arg1[%c0_8, %c0_9, %c19] : memref<1x16x198xbf16, #tpu.memory_space<vmem>>, vector<1x16x144xbf16>
    %9 = vector.shape_cast %8 : vector<1x16x144xbf16> to vector<16x144xbf16>
    %c0_10 = arith.constant 0 : index
    %c0_11 = arith.constant 0 : index
    %c20 = arith.constant 20 : index
    %10 = vector.load %arg1[%c0_10, %c0_11, %c20] : memref<1x16x198xbf16, #tpu.memory_space<vmem>>, vector<1x16x144xbf16>
    %11 = vector.shape_cast %10 : vector<1x16x144xbf16> to vector<16x144xbf16>
    %c0_12 = arith.constant 0 : index
    %c0_13 = arith.constant 0 : index
    %c36 = arith.constant 36 : index
    %12 = vector.load %arg1[%c0_12, %c0_13, %c36] : memref<1x16x198xbf16, #tpu.memory_space<vmem>>, vector<1x16x144xbf16>
    %13 = vector.shape_cast %12 : vector<1x16x144xbf16> to vector<16x144xbf16>
    %c0_14 = arith.constant 0 : index
    %c0_15 = arith.constant 0 : index
    %c37 = arith.constant 37 : index
    %14 = vector.load %arg1[%c0_14, %c0_15, %c37] : memref<1x16x198xbf16, #tpu.memory_space<vmem>>, vector<1x16x144xbf16>
    %15 = vector.shape_cast %14 : vector<1x16x144xbf16> to vector<16x144xbf16>
    %c0_16 = arith.constant 0 : index
    %c0_17 = arith.constant 0 : index
    %c38 = arith.constant 38 : index
    %16 = vector.load %arg1[%c0_16, %c0_17, %c38] : memref<1x16x198xbf16, #tpu.memory_space<vmem>>, vector<1x16x144xbf16>
    %17 = vector.shape_cast %16 : vector<1x16x144xbf16> to vector<16x144xbf16>
    %18 = tpu.concatenate %1, %3, %5, %7, %9, %11, %13, %15, %17 in 0 : vector<16x144xbf16>, vector<16x144xbf16>, vector<16x144xbf16>, vector<16x144xbf16>, vector<16x144xbf16>, vector<16x144xbf16>, vector<16x144xbf16>, vector<16x144xbf16>, vector<16x144xbf16> -> vector<144x144xbf16>
    %c0_18 = arith.constant 0 : index
    %c0_19 = arith.constant 0 : index
    %c0_20 = arith.constant 0 : index
    %19 = vector.load %arg2[%c0_18, %c0_19, %c0_20] : memref<1x16x144xbf16, #tpu.memory_space<vmem>>, vector<1x16x144xbf16>
    %20 = vector.shape_cast %19 : vector<1x16x144xbf16> to vector<16x144xbf16>
    %cst = arith.constant dense<0.000000e+00> : vector<16x144xf32>
    %21 = tpu.matmul %20, %18, %cst {dimension_numbers = #tpu.dot_dimension_numbers<[1], [0], [0], [1], [0, 0, 1, 1], [], []>} : vector<16x144xbf16>, vector<144x144xbf16>, vector<16x144xf32> -> vector<16x144xf32>
    %c0_21 = arith.constant 0 : index
    %c0_22 = arith.constant 0 : index
    %22 = vector.load %arg3[%c0_21, %c0_22] : memref<16x1xf32, #tpu.memory_space<vmem>>, vector<16x1xf32>
    %23 = vector.broadcast %22 : vector<16x1xf32> to vector<16x144xf32>
    %24 = arith.mulf %21, %23 : vector<16x144xf32>
    %c0_23 = arith.constant 0 : index
    %c0_24 = arith.constant 0 : index
    %25 = vector.load %arg4[%c0_23, %c0_24] : memref<16x1xf32, #tpu.memory_space<vmem>>, vector<16x1xf32>
    %26 = vector.broadcast %25 : vector<16x1xf32> to vector<16x144xf32>
    %27 = arith.addf %24, %26 : vector<16x144xf32>
    %cst_25 = arith.constant 0.000000e+00 : f32
    %28 = vector.broadcast %cst_25 : f32 to vector<16x144xf32>
    %29 = arith.maximumf %27, %28 : vector<16x144xf32>
    %30 = tpu.iota {dimensions = array<i32: 1>} : vector<1x144xi32>
    %c18_i32 = arith.constant 18 : i32
    %c0_i32 = arith.constant 0 : i32
    %31 = arith.cmpi eq, %c18_i32, %c0_i32 : i32
    %c1_i32 = arith.constant 1 : i32
    %32 = arith.select %31, %c1_i32, %c18_i32 : i32
    %33 = vector.broadcast %32 : i32 to vector<1x144xi32>
    %34 = arith.remsi %30, %33 : vector<1x144xi32>
    %c0_i32_26 = arith.constant 0 : i32
    %35 = vector.broadcast %c0_i32_26 : i32 to vector<1x144xi32>
    %36 = arith.cmpi ne, %34, %35 : vector<1x144xi32>
    %c0_i32_27 = arith.constant 0 : i32
    %37 = vector.broadcast %c0_i32_27 : i32 to vector<1x144xi32>
    %38 = arith.cmpi slt, %34, %37 : vector<1x144xi32>
    %c0_i32_28 = arith.constant 0 : i32
    %39 = arith.cmpi slt, %32, %c0_i32_28 : i32
    %40 = vector.broadcast %39 : i1 to vector<1x144xi1>
    %41 = vector.broadcast %40 : vector<1x144xi1> to vector<1x144xi1>
    %42 = arith.xori %38, %41 : vector<1x144xi1>
    %43 = arith.andi %42, %36 : vector<1x144xi1>
    %44 = vector.broadcast %32 : i32 to vector<1x144xi32>
    %45 = arith.addi %34, %44 : vector<1x144xi32>
    %46 = arith.select %43, %45, %34 : vector<1x144xi1>, vector<1x144xi32>
    %c16_i32 = arith.constant 16 : i32
    %47 = vector.broadcast %c16_i32 : i32 to vector<1x144xi32>
    %48 = arith.cmpi slt, %46, %47 : vector<1x144xi32>
    %cst_29 = arith.constant 0.000000e+00 : f32
    %49 = vector.shape_cast %48 : vector<1x144xi1> to vector<1x144xi1>
    %50 = vector.broadcast %49 : vector<1x144xi1> to vector<16x144xi1>
    %51 = vector.broadcast %cst_29 : f32 to vector<16x144xf32>
    %52 = arith.select %50, %29, %51 : vector<16x144xi1>, vector<16x144xf32>
    %53 = arith.truncf %52 : vector<16x144xf32> to vector<16x144xbf16>
    %cst_30 = arith.constant 0.000000e+00 : bf16
    %54 = vector.broadcast %cst_30 : bf16 to vector<16x19xbf16>
    %c0_31 = arith.constant 0 : index
    %c0_32 = arith.constant 0 : index
    %55 = vector.load %arg9[%c0_31, %c0_32] : memref<16x198xbf16, #tpu.memory_space<vmem>>, vector<16x19xbf16>
    tpu.vector_store %arg9[%c0_31, %c0_32], %54 {strides = array<i32>} : memref<16x198xbf16, #tpu.memory_space<vmem>>, vector<16x19xbf16>,
    %c0_33 = arith.constant 0 : index
    %c19_34 = arith.constant 19 : index
    %56 = vector.load %arg9[%c0_33, %c19_34] : memref<16x198xbf16, #tpu.memory_space<vmem>>, vector<16x144xbf16>
    tpu.vector_store %arg9[%c0_33, %c19_34], %53 {strides = array<i32>} : memref<16x198xbf16, #tpu.memory_space<vmem>>, vector<16x144xbf16>,
    %cst_35 = arith.constant 0.000000e+00 : bf16
    %57 = vector.broadcast %cst_35 : bf16 to vector<16x35xbf16>
    %c0_36 = arith.constant 0 : index
    %c163 = arith.constant 163 : index
    %58 = vector.load %arg9[%c0_36, %c163] : memref<16x198xbf16, #tpu.memory_space<vmem>>, vector<16x35xbf16>
    tpu.vector_store %arg9[%c0_36, %c163], %57 {strides = array<i32>} : memref<16x198xbf16, #tpu.memory_space<vmem>>, vector<16x35xbf16>,
    %c0_37 = arith.constant 0 : index
    %c0_38 = arith.constant 0 : index
    %59 = vector.load %arg9[%c0_37, %c0_38] : memref<16x198xbf16, #tpu.memory_space<vmem>>, vector<16x144xbf16>
    %c0_39 = arith.constant 0 : index
    %c1_40 = arith.constant 1 : index
    %60 = vector.load %arg9[%c0_39, %c1_40] : memref<16x198xbf16, #tpu.memory_space<vmem>>, vector<16x144xbf16>
    %c0_41 = arith.constant 0 : index
    %c2_42 = arith.constant 2 : index
    %61 = vector.load %arg9[%c0_41, %c2_42] : memref<16x198xbf16, #tpu.memory_space<vmem>>, vector<16x144xbf16>
    %c0_43 = arith.constant 0 : index
    %c18_44 = arith.constant 18 : index
    %62 = vector.load %arg9[%c0_43, %c18_44] : memref<16x198xbf16, #tpu.memory_space<vmem>>, vector<16x144xbf16>
    %c0_45 = arith.constant 0 : index
    %c19_46 = arith.constant 19 : index
    %63 = vector.load %arg9[%c0_45, %c19_46] : memref<16x198xbf16, #tpu.memory_space<vmem>>, vector<16x144xbf16>
    %c0_47 = arith.constant 0 : index
    %c20_48 = arith.constant 20 : index
    %64 = vector.load %arg9[%c0_47, %c20_48] : memref<16x198xbf16, #tpu.memory_space<vmem>>, vector<16x144xbf16>
    %c0_49 = arith.constant 0 : index
    %c36_50 = arith.constant 36 : index
    %65 = vector.load %arg9[%c0_49, %c36_50] : memref<16x198xbf16, #tpu.memory_space<vmem>>, vector<16x144xbf16>
    %c0_51 = arith.constant 0 : index
    %c37_52 = arith.constant 37 : index
    %66 = vector.load %arg9[%c0_51, %c37_52] : memref<16x198xbf16, #tpu.memory_space<vmem>>, vector<16x144xbf16>
    %c0_53 = arith.constant 0 : index
    %c38_54 = arith.constant 38 : index
    %67 = vector.load %arg9[%c0_53, %c38_54] : memref<16x198xbf16, #tpu.memory_space<vmem>>, vector<16x144xbf16>
    %68 = tpu.concatenate %59, %60, %61, %62, %63, %64, %65, %66, %67 in 0 : vector<16x144xbf16>, vector<16x144xbf16>, vector<16x144xbf16>, vector<16x144xbf16>, vector<16x144xbf16>, vector<16x144xbf16>, vector<16x144xbf16>, vector<16x144xbf16>, vector<16x144xbf16> -> vector<144x144xbf16>
    %c0_55 = arith.constant 0 : index
    %c0_56 = arith.constant 0 : index
    %c0_57 = arith.constant 0 : index
    %69 = vector.load %arg5[%c0_55, %c0_56, %c0_57] : memref<1x16x144xbf16, #tpu.memory_space<vmem>>, vector<1x16x144xbf16>
    %70 = vector.shape_cast %69 : vector<1x16x144xbf16> to vector<16x144xbf16>
    %cst_58 = arith.constant dense<0.000000e+00> : vector<16x144xf32>
    %71 = tpu.matmul %70, %68, %cst_58 {dimension_numbers = #tpu.dot_dimension_numbers<[1], [0], [0], [1], [0, 0, 1, 1], [], []>} : vector<16x144xbf16>, vector<144x144xbf16>, vector<16x144xf32> -> vector<16x144xf32>
    %c0_59 = arith.constant 0 : index
    %c0_60 = arith.constant 0 : index
    %72 = vector.load %arg6[%c0_59, %c0_60] : memref<16x1xf32, #tpu.memory_space<vmem>>, vector<16x1xf32>
    %73 = vector.broadcast %72 : vector<16x1xf32> to vector<16x144xf32>
    %74 = arith.mulf %71, %73 : vector<16x144xf32>
    %c0_61 = arith.constant 0 : index
    %c0_62 = arith.constant 0 : index
    %75 = vector.load %arg7[%c0_61, %c0_62] : memref<16x1xf32, #tpu.memory_space<vmem>>, vector<16x1xf32>
    %76 = vector.broadcast %75 : vector<16x1xf32> to vector<16x144xf32>
    %77 = arith.addf %74, %76 : vector<16x144xf32>
    %c0_63 = arith.constant 0 : index
    %c0_64 = arith.constant 0 : index
    %c19_65 = arith.constant 19 : index
    %78 = vector.load %arg1[%c0_63, %c0_64, %c19_65] : memref<1x16x198xbf16, #tpu.memory_space<vmem>>, vector<1x16x144xbf16>
    %79 = vector.shape_cast %78 : vector<1x16x144xbf16> to vector<16x144xbf16>
    %80 = arith.extf %79 : vector<16x144xbf16> to vector<16x144xf32>
    %81 = arith.addf %77, %80 : vector<16x144xf32>
    %cst_66 = arith.constant 0.000000e+00 : f32
    %82 = vector.broadcast %cst_66 : f32 to vector<16x144xf32>
    %83 = arith.maximumf %81, %82 : vector<16x144xf32>
    %84 = tpu.iota {dimensions = array<i32: 1>} : vector<1x144xi32>
    %c18_i32_67 = arith.constant 18 : i32
    %c0_i32_68 = arith.constant 0 : i32
    %85 = arith.cmpi eq, %c18_i32_67, %c0_i32_68 : i32
    %c1_i32_69 = arith.constant 1 : i32
    %86 = arith.select %85, %c1_i32_69, %c18_i32_67 : i32
    %87 = vector.broadcast %86 : i32 to vector<1x144xi32>
    %88 = arith.remsi %84, %87 : vector<1x144xi32>
    %c0_i32_70 = arith.constant 0 : i32
    %89 = vector.broadcast %c0_i32_70 : i32 to vector<1x144xi32>
    %90 = arith.cmpi ne, %88, %89 : vector<1x144xi32>
    %c0_i32_71 = arith.constant 0 : i32
    %91 = vector.broadcast %c0_i32_71 : i32 to vector<1x144xi32>
    %92 = arith.cmpi slt, %88, %91 : vector<1x144xi32>
    %c0_i32_72 = arith.constant 0 : i32
    %93 = arith.cmpi slt, %86, %c0_i32_72 : i32
    %94 = vector.broadcast %93 : i1 to vector<1x144xi1>
    %95 = vector.broadcast %94 : vector<1x144xi1> to vector<1x144xi1>
    %96 = arith.xori %92, %95 : vector<1x144xi1>
    %97 = arith.andi %96, %90 : vector<1x144xi1>
    %98 = vector.broadcast %86 : i32 to vector<1x144xi32>
    %99 = arith.addi %88, %98 : vector<1x144xi32>
    %100 = arith.select %97, %99, %88 : vector<1x144xi1>, vector<1x144xi32>
    %c16_i32_73 = arith.constant 16 : i32
    %101 = vector.broadcast %c16_i32_73 : i32 to vector<1x144xi32>
    %102 = arith.cmpi slt, %100, %101 : vector<1x144xi32>
    %cst_74 = arith.constant 0.000000e+00 : f32
    %103 = vector.shape_cast %102 : vector<1x144xi1> to vector<1x144xi1>
    %104 = vector.broadcast %103 : vector<1x144xi1> to vector<16x144xi1>
    %105 = vector.broadcast %cst_74 : f32 to vector<16x144xf32>
    %106 = arith.select %104, %83, %105 : vector<16x144xi1>, vector<16x144xf32>
    %107 = arith.truncf %106 : vector<16x144xf32> to vector<16x144xbf16>
    %cst_75 = arith.constant 0.000000e+00 : bf16
    %108 = vector.broadcast %cst_75 : bf16 to vector<16x19xbf16>
    %c0_76 = arith.constant 0 : index
    %c0_77 = arith.constant 0 : index
    %c0_78 = arith.constant 0 : index
    %109 = vector.load %arg8[%c0_76, %c0_77, %c0_78] : memref<1x16x198xbf16, #tpu.memory_space<vmem>>, vector<1x16x19xbf16>
    %110 = vector.shape_cast %109 : vector<1x16x19xbf16> to vector<16x19xbf16>
    %111 = vector.shape_cast %108 : vector<16x19xbf16> to vector<1x16x19xbf16>
    tpu.vector_store %arg8[%c0_76, %c0_77, %c0_78], %111 {strides = array<i32>} : memref<1x16x198xbf16, #tpu.memory_space<vmem>>, vector<1x16x19xbf16>,
    %c0_79 = arith.constant 0 : index
    %c0_80 = arith.constant 0 : index
    %c19_81 = arith.constant 19 : index
    %112 = vector.load %arg8[%c0_79, %c0_80, %c19_81] : memref<1x16x198xbf16, #tpu.memory_space<vmem>>, vector<1x16x144xbf16>
    %113 = vector.shape_cast %112 : vector<1x16x144xbf16> to vector<16x144xbf16>
    %114 = vector.shape_cast %107 : vector<16x144xbf16> to vector<1x16x144xbf16>
    tpu.vector_store %arg8[%c0_79, %c0_80, %c19_81], %114 {strides = array<i32>} : memref<1x16x198xbf16, #tpu.memory_space<vmem>>, vector<1x16x144xbf16>,
    %cst_82 = arith.constant 0.000000e+00 : bf16
    %115 = vector.broadcast %cst_82 : bf16 to vector<16x35xbf16>
    %c0_83 = arith.constant 0 : index
    %c0_84 = arith.constant 0 : index
    %c163_85 = arith.constant 163 : index
    %116 = vector.load %arg8[%c0_83, %c0_84, %c163_85] : memref<1x16x198xbf16, #tpu.memory_space<vmem>>, vector<1x16x35xbf16>
    %117 = vector.shape_cast %116 : vector<1x16x35xbf16> to vector<16x35xbf16>
    %118 = vector.shape_cast %115 : vector<16x35xbf16> to vector<1x16x35xbf16>
    tpu.vector_store %arg8[%c0_83, %c0_84, %c163_85], %118 {strides = array<i32>} : memref<1x16x198xbf16, #tpu.memory_space<vmem>>, vector<1x16x35xbf16>,
    return
  }
  func.func @transform_0(%arg0: i32) -> (i32, i32, i32) {
    %c0_i32 = arith.constant 0 : i32
    %c0_i32_0 = arith.constant 0 : i32
    %c0_i32_1 = arith.constant 0 : i32
    return %arg0, %c0_i32, %c0_i32_0 : i32, i32, i32
  }
  func.func @transform_1(%arg0: i32) -> (i32, i32, i32) {
    %c0_i32 = arith.constant 0 : i32
    %c0_i32_0 = arith.constant 0 : i32
    %c0_i32_1 = arith.constant 0 : i32
    %c0_i32_2 = arith.constant 0 : i32
    return %c0_i32, %c0_i32_0, %c0_i32_1 : i32, i32, i32
  }
  func.func @transform_2(%arg0: i32) -> (i32, i32) {
    %c0_i32 = arith.constant 0 : i32
    %c0_i32_0 = arith.constant 0 : i32
    %c0_i32_1 = arith.constant 0 : i32
    return %c0_i32, %c0_i32_0 : i32, i32
  }
  func.func @transform_3(%arg0: i32) -> (i32, i32) {
    %c0_i32 = arith.constant 0 : i32
    %c0_i32_0 = arith.constant 0 : i32
    %c0_i32_1 = arith.constant 0 : i32
    return %c0_i32, %c0_i32_0 : i32, i32
  }
  func.func @transform_4(%arg0: i32) -> (i32, i32, i32) {
    %c0_i32 = arith.constant 0 : i32
    %c0_i32_0 = arith.constant 0 : i32
    %c0_i32_1 = arith.constant 0 : i32
    %c0_i32_2 = arith.constant 0 : i32
    return %c0_i32, %c0_i32_0, %c0_i32_1 : i32, i32, i32
  }
  func.func @transform_5(%arg0: i32) -> (i32, i32) {
    %c0_i32 = arith.constant 0 : i32
    %c0_i32_0 = arith.constant 0 : i32
    %c0_i32_1 = arith.constant 0 : i32
    return %c0_i32, %c0_i32_0 : i32, i32
  }
  func.func @transform_6(%arg0: i32) -> (i32, i32) {
    %c0_i32 = arith.constant 0 : i32
    %c0_i32_0 = arith.constant 0 : i32
    %c0_i32_1 = arith.constant 0 : i32
    return %c0_i32, %c0_i32_0 : i32, i32
  }
  func.func @transform_7(%arg0: i32) -> (i32, i32, i32) {
    %c0_i32 = arith.constant 0 : i32
    %c0_i32_0 = arith.constant 0 : i32
    %c0_i32_1 = arith.constant 0 : i32
    return %arg0, %c0_i32, %c0_i32_0 : i32, i32, i32
  }
}

module attributes {stable_mosaic.version = 11 : i64} {
  func.func @_block_s2_kernel(%arg0: i32, %arg1: memref<1x4x16x60xbf16, #tpu.memory_space<vmem>>, %arg2: memref<1x32x144xbf16, #tpu.memory_space<vmem>>, %arg3: memref<32x1xf32, #tpu.memory_space<vmem>>, %arg4: memref<32x1xf32, #tpu.memory_space<vmem>>, %arg5: memref<3x32x96xbf16, #tpu.memory_space<vmem>>, %arg6: memref<32x1xf32, #tpu.memory_space<vmem>>, %arg7: memref<32x1xf32, #tpu.memory_space<vmem>>, %arg8: memref<32x16xbf16, #tpu.memory_space<vmem>>, %arg9: memref<32x1xf32, #tpu.memory_space<vmem>>, %arg10: memref<32x1xf32, #tpu.memory_space<vmem>>, %arg11: memref<1x32x70xbf16, #tpu.memory_space<vmem>>, %arg12: memref<32x70xbf16, #tpu.memory_space<vmem>>) attributes {dimension_semantics = [#tpu.dimension_semantics<parallel>], iteration_bounds = array<i64: 2>, scalar_prefetch = 0 : i64, scratch_operands = 1 : i64, tpu.core_type = #tpu.core_type<tc>, window_params = [{transform_indices = @transform_0, window_bounds = array<i64: 1, 4, 16, 60>}, {pipeline_mode = #tpu.pipeline_mode<synchronous>, transform_indices = @transform_1, window_bounds = array<i64: 1, 32, 144>}, {pipeline_mode = #tpu.pipeline_mode<synchronous>, transform_indices = @transform_2, window_bounds = array<i64: 32, 1>}, {pipeline_mode = #tpu.pipeline_mode<synchronous>, transform_indices = @transform_3, window_bounds = array<i64: 32, 1>}, {pipeline_mode = #tpu.pipeline_mode<synchronous>, transform_indices = @transform_4, window_bounds = array<i64: 3, 32, 96>}, {pipeline_mode = #tpu.pipeline_mode<synchronous>, transform_indices = @transform_5, window_bounds = array<i64: 32, 1>}, {pipeline_mode = #tpu.pipeline_mode<synchronous>, transform_indices = @transform_6, window_bounds = array<i64: 32, 1>}, {pipeline_mode = #tpu.pipeline_mode<synchronous>, transform_indices = @transform_7, window_bounds = array<i64: 32, 16>}, {pipeline_mode = #tpu.pipeline_mode<synchronous>, transform_indices = @transform_8, window_bounds = array<i64: 32, 1>}, {pipeline_mode = #tpu.pipeline_mode<synchronous>, transform_indices = @transform_9, window_bounds = array<i64: 32, 1>}, {transform_indices = @transform_10, window_bounds = array<i64: 1, 32, 70>}]} {
    %c0 = arith.constant 0 : index
    %c0_0 = arith.constant 0 : index
    %c0_1 = arith.constant 0 : index
    %c0_2 = arith.constant 0 : index
    %0 = vector.load %arg1[%c0, %c0_0, %c0_1, %c0_2] : memref<1x4x16x60xbf16, #tpu.memory_space<vmem>>, vector<1x1x16x40xbf16>
    %1 = vector.shape_cast %0 : vector<1x1x16x40xbf16> to vector<16x40xbf16>
    %c0_3 = arith.constant 0 : index
    %c1 = arith.constant 1 : index
    %c0_4 = arith.constant 0 : index
    %c0_5 = arith.constant 0 : index
    %2 = vector.load %arg1[%c0_3, %c1, %c0_4, %c0_5] : memref<1x4x16x60xbf16, #tpu.memory_space<vmem>>, vector<1x1x16x40xbf16>
    %3 = vector.shape_cast %2 : vector<1x1x16x40xbf16> to vector<16x40xbf16>
    %c0_6 = arith.constant 0 : index
    %c0_7 = arith.constant 0 : index
    %c0_8 = arith.constant 0 : index
    %c1_9 = arith.constant 1 : index
    %4 = vector.load %arg1[%c0_6, %c0_7, %c0_8, %c1_9] : memref<1x4x16x60xbf16, #tpu.memory_space<vmem>>, vector<1x1x16x40xbf16>
    %5 = vector.shape_cast %4 : vector<1x1x16x40xbf16> to vector<16x40xbf16>
    %c0_10 = arith.constant 0 : index
    %c2 = arith.constant 2 : index
    %c0_11 = arith.constant 0 : index
    %c0_12 = arith.constant 0 : index
    %6 = vector.load %arg1[%c0_10, %c2, %c0_11, %c0_12] : memref<1x4x16x60xbf16, #tpu.memory_space<vmem>>, vector<1x1x16x40xbf16>
    %7 = vector.shape_cast %6 : vector<1x1x16x40xbf16> to vector<16x40xbf16>
    %c0_13 = arith.constant 0 : index
    %c3 = arith.constant 3 : index
    %c0_14 = arith.constant 0 : index
    %c0_15 = arith.constant 0 : index
    %8 = vector.load %arg1[%c0_13, %c3, %c0_14, %c0_15] : memref<1x4x16x60xbf16, #tpu.memory_space<vmem>>, vector<1x1x16x40xbf16>
    %9 = vector.shape_cast %8 : vector<1x1x16x40xbf16> to vector<16x40xbf16>
    %c0_16 = arith.constant 0 : index
    %c2_17 = arith.constant 2 : index
    %c0_18 = arith.constant 0 : index
    %c1_19 = arith.constant 1 : index
    %10 = vector.load %arg1[%c0_16, %c2_17, %c0_18, %c1_19] : memref<1x4x16x60xbf16, #tpu.memory_space<vmem>>, vector<1x1x16x40xbf16>
    %11 = vector.shape_cast %10 : vector<1x1x16x40xbf16> to vector<16x40xbf16>
    %c0_20 = arith.constant 0 : index
    %c0_21 = arith.constant 0 : index
    %c0_22 = arith.constant 0 : index
    %c10 = arith.constant 10 : index
    %12 = vector.load %arg1[%c0_20, %c0_21, %c0_22, %c10] : memref<1x4x16x60xbf16, #tpu.memory_space<vmem>>, vector<1x1x16x40xbf16>
    %13 = vector.shape_cast %12 : vector<1x1x16x40xbf16> to vector<16x40xbf16>
    %c0_23 = arith.constant 0 : index
    %c1_24 = arith.constant 1 : index
    %c0_25 = arith.constant 0 : index
    %c10_26 = arith.constant 10 : index
    %14 = vector.load %arg1[%c0_23, %c1_24, %c0_25, %c10_26] : memref<1x4x16x60xbf16, #tpu.memory_space<vmem>>, vector<1x1x16x40xbf16>
    %15 = vector.shape_cast %14 : vector<1x1x16x40xbf16> to vector<16x40xbf16>
    %c0_27 = arith.constant 0 : index
    %c0_28 = arith.constant 0 : index
    %c0_29 = arith.constant 0 : index
    %c11 = arith.constant 11 : index
    %16 = vector.load %arg1[%c0_27, %c0_28, %c0_29, %c11] : memref<1x4x16x60xbf16, #tpu.memory_space<vmem>>, vector<1x1x16x40xbf16>
    %17 = vector.shape_cast %16 : vector<1x1x16x40xbf16> to vector<16x40xbf16>
    %18 = tpu.concatenate %1, %3, %5, %7, %9, %11, %13, %15, %17 in 0 : vector<16x40xbf16>, vector<16x40xbf16>, vector<16x40xbf16>, vector<16x40xbf16>, vector<16x40xbf16>, vector<16x40xbf16>, vector<16x40xbf16>, vector<16x40xbf16>, vector<16x40xbf16> -> vector<144x40xbf16>
    %c0_30 = arith.constant 0 : index
    %c0_31 = arith.constant 0 : index
    %c0_32 = arith.constant 0 : index
    %19 = vector.load %arg2[%c0_30, %c0_31, %c0_32] : memref<1x32x144xbf16, #tpu.memory_space<vmem>>, vector<1x32x144xbf16>
    %20 = vector.shape_cast %19 : vector<1x32x144xbf16> to vector<32x144xbf16>
    %cst = arith.constant dense<0.000000e+00> : vector<32x40xf32>
    %21 = tpu.matmul %20, %18, %cst {dimension_numbers = #tpu.dot_dimension_numbers<[1], [0], [0], [1], [0, 0, 1, 1], [], []>} : vector<32x144xbf16>, vector<144x40xbf16>, vector<32x40xf32> -> vector<32x40xf32>
    %c0_33 = arith.constant 0 : index
    %c0_34 = arith.constant 0 : index
    %22 = vector.load %arg3[%c0_33, %c0_34] : memref<32x1xf32, #tpu.memory_space<vmem>>, vector<32x1xf32>
    %23 = vector.broadcast %22 : vector<32x1xf32> to vector<32x40xf32>
    %24 = arith.mulf %21, %23 : vector<32x40xf32>
    %c0_35 = arith.constant 0 : index
    %c0_36 = arith.constant 0 : index
    %25 = vector.load %arg4[%c0_35, %c0_36] : memref<32x1xf32, #tpu.memory_space<vmem>>, vector<32x1xf32>
    %26 = vector.broadcast %25 : vector<32x1xf32> to vector<32x40xf32>
    %27 = arith.addf %24, %26 : vector<32x40xf32>
    %cst_37 = arith.constant 0.000000e+00 : f32
    %28 = vector.broadcast %cst_37 : f32 to vector<32x40xf32>
    %29 = arith.maximumf %27, %28 : vector<32x40xf32>
    %30 = tpu.iota {dimensions = array<i32: 1>} : vector<1x40xi32>
    %c10_i32 = arith.constant 10 : i32
    %c0_i32 = arith.constant 0 : i32
    %31 = arith.cmpi eq, %c10_i32, %c0_i32 : i32
    %c1_i32 = arith.constant 1 : i32
    %32 = arith.select %31, %c1_i32, %c10_i32 : i32
    %33 = vector.broadcast %32 : i32 to vector<1x40xi32>
    %34 = arith.remsi %30, %33 : vector<1x40xi32>
    %c0_i32_38 = arith.constant 0 : i32
    %35 = vector.broadcast %c0_i32_38 : i32 to vector<1x40xi32>
    %36 = arith.cmpi ne, %34, %35 : vector<1x40xi32>
    %c0_i32_39 = arith.constant 0 : i32
    %37 = vector.broadcast %c0_i32_39 : i32 to vector<1x40xi32>
    %38 = arith.cmpi slt, %34, %37 : vector<1x40xi32>
    %c0_i32_40 = arith.constant 0 : i32
    %39 = arith.cmpi slt, %32, %c0_i32_40 : i32
    %40 = vector.broadcast %39 : i1 to vector<1x40xi1>
    %41 = vector.broadcast %40 : vector<1x40xi1> to vector<1x40xi1>
    %42 = arith.xori %38, %41 : vector<1x40xi1>
    %43 = arith.andi %42, %36 : vector<1x40xi1>
    %44 = vector.broadcast %32 : i32 to vector<1x40xi32>
    %45 = arith.addi %34, %44 : vector<1x40xi32>
    %46 = arith.select %43, %45, %34 : vector<1x40xi1>, vector<1x40xi32>
    %c8_i32 = arith.constant 8 : i32
    %47 = vector.broadcast %c8_i32 : i32 to vector<1x40xi32>
    %48 = arith.cmpi slt, %46, %47 : vector<1x40xi32>
    %cst_41 = arith.constant 0.000000e+00 : f32
    %49 = vector.shape_cast %48 : vector<1x40xi1> to vector<1x40xi1>
    %50 = vector.broadcast %49 : vector<1x40xi1> to vector<32x40xi1>
    %51 = vector.broadcast %cst_41 : f32 to vector<32x40xf32>
    %52 = arith.select %50, %29, %51 : vector<32x40xi1>, vector<32x40xf32>
    %53 = arith.truncf %52 : vector<32x40xf32> to vector<32x40xbf16>
    %cst_42 = arith.constant 0.000000e+00 : bf16
    %54 = vector.broadcast %cst_42 : bf16 to vector<32x11xbf16>
    %c0_43 = arith.constant 0 : index
    %c0_44 = arith.constant 0 : index
    %55 = vector.load %arg12[%c0_43, %c0_44] : memref<32x70xbf16, #tpu.memory_space<vmem>>, vector<32x11xbf16>
    tpu.vector_store %arg12[%c0_43, %c0_44], %54 {strides = array<i32>} : memref<32x70xbf16, #tpu.memory_space<vmem>>, vector<32x11xbf16>,
    %c0_45 = arith.constant 0 : index
    %c11_46 = arith.constant 11 : index
    %56 = vector.load %arg12[%c0_45, %c11_46] : memref<32x70xbf16, #tpu.memory_space<vmem>>, vector<32x40xbf16>
    tpu.vector_store %arg12[%c0_45, %c11_46], %53 {strides = array<i32>} : memref<32x70xbf16, #tpu.memory_space<vmem>>, vector<32x40xbf16>,
    %cst_47 = arith.constant 0.000000e+00 : bf16
    %57 = vector.broadcast %cst_47 : bf16 to vector<32x19xbf16>
    %c0_48 = arith.constant 0 : index
    %c51 = arith.constant 51 : index
    %58 = vector.load %arg12[%c0_48, %c51] : memref<32x70xbf16, #tpu.memory_space<vmem>>, vector<32x19xbf16>
    tpu.vector_store %arg12[%c0_48, %c51], %57 {strides = array<i32>} : memref<32x70xbf16, #tpu.memory_space<vmem>>, vector<32x19xbf16>,
    %c0_49 = arith.constant 0 : index
    %c0_50 = arith.constant 0 : index
    %59 = vector.load %arg12[%c0_49, %c0_50] : memref<32x70xbf16, #tpu.memory_space<vmem>>, vector<32x40xbf16>
    %c0_51 = arith.constant 0 : index
    %c1_52 = arith.constant 1 : index
    %60 = vector.load %arg12[%c0_51, %c1_52] : memref<32x70xbf16, #tpu.memory_space<vmem>>, vector<32x40xbf16>
    %c0_53 = arith.constant 0 : index
    %c2_54 = arith.constant 2 : index
    %61 = vector.load %arg12[%c0_53, %c2_54] : memref<32x70xbf16, #tpu.memory_space<vmem>>, vector<32x40xbf16>
    %62 = tpu.concatenate %59, %60, %61 in 0 : vector<32x40xbf16>, vector<32x40xbf16>, vector<32x40xbf16> -> vector<96x40xbf16>
    %c0_55 = arith.constant 0 : index
    %c0_56 = arith.constant 0 : index
    %c0_57 = arith.constant 0 : index
    %63 = vector.load %arg5[%c0_55, %c0_56, %c0_57] : memref<3x32x96xbf16, #tpu.memory_space<vmem>>, vector<1x32x96xbf16>
    %64 = vector.shape_cast %63 : vector<1x32x96xbf16> to vector<32x96xbf16>
    %cst_58 = arith.constant dense<0.000000e+00> : vector<32x40xf32>
    %65 = tpu.matmul %64, %62, %cst_58 {dimension_numbers = #tpu.dot_dimension_numbers<[1], [0], [0], [1], [0, 0, 1, 1], [], []>} : vector<32x96xbf16>, vector<96x40xbf16>, vector<32x40xf32> -> vector<32x40xf32>
    %c0_59 = arith.constant 0 : index
    %c10_60 = arith.constant 10 : index
    %66 = vector.load %arg12[%c0_59, %c10_60] : memref<32x70xbf16, #tpu.memory_space<vmem>>, vector<32x40xbf16>
    %c0_61 = arith.constant 0 : index
    %c11_62 = arith.constant 11 : index
    %67 = vector.load %arg12[%c0_61, %c11_62] : memref<32x70xbf16, #tpu.memory_space<vmem>>, vector<32x40xbf16>
    %c0_63 = arith.constant 0 : index
    %c12 = arith.constant 12 : index
    %68 = vector.load %arg12[%c0_63, %c12] : memref<32x70xbf16, #tpu.memory_space<vmem>>, vector<32x40xbf16>
    %69 = tpu.concatenate %66, %67, %68 in 0 : vector<32x40xbf16>, vector<32x40xbf16>, vector<32x40xbf16> -> vector<96x40xbf16>
    %c1_64 = arith.constant 1 : index
    %c0_65 = arith.constant 0 : index
    %c0_66 = arith.constant 0 : index
    %70 = vector.load %arg5[%c1_64, %c0_65, %c0_66] : memref<3x32x96xbf16, #tpu.memory_space<vmem>>, vector<1x32x96xbf16>
    %71 = vector.shape_cast %70 : vector<1x32x96xbf16> to vector<32x96xbf16>
    %cst_67 = arith.constant dense<0.000000e+00> : vector<32x40xf32>
    %72 = tpu.matmul %71, %69, %cst_67 {dimension_numbers = #tpu.dot_dimension_numbers<[1], [0], [0], [1], [0, 0, 1, 1], [], []>} : vector<32x96xbf16>, vector<96x40xbf16>, vector<32x40xf32> -> vector<32x40xf32>
    %73 = arith.addf %65, %72 : vector<32x40xf32>
    %c0_68 = arith.constant 0 : index
    %c20 = arith.constant 20 : index
    %74 = vector.load %arg12[%c0_68, %c20] : memref<32x70xbf16, #tpu.memory_space<vmem>>, vector<32x40xbf16>
    %c0_69 = arith.constant 0 : index
    %c21 = arith.constant 21 : index
    %75 = vector.load %arg12[%c0_69, %c21] : memref<32x70xbf16, #tpu.memory_space<vmem>>, vector<32x40xbf16>
    %c0_70 = arith.constant 0 : index
    %c22 = arith.constant 22 : index
    %76 = vector.load %arg12[%c0_70, %c22] : memref<32x70xbf16, #tpu.memory_space<vmem>>, vector<32x40xbf16>
    %77 = tpu.concatenate %74, %75, %76 in 0 : vector<32x40xbf16>, vector<32x40xbf16>, vector<32x40xbf16> -> vector<96x40xbf16>
    %c2_71 = arith.constant 2 : index
    %c0_72 = arith.constant 0 : index
    %c0_73 = arith.constant 0 : index
    %78 = vector.load %arg5[%c2_71, %c0_72, %c0_73] : memref<3x32x96xbf16, #tpu.memory_space<vmem>>, vector<1x32x96xbf16>
    %79 = vector.shape_cast %78 : vector<1x32x96xbf16> to vector<32x96xbf16>
    %cst_74 = arith.constant dense<0.000000e+00> : vector<32x40xf32>
    %80 = tpu.matmul %79, %77, %cst_74 {dimension_numbers = #tpu.dot_dimension_numbers<[1], [0], [0], [1], [0, 0, 1, 1], [], []>} : vector<32x96xbf16>, vector<96x40xbf16>, vector<32x40xf32> -> vector<32x40xf32>
    %81 = arith.addf %73, %80 : vector<32x40xf32>
    %c0_75 = arith.constant 0 : index
    %c0_76 = arith.constant 0 : index
    %82 = vector.load %arg6[%c0_75, %c0_76] : memref<32x1xf32, #tpu.memory_space<vmem>>, vector<32x1xf32>
    %83 = vector.broadcast %82 : vector<32x1xf32> to vector<32x40xf32>
    %84 = arith.mulf %81, %83 : vector<32x40xf32>
    %c0_77 = arith.constant 0 : index
    %c0_78 = arith.constant 0 : index
    %85 = vector.load %arg7[%c0_77, %c0_78] : memref<32x1xf32, #tpu.memory_space<vmem>>, vector<32x1xf32>
    %86 = vector.broadcast %85 : vector<32x1xf32> to vector<32x40xf32>
    %87 = arith.addf %84, %86 : vector<32x40xf32>
    %c0_79 = arith.constant 0 : index
    %c0_80 = arith.constant 0 : index
    %88 = vector.load %arg8[%c0_79, %c0_80] : memref<32x16xbf16, #tpu.memory_space<vmem>>, vector<32x16xbf16>
    %c0_81 = arith.constant 0 : index
    %c3_82 = arith.constant 3 : index
    %c0_83 = arith.constant 0 : index
    %c0_84 = arith.constant 0 : index
    %89 = vector.load %arg1[%c0_81, %c3_82, %c0_83, %c0_84] : memref<1x4x16x60xbf16, #tpu.memory_space<vmem>>, vector<1x1x16x40xbf16>
    %90 = vector.shape_cast %89 : vector<1x1x16x40xbf16> to vector<16x40xbf16>
    %cst_85 = arith.constant dense<0.000000e+00> : vector<32x40xf32>
    %91 = tpu.matmul %88, %90, %cst_85 {dimension_numbers = #tpu.dot_dimension_numbers<[1], [0], [0], [1], [0, 0, 1, 1], [], []>} : vector<32x16xbf16>, vector<16x40xbf16>, vector<32x40xf32> -> vector<32x40xf32>
    %c0_86 = arith.constant 0 : index
    %c0_87 = arith.constant 0 : index
    %92 = vector.load %arg9[%c0_86, %c0_87] : memref<32x1xf32, #tpu.memory_space<vmem>>, vector<32x1xf32>
    %93 = vector.broadcast %92 : vector<32x1xf32> to vector<32x40xf32>
    %94 = arith.mulf %91, %93 : vector<32x40xf32>
    %c0_88 = arith.constant 0 : index
    %c0_89 = arith.constant 0 : index
    %95 = vector.load %arg10[%c0_88, %c0_89] : memref<32x1xf32, #tpu.memory_space<vmem>>, vector<32x1xf32>
    %96 = vector.broadcast %95 : vector<32x1xf32> to vector<32x40xf32>
    %97 = arith.addf %94, %96 : vector<32x40xf32>
    %98 = arith.addf %87, %97 : vector<32x40xf32>
    %cst_90 = arith.constant 0.000000e+00 : f32
    %99 = vector.broadcast %cst_90 : f32 to vector<32x40xf32>
    %100 = arith.maximumf %98, %99 : vector<32x40xf32>
    %101 = tpu.iota {dimensions = array<i32: 1>} : vector<1x40xi32>
    %c10_i32_91 = arith.constant 10 : i32
    %c0_i32_92 = arith.constant 0 : i32
    %102 = arith.cmpi eq, %c10_i32_91, %c0_i32_92 : i32
    %c1_i32_93 = arith.constant 1 : i32
    %103 = arith.select %102, %c1_i32_93, %c10_i32_91 : i32
    %104 = vector.broadcast %103 : i32 to vector<1x40xi32>
    %105 = arith.remsi %101, %104 : vector<1x40xi32>
    %c0_i32_94 = arith.constant 0 : i32
    %106 = vector.broadcast %c0_i32_94 : i32 to vector<1x40xi32>
    %107 = arith.cmpi ne, %105, %106 : vector<1x40xi32>
    %c0_i32_95 = arith.constant 0 : i32
    %108 = vector.broadcast %c0_i32_95 : i32 to vector<1x40xi32>
    %109 = arith.cmpi slt, %105, %108 : vector<1x40xi32>
    %c0_i32_96 = arith.constant 0 : i32
    %110 = arith.cmpi slt, %103, %c0_i32_96 : i32
    %111 = vector.broadcast %110 : i1 to vector<1x40xi1>
    %112 = vector.broadcast %111 : vector<1x40xi1> to vector<1x40xi1>
    %113 = arith.xori %109, %112 : vector<1x40xi1>
    %114 = arith.andi %113, %107 : vector<1x40xi1>
    %115 = vector.broadcast %103 : i32 to vector<1x40xi32>
    %116 = arith.addi %105, %115 : vector<1x40xi32>
    %117 = arith.select %114, %116, %105 : vector<1x40xi1>, vector<1x40xi32>
    %c8_i32_97 = arith.constant 8 : i32
    %118 = vector.broadcast %c8_i32_97 : i32 to vector<1x40xi32>
    %119 = arith.cmpi slt, %117, %118 : vector<1x40xi32>
    %cst_98 = arith.constant 0.000000e+00 : f32
    %120 = vector.shape_cast %119 : vector<1x40xi1> to vector<1x40xi1>
    %121 = vector.broadcast %120 : vector<1x40xi1> to vector<32x40xi1>
    %122 = vector.broadcast %cst_98 : f32 to vector<32x40xf32>
    %123 = arith.select %121, %100, %122 : vector<32x40xi1>, vector<32x40xf32>
    %124 = arith.truncf %123 : vector<32x40xf32> to vector<32x40xbf16>
    %cst_99 = arith.constant 0.000000e+00 : bf16
    %125 = vector.broadcast %cst_99 : bf16 to vector<32x11xbf16>
    %c0_100 = arith.constant 0 : index
    %c0_101 = arith.constant 0 : index
    %c0_102 = arith.constant 0 : index
    %126 = vector.load %arg11[%c0_100, %c0_101, %c0_102] : memref<1x32x70xbf16, #tpu.memory_space<vmem>>, vector<1x32x11xbf16>
    %127 = vector.shape_cast %126 : vector<1x32x11xbf16> to vector<32x11xbf16>
    %128 = vector.shape_cast %125 : vector<32x11xbf16> to vector<1x32x11xbf16>
    tpu.vector_store %arg11[%c0_100, %c0_101, %c0_102], %128 {strides = array<i32>} : memref<1x32x70xbf16, #tpu.memory_space<vmem>>, vector<1x32x11xbf16>,
    %c0_103 = arith.constant 0 : index
    %c0_104 = arith.constant 0 : index
    %c11_105 = arith.constant 11 : index
    %129 = vector.load %arg11[%c0_103, %c0_104, %c11_105] : memref<1x32x70xbf16, #tpu.memory_space<vmem>>, vector<1x32x40xbf16>
    %130 = vector.shape_cast %129 : vector<1x32x40xbf16> to vector<32x40xbf16>
    %131 = vector.shape_cast %124 : vector<32x40xbf16> to vector<1x32x40xbf16>
    tpu.vector_store %arg11[%c0_103, %c0_104, %c11_105], %131 {strides = array<i32>} : memref<1x32x70xbf16, #tpu.memory_space<vmem>>, vector<1x32x40xbf16>,
    %cst_106 = arith.constant 0.000000e+00 : bf16
    %132 = vector.broadcast %cst_106 : bf16 to vector<32x19xbf16>
    %c0_107 = arith.constant 0 : index
    %c0_108 = arith.constant 0 : index
    %c51_109 = arith.constant 51 : index
    %133 = vector.load %arg11[%c0_107, %c0_108, %c51_109] : memref<1x32x70xbf16, #tpu.memory_space<vmem>>, vector<1x32x19xbf16>
    %134 = vector.shape_cast %133 : vector<1x32x19xbf16> to vector<32x19xbf16>
    %135 = vector.shape_cast %132 : vector<32x19xbf16> to vector<1x32x19xbf16>
    tpu.vector_store %arg11[%c0_107, %c0_108, %c51_109], %135 {strides = array<i32>} : memref<1x32x70xbf16, #tpu.memory_space<vmem>>, vector<1x32x19xbf16>,
    return
  }
  func.func @transform_0(%arg0: i32) -> (i32, i32, i32, i32) {
    %c0_i32 = arith.constant 0 : i32
    %c0_i32_0 = arith.constant 0 : i32
    %c0_i32_1 = arith.constant 0 : i32
    %c0_i32_2 = arith.constant 0 : i32
    return %arg0, %c0_i32, %c0_i32_0, %c0_i32_1 : i32, i32, i32, i32
  }
  func.func @transform_1(%arg0: i32) -> (i32, i32, i32) {
    %c0_i32 = arith.constant 0 : i32
    %c0_i32_0 = arith.constant 0 : i32
    %c0_i32_1 = arith.constant 0 : i32
    %c0_i32_2 = arith.constant 0 : i32
    return %c0_i32, %c0_i32_0, %c0_i32_1 : i32, i32, i32
  }
  func.func @transform_2(%arg0: i32) -> (i32, i32) {
    %c0_i32 = arith.constant 0 : i32
    %c0_i32_0 = arith.constant 0 : i32
    %c0_i32_1 = arith.constant 0 : i32
    return %c0_i32, %c0_i32_0 : i32, i32
  }
  func.func @transform_3(%arg0: i32) -> (i32, i32) {
    %c0_i32 = arith.constant 0 : i32
    %c0_i32_0 = arith.constant 0 : i32
    %c0_i32_1 = arith.constant 0 : i32
    return %c0_i32, %c0_i32_0 : i32, i32
  }
  func.func @transform_4(%arg0: i32) -> (i32, i32, i32) {
    %c0_i32 = arith.constant 0 : i32
    %c0_i32_0 = arith.constant 0 : i32
    %c0_i32_1 = arith.constant 0 : i32
    %c0_i32_2 = arith.constant 0 : i32
    return %c0_i32, %c0_i32_0, %c0_i32_1 : i32, i32, i32
  }
  func.func @transform_5(%arg0: i32) -> (i32, i32) {
    %c0_i32 = arith.constant 0 : i32
    %c0_i32_0 = arith.constant 0 : i32
    %c0_i32_1 = arith.constant 0 : i32
    return %c0_i32, %c0_i32_0 : i32, i32
  }
  func.func @transform_6(%arg0: i32) -> (i32, i32) {
    %c0_i32 = arith.constant 0 : i32
    %c0_i32_0 = arith.constant 0 : i32
    %c0_i32_1 = arith.constant 0 : i32
    return %c0_i32, %c0_i32_0 : i32, i32
  }
  func.func @transform_7(%arg0: i32) -> (i32, i32) {
    %c0_i32 = arith.constant 0 : i32
    %c0_i32_0 = arith.constant 0 : i32
    %c0_i32_1 = arith.constant 0 : i32
    return %c0_i32, %c0_i32_0 : i32, i32
  }
  func.func @transform_8(%arg0: i32) -> (i32, i32) {
    %c0_i32 = arith.constant 0 : i32
    %c0_i32_0 = arith.constant 0 : i32
    %c0_i32_1 = arith.constant 0 : i32
    return %c0_i32, %c0_i32_0 : i32, i32
  }
  func.func @transform_9(%arg0: i32) -> (i32, i32) {
    %c0_i32 = arith.constant 0 : i32
    %c0_i32_0 = arith.constant 0 : i32
    %c0_i32_1 = arith.constant 0 : i32
    return %c0_i32, %c0_i32_0 : i32, i32
  }
  func.func @transform_10(%arg0: i32) -> (i32, i32, i32) {
    %c0_i32 = arith.constant 0 : i32
    %c0_i32_0 = arith.constant 0 : i32
    %c0_i32_1 = arith.constant 0 : i32
    return %arg0, %c0_i32, %c0_i32_0 : i32, i32, i32
  }
}

module attributes {stable_mosaic.version = 11 : i64} {
  func.func @_tstp_kernel(%arg0: i32, %arg1: memref<1x64x5x6xbf16, #tpu.memory_space<vmem>>, %arg2: memref<1x64x2xf32, #tpu.memory_space<vmem>>, %arg3: memref<1x64x2xf32, #tpu.memory_space<vmem>>) attributes {dimension_semantics = [#tpu.dimension_semantics<parallel>], iteration_bounds = array<i64: 2>, scalar_prefetch = 0 : i64, scratch_operands = 0 : i64, tpu.core_type = #tpu.core_type<tc>, window_params = [{transform_indices = @transform_0, window_bounds = array<i64: 1, 64, 5, 6>}, {transform_indices = @transform_1, window_bounds = array<i64: 1, 64, 2>}, {transform_indices = @transform_2, window_bounds = array<i64: 1, 64, 2>}]} {
    %c0 = arith.constant 0 : index
    %c0_0 = arith.constant 0 : index
    %c1 = arith.constant 1 : index
    %c1_1 = arith.constant 1 : index
    %0 = vector.load %arg1[%c0, %c0_0, %c1, %c1_1] : memref<1x64x5x6xbf16, #tpu.memory_space<vmem>>, vector<1x64x2x4xbf16>
    %1 = vector.shape_cast %0 : vector<1x64x2x4xbf16> to vector<64x2x4xbf16>
    %2 = arith.extf %1 : vector<64x2x4xbf16> to vector<64x2x4xf32>
    %cst = arith.constant dense<0.000000e+00> : vector<64x2xf32>
    %3 = vector.multi_reduction <add>, %2, %cst [2] : vector<64x2x4xf32> to vector<64x2xf32>
    %4 = arith.mulf %2, %2 : vector<64x2x4xf32>
    %cst_2 = arith.constant dense<0.000000e+00> : vector<64x2xf32>
    %5 = vector.multi_reduction <add>, %4, %cst_2 [2] : vector<64x2x4xf32> to vector<64x2xf32>
    %cst_3 = arith.constant 2.500000e-01 : f32
    %6 = vector.broadcast %cst_3 : f32 to vector<64x2xf32>
    %7 = arith.mulf %3, %6 : vector<64x2xf32>
    %8 = arith.mulf %3, %7 : vector<64x2xf32>
    %9 = arith.subf %5, %8 : vector<64x2xf32>
    %cst_4 = arith.constant 0.333333343 : f32
    %10 = vector.broadcast %cst_4 : f32 to vector<64x2xf32>
    %11 = arith.mulf %9, %10 : vector<64x2xf32>
    %c0_5 = arith.constant 0 : index
    %c0_6 = arith.constant 0 : index
    %c0_7 = arith.constant 0 : index
    %12 = vector.load %arg2[%c0_5, %c0_6, %c0_7] : memref<1x64x2xf32, #tpu.memory_space<vmem>>, vector<1x64x2xf32>
    %13 = vector.shape_cast %12 : vector<1x64x2xf32> to vector<64x2xf32>
    %14 = vector.shape_cast %7 : vector<64x2xf32> to vector<1x64x2xf32>
    tpu.vector_store %arg2[%c0_5, %c0_6, %c0_7], %14 {strides = array<i32>} : memref<1x64x2xf32, #tpu.memory_space<vmem>>, vector<1x64x2xf32>,
    %cst_8 = arith.constant 0.000000e+00 : f32
    %15 = vector.broadcast %cst_8 : f32 to vector<64x2xf32>
    %16 = arith.maximumf %11, %15 : vector<64x2xf32>
    %cst_9 = arith.constant 1.000000e-07 : f32
    %17 = vector.broadcast %cst_9 : f32 to vector<64x2xf32>
    %18 = arith.addf %16, %17 : vector<64x2xf32>
    %19 = math.sqrt %18 : vector<64x2xf32>
    %c0_10 = arith.constant 0 : index
    %c0_11 = arith.constant 0 : index
    %c0_12 = arith.constant 0 : index
    %20 = vector.load %arg3[%c0_10, %c0_11, %c0_12] : memref<1x64x2xf32, #tpu.memory_space<vmem>>, vector<1x64x2xf32>
    %21 = vector.shape_cast %20 : vector<1x64x2xf32> to vector<64x2xf32>
    %22 = vector.shape_cast %19 : vector<64x2xf32> to vector<1x64x2xf32>
    tpu.vector_store %arg3[%c0_10, %c0_11, %c0_12], %22 {strides = array<i32>} : memref<1x64x2xf32, #tpu.memory_space<vmem>>, vector<1x64x2xf32>,
    return
  }
  func.func @transform_0(%arg0: i32) -> (i32, i32, i32, i32) {
    %c0_i32 = arith.constant 0 : i32
    %c0_i32_0 = arith.constant 0 : i32
    %c0_i32_1 = arith.constant 0 : i32
    %c0_i32_2 = arith.constant 0 : i32
    return %arg0, %c0_i32, %c0_i32_0, %c0_i32_1 : i32, i32, i32, i32
  }
  func.func @transform_1(%arg0: i32) -> (i32, i32, i32) {
    %c0_i32 = arith.constant 0 : i32
    %c0_i32_0 = arith.constant 0 : i32
    %c0_i32_1 = arith.constant 0 : i32
    return %arg0, %c0_i32, %c0_i32_0 : i32, i32, i32
  }
  func.func @transform_2(%arg0: i32) -> (i32, i32, i32) {
    %c0_i32 = arith.constant 0 : i32
    %c0_i32_0 = arith.constant 0 : i32
    %c0_i32_1 = arith.constant 0 : i32
    return %arg0, %c0_i32, %c0_i32_0 : i32, i32, i32
  }
}

module attributes {stable_mosaic.version = 11 : i64} {
  func.func @_block_s2_kernel(%arg0: i32, %arg1: memref<1x4x32x24xbf16, #tpu.memory_space<vmem>>, %arg2: memref<3x64x96xbf16, #tpu.memory_space<vmem>>, %arg3: memref<64x1xf32, #tpu.memory_space<vmem>>, %arg4: memref<64x1xf32, #tpu.memory_space<vmem>>, %arg5: memref<3x64x192xbf16, #tpu.memory_space<vmem>>, %arg6: memref<64x1xf32, #tpu.memory_space<vmem>>, %arg7: memref<64x1xf32, #tpu.memory_space<vmem>>, %arg8: memref<64x32xbf16, #tpu.memory_space<vmem>>, %arg9: memref<64x1xf32, #tpu.memory_space<vmem>>, %arg10: memref<64x1xf32, #tpu.memory_space<vmem>>, %arg11: memref<1x64x30xbf16, #tpu.memory_space<vmem>>, %arg12: memref<64x30xbf16, #tpu.memory_space<vmem>>) attributes {dimension_semantics = [#tpu.dimension_semantics<parallel>], iteration_bounds = array<i64: 2>, scalar_prefetch = 0 : i64, scratch_operands = 1 : i64, tpu.core_type = #tpu.core_type<tc>, window_params = [{transform_indices = @transform_0, window_bounds = array<i64: 1, 4, 32, 24>}, {pipeline_mode = #tpu.pipeline_mode<synchronous>, transform_indices = @transform_1, window_bounds = array<i64: 3, 64, 96>}, {pipeline_mode = #tpu.pipeline_mode<synchronous>, transform_indices = @transform_2, window_bounds = array<i64: 64, 1>}, {pipeline_mode = #tpu.pipeline_mode<synchronous>, transform_indices = @transform_3, window_bounds = array<i64: 64, 1>}, {pipeline_mode = #tpu.pipeline_mode<synchronous>, transform_indices = @transform_4, window_bounds = array<i64: 3, 64, 192>}, {pipeline_mode = #tpu.pipeline_mode<synchronous>, transform_indices = @transform_5, window_bounds = array<i64: 64, 1>}, {pipeline_mode = #tpu.pipeline_mode<synchronous>, transform_indices = @transform_6, window_bounds = array<i64: 64, 1>}, {pipeline_mode = #tpu.pipeline_mode<synchronous>, transform_indices = @transform_7, window_bounds = array<i64: 64, 32>}, {pipeline_mode = #tpu.pipeline_mode<synchronous>, transform_indices = @transform_8, window_bounds = array<i64: 64, 1>}, {pipeline_mode = #tpu.pipeline_mode<synchronous>, transform_indices = @transform_9, window_bounds = array<i64: 64, 1>}, {transform_indices = @transform_10, window_bounds = array<i64: 1, 64, 30>}]} {
    %c0 = arith.constant 0 : index
    %c0_0 = arith.constant 0 : index
    %c0_1 = arith.constant 0 : index
    %c0_2 = arith.constant 0 : index
    %0 = vector.load %arg1[%c0, %c0_0, %c0_1, %c0_2] : memref<1x4x32x24xbf16, #tpu.memory_space<vmem>>, vector<1x1x32x12xbf16>
    %1 = vector.shape_cast %0 : vector<1x1x32x12xbf16> to vector<32x12xbf16>
    %c0_3 = arith.constant 0 : index
    %c1 = arith.constant 1 : index
    %c0_4 = arith.constant 0 : index
    %c0_5 = arith.constant 0 : index
    %2 = vector.load %arg1[%c0_3, %c1, %c0_4, %c0_5] : memref<1x4x32x24xbf16, #tpu.memory_space<vmem>>, vector<1x1x32x12xbf16>
    %3 = vector.shape_cast %2 : vector<1x1x32x12xbf16> to vector<32x12xbf16>
    %c0_6 = arith.constant 0 : index
    %c0_7 = arith.constant 0 : index
    %c0_8 = arith.constant 0 : index
    %c1_9 = arith.constant 1 : index
    %4 = vector.load %arg1[%c0_6, %c0_7, %c0_8, %c1_9] : memref<1x4x32x24xbf16, #tpu.memory_space<vmem>>, vector<1x1x32x12xbf16>
    %5 = vector.shape_cast %4 : vector<1x1x32x12xbf16> to vector<32x12xbf16>
    %6 = tpu.concatenate %1, %3, %5 in 0 : vector<32x12xbf16>, vector<32x12xbf16>, vector<32x12xbf16> -> vector<96x12xbf16>
    %c0_10 = arith.constant 0 : index
    %c0_11 = arith.constant 0 : index
    %c0_12 = arith.constant 0 : index
    %7 = vector.load %arg2[%c0_10, %c0_11, %c0_12] : memref<3x64x96xbf16, #tpu.memory_space<vmem>>, vector<1x64x96xbf16>
    %8 = vector.shape_cast %7 : vector<1x64x96xbf16> to vector<64x96xbf16>
    %cst = arith.constant dense<0.000000e+00> : vector<64x12xf32>
    %9 = tpu.matmul %8, %6, %cst {dimension_numbers = #tpu.dot_dimension_numbers<[1], [0], [0], [1], [0, 0, 1, 1], [], []>} : vector<64x96xbf16>, vector<96x12xbf16>, vector<64x12xf32> -> vector<64x12xf32>
    %c0_13 = arith.constant 0 : index
    %c2 = arith.constant 2 : index
    %c0_14 = arith.constant 0 : index
    %c0_15 = arith.constant 0 : index
    %10 = vector.load %arg1[%c0_13, %c2, %c0_14, %c0_15] : memref<1x4x32x24xbf16, #tpu.memory_space<vmem>>, vector<1x1x32x12xbf16>
    %11 = vector.shape_cast %10 : vector<1x1x32x12xbf16> to vector<32x12xbf16>
    %c0_16 = arith.constant 0 : index
    %c3 = arith.constant 3 : index
    %c0_17 = arith.constant 0 : index
    %c0_18 = arith.constant 0 : index
    %12 = vector.load %arg1[%c0_16, %c3, %c0_17, %c0_18] : memref<1x4x32x24xbf16, #tpu.memory_space<vmem>>, vector<1x1x32x12xbf16>
    %13 = vector.shape_cast %12 : vector<1x1x32x12xbf16> to vector<32x12xbf16>
    %c0_19 = arith.constant 0 : index
    %c2_20 = arith.constant 2 : index
    %c0_21 = arith.constant 0 : index
    %c1_22 = arith.constant 1 : index
    %14 = vector.load %arg1[%c0_19, %c2_20, %c0_21, %c1_22] : memref<1x4x32x24xbf16, #tpu.memory_space<vmem>>, vector<1x1x32x12xbf16>
    %15 = vector.shape_cast %14 : vector<1x1x32x12xbf16> to vector<32x12xbf16>
    %16 = tpu.concatenate %11, %13, %15 in 0 : vector<32x12xbf16>, vector<32x12xbf16>, vector<32x12xbf16> -> vector<96x12xbf16>
    %c1_23 = arith.constant 1 : index
    %c0_24 = arith.constant 0 : index
    %c0_25 = arith.constant 0 : index
    %17 = vector.load %arg2[%c1_23, %c0_24, %c0_25] : memref<3x64x96xbf16, #tpu.memory_space<vmem>>, vector<1x64x96xbf16>
    %18 = vector.shape_cast %17 : vector<1x64x96xbf16> to vector<64x96xbf16>
    %cst_26 = arith.constant dense<0.000000e+00> : vector<64x12xf32>
    %19 = tpu.matmul %18, %16, %cst_26 {dimension_numbers = #tpu.dot_dimension_numbers<[1], [0], [0], [1], [0, 0, 1, 1], [], []>} : vector<64x96xbf16>, vector<96x12xbf16>, vector<64x12xf32> -> vector<64x12xf32>
    %20 = arith.addf %9, %19 : vector<64x12xf32>
    %c0_27 = arith.constant 0 : index
    %c0_28 = arith.constant 0 : index
    %c0_29 = arith.constant 0 : index
    %c6 = arith.constant 6 : index
    %21 = vector.load %arg1[%c0_27, %c0_28, %c0_29, %c6] : memref<1x4x32x24xbf16, #tpu.memory_space<vmem>>, vector<1x1x32x12xbf16>
    %22 = vector.shape_cast %21 : vector<1x1x32x12xbf16> to vector<32x12xbf16>
    %c0_30 = arith.constant 0 : index
    %c1_31 = arith.constant 1 : index
    %c0_32 = arith.constant 0 : index
    %c6_33 = arith.constant 6 : index
    %23 = vector.load %arg1[%c0_30, %c1_31, %c0_32, %c6_33] : memref<1x4x32x24xbf16, #tpu.memory_space<vmem>>, vector<1x1x32x12xbf16>
    %24 = vector.shape_cast %23 : vector<1x1x32x12xbf16> to vector<32x12xbf16>
    %c0_34 = arith.constant 0 : index
    %c0_35 = arith.constant 0 : index
    %c0_36 = arith.constant 0 : index
    %c7 = arith.constant 7 : index
    %25 = vector.load %arg1[%c0_34, %c0_35, %c0_36, %c7] : memref<1x4x32x24xbf16, #tpu.memory_space<vmem>>, vector<1x1x32x12xbf16>
    %26 = vector.shape_cast %25 : vector<1x1x32x12xbf16> to vector<32x12xbf16>
    %27 = tpu.concatenate %22, %24, %26 in 0 : vector<32x12xbf16>, vector<32x12xbf16>, vector<32x12xbf16> -> vector<96x12xbf16>
    %c2_37 = arith.constant 2 : index
    %c0_38 = arith.constant 0 : index
    %c0_39 = arith.constant 0 : index
    %28 = vector.load %arg2[%c2_37, %c0_38, %c0_39] : memref<3x64x96xbf16, #tpu.memory_space<vmem>>, vector<1x64x96xbf16>
    %29 = vector.shape_cast %28 : vector<1x64x96xbf16> to vector<64x96xbf16>
    %cst_40 = arith.constant dense<0.000000e+00> : vector<64x12xf32>
    %30 = tpu.matmul %29, %27, %cst_40 {dimension_numbers = #tpu.dot_dimension_numbers<[1], [0], [0], [1], [0, 0, 1, 1], [], []>} : vector<64x96xbf16>, vector<96x12xbf16>, vector<64x12xf32> -> vector<64x12xf32>
    %31 = arith.addf %20, %30 : vector<64x12xf32>
    %c0_41 = arith.constant 0 : index
    %c0_42 = arith.constant 0 : index
    %32 = vector.load %arg3[%c0_41, %c0_42] : memref<64x1xf32, #tpu.memory_space<vmem>>, vector<64x1xf32>
    %33 = vector.broadcast %32 : vector<64x1xf32> to vector<64x12xf32>
    %34 = arith.mulf %31, %33 : vector<64x12xf32>
    %c0_43 = arith.constant 0 : index
    %c0_44 = arith.constant 0 : index
    %35 = vector.load %arg4[%c0_43, %c0_44] : memref<64x1xf32, #tpu.memory_space<vmem>>, vector<64x1xf32>
    %36 = vector.broadcast %35 : vector<64x1xf32> to vector<64x12xf32>
    %37 = arith.addf %34, %36 : vector<64x12xf32>
    %cst_45 = arith.constant 0.000000e+00 : f32
    %38 = vector.broadcast %cst_45 : f32 to vector<64x12xf32>
    %39 = arith.maximumf %37, %38 : vector<64x12xf32>
    %40 = tpu.iota {dimensions = array<i32: 1>} : vector<1x12xi32>
    %c6_i32 = arith.constant 6 : i32
    %c0_i32 = arith.constant 0 : i32
    %41 = arith.cmpi eq, %c6_i32, %c0_i32 : i32
    %c1_i32 = arith.constant 1 : i32
    %42 = arith.select %41, %c1_i32, %c6_i32 : i32
    %43 = vector.broadcast %42 : i32 to vector<1x12xi32>
    %44 = arith.remsi %40, %43 : vector<1x12xi32>
    %c0_i32_46 = arith.constant 0 : i32
    %45 = vector.broadcast %c0_i32_46 : i32 to vector<1x12xi32>
    %46 = arith.cmpi ne, %44, %45 : vector<1x12xi32>
    %c0_i32_47 = arith.constant 0 : i32
    %47 = vector.broadcast %c0_i32_47 : i32 to vector<1x12xi32>
    %48 = arith.cmpi slt, %44, %47 : vector<1x12xi32>
    %c0_i32_48 = arith.constant 0 : i32
    %49 = arith.cmpi slt, %42, %c0_i32_48 : i32
    %50 = vector.broadcast %49 : i1 to vector<1x12xi1>
    %51 = vector.broadcast %50 : vector<1x12xi1> to vector<1x12xi1>
    %52 = arith.xori %48, %51 : vector<1x12xi1>
    %53 = arith.andi %52, %46 : vector<1x12xi1>
    %54 = vector.broadcast %42 : i32 to vector<1x12xi32>
    %55 = arith.addi %44, %54 : vector<1x12xi32>
    %56 = arith.select %53, %55, %44 : vector<1x12xi1>, vector<1x12xi32>
    %c4_i32 = arith.constant 4 : i32
    %57 = vector.broadcast %c4_i32 : i32 to vector<1x12xi32>
    %58 = arith.cmpi slt, %56, %57 : vector<1x12xi32>
    %cst_49 = arith.constant 0.000000e+00 : f32
    %59 = vector.shape_cast %58 : vector<1x12xi1> to vector<1x12xi1>
    %60 = vector.broadcast %59 : vector<1x12xi1> to vector<64x12xi1>
    %61 = vector.broadcast %cst_49 : f32 to vector<64x12xf32>
    %62 = arith.select %60, %39, %61 : vector<64x12xi1>, vector<64x12xf32>
    %63 = arith.truncf %62 : vector<64x12xf32> to vector<64x12xbf16>
    %cst_50 = arith.constant 0.000000e+00 : bf16
    %64 = vector.broadcast %cst_50 : bf16 to vector<64x7xbf16>
    %c0_51 = arith.constant 0 : index
    %c0_52 = arith.constant 0 : index
    %65 = vector.load %arg12[%c0_51, %c0_52] : memref<64x30xbf16, #tpu.memory_space<vmem>>, vector<64x7xbf16>
    tpu.vector_store %arg12[%c0_51, %c0_52], %64 {strides = array<i32>} : memref<64x30xbf16, #tpu.memory_space<vmem>>, vector<64x7xbf16>,
    %c0_53 = arith.constant 0 : index
    %c7_54 = arith.constant 7 : index
    %66 = vector.load %arg12[%c0_53, %c7_54] : memref<64x30xbf16, #tpu.memory_space<vmem>>, vector<64x12xbf16>
    tpu.vector_store %arg12[%c0_53, %c7_54], %63 {strides = array<i32>} : memref<64x30xbf16, #tpu.memory_space<vmem>>, vector<64x12xbf16>,
    %cst_55 = arith.constant 0.000000e+00 : bf16
    %67 = vector.broadcast %cst_55 : bf16 to vector<64x11xbf16>
    %c0_56 = arith.constant 0 : index
    %c19 = arith.constant 19 : index
    %68 = vector.load %arg12[%c0_56, %c19] : memref<64x30xbf16, #tpu.memory_space<vmem>>, vector<64x11xbf16>
    tpu.vector_store %arg12[%c0_56, %c19], %67 {strides = array<i32>} : memref<64x30xbf16, #tpu.memory_space<vmem>>, vector<64x11xbf16>,
    %c0_57 = arith.constant 0 : index
    %c0_58 = arith.constant 0 : index
    %69 = vector.load %arg12[%c0_57, %c0_58] : memref<64x30xbf16, #tpu.memory_space<vmem>>, vector<64x12xbf16>
    %c0_59 = arith.constant 0 : index
    %c1_60 = arith.constant 1 : index
    %70 = vector.load %arg12[%c0_59, %c1_60] : memref<64x30xbf16, #tpu.memory_space<vmem>>, vector<64x12xbf16>
    %c0_61 = arith.constant 0 : index
    %c2_62 = arith.constant 2 : index
    %71 = vector.load %arg12[%c0_61, %c2_62] : memref<64x30xbf16, #tpu.memory_space<vmem>>, vector<64x12xbf16>
    %72 = tpu.concatenate %69, %70, %71 in 0 : vector<64x12xbf16>, vector<64x12xbf16>, vector<64x12xbf16> -> vector<192x12xbf16>
    %c0_63 = arith.constant 0 : index
    %c0_64 = arith.constant 0 : index
    %c0_65 = arith.constant 0 : index
    %73 = vector.load %arg5[%c0_63, %c0_64, %c0_65] : memref<3x64x192xbf16, #tpu.memory_space<vmem>>, vector<1x64x192xbf16>
    %74 = vector.shape_cast %73 : vector<1x64x192xbf16> to vector<64x192xbf16>
    %cst_66 = arith.constant dense<0.000000e+00> : vector<64x12xf32>
    %75 = tpu.matmul %74, %72, %cst_66 {dimension_numbers = #tpu.dot_dimension_numbers<[1], [0], [0], [1], [0, 0, 1, 1], [], []>} : vector<64x192xbf16>, vector<192x12xbf16>, vector<64x12xf32> -> vector<64x12xf32>
    %c0_67 = arith.constant 0 : index
    %c6_68 = arith.constant 6 : index
    %76 = vector.load %arg12[%c0_67, %c6_68] : memref<64x30xbf16, #tpu.memory_space<vmem>>, vector<64x12xbf16>
    %c0_69 = arith.constant 0 : index
    %c7_70 = arith.constant 7 : index
    %77 = vector.load %arg12[%c0_69, %c7_70] : memref<64x30xbf16, #tpu.memory_space<vmem>>, vector<64x12xbf16>
    %c0_71 = arith.constant 0 : index
    %c8 = arith.constant 8 : index
    %78 = vector.load %arg12[%c0_71, %c8] : memref<64x30xbf16, #tpu.memory_space<vmem>>, vector<64x12xbf16>
    %79 = tpu.concatenate %76, %77, %78 in 0 : vector<64x12xbf16>, vector<64x12xbf16>, vector<64x12xbf16> -> vector<192x12xbf16>
    %c1_72 = arith.constant 1 : index
    %c0_73 = arith.constant 0 : index
    %c0_74 = arith.constant 0 : index
    %80 = vector.load %arg5[%c1_72, %c0_73, %c0_74] : memref<3x64x192xbf16, #tpu.memory_space<vmem>>, vector<1x64x192xbf16>
    %81 = vector.shape_cast %80 : vector<1x64x192xbf16> to vector<64x192xbf16>
    %cst_75 = arith.constant dense<0.000000e+00> : vector<64x12xf32>
    %82 = tpu.matmul %81, %79, %cst_75 {dimension_numbers = #tpu.dot_dimension_numbers<[1], [0], [0], [1], [0, 0, 1, 1], [], []>} : vector<64x192xbf16>, vector<192x12xbf16>, vector<64x12xf32> -> vector<64x12xf32>
    %83 = arith.addf %75, %82 : vector<64x12xf32>
    %c0_76 = arith.constant 0 : index
    %c12 = arith.constant 12 : index
    %84 = vector.load %arg12[%c0_76, %c12] : memref<64x30xbf16, #tpu.memory_space<vmem>>, vector<64x12xbf16>
    %c0_77 = arith.constant 0 : index
    %c13 = arith.constant 13 : index
    %85 = vector.load %arg12[%c0_77, %c13] : memref<64x30xbf16, #tpu.memory_space<vmem>>, vector<64x12xbf16>
    %c0_78 = arith.constant 0 : index
    %c14 = arith.constant 14 : index
    %86 = vector.load %arg12[%c0_78, %c14] : memref<64x30xbf16, #tpu.memory_space<vmem>>, vector<64x12xbf16>
    %87 = tpu.concatenate %84, %85, %86 in 0 : vector<64x12xbf16>, vector<64x12xbf16>, vector<64x12xbf16> -> vector<192x12xbf16>
    %c2_79 = arith.constant 2 : index
    %c0_80 = arith.constant 0 : index
    %c0_81 = arith.constant 0 : index
    %88 = vector.load %arg5[%c2_79, %c0_80, %c0_81] : memref<3x64x192xbf16, #tpu.memory_space<vmem>>, vector<1x64x192xbf16>
    %89 = vector.shape_cast %88 : vector<1x64x192xbf16> to vector<64x192xbf16>
    %cst_82 = arith.constant dense<0.000000e+00> : vector<64x12xf32>
    %90 = tpu.matmul %89, %87, %cst_82 {dimension_numbers = #tpu.dot_dimension_numbers<[1], [0], [0], [1], [0, 0, 1, 1], [], []>} : vector<64x192xbf16>, vector<192x12xbf16>, vector<64x12xf32> -> vector<64x12xf32>
    %91 = arith.addf %83, %90 : vector<64x12xf32>
    %c0_83 = arith.constant 0 : index
    %c0_84 = arith.constant 0 : index
    %92 = vector.load %arg6[%c0_83, %c0_84] : memref<64x1xf32, #tpu.memory_space<vmem>>, vector<64x1xf32>
    %93 = vector.broadcast %92 : vector<64x1xf32> to vector<64x12xf32>
    %94 = arith.mulf %91, %93 : vector<64x12xf32>
    %c0_85 = arith.constant 0 : index
    %c0_86 = arith.constant 0 : index
    %95 = vector.load %arg7[%c0_85, %c0_86] : memref<64x1xf32, #tpu.memory_space<vmem>>, vector<64x1xf32>
    %96 = vector.broadcast %95 : vector<64x1xf32> to vector<64x12xf32>
    %97 = arith.addf %94, %96 : vector<64x12xf32>
    %c0_87 = arith.constant 0 : index
    %c0_88 = arith.constant 0 : index
    %98 = vector.load %arg8[%c0_87, %c0_88] : memref<64x32xbf16, #tpu.memory_space<vmem>>, vector<64x32xbf16>
    %c0_89 = arith.constant 0 : index
    %c3_90 = arith.constant 3 : index
    %c0_91 = arith.constant 0 : index
    %c0_92 = arith.constant 0 : index
    %99 = vector.load %arg1[%c0_89, %c3_90, %c0_91, %c0_92] : memref<1x4x32x24xbf16, #tpu.memory_space<vmem>>, vector<1x1x32x12xbf16>
    %100 = vector.shape_cast %99 : vector<1x1x32x12xbf16> to vector<32x12xbf16>
    %cst_93 = arith.constant dense<0.000000e+00> : vector<64x12xf32>
    %101 = tpu.matmul %98, %100, %cst_93 {dimension_numbers = #tpu.dot_dimension_numbers<[1], [0], [0], [1], [0, 0, 1, 1], [], []>} : vector<64x32xbf16>, vector<32x12xbf16>, vector<64x12xf32> -> vector<64x12xf32>
    %c0_94 = arith.constant 0 : index
    %c0_95 = arith.constant 0 : index
    %102 = vector.load %arg9[%c0_94, %c0_95] : memref<64x1xf32, #tpu.memory_space<vmem>>, vector<64x1xf32>
    %103 = vector.broadcast %102 : vector<64x1xf32> to vector<64x12xf32>
    %104 = arith.mulf %101, %103 : vector<64x12xf32>
    %c0_96 = arith.constant 0 : index
    %c0_97 = arith.constant 0 : index
    %105 = vector.load %arg10[%c0_96, %c0_97] : memref<64x1xf32, #tpu.memory_space<vmem>>, vector<64x1xf32>
    %106 = vector.broadcast %105 : vector<64x1xf32> to vector<64x12xf32>
    %107 = arith.addf %104, %106 : vector<64x12xf32>
    %108 = arith.addf %97, %107 : vector<64x12xf32>
    %cst_98 = arith.constant 0.000000e+00 : f32
    %109 = vector.broadcast %cst_98 : f32 to vector<64x12xf32>
    %110 = arith.maximumf %108, %109 : vector<64x12xf32>
    %111 = tpu.iota {dimensions = array<i32: 1>} : vector<1x12xi32>
    %c6_i32_99 = arith.constant 6 : i32
    %c0_i32_100 = arith.constant 0 : i32
    %112 = arith.cmpi eq, %c6_i32_99, %c0_i32_100 : i32
    %c1_i32_101 = arith.constant 1 : i32
    %113 = arith.select %112, %c1_i32_101, %c6_i32_99 : i32
    %114 = vector.broadcast %113 : i32 to vector<1x12xi32>
    %115 = arith.remsi %111, %114 : vector<1x12xi32>
    %c0_i32_102 = arith.constant 0 : i32
    %116 = vector.broadcast %c0_i32_102 : i32 to vector<1x12xi32>
    %117 = arith.cmpi ne, %115, %116 : vector<1x12xi32>
    %c0_i32_103 = arith.constant 0 : i32
    %118 = vector.broadcast %c0_i32_103 : i32 to vector<1x12xi32>
    %119 = arith.cmpi slt, %115, %118 : vector<1x12xi32>
    %c0_i32_104 = arith.constant 0 : i32
    %120 = arith.cmpi slt, %113, %c0_i32_104 : i32
    %121 = vector.broadcast %120 : i1 to vector<1x12xi1>
    %122 = vector.broadcast %121 : vector<1x12xi1> to vector<1x12xi1>
    %123 = arith.xori %119, %122 : vector<1x12xi1>
    %124 = arith.andi %123, %117 : vector<1x12xi1>
    %125 = vector.broadcast %113 : i32 to vector<1x12xi32>
    %126 = arith.addi %115, %125 : vector<1x12xi32>
    %127 = arith.select %124, %126, %115 : vector<1x12xi1>, vector<1x12xi32>
    %c4_i32_105 = arith.constant 4 : i32
    %128 = vector.broadcast %c4_i32_105 : i32 to vector<1x12xi32>
    %129 = arith.cmpi slt, %127, %128 : vector<1x12xi32>
    %cst_106 = arith.constant 0.000000e+00 : f32
    %130 = vector.shape_cast %129 : vector<1x12xi1> to vector<1x12xi1>
    %131 = vector.broadcast %130 : vector<1x12xi1> to vector<64x12xi1>
    %132 = vector.broadcast %cst_106 : f32 to vector<64x12xf32>
    %133 = arith.select %131, %110, %132 : vector<64x12xi1>, vector<64x12xf32>
    %134 = arith.truncf %133 : vector<64x12xf32> to vector<64x12xbf16>
    %cst_107 = arith.constant 0.000000e+00 : bf16
    %135 = vector.broadcast %cst_107 : bf16 to vector<64x7xbf16>
    %c0_108 = arith.constant 0 : index
    %c0_109 = arith.constant 0 : index
    %c0_110 = arith.constant 0 : index
    %136 = vector.load %arg11[%c0_108, %c0_109, %c0_110] : memref<1x64x30xbf16, #tpu.memory_space<vmem>>, vector<1x64x7xbf16>
    %137 = vector.shape_cast %136 : vector<1x64x7xbf16> to vector<64x7xbf16>
    %138 = vector.shape_cast %135 : vector<64x7xbf16> to vector<1x64x7xbf16>
    tpu.vector_store %arg11[%c0_108, %c0_109, %c0_110], %138 {strides = array<i32>} : memref<1x64x30xbf16, #tpu.memory_space<vmem>>, vector<1x64x7xbf16>,
    %c0_111 = arith.constant 0 : index
    %c0_112 = arith.constant 0 : index
    %c7_113 = arith.constant 7 : index
    %139 = vector.load %arg11[%c0_111, %c0_112, %c7_113] : memref<1x64x30xbf16, #tpu.memory_space<vmem>>, vector<1x64x12xbf16>
    %140 = vector.shape_cast %139 : vector<1x64x12xbf16> to vector<64x12xbf16>
    %141 = vector.shape_cast %134 : vector<64x12xbf16> to vector<1x64x12xbf16>
    tpu.vector_store %arg11[%c0_111, %c0_112, %c7_113], %141 {strides = array<i32>} : memref<1x64x30xbf16, #tpu.memory_space<vmem>>, vector<1x64x12xbf16>,
    %cst_114 = arith.constant 0.000000e+00 : bf16
    %142 = vector.broadcast %cst_114 : bf16 to vector<64x11xbf16>
    %c0_115 = arith.constant 0 : index
    %c0_116 = arith.constant 0 : index
    %c19_117 = arith.constant 19 : index
    %143 = vector.load %arg11[%c0_115, %c0_116, %c19_117] : memref<1x64x30xbf16, #tpu.memory_space<vmem>>, vector<1x64x11xbf16>
    %144 = vector.shape_cast %143 : vector<1x64x11xbf16> to vector<64x11xbf16>
    %145 = vector.shape_cast %142 : vector<64x11xbf16> to vector<1x64x11xbf16>
    tpu.vector_store %arg11[%c0_115, %c0_116, %c19_117], %145 {strides = array<i32>} : memref<1x64x30xbf16, #tpu.memory_space<vmem>>, vector<1x64x11xbf16>,
    return
  }
  func.func @transform_0(%arg0: i32) -> (i32, i32, i32, i32) {
    %c0_i32 = arith.constant 0 : i32
    %c0_i32_0 = arith.constant 0 : i32
    %c0_i32_1 = arith.constant 0 : i32
    %c0_i32_2 = arith.constant 0 : i32
    return %arg0, %c0_i32, %c0_i32_0, %c0_i32_1 : i32, i32, i32, i32
  }
  func.func @transform_1(%arg0: i32) -> (i32, i32, i32) {
    %c0_i32 = arith.constant 0 : i32
    %c0_i32_0 = arith.constant 0 : i32
    %c0_i32_1 = arith.constant 0 : i32
    %c0_i32_2 = arith.constant 0 : i32
    return %c0_i32, %c0_i32_0, %c0_i32_1 : i32, i32, i32
  }
  func.func @transform_2(%arg0: i32) -> (i32, i32) {
    %c0_i32 = arith.constant 0 : i32
    %c0_i32_0 = arith.constant 0 : i32
    %c0_i32_1 = arith.constant 0 : i32
    return %c0_i32, %c0_i32_0 : i32, i32
  }
  func.func @transform_3(%arg0: i32) -> (i32, i32) {
    %c0_i32 = arith.constant 0 : i32
    %c0_i32_0 = arith.constant 0 : i32
    %c0_i32_1 = arith.constant 0 : i32
    return %c0_i32, %c0_i32_0 : i32, i32
  }
  func.func @transform_4(%arg0: i32) -> (i32, i32, i32) {
    %c0_i32 = arith.constant 0 : i32
    %c0_i32_0 = arith.constant 0 : i32
    %c0_i32_1 = arith.constant 0 : i32
    %c0_i32_2 = arith.constant 0 : i32
    return %c0_i32, %c0_i32_0, %c0_i32_1 : i32, i32, i32
  }
  func.func @transform_5(%arg0: i32) -> (i32, i32) {
    %c0_i32 = arith.constant 0 : i32
    %c0_i32_0 = arith.constant 0 : i32
    %c0_i32_1 = arith.constant 0 : i32
    return %c0_i32, %c0_i32_0 : i32, i32
  }
  func.func @transform_6(%arg0: i32) -> (i32, i32) {
    %c0_i32 = arith.constant 0 : i32
    %c0_i32_0 = arith.constant 0 : i32
    %c0_i32_1 = arith.constant 0 : i32
    return %c0_i32, %c0_i32_0 : i32, i32
  }
  func.func @transform_7(%arg0: i32) -> (i32, i32) {
    %c0_i32 = arith.constant 0 : i32
    %c0_i32_0 = arith.constant 0 : i32
    %c0_i32_1 = arith.constant 0 : i32
    return %c0_i32, %c0_i32_0 : i32, i32
  }
  func.func @transform_8(%arg0: i32) -> (i32, i32) {
    %c0_i32 = arith.constant 0 : i32
    %c0_i32_0 = arith.constant 0 : i32
    %c0_i32_1 = arith.constant 0 : i32
    return %c0_i32, %c0_i32_0 : i32, i32
  }
  func.func @transform_9(%arg0: i32) -> (i32, i32) {
    %c0_i32 = arith.constant 0 : i32
    %c0_i32_0 = arith.constant 0 : i32
    %c0_i32_1 = arith.constant 0 : i32
    return %c0_i32, %c0_i32_0 : i32, i32
  }
  func.func @transform_10(%arg0: i32) -> (i32, i32, i32) {
    %c0_i32 = arith.constant 0 : i32
    %c0_i32_0 = arith.constant 0 : i32
    %c0_i32_1 = arith.constant 0 : i32
    return %arg0, %c0_i32, %c0_i32_0 : i32, i32, i32
  }
}

module attributes {stable_mosaic.version = 11 : i64} {
  func.func @_head_kernel(%arg0: memref<2x256xbf16, #tpu.memory_space<vmem>>, %arg1: memref<256x64xbf16, #tpu.memory_space<vmem>>, %arg2: memref<1x64xf32, #tpu.memory_space<vmem>>, %arg3: memref<1x64xf32, #tpu.memory_space<vmem>>, %arg4: memref<1x64xf32, #tpu.memory_space<vmem>>, %arg5: memref<64x64xbf16, #tpu.memory_space<vmem>>, %arg6: memref<1x64xf32, #tpu.memory_space<vmem>>, %arg7: memref<2x64xf32, #tpu.memory_space<vmem>>) attributes {dimension_semantics = [], scalar_prefetch = 0 : i64, scratch_operands = 0 : i64, tpu.core_type = #tpu.core_type<tc>} {
    %c0 = arith.constant 0 : index
    %c0_0 = arith.constant 0 : index
    %0 = vector.load %arg0[%c0, %c0_0] : memref<2x256xbf16, #tpu.memory_space<vmem>>, vector<2x256xbf16>
    %c0_1 = arith.constant 0 : index
    %c0_2 = arith.constant 0 : index
    %1 = vector.load %arg1[%c0_1, %c0_2] : memref<256x64xbf16, #tpu.memory_space<vmem>>, vector<256x64xbf16>
    %cst = arith.constant dense<0.000000e+00> : vector<2x64xf32>
    %2 = tpu.matmul %0, %1, %cst {dimension_numbers = #tpu.dot_dimension_numbers<[1], [0], [0], [1], [0, 0, 1, 1], [], []>} : vector<2x256xbf16>, vector<256x64xbf16>, vector<2x64xf32> -> vector<2x64xf32>
    %c0_3 = arith.constant 0 : index
    %c0_4 = arith.constant 0 : index
    %3 = vector.load %arg2[%c0_3, %c0_4] : memref<1x64xf32, #tpu.memory_space<vmem>>, vector<1x64xf32>
    %4 = vector.broadcast %3 : vector<1x64xf32> to vector<2x64xf32>
    %5 = arith.addf %2, %4 : vector<2x64xf32>
    %cst_5 = arith.constant 0.000000e+00 : f32
    %6 = vector.broadcast %cst_5 : f32 to vector<2x64xf32>
    %7 = arith.maximumf %5, %6 : vector<2x64xf32>
    %c0_6 = arith.constant 0 : index
    %c0_7 = arith.constant 0 : index
    %8 = vector.load %arg3[%c0_6, %c0_7] : memref<1x64xf32, #tpu.memory_space<vmem>>, vector<1x64xf32>
    %9 = vector.broadcast %8 : vector<1x64xf32> to vector<2x64xf32>
    %10 = arith.mulf %7, %9 : vector<2x64xf32>
    %c0_8 = arith.constant 0 : index
    %c0_9 = arith.constant 0 : index
    %11 = vector.load %arg4[%c0_8, %c0_9] : memref<1x64xf32, #tpu.memory_space<vmem>>, vector<1x64xf32>
    %12 = vector.broadcast %11 : vector<1x64xf32> to vector<2x64xf32>
    %13 = arith.addf %10, %12 : vector<2x64xf32>
    %14 = arith.truncf %13 : vector<2x64xf32> to vector<2x64xbf16>
    %c0_10 = arith.constant 0 : index
    %c0_11 = arith.constant 0 : index
    %15 = vector.load %arg5[%c0_10, %c0_11] : memref<64x64xbf16, #tpu.memory_space<vmem>>, vector<64x64xbf16>
    %cst_12 = arith.constant dense<0.000000e+00> : vector<2x64xf32>
    %16 = tpu.matmul %14, %15, %cst_12 {dimension_numbers = #tpu.dot_dimension_numbers<[1], [0], [0], [1], [0, 0, 1, 1], [], []>} : vector<2x64xbf16>, vector<64x64xbf16>, vector<2x64xf32> -> vector<2x64xf32>
    %c0_13 = arith.constant 0 : index
    %c0_14 = arith.constant 0 : index
    %17 = vector.load %arg6[%c0_13, %c0_14] : memref<1x64xf32, #tpu.memory_space<vmem>>, vector<1x64xf32>
    %18 = vector.broadcast %17 : vector<1x64xf32> to vector<2x64xf32>
    %19 = arith.addf %16, %18 : vector<2x64xf32>
    %c0_15 = arith.constant 0 : index
    %c0_16 = arith.constant 0 : index
    %20 = vector.load %arg7[%c0_15, %c0_16] : memref<2x64xf32, #tpu.memory_space<vmem>>, vector<2x64xf32>
    tpu.vector_store %arg7[%c0_15, %c0_16], %19 {strides = array<i32>} : memref<2x64xf32, #tpu.memory_space<vmem>>, vector<2x64xf32>,
    return
  }
}

</mosaic_0001>

<bundles_post_ra>
// kernel: _lambda_.8
= control target key start
LH: loop header
LB: loop body
LE: loop exit
PB: predicated region body
PF: predicated region fallthrough
CT: control target
= control target key end

     0   :  { %s1102_s15 = smov 0   ;;  %s1494_s0 = inlined_call_operand.vmem [shape: bf16[2,1,646], index: 0, kind: input, shape index: {}]   ;;  %s1495_s1 = inlined_call_operand.vmem [shape: bf16[1,8,9], index: 1, kind: input, shape index: {}]   ;;  %s1496_s2 = inlined_call_operand.vmem [shape: f32[8,1], index: 2, kind: input, shape index: {}]   ;;  %s1497_s3 = inlined_call_operand.vmem [shape: f32[8,1], index: 3, kind: input, shape index: {}]   ;;  %s1498_s4 = inlined_call_operand.vmem [shape: bf16[2,8,646], index: 4, kind: output, shape index: {}]  }
   0x1 LB: > { %s952_s16 = sadd.s32 4294967295, %s1061_s15   ;;  %p956_p0 = scmp.ge.s32.totalorder %s1061_s15, 1  ;;  %s1061_s15 = sphi %s1102_s15, %s14_s15  }
   0x2   : > { %p161_p1 = scmp.lt.s32.totalorder %s1061_s15, 3 }
   0x4   : > { %p162_p2 = pnand %p956_p0, %p161_p1 }
   0x5   : > { %p186_p3 = scmp.lt.s32.totalorder (!%p162_p2), %s952_s16, 1  ;;  %v202_v0 = vlaneseq (!%p162_p2)  ;;  %v1063_v1 = vmov (!%p162_p2), 1966171168   ;;  %s1064_s21 = smov (!%p162_p2), 93   ;;  %v1072_v59 = vmov (!%p162_p2), 0   ;;  %v728_v63 = vld [vmem:[%s1497_s3] sm:$0xff] (!%p162_p2) }
   0x6   : > { %165 = sbr.rel (%p162_p2) target bundleno = 549 (0x225), region = 36  ;;  %v200_v2 = vunpack.c.l.s4 (!%p162_p2), %v1063_v1  ;;  %s1065_s22 = smov (!%p162_p2), 126   ;;  %627 = vmatprep.mubr.bf16.mxu0 (!%p162_p2), %v1072_v59  ;;  %668 = vmatprep.mubr.bf16.mxu1 (!%p162_p2), %v1072_v59  ;;  %v717_v1 = vld [vmem:[%s1496_s2] sm:$0xff] (!%p162_p2)  ;;  %vm267_vm0 = vcmask (!%p162_p2), 1039360   ;;  %vm1500_vm1 = vcmask (!%p162_p2), 1040384   ;;  %vm1499_vm3 = vcmask (!%p162_p2), 769024  }
   0x7   : > { %v203_v3 = vshrl.u32 (!%p162_p2), %v202_v0, 7  ;;  %s1066_s23 = smov (!%p162_p2), 127   ;;  %s1067_s24 = smov (!%p162_p2), 94   ;;  %1051 = vset.pattern.permute.xlu0 (!%p162_p2), %v1072_v59  ;;  %1052 = vset.pattern.permute.xlu1 (!%p162_p2), %v1072_v59  ;;  %vm467_vm2 = vsmask.f32 (!%p162_p2), 256  ;;  %vm495_vm4 = vcmask (!%p162_p2), 1041408  }
   0x8   : > { %v201_v4 = vunpack.c.0.s8 (!%p162_p2), %v200_v2  ;;  %s1068_s25 = smov (!%p162_p2), 92   ;;  %s1069_s26 = smov (!%p162_p2), 60   ;;  %vm496_vm5 = vsmask.f32 (!%p162_p2), 1280  ;;  %vm312_vm6 = vcmask (!%p162_p2), 1031168   ;;  %vm1232_vm7 = vmand (!%p162_p2), %vm1500_vm1, %vm467_vm2  ;;  %vm369_vm8 = vcmask (!%p162_p2), 760832  }
   0x9   : > { %s1070_s27 = smov (!%p162_p2), 59   ;;  %s1071_s28 = smov (!%p162_p2), 58   ;;  %vm1249_vm9 = vmand (!%p162_p2), %vm495_vm4, %vm496_vm5  ;;  %vm389_vm10 = vcmask (!%p162_p2), 752640   ;;  %vm524_vm11 = vcmask (!%p162_p2), 1042432   ;;  %vm525_vm12 = vsmask.f32 (!%p162_p2), 2304 }
   0xa   : > { %v1114_v5 = vsub.s32 (!%p162_p2), %v201_v4, %v203_v3  ;;  %vm418_vm13 = vcmask (!%p162_p2), 490496   ;;  %vm438_vm14 = vcmask (!%p162_p2), 482304   ;;  %vm553_vm15 = vcmask (!%p162_p2), 1043456   ;;  %vm1283_vm5 = vmand (!%p162_p2), %vm524_vm11, %vm525_vm12  ;;  %s1076_s13 = smov (!%p162_p2), 35  }
   0xb   : > { %vm554_vm2 = vsmask.f32 (!%p162_p2), 3328  ;;  %vm461_vm12 = vcmask (!%p162_p2), 474112  }
   0xd   : > { %s1525_s16 = smov (!%p186_p3, %s952_s16), 1 }
   0xe   : > { %s977_s17 = smul.u32 6, %s1525_s16 }
   0xf   : > { %s978_s9 = smul.u32 24, %s1525_s16 }
  0x10   : > { %s189_s20 = scalar_lea.vmem %s1494_s0, %s977_s17 }
  0x11   : > { %v196_v6 = vld [vmem:[%s189_s20] sm:$0x1f]  ;;  %s1427_s12 = scalar_lea.vmem %s1498_s4, %s978_s9 }
  0x12   : > { %v205_v7 = vrot.slane %v196_v6, %v1114_v5  ;;  %v277_v8 = vcombine.low %v196_v6, %v196_v6  ;;  %v198_v23 = vcombine.high %v196_v6, %v196_v6 }
  0x14   : > { %v1121_v9 = vrot.slane %v205_v7, %v1114_v5  ;;  %v284_v10 = vrot.slane %v277_v8, %v1114_v5  ;;  %v342_v11 = vcombine.low %v205_v7, %v205_v7  ;;  %v213_v12 = vcombine.high %v205_v7, %v205_v7 }
  0x15   : > { %v212_v30 = vrot.slane %v198_v23, %v1114_v5 }
  0x16   : > { %361 = vrot.lane.b32.xlu1 %v1121_v9, %s1064_s21  ;;  %v292_v13 = vrot.slane %v284_v10, %v1114_v5  ;;  %v1128_v14 = vrot.slane %v342_v11, %v1114_v5  ;;  %v1131_v15 = vrot.slane %v213_v12, %v1114_v5  ;;  %v1135_v16 = vcombine.high %v1121_v9, %v1121_v9 }
  0x17   : > { %v285_v17 = vcombine.high %v284_v10, %v284_v10  ;;  %v243_v25 = vshll.u32 %v1121_v9, 16  ;;  %v1159_v35 = vrot.slane %v212_v30, %v1114_v5  ;;  %v399_v43 = vcombine.low %v284_v10, %v284_v10 }
  0x18   : > { %302 = vrot.lane.b32.xlu0 %v292_v13, %s1065_s22  ;;  %v246_v18 = vshll.u32 %v1131_v15, 16  ;;  %v249_v19 = vshll.u32 %v1135_v16, 16  ;;  %v1142_v20 = vcombine.high %v1131_v15, %v1131_v15  ;;  %v358_v24 = vcombine.high %v1128_v14, %v1128_v14 }
  0x19   : > { %v299_v22 = vrot.slane %v285_v17, %v1114_v5  ;;  %v1152_v27 = vcombine.high %v292_v13, %v292_v13  ;;  %v317_v37 = vrot.slane %v243_v25, 7  ;;  %v255_v39 = vshll.u32 %v1159_v35, 16 }
  0x1a   : > { %359 = vrot.lane.b32.xlu1 %v1128_v14, %s1064_s21  ;;  %v1011_v21 = vpack.i.bf16 %v249_v19, %v246_v18  ;;  %v252_v26 = vshll.u32 %v1142_v20, 16  ;;  %v318_v28 = vrot.slane %v246_v18, 7  ;;  %v319_v29 = vrot.slane %v249_v19, 7 }
  0x1b   : > { %v375_v32 = vrot.slane %v246_v18, 6  ;;  %v376_v33 = vrot.slane %v249_v19, 6  ;;  %v374_v41 = vrot.slane %v243_v25, 6  ;;  %v406_v45 = vrot.slane %v399_v43, %v1114_v5 }
  0x1c   : > { %1012 = vrot.lane.b32.xlu0 %v1011_v21, %s1066_s23  ;;  %v1016_v31 = vpack.i.bf16 %v252_v26, %v243_v25  ;;  %v1021_v34 = vpack.i.bf16 %v319_v29, %v318_v28  ;;  %v320_v38 = vrot.slane %v252_v26, 7  ;;  %v377_v42 = vrot.slane %v252_v26, 6 }
  0x1d   : > { %v1026_v36 = vpack.i.bf16 %v376_v33, %v375_v32  ;;  %v301_v46 = vcombine.high %v299_v22, %v299_v22  ;;  %v407_v47 = vcombine.high %v406_v45, %v406_v45  ;;  %v424_v48 = vrot.slane %v246_v18, 5 }
  0x1e   : > { %304 = vrot.lane.b32.xlu1 %v299_v22, %s1065_s22  ;;  %v1031_v40 = vpack.i.bf16 %v320_v38, %v317_v37  ;;  %v1036_v44 = vpack.i.bf16 %v377_v42, %v374_v41  ;;  %v425_v49 = vrot.slane %v249_v19, 5  ;;  %v321_v50 = vrot.slane %v255_v39, 7 }
  0x1f   : > { %v423_v52 = vrot.slane %v243_v25, 5  ;;  %v426_v53 = vrot.slane %v252_v26, 5  ;;  %v450_v54 = vcombine.low %v1131_v15, %v1131_v15  ;;  %v343_v56 = vcombine.low %v212_v30, %v212_v30 }
  0x20   : > { %363 = vrot.lane.b32.xlu0 %v358_v24, %s1064_s21  ;;  %v1041_v51 = vpack.i.bf16 %v425_v49, %v424_v48  ;;  %v448_v57 = vcombine.low %v1121_v9, %v1121_v9  ;;  %v378_v60 = vrot.slane %v255_v39, 6  ;;  %v427_v61 = vrot.slane %v255_v39, 5 }
  0x21   : > { %v1046_v55 = vpack.i.bf16 %v426_v53, %v423_v52  ;;  %v357_v58 = vrot.slane %v343_v56, %v1114_v5  ;;  %v449_v62 = vcombine.low %v1159_v35, %v1159_v35 }
  0x22   : > { %306 = vrot.lane.b32.xlu1 %v1152_v27, %s1065_s22 }
  0x24   : > { %1017 = vrot.lane.b32.xlu0 %v1016_v31, %s1066_s23 }
  0x26   : > { %1022 = vrot.lane.b32.xlu1 %v1021_v34, %s1067_s24 }
  0x28   : > { %1027 = vrot.lane.b32.xlu0 %v1026_v36, %s1068_s25 }
  0x2a   : > { %265 = vrot.lane.b32.xlu1 %v255_v39, %s1066_s23 }
  0x2c   : > { %1032 = vrot.lane.b32.xlu0 %v1031_v40, %s1067_s24 }
  0x2e   : > { %410 = vrot.lane.b32.xlu1 %v292_v13, %s1069_s26 }
  0x30   : > { %1037 = vrot.lane.b32.xlu0 %v1036_v44, %s1068_s25 }
  0x32   : > { %308 = vrot.lane.b32.xlu1 %v301_v46, %s1065_s22 }
  0x34   : > { %412 = vrot.lane.b32.xlu0 %v407_v47, %s1069_s26 }
  0x36   : > { %408 = vrot.lane.b32.xlu1 %v406_v45, %s1069_s26 }
  0x38   : > { %310 = vrot.lane.b32.xlu0 %v1121_v9, %s1065_s22 }
  0x3a   : > { %330 = vrot.lane.b32.xlu1 %v321_v50, %s1067_s24 }
  0x3c   : > { %1042 = vrot.lane.b32.xlu0 %v1041_v51, %s1070_s27 }
  0x3e   : > { %453 = vrot.lane.b32.xlu1 %v450_v54, %s1071_s28 }
  0x40   : > { %1047 = vrot.lane.b32.xlu0 %v1046_v55, %s1070_s27 }
  0x42   : > { %365 = vrot.lane.b32.xlu1 %v1135_v16, %s1064_s21 }
  0x44   : > { %455 = vrot.lane.b32.xlu0 %v1121_v9, %s1071_s28 }
  0x46   : > { %451 = vrot.lane.b32.xlu1 %v448_v57, %s1071_s28 }
  0x48   : > { %367 = vrot.lane.b32.xlu0 %v357_v58, %s1064_s21  ;;  %v1073_v58 = vmov 65535  }
  0x4a   : > { %414 = vrot.lane.b32.xlu1 %v1152_v27, %s1069_s26 }
  0x4c   : > { %387 = vrot.lane.b32.xlu0 %v378_v60, %s1068_s25  ;;  %v583_v60 = vsel %vm553_vm15, 4294967295, %v1073_v58 }
  0x4e   : > { %436 = vrot.lane.b32.xlu1 %v427_v61, %s1070_s27 }
  0x50   : > { %416 = vrot.lane.b32.xlu0 %v1128_v14, %s1069_s26 }
  0x52   : > { %459 = vrot.lane.b32.xlu1 %v449_v62, %s1071_s28 }
  0x54   : > { %457 = vrot.lane.b32.xlu0 %v1131_v15, %s1071_s28 }
  0x56   : > { %731 = vperm.xlu1 %1052, %v728_v63  }
  0x58   : > { %720 = vperm.xlu0 %1051, %v717_v1  }
  0x88   : > { %v1198_v2 = vpop.permute.xlu1 %361 }
  0x8a   : > { %v303_v3 = vpop.permute.xlu0 %302 }
  0x8c   : > { %v1200_v4 = vpop.permute.xlu1 %359 }
  0x8e   : > { %v1202_v5 = vpop.permute.xlu0 %1012 }
  0x8f   : > { %v1015_v21 = vunpack.i.h.bf16 %v1202_v5  ;;  %v1014_v22 = vunpack.i.l.bf16 %v1202_v5 }
  0x90   : > { %v305_v6 = vpop.permute.xlu1 %304 }
  0x91   : > { %v269_v29 = vsel %vm267_vm0, %v1014_v22, %v1015_v21  ;;  %v313_v49 = vsel %vm312_vm6, %v303_v3, %v305_v6  ;;  %v745_v3 = vand.u32 127, %v202_v0 }
  0x92   : > { %v1204_v7 = vpop.permute.xlu0 %363  ;;  %v470_v38 = vsel %vm1232_vm7, %v1131_v15, %v269_v29 }
  0x93   : > { %v371_v50 = vsel %vm369_vm8, %v1198_v2, %v1204_v7 }
  0x94   : > { %v1206_v8 = vpop.permute.xlu1 %306 }
  0x95   : > { %v314_v31 = vsel %vm312_vm6, %v305_v6, %v1206_v8  ;;  %v370_v6 = vsel %vm369_vm8, %v1200_v4, %v1198_v2 }
  0x96   : > { %v1208_v10 = vpop.permute.xlu0 %1017  ;;  %v481_v39 = vsel %vm1500_vm1, %v470_v38, %v314_v31 }
  0x97   : > { %v1019_v24 = vunpack.i.l.bf16 %v1208_v10  ;;  %v1020_v61 = vunpack.i.h.bf16 %v1208_v10 }
  0x98   : > { %v1210_v11 = vpop.permute.xlu1 %1022 }
  0x99   : > { %v1025_v25 = vunpack.i.h.bf16 %v1210_v11  ;;  %v1024_v26 = vunpack.i.l.bf16 %v1210_v11  ;;  %v268_v32 = vsel %vm267_vm0, %v1019_v24, %v1014_v22 }
  0x9a   : > { %v1212_v12 = vpop.permute.xlu0 %1027  ;;  %v469_v43 = vsel %vm1232_vm7, %v1121_v9, %v268_v32 }
  0x9b   : > { %v334_v34 = vsel %vm1499_vm3, %v1024_v26, %v1025_v25  ;;  %v1030_v40 = vunpack.i.h.bf16 %v1212_v12  ;;  %v1029_v41 = vunpack.i.l.bf16 %v1212_v12  ;;  %v477_v9 = vsel %vm1500_vm1, %v469_v43, %v313_v49  ;;  %vm1303_vm1 = vmand %vm553_vm15, %vm554_vm2 }
  0x9c   : > { %v1214_v13 = vpop.permute.xlu1 %265  ;;  %v499_v44 = vsel %vm1249_vm9, %v481_v39, %v334_v34 }
  0x9d   : > { %v391_v51 = vsel %vm389_vm10, %v1029_v41, %v1030_v40  ;;  %v510_v52 = vsel %vm495_vm4, %v499_v44, %v371_v50  ;;  %v271_v5 = vsel %vm267_vm0, %v1020_v61, %v1214_v13  ;;  %v473_v49 = vsel %vm1232_vm7, %v1159_v35, %v1214_v13 }
  0x9e   : > { %v1216_v14 = vpop.permute.xlu0 %1032  ;;  %v528_v10 = vsel %vm1283_vm5, %v510_v52, %v391_v51  ;;  %v577_v51 = vld [vmem:[%s1495_s1] sm:$0xf] }
  0x9f   : > { %v1034_v33 = vunpack.i.l.bf16 %v1216_v14 }
  0xa0   : > { %v1218_v17 = vpop.permute.xlu1 %410 }
  0xa1   : > { %v333_v45 = vsel %vm1499_vm3, %v1034_v33, %v1024_v26  ;;  %vm582_vm3 = vcmask 1044480  }
  0xa2   : > { %v1220_v18 = vpop.permute.xlu0 %1037  ;;  %v498_v56 = vsel %vm1249_vm9, %v477_v9, %v333_v45  ;;  %v1320_v32 = vsel %vm582_vm3, %v583_v60, 0  ;;  %vm578_vm3 = vcmask 72704  }
  0xa3   : > { %v1039_v15 = vunpack.i.l.bf16 %v1220_v18  ;;  %v506_v26 = vsel %vm495_vm4, %v498_v56, %v370_v6  ;;  %v1040_v35 = vunpack.i.h.bf16 %v1220_v18 }
  0xa4   : > { %v1222_v19 = vpop.permute.xlu1 %308 }
  0xa5   : > { %v390_v62 = vsel %vm389_vm10, %v1039_v15, %v1029_v41  ;;  %v315_v39 = vsel %vm312_vm6, %v1206_v8, %v1222_v19 }
  0xa6   : > { %v1226_v23 = vpop.permute.xlu0 %412  ;;  %v527_v2 = vsel %vm1283_vm5, %v506_v26, %v390_v62 }
  0xa7   : > { %v420_v55 = vsel %vm418_vm13, %v1218_v17, %v1226_v23 }
  0xa8   : > { %v409_v27 = vpop.permute.xlu1 %408  ;;  %v539_v24 = vsel %vm524_vm11, %v528_v10, %v420_v55 }
  0xa9   : > { %v419_v22 = vsel %vm418_vm13, %v409_v27, %v1218_v17  ;;  %v270_v27 = vsel %vm267_vm0, %v1015_v21, %v1020_v61  ;;  %v1035_v21 = vunpack.i.h.bf16 %v1216_v14  ;;  %vm1509_vm0 = vcmask 1040384  }
  0xaa   : > { %v1239_v30 = vpop.permute.xlu0 %310  ;;  %v535_v33 = vsel %vm524_vm11, %v527_v2, %v419_v22  ;;  %vm1510_vm2 = vmmov %vm1509_vm0 }
  0xab   : > { %v316_v8 = vsel %vm312_vm6, %v1222_v19, %v1239_v30  ;;  %v493_v9 = vsel %vm1510_vm2, %v473_v49, %v1239_v30  ;;  %vm1511_vm6 = vmmov %vm1509_vm0  ;;  %v1074_v30 = vmov 0.0  }
  0xac   : > { %v1253_v37 = vpop.permute.xlu1 %330 }
  0xad   : > { %v502_v18 = vsel %vm1249_vm9, %v493_v9, %v1253_v37 }
  0xae   : > { %v1261_v42 = vpop.permute.xlu0 %1042 }
  0xaf   : > { %v1045_v46 = vunpack.i.h.bf16 %v1261_v42  ;;  %v1044_v47 = vunpack.i.l.bf16 %v1261_v42 }
  0xb0   : > { %v454_v48 = vpop.permute.xlu1 %453 }
  0xb1   : > { %v440_v1 = vsel %vm438_vm14, %v1044_v47, %v1045_v46 }
  0xb2   : > { %v1287_v54 = vpop.permute.xlu0 %1047  ;;  %v557_v17 = vsel %vm1303_vm1, %v539_v24, %v440_v1 }
  0xb3   : > { %v1049_v57 = vunpack.i.l.bf16 %v1287_v54  ;;  %v1050_v61 = vunpack.i.h.bf16 %v1287_v54 }
  0xb4   : > { %v366_v63 = vpop.permute.xlu1 %365 }
  0xb5   : > { %v439_v29 = vsel %vm438_vm14, %v1049_v57, %v1044_v47  ;;  %v471_v47 = vsel %vm1232_vm7, %v1135_v16, %v270_v27  ;;  %v472_v16 = vsel %vm1232_vm7, %v1142_v20, %v271_v5  ;;  %v372_v19 = vsel %vm369_vm8, %v1204_v7, %v366_v63 }
  0xb6   : > { %v1317_v31 = vpop.permute.xlu0 %455  ;;  %v556_v44 = vsel %vm1303_vm1, %v535_v33, %v439_v29  ;;  %v485_v14 = vsel %vm1509_vm0, %v471_v47, %v315_v39  ;;  %v489_v13 = vsel %vm1511_vm6, %v472_v16, %v316_v8  ;;  %vm1512_vm0 = vcmask 769024  }
  0xb7   : > { %v463_v4 = vsel %vm461_vm12, %v454_v48, %v1317_v31  ;;  %v336_v52 = vsel %vm1512_vm0, %v1035_v21, %v1253_v37  ;;  %vm1513_vm7 = vmmov %vm1512_vm0  ;;  %v392_v37 = vsel %vm389_vm10, %v1030_v40, %v1040_v35  ;;  %v441_v26 = vsel %vm438_vm14, %v1045_v46, %v1050_v61 }
  0xb8   : > { %v452_v34 = vpop.permute.xlu1 %451  ;;  %v567_v38 = vsel %vm553_vm15, %v557_v17, %v463_v4  ;;  %v335_v20 = vsel %vm1513_vm7, %v1025_v25, %v1035_v21  ;;  %v501_v11 = vsel %vm1249_vm9, %v489_v13, %v336_v52  ;;  %v747_v47 = vadd.s32 256, %v745_v3 }
  0xb9   : > { %v462_v41 = vsel %vm461_vm12, %v452_v34, %v454_v48  ;;  %v587_v43 = vand.u32 %v1320_v32, %v567_v38  ;;  %v500_v7 = vsel %vm1249_vm9, %v485_v14, %v335_v20 }
  0xba   : > { %v368_v15 = vpop.permute.xlu0 %367  ;;  %v564_v45 = vsel %vm553_vm15, %v556_v44, %v462_v41  ;;  %v514_v56 = vsel %vm495_vm4, %v500_v7, %v372_v19  ;;  %v749_v44 = vadd.s32 512, %v745_v3 }
  0xbb   : > { %595 = vmatprep.subr.bf16.mxu0 %v587_v43  ;;  %v585_v48 = vand.u32 %v1320_v32, %v564_v45  ;;  %v373_v55 = vsel %vm369_vm8, %v366_v63, %v368_v15  ;;  %v522_v25 = vsel %vm495_vm4, %v502_v18, %v368_v15  ;;  %vm1075_vm8 = vmmov 0  }
  0xbc   : > { %v415_v50 = vpop.permute.xlu1 %414  ;;  %v518_v62 = vsel %vm495_vm4, %v501_v11, %v373_v55  ;;  %v529_v1 = vsel %vm1283_vm5, %v514_v56, %v392_v37  ;;  %vm855_vm4 = vcmask 281600  }
  0xbd   : > { %596 = vmatpush1.bf16.msra.mxu0 %v585_v48  ;;  %v421_v60 = vsel %vm418_vm13, %v1226_v23, %v415_v50  ;;  %856 = vst.msk [vmem:[%s1427_s12] sm:$0xf] %vm855_vm4, %v1072_v59  ;;  %v1440_v15 = vmul.u32.u64.low 4042322161, %v749_v44  ;;  %v1441_v45 = vmul.u32.u64.high 4042322161, %v749_v44, %v1440_v15  ;;  %v748_v48 = vadd.s32 384, %v745_v3 }
  0xbe   : > { %v388_v28 = vpop.permute.xlu0 %387  ;;  %971 = vmatprep.subr.bf16.mxu0 %v1074_v30  ;;  %v543_v40 = vsel %vm524_vm11, %v529_v1, %v421_v60  ;;  %v1443_v0 = vmul.u32.u64.low 4042322161, %v747_v47  ;;  %v1444_v14 = vmul.u32.u64.high 4042322161, %v747_v47, %v1443_v0 }
  0xbf   : > { %v393_v57 = vsel %vm389_vm10, %v1040_v35, %v388_v28  ;;  %v531_v63 = vsel %vm1283_vm5, %v522_v25, %v388_v28  ;;  %v558_v33 = vsel %vm1303_vm1, %v543_v40, %v441_v26 }
  0xc0   : > { %v437_v58 = vpop.permute.xlu1 %436  ;;  %958 = vmatmul.mubr.msk.bf16.vlgmr.msra.gmra.mrb[0].mxu0 %vm578_vm3, %v577_v51  ;;  %v530_v23 = vsel %vm1283_vm5, %v518_v62, %v393_v57  ;;  %v1446_v16 = vmul.u32.u64.low 4042322161, %v748_v48  ;;  %v1447_v9 = vmul.u32.u64.high 4042322161, %v748_v48, %v1446_v16 }
  0xc1   : > { %973 = vmatprep.mubr.msk.bf16.mxu0 %vm1075_vm8, %v1074_v30  ;;  %v442_v53 = vsel %vm438_vm14, %v1050_v61, %v437_v58  ;;  %v778_v30 = vshrl.u32 %v1444_v14, 5 }
  0xc2   : > { %v417_v36 = vpop.permute.xlu0 %416  ;;  %v789_v55 = vshrl.u32 %v1447_v9, 5 }
  0xc3   : > { %v422_v6 = vsel %vm418_vm13, %v415_v50, %v417_v36  ;;  %v551_v12 = vsel %vm524_vm11, %v531_v63, %v417_v36  ;;  %v779_v62 = vmul.u32 34, %v778_v30 }
  0xc4   : > { %v547_v54 = vsel %vm524_vm11, %v530_v23, %v422_v6  ;;  %v560_v10 = vsel %vm1303_vm1, %v551_v12, %v437_v58  ;;  %v460_v22 = vpop.permute.xlu1 %459  ;;  %v790_v1 = vmul.u32 34, %v789_v55 }
  0xc5   : > { %v576_v24 = vsel %vm553_vm15, %v560_v10, %v460_v22  ;;  %v559_v27 = vsel %vm1303_vm1, %v547_v54, %v442_v53  ;;  %v780_v40 = vsub.s32 %v747_v47, %v779_v62 }
  0xc6   : > { %v593_v29 = vand.u32 %v1320_v32, %v576_v24  ;;  %v458_v2 = vpop.permute.xlu0 %457  ;;  %v791_v10 = vsub.s32 %v748_v48, %v790_v1 }
  0xc7   : > { %v464_v4 = vsel %vm461_vm12, %v1317_v31, %v458_v2  ;;  %v465_v17 = vsel %vm461_vm12, %v458_v2, %v460_v22  ;;  %v746_v31 = vadd.s32 128, %v745_v3  ;;  %vm807_vm0 = vcmp.ne.s32.totalorder %v780_v40, 0 }
  0xc8   : > { %972 = vmatpush3.bf16.msra.mxu0 %v593_v29  ;;  %v573_v42 = vsel %vm553_vm15, %v559_v27, %v465_v17  ;;  %v570_v46 = vsel %vm553_vm15, %v558_v33, %v464_v4  ;;  %vm812_vm7 = vcmp.lt.s32.totalorder %v780_v40, 0  ;;  %vm808_vm8 = vcmp.ne.s32.totalorder %v791_v10, 0 }
  0xc9   : > { %v591_v34 = vand.u32 %v1320_v32, %v573_v42  ;;  %v589_v38 = vand.u32 %v1320_v32, %v570_v46  ;;  %v1432_v32 = vmul.u32.u64.low 4042322161, %v745_v3  ;;  %v1433_v39 = vmul.u32.u64.high 4042322161, %v745_v3, %v1432_v32 }
  0xca   : > { %v1435_v41 = vmul.u32.u64.low 4042322161, %v746_v31  ;;  %v1436_v43 = vmul.u32.u64.high 4042322161, %v746_v31, %v1435_v41  ;;  %vm813_vm4 = vcmp.lt.s32.totalorder %v791_v10, 0  ;;  %v822_v27 = vadd.s32 34, %v780_v40 }
  0xcb   : > { %636 = vmatprep.subr.bf16.mxu1 %v591_v34  ;;  %974 = vmatmul.mubr.msk.bf16.vlgmr.msra.gmra.mrb[4].mxu0 %vm578_vm3, %v577_v51  ;;  %v756_v5 = vshrl.u32 %v1433_v39, 5  ;;  %v823_v46 = vadd.s32 34, %v791_v10 }
  0xcc   : > { %637 = vmatpush1.bf16.msra.mxu1 %v589_v38  ;;  %v767_v21 = vshrl.u32 %v1436_v43, 5 }
  0xcd   : > { %v757_v8 = vmul.u32 34, %v756_v5 }
  0xce   : > { %v768_v49 = vmul.u32 34, %v767_v21 }
  0xcf   : > { %959 = vmatmul.mubr.msk.bf16.vlgmr.msra.gmra.mrb[0].mxu1 %vm578_vm3, %v577_v51  ;;  %v758_v50 = vsub.s32 %v745_v3, %v757_v8  ;;  %v800_v51 = vshrl.u32 %v1441_v45, 5 }
  0xd0   : > { %v769_v19 = vsub.s32 %v746_v31, %v768_v49 }
  0xd1   : > { %vm805_vm1 = vcmp.ne.s32.totalorder %v758_v50, 0  ;;  %vm810_vm9 = vcmp.lt.s32.totalorder %v758_v50, 0  ;;  %v820_v35 = vadd.s32 34, %v758_v50  ;;  %v801_v28 = vmul.u32 34, %v800_v51 }
  0xd2   : > { %vm806_vm10 = vcmp.ne.s32.totalorder %v769_v19, 0  ;;  %vm811_vm11 = vcmp.lt.s32.totalorder %v769_v19, 0  ;;  %vm1450_vm13 = vmand %vm810_vm9, %vm805_vm1  ;;  %v821_v20 = vadd.s32 34, %v769_v19 }
  0xd3   : > { %vm1455_vm14 = vmand %vm811_vm11, %vm806_vm10  ;;  %v825_v11 = vsel %vm1450_vm13, %v820_v35, %v758_v50  ;;  %v802_v61 = vsub.s32 %v749_v44, %v801_v28 }
  0xd4   : > { %v826_v37 = vsel %vm1455_vm14, %v821_v20, %v769_v19  ;;  %vm830_vm5 = vcmp.lt.s32.totalorder %v825_v11, 32  ;;  %vm1471_vm1 = vmand %vm812_vm7, %vm807_vm0  ;;  %vm886_vm14 = vcmask 1043736   ;;  %vm891_vm0 = vcmask 543744  }
  0xd5   : > { %v732_v56 = vpop.permute.xlu1 %731  ;;  %vm831_vm12 = vcmp.lt.s32.totalorder %v826_v37, 32  ;;  %vm809_vm3 = vcmp.ne.s32.totalorder %v802_v61, 0  ;;  %vm814_vm2 = vcmp.lt.s32.totalorder %v802_v61, 0  ;;  %v824_v24 = vadd.s32 34, %v802_v61  ;;  %vm1475_vm9 = vmand %vm813_vm4, %vm808_vm8 }
  0xd6   : > { %vm1464_vm6 = vmand %vm814_vm2, %vm809_vm3  ;;  %v827_v43 = vsel %vm1471_vm1, %v822_v27, %v780_v40  ;;  %v828_v21 = vsel %vm1475_vm9, %v823_v46, %v791_v10  ;;  %vm893_vm2 = vcmask 1043992  }
  0xd7   : > { %v721_v13 = vpop.permute.xlu0 %720  ;;  %v829_v17 = vsel %vm1464_vm6, %v824_v24, %v802_v61  ;;  %vm832_vm11 = vcmp.lt.s32.totalorder %v827_v43, 32  ;;  %vm833_vm13 = vcmp.lt.s32.totalorder %v828_v21, 32  ;;  %vm894_vm6 = vcmask 48132  }
  0xd8   : > { %vm834_vm10 = vcmp.lt.s32.totalorder %v829_v17, 32  ;;  %vm895_vm7 = vmor %vm894_vm6, %vm893_vm2 }
 0x193   : > { %v629_v18 = vpop.f32.mrb[0].mxu0 }
 0x194   : > { %v723_v57 = vmul.f32 %v721_v13, %v629_v18  ;;  %v631_v58 = vpop.f32.mrb[1].mxu0 }
 0x195   : > { %v724_v25 = vmul.f32 %v721_v13, %v631_v58  ;;  %v633_v60 = vpop.f32.mrb[2].mxu0 }
 0x196   : > { %v634_v63 = vpop.f32.mrb[3].mxu0  ;;  %v734_v36 = vadd.f32 %v732_v56, %v723_v57 }
 0x197   : > { %v735_v23 = vadd.f32 %v732_v56, %v724_v25 }
 0x198   : > { %v739_v6 = vmax.f32 %v734_v36, 0.0 }
 0x199   : > { %v740_v12 = vmax.f32 %v735_v23, 0.0 }
 0x19a   : > { %v845_v54 = vsel %vm830_vm5, %v739_v6, 0.0  ;;  %vm887_vm5 = vcmask 1047556  }
 0x19b   : > { %v846_v22 = vsel %vm831_vm12, %v740_v12, 0.0  ;;  %vm878_vm12 = vcmask 285696   ;;  %vm888_vm3 = vmor %vm887_vm5, %vm886_vm14 }
 0x19c   : > { %v966_v26 = vpack.c.bf16 %v846_v22, %v845_v54 }
 0x19e   : > { %v711_v29 = vpop.f32.mrb[4].mxu0  ;;  %870 = vrot.lane.b32.xlu1 %v966_v26, %s1076_s13 }
 0x19f   : > { %v727_v2 = vmul.f32 %v721_v13, %v711_v29  ;;  %v975_v4 = vpop.f32.mrb[5].mxu0 }
 0x1a0   : > { %v714_v33 = vpop.f32.mrb[6].mxu0 }
 0x1a1   : > { %v738_v34 = vadd.f32 %v732_v56, %v727_v2  ;;  %v976_v38 = vpop.f32.mrb[7].mxu0 }
 0x1a2   : > { %v670_v31 = vpop.f32.mrb[0].mxu1 }
 0x1a3   : > { %v743_v32 = vmax.f32 %v738_v34, 0.0  ;;  %v725_v39 = vmul.f32 %v721_v13, %v670_v31  ;;  %v672_v41 = vpop.f32.mrb[1].mxu1 }
 0x1a4   : > { %v726_v44 = vmul.f32 %v721_v13, %v672_v41  ;;  %v674_v5 = vpop.f32.mrb[2].mxu1 }
 0x1a5   : > { %v736_v15 = vadd.f32 %v732_v56, %v725_v39  ;;  %v675_v45 = vpop.f32.mrb[3].mxu1  ;;  %v849_v47 = vsel %vm834_vm10, %v743_v32, 0.0 }
 0x1a6   : > { %v737_v8 = vadd.f32 %v732_v56, %v726_v44  ;;  %v968_v48 = vpack.c.bf16 %v849_v47, %v849_v47 }
 0x1a7   : > { %v741_v49 = vmax.f32 %v736_v15, 0.0 }
 0x1a8   : > { %v742_v0 = vmax.f32 %v737_v8, 0.0  ;;  %874 = vrot.lane.b32.xlu1 %v968_v48, %s1076_s13 }
 0x1a9   : > { %v847_v14 = vsel %vm832_vm11, %v741_v49, 0.0 }
 0x1aa   : > { %v848_v50 = vsel %vm833_vm13, %v742_v0, 0.0 }
 0x1ab   : > { %v967_v16 = vpack.c.bf16 %v848_v50, %v847_v14 }
 0x1ad   : > { %872 = vrot.lane.b32.xlu0 %v967_v16, %s1076_s13 }
 0x210   : > { %v871_v9 = vpop.permute.xlu1 %870 }
 0x211   : > { %v876_v19 = vrot.slane %v871_v9, 4 }
 0x213   : > { %v879_v51 = vsel %vm878_vm12, %v876_v19, %v871_v9 }
 0x214   : > { %889 = vst.msk [vmem:[%s1427_s12] sm:$0xff] %vm888_vm3, %v879_v51 }
 0x21a   : > { %v875_v52 = vpop.permute.xlu1 %874 }
 0x21f   : > { %v873_v35 = vpop.permute.xlu0 %872 }
 0x220   : > { %v877_v13 = vrot.slane %v873_v35, 4 }
 0x222   : > { %v880_v20 = vsel %vm553_vm15, %v876_v19, %v877_v13  ;;  %v882_v28 = vsel %vm878_vm12, %v877_v13, %v875_v52 }
 0x223   : > { %v881_v30 = vsel %vm878_vm12, %v880_v20, %v873_v35  ;;  %892 = vst.msk [vmem:[%s1427_s12 + $0x10] sm:$0xf] %vm891_vm0, %v882_v28 }
 0x224   : > { %890 = vst [vmem:[%s1427_s12 + $0x8] sm:$0xff] %v881_v30  ;;  %896 = vst.msk [vmem:[%s1427_s12 + $0x10] sm:$0xff] %vm895_vm7, %v1072_v59 }
 0x225 PF: > { %s14_s15 = sadd.s32 1, %s1061_s15  }
 0x226   : > { %p11_p4 = scmp.ge.s32.totalorder %s14_s15, 4  }
 0x228   :  { %13 = sbr.rel (!%p11_p4) target bundleno = 1 (0x1), region = 66 }

// kernel: _lambda_.9
= control target key start
LH: loop header
LB: loop body
LE: loop exit
PB: predicated region body
PF: predicated region fallthrough
CT: control target
= control target key end

     0   :  { %s1524_s24 = smov 0   ;;  %s2088_s0 = inlined_call_operand.vmem [shape: bf16[2,8,646], index: 0, kind: input, shape index: {}]   ;;  %s2089_s1 = inlined_call_operand.vmem [shape: bf16[1,8,72], index: 1, kind: input, shape index: {}]   ;;  %s2090_s2 = inlined_call_operand.vmem [shape: f32[8,1], index: 2, kind: input, shape index: {}]   ;;  %s2091_s3 = inlined_call_operand.vmem [shape: f32[8,1], index: 3, kind: input, shape index: {}]   ;;  %s2092_s4 = inlined_call_operand.vmem [shape: bf16[1,8,72], index: 4, kind: input, shape index: {}]   ;;  %s2093_s5 = inlined_call_operand.vmem [shape: f32[8,1], index: 5, kind: input, shape index: {}]   ;;  %s2094_s6 = inlined_call_operand.vmem [shape: f32[8,1], index: 6, kind: input, shape index: {}]   ;;  %s2095_s7 = inlined_call_operand.vmem [shape: bf16[2,8,646], index: 7, kind: output, shape index: {}]  }
   0x1 LB: > { %s1332_s25 = sadd.s32 4294967295, %s1470_s24   ;;  %p1336_p0 = scmp.ge.s32.totalorder %s1470_s24, 1  ;;  %s1470_s24 = sphi %s1524_s24, %s17_s24  }
   0x2   : > { %p237_p1 = scmp.lt.s32.totalorder %s1470_s24, 3 }
   0x4   : > { %p238_p2 = pnand %p1336_p0, %p237_p1 }
   0x5   : > { %p269_p3 = scmp.lt.s32.totalorder (!%p238_p2), %s1332_s25, 1  ;;  %s1472_s30 = smov (!%p238_p2), 127   ;;  %v1479_v7 = vmov (!%p238_p2), 0   ;;  %v639_v8 = vld [vmem:[%s2090_s2] sm:$0xff] (!%p238_p2)  ;;  %vm306_vm0 = vcmask (!%p238_p2), 1039360   ;;  %vm416_vm1 = vcmask (!%p238_p2), 1043456  }
   0x6   : > { %241 = sbr.rel (%p238_p2) target bundleno = 1103 (0x44f), region = 48  ;;  %s1473_s8 = smov (!%p238_p2), 126   ;;  %549 = vmatprep.mubr.bf16.mxu0 (!%p238_p2), %v1479_v7  ;;  %590 = vmatprep.mubr.bf16.mxu1 (!%p238_p2), %v1479_v7  ;;  %v650_v9 = vld [vmem:[%s2091_s3] sm:$0xff] (!%p238_p2)  ;;  %vm321_vm2 = vcmask (!%p238_p2), 1031168   ;;  %vm336_vm3 = vcmask (!%p238_p2), 769024   ;;  %vm2102_vm4 = vcmask (!%p238_p2), 760832  }
   0x7   : > { %s1474_s9 = smov (!%p238_p2), 94   ;;  %s1475_s10 = smov (!%p238_p2), 93   ;;  %1444 = vset.pattern.permute.xlu0 (!%p238_p2), %v1479_v7  ;;  %1445 = vset.pattern.permute.xlu1 (!%p238_p2), %v1479_v7  ;;  %vm2105_vm5 = vcmask (!%p238_p2), 752640   ;;  %vm2100_vm6 = vcmask (!%p238_p2), 490496   ;;  %vm2101_vm7 = vcmask (!%p238_p2), 482304   ;;  %vm2099_vm8 = vcmask (!%p238_p2), 474112  }
   0x8   : > { %s1476_s11 = smov (!%p238_p2), 92   ;;  %s1477_s12 = smov (!%p238_p2), 60   ;;  %vm2098_vm9 = vcmask (!%p238_p2), 588800   ;;  %vm2097_vm10 = vmmov (!%p238_p2), 0   ;;  %vm2096_vm11 = vcmask (!%p238_p2), 281600  }
   0x9   : > { %s1478_s13 = smov (!%p238_p2), 59   ;;  %s1480_s14 = smov (!%p238_p2), 58   ;;  %778 = vst.msk [vmem:[#allocation2] sm:$0xf] (!%p238_p2), %vm2096_vm11, %v1479_v7 }
   0xa   : > { %s1483_s21 = smov (!%p238_p2), 35  }
   0xd   : > { %s2160_s25 = smov (!%p269_p3, %s1332_s25), 1 }
   0xe   : > { %s1413_s26 = smul.u32 24, %s2160_s25 }
  0x10   : > { %s1540_s29 = scalar_lea.vmem %s2088_s0, %s1413_s26 }
  0x11   : > { %v281_v0 = vld [vmem:[%s1540_s29 + $0x8] sm:$0xff]  ;;  %v280_v1 = vld [vmem:[%s1540_s29] sm:$0xff]  ;;  %v1553_v4 = vld [vmem:[%s1540_s29 + $0x10] ss:$0 sps:$4 sm:$0xff]  }
  0x12   : > { %v1544_v2 = vcombine.high %v281_v0, %v281_v0  ;;  %v1546_v3 = vcombine.high %v280_v1, %v280_v1  ;;  %v1555_v5 = vcombine.low %v281_v0, %v281_v0  ;;  %v1561_v6 = vcombine.low %v280_v1, %v280_v1 }
  0x14   : > { %302 = vrot.lane.b32.xlu1 %v1544_v2, %s1472_s30  ;;  %298 = vrot.lane.b32.xlu0 %v1546_v3, %s1472_s30 }
  0x18   : > { %304 = vrot.lane.b32.xlu1 %v1553_v4, %s1472_s30  ;;  %300 = vrot.lane.b32.xlu0 %v1555_v5, %s1472_s30 }
  0x1c   : > { %313 = vrot.lane.b32.xlu1 %v1546_v3, %s1473_s8  ;;  %296 = vrot.lane.b32.xlu0 %v1561_v6, %s1472_s30 }
  0x20   : > { %317 = vrot.lane.b32.xlu1 %v1544_v2, %s1473_s8  ;;  %315 = vrot.lane.b32.xlu0 %v1555_v5, %s1473_s8 }
  0x24   : > { %328 = vrot.lane.b32.xlu1 %v1546_v3, %s1474_s9  ;;  %319 = vrot.lane.b32.xlu0 %v1553_v4, %s1473_s8 }
  0x28   : > { %332 = vrot.lane.b32.xlu1 %v1544_v2, %s1474_s9  ;;  %330 = vrot.lane.b32.xlu0 %v1555_v5, %s1474_s9 }
  0x2c   : > { %311 = vrot.lane.b32.xlu1 %v1561_v6, %s1473_s8  ;;  %334 = vrot.lane.b32.xlu0 %v1553_v4, %s1474_s9 }
  0x30   : > { %343 = vrot.lane.b32.xlu1 %v1546_v3, %s1475_s10  ;;  %326 = vrot.lane.b32.xlu0 %v1561_v6, %s1474_s9 }
  0x34   : > { %347 = vrot.lane.b32.xlu1 %v1544_v2, %s1475_s10  ;;  %345 = vrot.lane.b32.xlu0 %v1555_v5, %s1475_s10 }
  0x38   : > { %358 = vrot.lane.b32.xlu1 %v1546_v3, %s1476_s11  ;;  %349 = vrot.lane.b32.xlu0 %v1553_v4, %s1475_s10 }
  0x3c   : > { %362 = vrot.lane.b32.xlu1 %v1544_v2, %s1476_s11  ;;  %360 = vrot.lane.b32.xlu0 %v1555_v5, %s1476_s11 }
  0x40   : > { %341 = vrot.lane.b32.xlu1 %v1561_v6, %s1475_s10  ;;  %364 = vrot.lane.b32.xlu0 %v1553_v4, %s1476_s11 }
  0x44   : > { %373 = vrot.lane.b32.xlu1 %v1546_v3, %s1477_s12  ;;  %356 = vrot.lane.b32.xlu0 %v1561_v6, %s1476_s11 }
  0x48   : > { %377 = vrot.lane.b32.xlu1 %v1544_v2, %s1477_s12  ;;  %375 = vrot.lane.b32.xlu0 %v1555_v5, %s1477_s12 }
  0x4c   : > { %388 = vrot.lane.b32.xlu1 %v1546_v3, %s1478_s13  ;;  %379 = vrot.lane.b32.xlu0 %v1553_v4, %s1477_s12 }
  0x50   : > { %392 = vrot.lane.b32.xlu1 %v1544_v2, %s1478_s13  ;;  %390 = vrot.lane.b32.xlu0 %v1555_v5, %s1478_s13 }
  0x54   : > { %371 = vrot.lane.b32.xlu1 %v1561_v6, %s1477_s12  ;;  %394 = vrot.lane.b32.xlu0 %v1553_v4, %s1478_s13 }
  0x58   : > { %401 = vrot.lane.b32.xlu1 %v1561_v6, %s1480_s14  ;;  %386 = vrot.lane.b32.xlu0 %v1561_v6, %s1478_s13 }
  0x5c   : > { %405 = vrot.lane.b32.xlu1 %v1555_v5, %s1480_s14  ;;  %403 = vrot.lane.b32.xlu0 %v1546_v3, %s1480_s14 }
  0x60   : > { %409 = vrot.lane.b32.xlu1 %v1553_v4, %s1480_s14  ;;  %407 = vrot.lane.b32.xlu0 %v1544_v2, %s1480_s14 }
  0x64   : > { %642 = vperm.xlu0 %1444, %v639_v8   ;;  %653 = vperm.xlu1 %1445, %v650_v9  }
  0x86   : > { %v303_v10 = vpop.permute.xlu1 %302  ;;  %v299_v11 = vpop.permute.xlu0 %298 }
  0x8a   : > { %v1645_v12 = vpop.permute.xlu1 %304  ;;  %v301_v13 = vpop.permute.xlu0 %300 }
  0x8b   : > { %v310_v14 = vsel %vm306_vm0, %v303_v10, %v1645_v12  ;;  %v308_v15 = vsel %vm306_vm0, %v299_v11, %v301_v13  ;;  %v309_v16 = vsel %vm306_vm0, %v301_v13, %v303_v10 }
  0x8c   : > { %v423_v17 = vsel %vm416_vm1, %v1546_v3, %v308_v15  ;;  %v431_v18 = vsel %vm416_vm1, %v1544_v2, %v310_v14  ;;  %v427_v19 = vsel %vm416_vm1, %v1555_v5, %v309_v16 }
  0x8d   : > { %517 = vmatprep.subr.bf16.mxu0 %v423_v17  ;;  %558 = vmatprep.subr.bf16.mxu1 %v431_v18 }
  0x8e   : > { %v314_v20 = vpop.permute.xlu1 %313  ;;  %559 = vmatpush1.bf16.msra.mxu1 %v427_v19  ;;  %v297_v21 = vpop.permute.xlu0 %296 }
  0x8f   : > { %v307_v22 = vsel %vm306_vm0, %v297_v21, %v299_v11 }
  0x90   : > { %v419_v23 = vsel %vm416_vm1, %v1561_v6, %v307_v22 }
  0x91   : > { %518 = vmatpush1.bf16.msra.mxu0 %v419_v23 }
  0x92   : > { %v318_v24 = vpop.permute.xlu1 %317  ;;  %v316_v25 = vpop.permute.xlu0 %315 }
  0x93   : > { %v323_v30 = vsel %vm321_vm2, %v314_v20, %v316_v25  ;;  %v324_v38 = vsel %vm321_vm2, %v316_v25, %v318_v24 }
  0x96   : > { %v329_v26 = vpop.permute.xlu1 %328  ;;  %v1660_v27 = vpop.permute.xlu0 %319 }
  0x97   : > { %v325_v36 = vsel %vm321_vm2, %v318_v24, %v1660_v27 }
  0x9a   : > { %v333_v28 = vpop.permute.xlu1 %332  ;;  %v331_v29 = vpop.permute.xlu0 %330 }
  0x9b   : > { %v338_v31 = vsel %vm336_vm3, %v329_v26, %v331_v29  ;;  %v339_v33 = vsel %vm336_vm3, %v331_v29, %v333_v28 }
  0x9c   : > { %v443_v32 = vsel %vm416_vm1, %v323_v30, %v338_v31  ;;  %v447_v40 = vsel %vm416_vm1, %v324_v38, %v339_v33 }
  0x9d   : > { %519 = vmatprep.subr.bf16.mxu0 %v443_v32 }
  0x9e   : > { %v312_v34 = vpop.permute.xlu1 %311  ;;  %v1666_v35 = vpop.permute.xlu0 %334 }
  0x9f   : > { %v340_v37 = vsel %vm336_vm3, %v333_v28, %v1666_v35  ;;  %v322_v43 = vsel %vm321_vm2, %v312_v34, %v314_v20 }
  0xa0   : > { %v451_v39 = vsel %vm416_vm1, %v325_v36, %v340_v37  ;;  %v497_v36 = vld [vmem:[%s2089_s1] sm:$0xf] }
  0xa1   : > { %560 = vmatprep.subr.bf16.mxu1 %v451_v39  ;;  %v1481_v39 = vmov 0.0  }
  0xa2   : > { %v344_v41 = vpop.permute.xlu1 %343  ;;  %561 = vmatpush1.bf16.msra.mxu1 %v447_v40  ;;  %v327_v42 = vpop.permute.xlu0 %326 }
  0xa3   : > { %v337_v44 = vsel %vm336_vm3, %v327_v42, %v329_v26  ;;  %v435_v42 = vsel %vm416_vm1, %v1553_v4, %v1645_v12 }
  0xa4   : > { %v439_v45 = vsel %vm416_vm1, %v322_v43, %v337_v44  ;;  %v455_v44 = vsel %vm416_vm1, %v1660_v27, %v1666_v35  ;;  %v666_v27 = vlaneseq }
  0xa5   : > { %520 = vmatpush1.bf16.msra.mxu0 %v439_v45 }
  0xa6   : > { %v348_v46 = vpop.permute.xlu1 %347  ;;  %v346_v47 = vpop.permute.xlu0 %345  ;;  %v667_v35 = vand.u32 127, %v666_v27 }
  0xa7   : > { %v353_v52 = vsel %vm2102_vm4, %v344_v41, %v346_v47  ;;  %v354_v60 = vsel %vm2102_vm4, %v346_v47, %v348_v46 }
  0xaa   : > { %v359_v48 = vpop.permute.xlu1 %358  ;;  %v1678_v49 = vpop.permute.xlu0 %349 }
  0xab   : > { %v355_v58 = vsel %vm2102_vm4, %v348_v46, %v1678_v49  ;;  %v668_v46 = vadd.s32 128, %v667_v35 }
  0xae   : > { %v363_v50 = vpop.permute.xlu1 %362  ;;  %v361_v51 = vpop.permute.xlu0 %360 }
  0xaf   : > { %v368_v53 = vsel %vm2105_vm5, %v359_v48, %v361_v51  ;;  %v369_v55 = vsel %vm2105_vm5, %v361_v51, %v363_v50 }
  0xb0   : > { %v463_v54 = vsel %vm416_vm1, %v353_v52, %v368_v53  ;;  %v467_v62 = vsel %vm416_vm1, %v354_v60, %v369_v55  ;;  %v670_v52 = vadd.s32 384, %v667_v35 }
  0xb1   : > { %521 = vmatprep.subr.bf16.mxu0 %v463_v54 }
  0xb2   : > { %v342_v56 = vpop.permute.xlu1 %341  ;;  %v1684_v57 = vpop.permute.xlu0 %364 }
  0xb3   : > { %v370_v59 = vsel %vm2105_vm5, %v363_v50, %v1684_v57  ;;  %v352_v1 = vsel %vm2102_vm4, %v342_v56, %v344_v41  ;;  %v475_v4 = vsel %vm416_vm1, %v1678_v49, %v1684_v57  ;;  %v669_v49 = vadd.s32 256, %v667_v35 }
  0xb4   : > { %v471_v61 = vsel %vm416_vm1, %v355_v58, %v370_v59  ;;  %v1747_v50 = vmul.u32.u64.low 4042322161, %v668_v46  ;;  %v1748_v51 = vmul.u32.u64.high 4042322161, %v668_v46, %v1747_v50 }
  0xb5   : > { %562 = vmatprep.subr.bf16.mxu1 %v471_v61  ;;  %v1750_v53 = vmul.u32.u64.low 4042322161, %v669_v49  ;;  %v1751_v54 = vmul.u32.u64.high 4042322161, %v669_v49, %v1750_v53  ;;  %v1753_v55 = vmul.u32.u64.low 4042322161, %v670_v52  ;;  %v1754_v56 = vmul.u32.u64.high 4042322161, %v670_v52, %v1753_v55 }
  0xb6   : > { %v374_v63 = vpop.permute.xlu1 %373  ;;  %563 = vmatpush1.bf16.msra.mxu1 %v467_v62  ;;  %v357_v0 = vpop.permute.xlu0 %356  ;;  %v689_v58 = vshrl.u32 %v1748_v51, 5 }
  0xb7   : > { %v367_v2 = vsel %vm2105_vm5, %v357_v0, %v359_v48  ;;  %v1744_v47 = vmul.u32.u64.low 4042322161, %v667_v35  ;;  %v1745_v48 = vmul.u32.u64.high 4042322161, %v667_v35, %v1744_v47  ;;  %v700_v60 = vshrl.u32 %v1751_v54, 5 }
  0xb8   : > { %v459_v3 = vsel %vm416_vm1, %v352_v1, %v367_v2  ;;  %v690_v61 = vmul.u32 34, %v689_v58  ;;  %v711_v62 = vshrl.u32 %v1754_v56, 5  ;;  %v671_v1 = vadd.s32 512, %v667_v35 }
  0xb9   : > { %522 = vmatpush1.bf16.msra.mxu0 %v459_v3  ;;  %v678_v57 = vshrl.u32 %v1745_v48, 5  ;;  %v701_v0 = vmul.u32 34, %v700_v60 }
  0xba   : > { %v378_v5 = vpop.permute.xlu1 %377  ;;  %v376_v6 = vpop.permute.xlu0 %375  ;;  %v691_v2 = vsub.s32 %v668_v46, %v690_v61  ;;  %v712_v3 = vmul.u32 34, %v711_v62 }
  0xbb   : > { %v383_v13 = vsel %vm2100_vm6, %v374_v63, %v376_v6  ;;  %v384_v21 = vsel %vm2100_vm6, %v376_v6, %v378_v5  ;;  %v679_v59 = vmul.u32 34, %v678_v57 }
  0xbc   : > { %vm728_vm14 = vcmp.ne.s32.totalorder %v691_v2, 0  ;;  %vm733_vm15 = vcmp.lt.s32.totalorder %v691_v2, 0 }
  0xbe   : > { %v389_v8 = vpop.permute.xlu1 %388  ;;  %v380_v9 = vpop.permute.xlu0 %379 }
  0xbf   : > { %v385_v19 = vsel %vm2100_vm6, %v378_v5, %v380_v9  ;;  %v702_v5 = vsub.s32 %v669_v49, %v701_v0 }
  0xc2   : > { %v393_v10 = vpop.permute.xlu1 %392  ;;  %v391_v11 = vpop.permute.xlu0 %390 }
  0xc3   : > { %v398_v14 = vsel %vm2101_vm7, %v389_v8, %v391_v11  ;;  %v399_v16 = vsel %vm2101_vm7, %v391_v11, %v393_v10 }
  0xc4   : > { %v483_v15 = vsel %vm416_vm1, %v383_v13, %v398_v14  ;;  %v487_v23 = vsel %vm416_vm1, %v384_v21, %v399_v16  ;;  %v743_v14 = vadd.s32 34, %v691_v2  ;;  %v744_v21 = vadd.s32 34, %v702_v5 }
  0xc5   : > { %523 = vmatprep.subr.bf16.mxu0 %v483_v15 }
  0xc6   : > { %v372_v17 = vpop.permute.xlu1 %371  ;;  %v395_v18 = vpop.permute.xlu0 %394 }
  0xc7   : > { %v400_v20 = vsel %vm2101_vm7, %v393_v10, %v395_v18  ;;  %v382_v26 = vsel %vm2100_vm6, %v372_v17, %v374_v63  ;;  %v495_v12 = vsel %vm416_vm1, %v380_v9, %v395_v18  ;;  %v680_v63 = vsub.s32 %v667_v35, %v679_v59 }
  0xc8   : > { %v491_v22 = vsel %vm416_vm1, %v385_v19, %v400_v20  ;;  %v713_v9 = vsub.s32 %v670_v52, %v712_v3 }
  0xc9   : > { %564 = vmatprep.subr.bf16.mxu1 %v491_v22  ;;  %vm727_vm12 = vcmp.ne.s32.totalorder %v680_v63, 0  ;;  %vm732_vm13 = vcmp.lt.s32.totalorder %v680_v63, 0  ;;  %v742_v10 = vadd.s32 34, %v680_v63 }
  0xca   : > { %v402_v24 = vpop.permute.xlu1 %401  ;;  %565 = vmatpush1.bf16.msra.mxu1 %v487_v23  ;;  %v387_v25 = vpop.permute.xlu0 %386  ;;  %vm1763_vm11 = vmand %vm732_vm13, %vm727_vm12  ;;  %vm730_vm6 = vcmp.ne.s32.totalorder %v713_v9, 0 }
  0xcb   : > { %v397_v28 = vsel %vm2101_vm7, %v387_v25, %v389_v8  ;;  %v1760_v6 = vmul.u32.u64.low 4042322161, %v671_v1  ;;  %v1761_v8 = vmul.u32.u64.high 4042322161, %v671_v1, %v1760_v6  ;;  %vm735_vm7 = vcmp.lt.s32.totalorder %v713_v9, 0  ;;  %v1180_v25 = vld [vmem:[%s2094_s6] sm:$0xff] }
  0xcc   : > { %v479_v29 = vsel %vm416_vm1, %v382_v26, %v397_v28  ;;  %v747_v20 = vsel %vm1763_vm11, %v742_v10, %v680_v63  ;;  %v745_v26 = vadd.s32 34, %v713_v9  ;;  %vm1779_vm13 = vmand %vm735_vm7, %vm730_vm6 }
  0xcd   : > { %524 = vmatpush1.bf16.msra.mxu0 %v479_v29  ;;  %vm1784_vm11 = vcmp.lt.s32.totalorder %v747_v20, 32 }
  0xce   : > { %v406_v30 = vpop.permute.xlu1 %405  ;;  %v404_v31 = vpop.permute.xlu0 %403 }
  0xcf   : > { %v412_v32 = vsel %vm2099_vm8, %v402_v24, %v404_v31  ;;  %v413_v33 = vsel %vm2099_vm8, %v404_v31, %v406_v30  ;;  %v722_v31 = vshrl.u32 %v1761_v8, 5 }
  0xd0   : > { %1344 = vmatprep.subr.msk.bf16.mxu0 %vm416_vm1, %v413_v33  ;;  %v503_v34 = vsel %vm416_vm1, %v412_v32, 0 }
  0xd1   : > { %526 = vmatpush1.bf16.msra.mxu0 %v503_v34  ;;  %v723_v35 = vmul.u32 34, %v722_v31 }
  0xd2   : > { %v410_v37 = vpop.permute.xlu1 %409  ;;  %v408_v38 = vpop.permute.xlu0 %407  ;;  %1385 = vmatprep.subr.bf16.mxu0 %v1481_v39 }
  0xd3   : > { %v414_v40 = vsel %vm2099_vm8, %v406_v30, %v408_v38  ;;  %v415_v41 = vsel %vm2099_vm8, %v408_v38, %v410_v37  ;;  %v515_v45 = vsel %vm416_vm1, %v410_v37, 0  ;;  %vm734_vm8 = vcmp.lt.s32.totalorder %v702_v5, 0 }
  0xd4   : > { %1345 = vmatmul.mubr.msk.bf16.vlgmr.msra.gmra.mrb[0].mxu0 %vm2098_vm9, %v497_v36  ;;  %1346 = vmatprep.subr.msk.bf16.mxu1 %vm416_vm1, %v415_v41  ;;  %v509_v43 = vsel %vm416_vm1, %v414_v40, 0  ;;  %v724_v54 = vsub.s32 %v671_v1, %v723_v35 }
  0xd5   : > { %567 = vmatpush1.bf16.msra.mxu1 %v509_v43  ;;  %1386 = vmatpush3.bf16.msra.mxu0 %v435_v42 }
  0xd6   : > { %1387 = vmatprep.subr.bf16.mxu0 %v1481_v39  ;;  %1395 = vmatprep.mubr.msk.bf16.mxu0 %vm2097_vm10, %v1481_v39  ;;  %vm1767_vm10 = vmand %vm733_vm15, %vm728_vm14  ;;  %v746_v57 = vadd.s32 34, %v724_v54 }
  0xd7   : > { %v748_v24 = vsel %vm1767_vm10, %v743_v14, %v691_v2  ;;  %vm736_vm10 = vcmp.lt.s32.totalorder %v724_v54, 0 }
  0xd8   : > { %1347 = vmatmul.mubr.msk.bf16.vlgmr.msra.gmra.mrb[0].mxu1 %vm2098_vm9, %v497_v36 }
  0xd9   : > { %1388 = vmatpush3.bf16.msra.mxu0 %v455_v44  ;;  %1079 = vmatprep.mubr.bf16.mxu1 %v1479_v7  ;;  %v750_v44 = vsel %vm1779_vm13, %v745_v26, %v713_v9  ;;  %vm810_vm13 = vcmask 1047556   ;;  %v1169_v26 = vld [vmem:[%s2093_s5] sm:$0xff] }
  0xda   : > { %1389 = vmatprep.subr.bf16.mxu0 %v1481_v39  ;;  %vm1804_vm7 = vcmp.lt.s32.totalorder %v750_v44, 32 }
  0xdd   : > { %1390 = vmatpush3.bf16.msra.mxu0 %v475_v4 }
  0xde   : > { %1391 = vmatprep.subr.bf16.mxu0 %v1481_v39 }
  0xe1   : > { %1392 = vmatpush3.bf16.msra.mxu0 %v495_v12 }
  0xe2   : > { %1393 = vmatprep.subr.bf16.mxu0 %v1481_v39 }
  0xe3   : > { %v643_v11 = vpop.permute.xlu0 %642  ;;  %v654_v17 = vpop.permute.xlu1 %653 }
  0xe5   : > { %1394 = vmatpush3.bf16.msra.mxu0 %v515_v45 }
  0xe8   : > { %1396 = vmatmul.mubr.msk.bf16.vlgmr.msra.gmra.mrb[4].mxu0 %vm2098_vm9, %v497_v36  ;;  %vm729_vm9 = vcmp.ne.s32.totalorder %v702_v5, 0 }
  0xe9   : > { %1120 = vmatprep.mubr.bf16.mxu0 %v1479_v7  ;;  %vm1775_vm12 = vmand %vm734_vm8, %vm729_vm9  ;;  %vm1788_vm8 = vcmp.lt.s32.totalorder %v748_v24, 32  ;;  %vm731_vm9 = vcmp.ne.s32.totalorder %v724_v54, 0 }
  0xea   : > { %v749_v41 = vsel %vm1775_vm12, %v744_v21, %v702_v5  ;;  %vm741_vm14 = vmand %vm736_vm10, %vm731_vm9  ;;  %vm809_vm12 = vcmask 1043736   ;;  %vm2104_vm9 = vcmask 285696  }
  0xeb   : > { %vm1800_vm6 = vcmp.lt.s32.totalorder %v749_v41, 32  ;;  %v751_v60 = vsel %vm741_vm14, %v746_v57, %v724_v54  ;;  %vm1821_vm10 = vmor %vm810_vm13, %vm809_vm12  ;;  %vm816_vm14 = vcmask 1043992   ;;  %vm817_vm12 = vcmask 48132  }
  0xec   : > { %vm1814_vm15 = vcmp.lt.s32.totalorder %v751_v60, 32  ;;  %vm2103_vm13 = vcmask 543744   ;;  %vm1842_vm4 = vmor %vm817_vm12, %vm816_vm14  ;;  %vm2128_vm14 = vcmask 760832  }
  0xed   : > { %vm2129_vm12 = vmmov %vm2128_vm14 }
 0x1a7   : > { %v551_v16 = vpop.f32.mrb[0].mxu0 }
 0x1a8   : > { %v645_v18 = vmul.f32 %v643_v11, %v551_v16  ;;  %v553_v19 = vpop.f32.mrb[1].mxu0 }
 0x1a9   : > { %v646_v22 = vmul.f32 %v643_v11, %v553_v19  ;;  %v555_v23 = vpop.f32.mrb[2].mxu0 }
 0x1aa   : > { %v556_v28 = vpop.f32.mrb[3].mxu0  ;;  %v656_v29 = vadd.f32 %v654_v17, %v645_v18 }
 0x1ab   : > { %v592_v32 = vpop.f32.mrb[0].mxu1  ;;  %v657_v33 = vadd.f32 %v654_v17, %v646_v22  ;;  %v1191_v28 = vld [vmem:[%s1540_s29] sm:$0xff] }
 0x1ac   : > { %v647_v36 = vmul.f32 %v643_v11, %v592_v32  ;;  %v594_v37 = vpop.f32.mrb[1].mxu1  ;;  %v661_v38 = vmax.f32 %v656_v29, 0.0  ;;  %v1192_v29 = vld [vmem:[%s1540_s29 + $0x8] sm:$0xff]  ;;  %v1194_v30 = vunpack.c.l.bf16 %v1191_v28  ;;  %v1195_v31 = vunpack.c.h.bf16 %v1191_v28 }
 0x1ad   : > { %v648_v42 = vmul.f32 %v643_v11, %v594_v37  ;;  %v662_v43 = vmax.f32 %v657_v33, 0.0  ;;  %v596_v4 = vpop.f32.mrb[2].mxu1  ;;  %v1196_v32 = vunpack.c.l.bf16 %v1192_v29  ;;  %v1197_v33 = vunpack.c.h.bf16 %v1192_v29 }
 0x1ae   : > { %v658_v12 = vadd.f32 %v654_v17, %v647_v36  ;;  %v767_v45 = vsel %vm1784_vm11, %v661_v38, 0.0  ;;  %v597_v27 = vpop.f32.mrb[3].mxu1  ;;  %v1193_v36 = vld [vmem:[%s1540_s29 + $0x10] sm:$0xf]  ;;  %v1446_v37 = vpack.i.bf16 %v1195_v31, %v1194_v30 }
 0x1af   : > { %v659_v46 = vadd.f32 %v654_v17, %v648_v42  ;;  %v768_v47 = vsel %vm1788_vm8, %v662_v43, 0.0  ;;  %v1451_v38 = vpack.i.bf16 %v1197_v33, %v1196_v32  ;;  %v1198_v41 = vunpack.c.l.bf16 %v1193_v36 }
 0x1b0   : > { %v663_v49 = vmax.f32 %v658_v12, 0.0  ;;  %v1367_v50 = vpack.c.bf16 %v768_v47, %v767_v45 }
 0x1b1   : > { %v664_v52 = vmax.f32 %v659_v46, 0.0 }
 0x1b2   : > { %792 = vrot.lane.b32.xlu1 %v1367_v50, %s1483_s21  ;;  %v769_v53 = vsel %vm1800_vm6, %v663_v49, 0.0 }
 0x1b3   : > { %v770_v55 = vsel %vm1804_vm7, %v664_v52, 0.0 }
 0x1b4   : > { %v1368_v56 = vpack.c.bf16 %v770_v55, %v769_v53 }
 0x1b6   : > { %794 = vrot.lane.b32.xlu0 %v1368_v56, %s1483_s21 }
 0x1bb   : > { %v633_v58 = vpop.f32.mrb[4].mxu0 }
 0x1bc   : > { %v649_v59 = vmul.f32 %v643_v11, %v633_v58  ;;  %v1397_v61 = vpop.f32.mrb[5].mxu0 }
 0x1bd   : > { %v636_v62 = vpop.f32.mrb[6].mxu0 }
 0x1be   : > { %v660_v63 = vadd.f32 %v654_v17, %v649_v59  ;;  %v1398_v0 = vpop.f32.mrb[7].mxu0 }
 0x1c0   : > { %v665_v1 = vmax.f32 %v660_v63, 0.0 }
 0x1c2   : > { %v771_v3 = vsel %vm1814_vm15, %v665_v1, 0.0 }
 0x1c3   : > { %v1369_v5 = vpack.c.bf16 %v771_v3, %v771_v3 }
 0x1c5   : > { %796 = vrot.lane.b32.xlu1 %v1369_v5, %s1483_s21 }
 0x224   : > { %v793_v6 = vpop.permute.xlu1 %792 }
 0x225   : > { %v798_v9 = vrot.slane %v793_v6, 4 }
 0x227   : > { %v801_v10 = vsel %vm2104_vm9, %v798_v9, %v793_v6 }
 0x228   : > { %812 = vst.msk [vmem:[#allocation2] sm:$0xff] %vm1821_vm10, %v801_v10  ;;  %v795_v11 = vpop.permute.xlu0 %794 }
 0x229   : > { %v799_v13 = vrot.slane %v795_v11, 4 }
 0x22b   : > { %v803_v14 = vsel %vm416_vm1, %v798_v9, %v799_v13 }
 0x22c   : > { %v804_v15 = vsel %vm2104_vm9, %v803_v14, %v795_v11 }
 0x22d   : > { %v1867_v22 = vcombine.low %v804_v15, %v804_v15  ;;  %v1889_v23 = vcombine.high %v804_v15, %v804_v15 }
 0x22f   : > { %v820_v16 = vld [vmem:[#allocation2] sm:$0xff] }
 0x230   : > { %v1830_v17 = vcombine.high %v820_v16, %v820_v16  ;;  %v1836_v18 = vcombine.low %v820_v16, %v820_v16 }
 0x232   : > { %852 = vrot.lane.b32.xlu1 %v1830_v17, %s1473_s8  ;;  %838 = vrot.lane.b32.xlu0 %v1830_v17, %s1472_s30 }
 0x236   : > { %866 = vrot.lane.b32.xlu1 %v1830_v17, %s1474_s9  ;;  %836 = vrot.lane.b32.xlu0 %v1836_v18, %s1472_s30 }
 0x237   : > { %v797_v20 = vpop.permute.xlu1 %796 }
 0x238   : > { %v805_v21 = vsel %vm2104_vm9, %v799_v13, %v797_v20  ;;  %vm2131_vm9 = vcmask 490496  }
 0x239   : > { %815 = vst.msk [vmem:[#allocation2 + $0x10] sm:$0xf] %vm2103_vm13, %v805_v21  ;;  %vm2130_vm13 = vcmask 482304  }
 0x23a   : > { %819 = vst.msk [vmem:[#allocation2 + $0x10] sm:$0xff] %vm1842_vm4, %v1479_v7  ;;  %850 = vrot.lane.b32.xlu1 %v1836_v18, %s1473_s8  ;;  %864 = vrot.lane.b32.xlu0 %v1836_v18, %s1474_s9 }
 0x23e   : > { %880 = vrot.lane.b32.xlu1 %v1830_v17, %s1475_s10  ;;  %892 = vrot.lane.b32.xlu0 %v1836_v18, %s1476_s11 }
 0x241   : > { %v1895_v24 = vld [vmem:[#allocation2 + $0x10] ss:$0 sps:$4 sm:$0xff]  }
 0x242   : > { %894 = vrot.lane.b32.xlu1 %v1830_v17, %s1476_s11  ;;  %920 = vrot.lane.b32.xlu0 %v1836_v18, %s1478_s13 }
 0x246   : > { %878 = vrot.lane.b32.xlu1 %v1836_v18, %s1475_s10  ;;  %936 = vrot.lane.b32.xlu0 %v1830_v17, %s1480_s14 }
 0x24a   : > { %908 = vrot.lane.b32.xlu1 %v1830_v17, %s1477_s12  ;;  %854 = vrot.lane.b32.xlu0 %v1867_v22, %s1473_s8 }
 0x24e   : > { %922 = vrot.lane.b32.xlu1 %v1830_v17, %s1478_s13  ;;  %868 = vrot.lane.b32.xlu0 %v1867_v22, %s1474_s9 }
 0x252   : > { %906 = vrot.lane.b32.xlu1 %v1836_v18, %s1477_s12  ;;  %882 = vrot.lane.b32.xlu0 %v1867_v22, %s1475_s10 }
 0x256   : > { %934 = vrot.lane.b32.xlu1 %v1836_v18, %s1480_s14  ;;  %896 = vrot.lane.b32.xlu0 %v1867_v22, %s1476_s11 }
 0x25a   : > { %840 = vrot.lane.b32.xlu1 %v1867_v22, %s1472_s30  ;;  %910 = vrot.lane.b32.xlu0 %v1867_v22, %s1477_s12 }
 0x25e   : > { %842 = vrot.lane.b32.xlu1 %v1889_v23, %s1472_s30  ;;  %924 = vrot.lane.b32.xlu0 %v1867_v22, %s1478_s13 }
 0x262   : > { %938 = vrot.lane.b32.xlu1 %v1867_v22, %s1480_s14  ;;  %856 = vrot.lane.b32.xlu0 %v1889_v23, %s1473_s8 }
 0x266   : > { %870 = vrot.lane.b32.xlu0 %v1889_v23, %s1474_s9  ;;  %858 = vrot.lane.b32.xlu1 %v1895_v24, %s1473_s8 }
 0x26a   : > { %884 = vrot.lane.b32.xlu0 %v1889_v23, %s1475_s10  ;;  %872 = vrot.lane.b32.xlu1 %v1895_v24, %s1474_s9 }
 0x26e   : > { %886 = vrot.lane.b32.xlu1 %v1895_v24, %s1475_s10  ;;  %844 = vrot.lane.b32.xlu0 %v1895_v24, %s1472_s30 }
 0x272   : > { %900 = vrot.lane.b32.xlu1 %v1895_v24, %s1476_s11  ;;  %898 = vrot.lane.b32.xlu0 %v1889_v23, %s1476_s11 }
 0x276   : > { %914 = vrot.lane.b32.xlu1 %v1895_v24, %s1477_s12  ;;  %912 = vrot.lane.b32.xlu0 %v1889_v23, %s1477_s12 }
 0x27a   : > { %928 = vrot.lane.b32.xlu1 %v1895_v24, %s1478_s13  ;;  %926 = vrot.lane.b32.xlu0 %v1889_v23, %s1478_s13 }
 0x27e   : > { %942 = vrot.lane.b32.xlu1 %v1895_v24, %s1480_s14  ;;  %940 = vrot.lane.b32.xlu0 %v1889_v23, %s1480_s14 }
 0x282   : > { %1183 = vperm.xlu1 %1445, %v1180_v25   ;;  %1172 = vperm.xlu0 %1444, %v1169_v26  }
 0x286   : > { %1447 = vrot.lane.b32.xlu0 %v1446_v37, %s1475_s10  ;;  %1452 = vrot.lane.b32.xlu1 %v1451_v38, %s1475_s10 }
 0x28a   : > { %1212 = vrot.lane.b32.xlu0 %v1198_v41, %s1475_s10  ;;  %s2049_s10 = scalar_lea.vmem %s2095_s7, %s1413_s26 }
 0x2a4   : > { %v839_v42 = vpop.permute.xlu0 %838  ;;  %v853_v43 = vpop.permute.xlu1 %852 }
 0x2a8   : > { %v837_v44 = vpop.permute.xlu0 %836  ;;  %v867_v4 = vpop.permute.xlu1 %866 }
 0x2a9   : > { %v846_v60 = vsel %vm306_vm0, %v837_v44, %v839_v42 }
 0x2aa   : > { %v950_v5 = vsel %vm416_vm1, %v1836_v18, %v846_v60 }
 0x2ac   : > { %v865_v12 = vpop.permute.xlu0 %864  ;;  %v851_v45 = vpop.permute.xlu1 %850 }
 0x2ad   : > { %v874_v6 = vsel %vm336_vm3, %v865_v12, %v867_v4  ;;  %v860_v9 = vsel %vm321_vm2, %v851_v45, %v853_v43 }
 0x2ae   : > { %v970_v16 = vsel %vm416_vm1, %v860_v9, %v874_v6 }
 0x2b0   : > { %v893_v27 = vpop.permute.xlu0 %892  ;;  %v881_v35 = vpop.permute.xlu1 %880 }
 0x2b4   : > { %v921_v46 = vpop.permute.xlu0 %920  ;;  %v895_v47 = vpop.permute.xlu1 %894 }
 0x2b5   : > { %v902_v26 = vsel %vm2105_vm5, %v893_v27, %v895_v47  ;;  %v1028_v27 = vld [vmem:[%s2092_s4] sm:$0xf] }
 0x2b8   : > { %v937_v49 = vpop.permute.xlu0 %936  ;;  %v879_v50 = vpop.permute.xlu1 %878 }
 0x2bc   : > { %v1941_v52 = vpop.permute.xlu0 %854  ;;  %v909_v53 = vpop.permute.xlu1 %908 }
 0x2bd   : > { %v861_v3 = vsel %vm321_vm2, %v853_v43, %v1941_v52 }
 0x2c0   : > { %v1943_v54 = vpop.permute.xlu0 %868  ;;  %v923_v55 = vpop.permute.xlu1 %922 }
 0x2c1   : > { %v875_v63 = vsel %vm336_vm3, %v867_v4, %v1943_v54 }
 0x2c2   : > { %v974_v13 = vsel %vm416_vm1, %v861_v3, %v875_v63 }
 0x2c4   : > { %v1945_v56 = vpop.permute.xlu0 %882  ;;  %v907_v57 = vpop.permute.xlu1 %906 }
 0x2c5   : > { %v889_v15 = vsel %vm2128_vm14, %v881_v35, %v1945_v56  ;;  %vm2132_vm14 = vmmov %vm2131_vm9 }
 0x2c6   : > { %v916_v30 = vsel %vm2132_vm14, %v907_v57, %v909_v53 }
 0x2c8   : > { %v1947_v58 = vpop.permute.xlu0 %896  ;;  %v935_v59 = vpop.permute.xlu1 %934 }
 0x2c9   : > { %v903_v14 = vsel %vm2105_vm5, %v895_v47, %v1947_v58 }
 0x2ca   : > { %v994_v21 = vsel %vm416_vm1, %v889_v15, %v903_v14 }
 0x2cc   : > { %v1950_v61 = vpop.permute.xlu0 %910  ;;  %v841_v62 = vpop.permute.xlu1 %840 }
 0x2cd   : > { %v847_v0 = vsel %vm306_vm0, %v839_v42, %v841_v62  ;;  %v917_v28 = vsel %vm2131_vm9, %v909_v53, %v1950_v61  ;;  %vm2138_vm9 = vmmov 0  }
 0x2ce   : > { %v954_v1 = vsel %vm416_vm1, %v1830_v17, %v847_v0  ;;  %v888_v17 = vsel %vm2129_vm12, %v879_v50, %v881_v35  ;;  %vm2133_vm12 = vmmov %vm2130_vm13 }
 0x2cf   : > { %1047 = vmatprep.subr.bf16.mxu1 %v954_v1  ;;  %v990_v29 = vsel %vm416_vm1, %v888_v17, %v902_v26  ;;  %v930_v36 = vsel %vm2133_vm12, %v921_v46, %v923_v55  ;;  %vm2142_vm12 = vcmask 490496  }
 0x2d0   : > { %v1963_v10 = vpop.permute.xlu0 %924  ;;  %1048 = vmatpush1.bf16.msra.mxu1 %v950_v5  ;;  %v843_v11 = vpop.permute.xlu1 %842  ;;  %v1010_v37 = vsel %vm416_vm1, %v916_v30, %v930_v36 }
 0x2d1   : > { %1049 = vmatprep.subr.bf16.mxu1 %v974_v13  ;;  %v931_v25 = vsel %vm2130_vm13, %v923_v55, %v1963_v10  ;;  %vm2134_vm13 = vcmask 474112   ;;  %v848_v4 = vsel %vm306_vm0, %v841_v62, %v843_v11 }
 0x2d2   : > { %v1014_v33 = vsel %vm416_vm1, %v917_v28, %v931_v25  ;;  %v944_v38 = vsel %vm2134_vm13, %v935_v59, %v937_v49  ;;  %vm2135_vm5 = vmmov %vm2134_vm13  ;;  %v958_v53 = vsel %vm416_vm1, %v1867_v22, %v848_v4 }
 0x2d3   : > { %v1033_v44 = vsel %vm416_vm1, %v944_v38, 0  ;;  %vm2143_vm13 = vmmov %vm2142_vm12 }
 0x2d4   : > { %v857_v18 = vpop.permute.xlu0 %856  ;;  %1050 = vmatpush1.bf16.msra.mxu1 %v970_v16  ;;  %v1972_v20 = vpop.permute.xlu1 %938 }
 0x2d5   : > { %1051 = vmatprep.subr.bf16.mxu1 %v994_v21  ;;  %v945_v41 = vsel %vm2135_vm5, %v937_v49, %v1972_v20  ;;  %vm2136_vm5 = vcmask 588800  }
 0x2d8   : > { %v871_v31 = vpop.permute.xlu0 %870  ;;  %1052 = vmatpush1.bf16.msra.mxu1 %v990_v29  ;;  %v859_v32 = vpop.permute.xlu1 %858 }
 0x2d9   : > { %1053 = vmatprep.subr.bf16.mxu1 %v1014_v33  ;;  %v863_v49 = vsel %vm321_vm2, %v857_v18, %v859_v32  ;;  %v876_v55 = vsel %vm336_vm3, %v1943_v54, %v871_v31 }
 0x2dc   : > { %v885_v42 = vpop.permute.xlu0 %884  ;;  %1054 = vmatpush1.bf16.msra.mxu1 %v1010_v37  ;;  %v873_v43 = vpop.permute.xlu1 %872 }
 0x2dd   : > { %1357 = vmatprep.subr.msk.bf16.mxu1 %vm416_vm1, %v945_v41  ;;  %v877_v35 = vsel %vm336_vm3, %v871_v31, %v873_v43  ;;  %v986_v22 = vsel %vm416_vm1, %v859_v32, %v873_v43  ;;  %vm2139_vm3 = vcmask 760832  }
 0x2e0   : > { %v845_v12 = vpop.permute.xlu0 %844  ;;  %1056 = vmatpush1.bf16.msra.mxu1 %v1033_v44  ;;  %v887_v45 = vpop.permute.xlu1 %886 }
 0x2e1   : > { %v849_v46 = vsel %vm306_vm0, %v843_v11, %v845_v12  ;;  %1399 = vmatprep.subr.bf16.mxu1 %v1481_v39  ;;  %v966_v50 = vsel %vm416_vm1, %v1895_v24, %v845_v12  ;;  %vm2137_vm0 = vcmask 752640   ;;  %v862_v24 = vsel %vm321_vm2, %v1941_v52, %v857_v18  ;;  %vm2141_vm2 = vmmov %vm2139_vm3 }
 0x2e2   : > { %v962_v47 = vsel %vm416_vm1, %v1889_v23, %v849_v46  ;;  %v982_v23 = vsel %vm416_vm1, %v863_v49, %v877_v35  ;;  %v891_v54 = vsel %vm2139_vm3, %v885_v42, %v887_v45  ;;  %v978_v62 = vsel %vm416_vm1, %v862_v24, %v876_v55  ;;  %vm2140_vm14 = vmmov %vm2137_vm0 }
 0x2e3   : > { %1358 = vmatmul.mubr.msk.bf16.vlgmr.msra.gmra.mrb[4].mxu1 %vm2136_vm5, %v1028_v27  ;;  %1088 = vmatprep.subr.bf16.mxu0 %v962_v47  ;;  %v890_v52 = vsel %vm2141_vm2, %v1945_v56, %v885_v42  ;;  %vm2144_vm5 = vcmask 482304  }
 0x2e4   : > { %v899_v57 = vpop.permute.xlu0 %898  ;;  %1089 = vmatpush1.bf16.msra.mxu0 %v958_v53  ;;  %1400 = vmatpush3.bf16.msra.mxu1 %v966_v50  ;;  %v901_v59 = vpop.permute.xlu1 %900 }
 0x2e5   : > { %v905_v60 = vsel %vm2137_vm0, %v899_v57, %v901_v59  ;;  %1090 = vmatprep.subr.bf16.mxu0 %v982_v23  ;;  %1401 = vmatprep.subr.bf16.mxu1 %v1481_v39  ;;  %v904_v63 = vsel %vm2140_vm14, %v1947_v58, %v899_v57  ;;  %v1006_v5 = vsel %vm416_vm1, %v887_v45, %v901_v59  ;;  %vm2145_vm0 = vmmov %vm2144_vm5  ;;  %vm2148_vm14 = vcmask 588800  }
 0x2e6   : > { %1409 = vmatprep.mubr.msk.bf16.mxu1 %vm2138_vm9, %v1481_v39  ;;  %v1002_v3 = vsel %vm416_vm1, %v891_v54, %v905_v60  ;;  %v998_v6 = vsel %vm416_vm1, %v890_v52, %v904_v63  ;;  %vm2146_vm9 = vcmask 474112   ;;  %vm2149_vm2 = vmmov %vm2148_vm14 }
 0x2e7   : > { %vm2147_vm3 = vmmov %vm2146_vm9 }
 0x2e8   : > { %v913_v0 = vpop.permute.xlu0 %912  ;;  %1091 = vmatpush1.bf16.msra.mxu0 %v978_v62  ;;  %1402 = vmatpush3.bf16.msra.mxu1 %v986_v22  ;;  %v915_v1 = vpop.permute.xlu1 %914 }
 0x2e9   : > { %1092 = vmatprep.subr.bf16.mxu0 %v1002_v3  ;;  %1403 = vmatprep.subr.bf16.mxu1 %v1481_v39  ;;  %v918_v11 = vsel %vm2142_vm12, %v1950_v61, %v913_v0  ;;  %v919_v13 = vsel %vm2143_vm13, %v913_v0, %v915_v1  ;;  %vm2150_vm12 = vcmask 281600   ;;  %vm2151_vm13 = vcmask 760832  }
 0x2ea   : > { %1244 = vst.msk [vmem:[%s2049_s10] sm:$0xf] %vm2150_vm12, %v1479_v7 }
 0x2ec   : > { %v927_v9 = vpop.permute.xlu0 %926  ;;  %1093 = vmatpush1.bf16.msra.mxu0 %v998_v6  ;;  %1404 = vmatpush3.bf16.msra.mxu1 %v1006_v5  ;;  %v929_v58 = vpop.permute.xlu1 %928 }
 0x2ed   : > { %v932_v14 = vsel %vm2144_vm5, %v1963_v10, %v927_v9  ;;  %v933_v15 = vsel %vm2145_vm0, %v927_v9, %v929_v58  ;;  %1405 = vmatprep.subr.bf16.mxu1 %v1481_v39  ;;  %v1026_v17 = vsel %vm416_vm1, %v915_v1, %v929_v58  ;;  %vm2152_vm5 = vmmov %vm2151_vm13 }
 0x2ee   : > { %v1022_v56 = vsel %vm416_vm1, %v919_v13, %v933_v15  ;;  %v1018_v16 = vsel %vm416_vm1, %v918_v11, %v932_v14  ;;  %vm2153_vm0 = vmmov %vm2152_vm5 }
 0x2ef   : > { %1094 = vmatprep.subr.bf16.mxu0 %v1022_v56 }
 0x2f0   : > { %v941_v18 = vpop.permute.xlu0 %940  ;;  %1095 = vmatpush1.bf16.msra.mxu0 %v1018_v16  ;;  %1406 = vmatpush3.bf16.msra.mxu1 %v1026_v17  ;;  %v943_v61 = vpop.permute.xlu1 %942 }
 0x2f1   : > { %v946_v21 = vsel %vm2146_vm9, %v1972_v20, %v941_v18  ;;  %v947_v10 = vsel %vm2147_vm3, %v941_v18, %v943_v61  ;;  %v1045_v25 = vsel %vm416_vm1, %v943_v61, 0  ;;  %1407 = vmatprep.subr.bf16.mxu1 %v1481_v39 }
 0x2f2   : > { %v1039_v26 = vsel %vm416_vm1, %v946_v21, 0  ;;  %1359 = vmatprep.subr.msk.bf16.mxu0 %vm416_vm1, %v947_v10 }
 0x2f4   : > { %1097 = vmatpush1.bf16.msra.mxu0 %v1039_v26  ;;  %1408 = vmatpush3.bf16.msra.mxu1 %v1045_v25 }
 0x2f7   : > { %1360 = vmatmul.mubr.msk.bf16.vlgmr.msra.gmra.mrb[8].mxu0 %vm2148_vm14, %v1028_v27  ;;  %1410 = vmatmul.mubr.msk.bf16.vlgmr.msra.gmra.mrb[8].mxu1 %vm2149_vm2, %v1028_v27 }
 0x301   : > { %v1173_v39 = vpop.permute.xlu0 %1172  ;;  %v1184_v20 = vpop.permute.xlu1 %1183 }
 0x305   : > { %v1448_v28 = vpop.permute.xlu0 %1447  ;;  %v1453_v29 = vpop.permute.xlu1 %1452 }
 0x306   : > { %v1450_v30 = vunpack.i.h.bf16 %v1448_v28  ;;  %v1449_v31 = vunpack.i.l.bf16 %v1448_v28  ;;  %v1454_v32 = vunpack.i.l.bf16 %v1453_v29  ;;  %v1455_v53 = vunpack.i.h.bf16 %v1453_v29 }
 0x308   : > { %v1215_v38 = vsel %vm2151_vm13, %v1449_v31, %v1450_v30  ;;  %v1216_v44 = vsel %vm2152_vm5, %v1450_v30, %v1454_v32  ;;  %v1217_v54 = vsel %vm2153_vm0, %v1454_v32, %v1455_v53 }
 0x309   : > { %v1213_v55 = vpop.permute.xlu0 %1212 }
 0x3b6   : > { %v1081_v33 = vpop.f32.mrb[4].mxu1 }
 0x3b7   : > { %v1175_v36 = vmul.f32 %v1173_v39, %v1081_v33  ;;  %v1083_v37 = vpop.f32.mrb[5].mxu1 }
 0x3b8   : > { %v1176_v41 = vmul.f32 %v1173_v39, %v1083_v37  ;;  %v1085_v42 = vpop.f32.mrb[6].mxu1 }
 0x3b9   : > { %v1186_v43 = vadd.f32 %v1184_v20, %v1175_v36  ;;  %v1086_v4 = vpop.f32.mrb[7].mxu1 }
 0x3ba   : > { %v1187_v12 = vadd.f32 %v1184_v20, %v1176_v41 }
 0x3bb   : > { %v1224_v45 = vadd.f32 %v1215_v38, %v1186_v43 }
 0x3bc   : > { %v1225_v27 = vadd.f32 %v1216_v44, %v1187_v12 }
 0x3bd   : > { %v1229_v35 = vmax.f32 %v1224_v45, 0.0 }
 0x3be   : > { %v1230_v46 = vmax.f32 %v1225_v27, 0.0 }
 0x3bf   : > { %v1234_v47 = vsel %vm1784_vm11, %v1229_v35, 0.0  ;;  %vm2154_vm11 = vmmov %vm2153_vm0 }
 0x3c0   : > { %v1235_v49 = vsel %vm1788_vm8, %v1230_v46, 0.0  ;;  %v1218_v6 = vsel %vm2154_vm11, %v1455_v53, %v1213_v55  ;;  %vm2155_vm8 = vcmask 285696  }
 0x3c1   : > { %v1370_v50 = vpack.c.bf16 %v1235_v49, %v1234_v47 }
 0x3c3   : > { %1258 = vrot.lane.b32.xlu1 %v1370_v50, %s1483_s21 }
 0x3ca   : > { %v1122_v57 = vpop.f32.mrb[8].mxu0  ;;  %v1163_v59 = vpop.f32.mrb[8].mxu1 }
 0x3cb   : > { %v1177_v23 = vmul.f32 %v1173_v39, %v1122_v57  ;;  %v1179_v60 = vmul.f32 %v1173_v39, %v1163_v59  ;;  %v1124_v24 = vpop.f32.mrb[9].mxu0  ;;  %v1411_v22 = vpop.f32.mrb[9].mxu1 }
 0x3cc   : > { %v1178_v62 = vmul.f32 %v1173_v39, %v1124_v24  ;;  %v1126_v63 = vpop.f32.mrb[10].mxu0  ;;  %v1166_v34 = vpop.f32.mrb[10].mxu1 }
 0x3cd   : > { %v1188_v0 = vadd.f32 %v1184_v20, %v1177_v23  ;;  %v1190_v1 = vadd.f32 %v1184_v20, %v1179_v60  ;;  %v1127_v40 = vpop.f32.mrb[11].mxu0  ;;  %v1412_v3 = vpop.f32.mrb[11].mxu1 }
 0x3ce   : > { %v1189_v52 = vadd.f32 %v1184_v20, %v1178_v62 }
 0x3cf   : > { %v1226_v5 = vadd.f32 %v1217_v54, %v1188_v0  ;;  %v1228_v9 = vadd.f32 %v1213_v55, %v1190_v1 }
 0x3d0   : > { %v1227_v58 = vadd.f32 %v1218_v6, %v1189_v52 }
 0x3d1   : > { %v1231_v11 = vmax.f32 %v1226_v5, 0.0  ;;  %v1233_v13 = vmax.f32 %v1228_v9, 0.0 }
 0x3d2   : > { %v1232_v14 = vmax.f32 %v1227_v58, 0.0 }
 0x3d3   : > { %v1238_v15 = vsel %vm1814_vm15, %v1233_v13, 0.0  ;;  %v1236_v56 = vsel %vm1800_vm6, %v1231_v11, 0.0  ;;  %vm2156_vm6 = vmmov %vm2155_vm8  ;;  %vm2158_vm15 = vcmask 543744  }
 0x3d4   : > { %v1372_v16 = vpack.c.bf16 %v1238_v15, %v1238_v15  ;;  %v1237_v17 = vsel %vm1804_vm7, %v1232_v14, 0.0  ;;  %vm2157_vm7 = vmmov %vm2156_vm6 }
 0x3d5   : > { %v1371_v18 = vpack.c.bf16 %v1237_v17, %v1236_v56 }
 0x3d6   : > { %1262 = vrot.lane.b32.xlu1 %v1372_v16, %s1483_s21 }
 0x3d7   : > { %1260 = vrot.lane.b32.xlu0 %v1371_v18, %s1483_s21 }
 0x435   : > { %v1259_v61 = vpop.permute.xlu1 %1258 }
 0x436   : > { %v1264_v21 = vrot.slane %v1259_v61, 4 }
 0x438   : > { %v1266_v2 = vsel %vm2155_vm8, %v1264_v21, %v1259_v61 }
 0x439   : > { %1273 = vst.msk [vmem:[%s2049_s10] sm:$0xff] %vm1821_vm10, %v1266_v2 }
 0x448   : > { %v1263_v25 = vpop.permute.xlu1 %1262 }
 0x449   : > { %v1261_v48 = vpop.permute.xlu0 %1260 }
 0x44a   : > { %v1265_v10 = vrot.slane %v1261_v48, 4 }
 0x44c   : > { %v1267_v51 = vsel %vm416_vm1, %v1264_v21, %v1265_v10  ;;  %v1269_v26 = vsel %vm2156_vm6, %v1265_v10, %v1263_v25 }
 0x44d   : > { %v1268_v39 = vsel %vm2157_vm7, %v1267_v51, %v1261_v48  ;;  %1275 = vst.msk [vmem:[%s2049_s10 + $0x10] sm:$0xf] %vm2158_vm15, %v1269_v26 }
 0x44e   : > { %1274 = vst [vmem:[%s2049_s10 + $0x8] sm:$0xff] %v1268_v39  ;;  %1276 = vst.msk [vmem:[%s2049_s10 + $0x10] sm:$0xff] %vm1842_vm4, %v1479_v7 }
 0x44f PF: > { %s17_s24 = sadd.s32 1, %s1470_s24  }
 0x450   : > { %p14_p4 = scmp.ge.s32.totalorder %s17_s24, 4  }
 0x452   :  { %16 = sbr.rel (!%p14_p4) target bundleno = 1 (0x1), region = 78 }

// kernel: _lambda_.10
= control target key start
LH: loop header
LB: loop body
LE: loop exit
PB: predicated region body
PF: predicated region fallthrough
CT: control target
= control target key end

     0   :  { %s1111_s13 = smov 0   ;;  %s1304_s0 = inlined_call_operand.vmem [shape: bf16[2,4,8,180], index: 0, kind: input, shape index: {}]   ;;  %s1305_s1 = inlined_call_operand.vmem [shape: bf16[1,16,72], index: 1, kind: input, shape index: {}]   ;;  %s1306_s2 = inlined_call_operand.vmem [shape: f32[16,1], index: 2, kind: input, shape index: {}]   ;;  %s1307_s3 = inlined_call_operand.vmem [shape: f32[16,1], index: 3, kind: input, shape index: {}]   ;;  %s1308_s4 = inlined_call_operand.vmem [shape: bf16[1,16,144], index: 4, kind: input, shape index: {}]   ;;  %s1309_s5 = inlined_call_operand.vmem [shape: f32[16,1], index: 5, kind: input, shape index: {}]   ;;  %s1310_s6 = inlined_call_operand.vmem [shape: f32[16,1], index: 6, kind: input, shape index: {}]   ;;  %s1311_s7 = inlined_call_operand.vmem [shape: bf16[16,8], index: 7, kind: input, shape index: {}]   ;;  %s1312_s8 = inlined_call_operand.vmem [shape: f32[16,1], index: 8, kind: input, shape index: {}]   ;;  %s1313_s9 = inlined_call_operand.vmem [shape: f32[16,1], index: 9, kind: input, shape index: {}]   ;;  %s1314_s10 = inlined_call_operand.vmem [shape: bf16[2,16,198], index: 10, kind: output, shape index: {}]  }
   0x1 LB: > { %s961_s14 = sadd.s32 4294967295, %s1044_s13   ;;  %p965_p0 = scmp.ge.s32.totalorder %s1044_s13, 1  ;;  %s1044_s13 = sphi %s1111_s13, %s20_s13  }
   0x2   : > { %p312_p1 = scmp.lt.s32.totalorder %s1044_s13, 3 }
   0x4   : > { %p313_p2 = pnand %p965_p0, %p312_p1 }
   0x5   : > { %p350_p3 = scmp.lt.s32.totalorder (!%p313_p2), %s961_s14, 1  ;;  %vm416_vm0 = vcmask (!%p313_p2), 1043456   ;;  %s1046_s19 = smov (!%p313_p2), 127   ;;  %v1047_v11 = vmov (!%p313_p2), 0   ;;  %v510_v12 = vld [vmem:[%s1306_s2 + $0x8] sm:$0xff] (!%p313_p2)  ;;  %v509_v13 = vld [vmem:[%s1306_s2] sm:$0xff] (!%p313_p2)  ;;  %v545_v44 = vlaneseq (!%p313_p2) }
   0x6   : > { %316 = sbr.rel (%p313_p2) target bundleno = 997 (0x3e5), region = 60  ;;  %498 = vmatprep.mubr.bf16.mxu0 (!%p313_p2), %v1047_v11  ;;  %1024 = vset.pattern.permute.xlu1 (!%p313_p2), %v1047_v11  ;;  %s1048_s20 = smov (!%p313_p2), 110   ;;  %v525_v14 = vld [vmem:[%s1307_s3] sm:$0xff] (!%p313_p2)  ;;  %v526_v15 = vld [vmem:[%s1307_s3 + $0x8] sm:$0xff] (!%p313_p2)  ;;  %vm382_vm1 = vcmask (!%p313_p2), 1039360   ;;  %vm403_vm2 = vcmask (!%p313_p2), 900096  }
   0x7   : > { %1023 = vset.pattern.permute.xlu0 (!%p313_p2), %v1047_v11  ;;  %s1049_s21 = smov (!%p313_p2), 109   ;;  %vm414_vm3 = vcmask (!%p313_p2), 891904   ;;  %v1033_v41 = vld [vmem:[%s1305_s1] sm:$0xff] (!%p313_p2)   ;;  %vm456_vm4 = vcmask (!%p313_p2), 588800   ;;  %vm592_vm5 = vcmask (!%p313_p2), 154624   ;;  %vm778_vm6 = vcmask (!%p313_p2), 64512  }
   0x8   : > { %v1034_v43 = vld [vmem:[%s1311_s7] sm:$0xff] (!%p313_p2)   ;;  %593 = vst.msk [vmem:[#allocation2] sm:$0xff] (!%p313_p2), %vm592_vm5, %v1047_v11  ;;  %v546_v45 = vand.u32 (!%p313_p2), 127, %v545_v44  ;;  %s1050_s16 = smov (!%p313_p2), 19   ;;  %vm604_vm15 = vcmask (!%p313_p2), 1047704   ;;  %s1051_s17 = smov (!%p313_p2), 126  }
   0x9   : > { %s1054_s24 = smov (!%p313_p2), 91   ;;  %v847_v44 = vld [vmem:[%s1313_s9] sm:$0xff] (!%p313_p2) }
   0xa   : > { %v547_v46 = vadd.s32 (!%p313_p2), 128, %v546_v45  ;;  %v1182_v47 = vmul.u32.u64.low (!%p313_p2), 3817748708, %v546_v45  ;;  %v1183_v48 = vmul.u32.u64.high 3817748708, %v546_v45, %v1182_v47 }
   0xc   : > { %v1185_v49 = vmul.u32.u64.low (!%p313_p2), 3817748708, %v547_v46  ;;  %v1186_v50 = vmul.u32.u64.high 3817748708, %v547_v46, %v1185_v49  ;;  %v554_v51 = vshrl.u32 (!%p313_p2), %v1183_v48, 4 }
   0xd   : > { %s1324_s14 = smov (!%p350_p3, %s961_s14), 1 }
   0xe   : > { %s997_s15 = sshll.u32 %s1324_s14, 5  ;;  %v565_v52 = vshrl.u32 %v1186_v50, 4  ;;  %v555_v53 = vmul.u32 18, %v554_v51  ;;  %s998_s26 = sshll.u32 %s1324_s14, 4 }
   0xf   : > { %s1125_s18 = scalar_lea.vmem %s1304_s0, %s997_s15  ;;  %s1273_s28 = scalar_lea.vmem %s1314_s10, %s998_s26 }
  0x10   : > { %v971_v0 = vld [vmem:[%s1125_s18 + $0x10] sm:$0xff]  ;;  %v361_v1 = vld [vmem:[%s1125_s18] sm:$0xff]  ;;  %v970_v2 = vld [vmem:[%s1125_s18 + $0x8] sm:$0xff]  ;;  %v566_v54 = vmul.u32 18, %v565_v52  ;;  %v556_v55 = vsub.s32 %v546_v45, %v555_v53 }
  0x11   : > { %v977_v3 = vcombine.low %v971_v0, %v971_v0  ;;  %v973_v4 = vcombine.low %v361_v1, %v361_v1  ;;  %v974_v5 = vcombine.high %v361_v1, %v361_v1  ;;  %v976_v6 = vcombine.high %v970_v2, %v970_v2  ;;  %v972_v18 = vld [vmem:[%s1125_s18 + $0x18] sm:$0xff]  ;;  %s1052_s18 = smov 108   ;;  %v848_v45 = vld [vmem:[%s1313_s9 + $0x8] sm:$0xff] }
  0x12   : > { %v975_v7 = vcombine.low %v970_v2, %v970_v2  ;;  %v978_v8 = vcombine.high %v971_v0, %v971_v0  ;;  %v980_v19 = vcombine.high %v972_v18, %v972_v18  ;;  %v979_v25 = vcombine.low %v972_v18, %v972_v18 }
  0x13   : > { %394 = vrot.lane.b32.xlu1 %v977_v3, %s1046_s19  ;;  %378 = vrot.lane.b32.xlu0 %v973_v4, %s1046_s19  ;;  %v423_v9 = vsel %vm416_vm0, %v974_v5, %v976_v6  ;;  %v567_v57 = vsub.s32 %v547_v46, %v566_v54  ;;  %vm570_vm7 = vcmp.ne.s32.totalorder %v556_v55, 0  ;;  %vm572_vm8 = vcmp.lt.s32.totalorder %v556_v55, 0 }
  0x14   : > { %v419_v10 = vsel %vm416_vm0, %v973_v4, %v975_v7  ;;  %466 = vmatprep.subr.bf16.mxu0 %v423_v9  ;;  %v783_v42 = vsel %vm416_vm0, %v979_v25, 0  ;;  %v576_v59 = vadd.s32 18, %v556_v55  ;;  %vm1190_vm11 = vmand %vm572_vm8, %vm570_vm7  ;;  %vm625_vm7 = vcmask 1031168  }
  0x15   : > { %467 = vmatpush1.bf16.msra.mxu0 %v419_v10  ;;  %vm571_vm9 = vcmp.ne.s32.totalorder %v567_v57, 0  ;;  %vm573_vm10 = vcmp.lt.s32.totalorder %v567_v57, 0  ;;  %v577_v63 = vadd.s32 18, %v567_v57  ;;  %vm655_vm8 = vcmask 752640  }
  0x16   : > { %vm1194_vm12 = vmand %vm573_vm10, %vm571_vm9  ;;  %vm877_vm9 = vcmask 150528   ;;  %vm898_vm10 = vcmask 1043608  }
  0x17   : > { %396 = vrot.lane.b32.xlu1 %v978_v8, %s1046_s19  ;;  %380 = vrot.lane.b32.xlu0 %v974_v5, %s1046_s19  ;;  %878 = vst.msk [vmem:[%s1273_s28] sm:$0xf] %vm877_vm9, %v1047_v11  ;;  %879 = vst.msk [vmem:[%s1273_s28 + $0x8] sm:$0xf] %vm877_vm9, %v1047_v11 }
  0x1b   : > { %401 = vrot.lane.b32.xlu1 %v974_v5, %s1048_s20  ;;  %399 = vrot.lane.b32.xlu0 %v973_v4, %s1048_s20 }
  0x1f   : > { %407 = vrot.lane.b32.xlu1 %v976_v6, %s1048_s20  ;;  %405 = vrot.lane.b32.xlu0 %v975_v7, %s1048_s20 }
  0x23   : > { %412 = vrot.lane.b32.xlu1 %v974_v5, %s1049_s21  ;;  %410 = vrot.lane.b32.xlu0 %v973_v4, %s1049_s21  ;;  %v578_v5 = vsel %vm1190_vm11, %v576_v59, %v556_v55  ;;  %vm899_vm11 = vcmask 285700  }
  0x24   : > { %vm1202_vm13 = vcmp.lt.s32.totalorder %v578_v5, 16 }
  0x27   : > { %518 = vperm.xlu1 %1024, %v510_v12   ;;  %513 = vperm.xlu0 %1023, %v509_v13   ;;  %v579_v13 = vsel %vm1194_vm12, %v577_v63, %v567_v57  ;;  %vm900_vm12 = vmor %vm899_vm11, %vm898_vm10 }
  0x28   : > { %vm1206_vm14 = vcmp.lt.s32.totalorder %v579_v13, 16 }
  0x2b   : > { %529 = vperm.xlu1 %1024, %v525_v14   ;;  %534 = vperm.xlu0 %1023, %v526_v15  }
  0x85   : > { %v395_v16 = vpop.permute.xlu1 %394  ;;  %v379_v17 = vpop.permute.xlu0 %378 }
  0x89   : > { %v397_v20 = vpop.permute.xlu1 %396  ;;  %v381_v21 = vpop.permute.xlu0 %380 }
  0x8a   : > { %v383_v22 = vsel %vm382_vm1, %v379_v17, %v381_v21  ;;  %v431_v23 = vsel %vm416_vm0, %v381_v21, %v978_v8  ;;  %v398_v26 = vsel %vm382_vm1, %v395_v16, %v397_v20  ;;  %v439_v27 = vsel %vm416_vm0, %v980_v19, %v397_v20 }
  0x8b   : > { %468 = vmatprep.subr.bf16.mxu0 %v431_v23  ;;  %v427_v24 = vsel %vm416_vm0, %v383_v22, %v977_v3  ;;  %v435_v30 = vsel %vm416_vm0, %v979_v25, %v398_v26 }
  0x8c   : > { %469 = vmatpush1.bf16.msra.mxu0 %v427_v24 }
  0x8d   : > { %v402_v28 = vpop.permute.xlu1 %401  ;;  %v400_v29 = vpop.permute.xlu0 %399  ;;  %470 = vmatprep.subr.bf16.mxu0 %v439_v27 }
  0x8e   : > { %v404_v33 = vsel %vm403_vm2, %v400_v29, %v402_v28 }
  0x90   : > { %471 = vmatpush1.bf16.msra.mxu0 %v435_v30 }
  0x91   : > { %v408_v31 = vpop.permute.xlu1 %407  ;;  %v406_v32 = vpop.permute.xlu0 %405 }
  0x92   : > { %v409_v34 = vsel %vm403_vm2, %v406_v32, %v408_v31  ;;  %v447_v35 = vsel %vm416_vm0, %v402_v28, %v408_v31 }
  0x93   : > { %472 = vmatprep.subr.bf16.mxu0 %v447_v35  ;;  %v443_v36 = vsel %vm416_vm0, %v404_v33, %v409_v34  ;;  %v1037_v33 = vld [vmem:[%s1308_s4 + $0x4] ss:$8 sps:$4 sm:$0xff]  }
  0x94   : > { %473 = vmatpush1.bf16.msra.mxu0 %v443_v36  ;;  %v733_v34 = vld [vmem:[%s1309_s5] sm:$0xff]  ;;  %v734_v36 = vld [vmem:[%s1309_s5 + $0x8] sm:$0xff] }
  0x95   : > { %v413_v37 = vpop.permute.xlu1 %412  ;;  %v411_v38 = vpop.permute.xlu0 %410 }
  0x96   : > { %v415_v39 = vsel %vm414_vm3, %v411_v38, %v413_v37  ;;  %982 = vmatprep.subr.msk.bf16.mxu0 %vm416_vm0, %v413_v37  ;;  %v831_v37 = vld [vmem:[%s1312_s8] sm:$0xff] }
  0x97   : > { %v461_v40 = vsel %vm416_vm0, %v415_v39, 0  ;;  %v832_v39 = vld [vmem:[%s1312_s8 + $0x8] sm:$0xff] }
  0x98   : > { %475 = vmatpush1.bf16.msra.mxu0 %v461_v40 }
  0x99   : > { %991 = vmatprep.subr.msk.bf16.mxu0 %vm416_vm0, %v980_v19  ;;  %vm606_vm0 = vcmask 285696  }
  0x9b   : > { %983 = vmatmul.mubr.msk.bf16.vlgmr.msra.gmra.mrb[0].mxu0 %vm456_vm4, %v1033_v41  ;;  %vm608_vm4 = vcmask 572696   ;;  %v749_v41 = vld [vmem:[%s1310_s6] sm:$0xff] }
  0x9c   : > { %820 = vmatprep.mubr.bf16.mxu0 %v1047_v11  ;;  %789 = vmatpush1.bf16.msra.mxu0 %v783_v42 }
  0xa3   : > { %992 = vmatmul.mubr.msk.bf16.vlgmr.msra.gmra.mrb[4].mxu0 %vm778_vm6, %v1034_v43  ;;  %vm686_vm6 = vcmask 130048   ;;  %v750_v43 = vld [vmem:[%s1310_s6 + $0x8] sm:$0xff] }
  0xa4   : > { %986 = vmatprep.mubr.msk.bf16.mxu1 %vm686_vm6, %v1037_v33 }
  0xa6   : > { %v519_v56 = vpop.permute.xlu1 %518  ;;  %v514_v58 = vpop.permute.xlu0 %513 }
  0xaa   : > { %v530_v62 = vpop.permute.xlu1 %529  ;;  %v535_v9 = vpop.permute.xlu0 %534 }
 0x16e   : > { %v500_v60 = vpop.f32.mrb[0].mxu0 }
 0x16f   : > { %v521_v0 = vmul.f32 %v514_v58, %v500_v60  ;;  %v502_v1 = vpop.f32.mrb[1].mxu0 }
 0x170   : > { %v522_v3 = vmul.f32 %v514_v58, %v502_v1  ;;  %v504_v4 = vpop.f32.mrb[2].mxu0 }
 0x171   : > { %v537_v6 = vadd.f32 %v530_v62, %v521_v0  ;;  %v523_v7 = vmul.f32 %v519_v56, %v504_v4  ;;  %v506_v8 = vpop.f32.mrb[3].mxu0 }
 0x172   : > { %v538_v10 = vadd.f32 %v530_v62, %v522_v3  ;;  %v524_v12 = vmul.f32 %v519_v56, %v506_v8 }
 0x173   : > { %v541_v14 = vmax.f32 %v537_v6, 0.0  ;;  %v539_v15 = vadd.f32 %v535_v9, %v523_v7  ;;  %v1035_v6 = vld [vmem:[%s1308_s4] ss:$8 sps:$4 sm:$0xff]  }
 0x174   : > { %v542_v17 = vmax.f32 %v538_v10, 0.0  ;;  %v540_v18 = vadd.f32 %v535_v9, %v524_v12 }
 0x175   : > { %v543_v19 = vmax.f32 %v539_v15, 0.0  ;;  %v586_v22 = vsel %vm1202_vm13, %v541_v14, 0.0 }
 0x176   : > { %v544_v21 = vmax.f32 %v540_v18, 0.0  ;;  %v587_v25 = vsel %vm1206_vm14, %v542_v17, 0.0  ;;  %v1234_v35 = vpop.f32.mrb[4].mxu0 }
 0x177   : > { %v588_v23 = vsel %vm1202_vm13, %v543_v19, 0.0  ;;  %v1242_v38 = vpop.f32.mrb[5].mxu0 }
 0x178   : > { %v590_v24 = vpack.c.bf16 %v588_v23, %v586_v22  ;;  %v589_v26 = vsel %vm1206_vm14, %v544_v21, 0.0  ;;  %v1247_v40 = vpop.f32.mrb[6].mxu0 }
 0x179   : > { %v591_v27 = vpack.c.bf16 %v589_v26, %v587_v25  ;;  %v1252_v42 = vpop.f32.mrb[7].mxu0 }
 0x17a   : > { %596 = vrot.lane.b32.xlu1 %v590_v24, %s1050_s16 }
 0x17b   : > { %598 = vrot.lane.b32.xlu0 %v591_v27, %s1050_s16 }
 0x1ec   : > { %v597_v28 = vpop.permute.xlu1 %596 }
 0x1ed   : > { %605 = vst.msk [vmem:[#allocation2] sm:$0xff] %vm604_vm15, %v597_v28  ;;  %v599_v29 = vpop.permute.xlu0 %598  ;;  %vm903_vm15 = vcmask 568600  }
 0x1ee   : > { %v601_v30 = vsel %vm592_vm5, %v597_v28, %v599_v29 }
 0x1ef   : > { %607 = vst.msk [vmem:[#allocation2 + $0x8] sm:$0xff] %vm606_vm0, %v601_v30 }
 0x1f0   : > { %609 = vst.msk [vmem:[#allocation2 + $0x8] sm:$0xff] %vm608_vm4, %v1047_v11 }
 0x1f4   : > { %v610_v31 = vld [vmem:[#allocation2] sm:$0xff] }
 0x1f5   : > { %614 = vrot.lane.b32.xlu1 %v610_v31, %s1046_s19 }
 0x1f7   : > { %v611_v32 = vld [vmem:[#allocation2 + $0x8] sm:$0xff] }
 0x1f8   : > { %616 = vrot.lane.b32.xlu0 %v611_v32, %s1046_s19  ;;  %690 = vmatprep.subr.bf16.mxu1 %v611_v32  ;;  %s1053_s19 = smov 92  }
 0x1f9   : > { %621 = vrot.lane.b32.xlu1 %v610_v31, %s1051_s17  ;;  %691 = vmatpush1.bf16.msra.mxu1 %v610_v31 }
 0x1fc   : > { %623 = vrot.lane.b32.xlu0 %v611_v32, %s1051_s17 }
 0x1fd   : > { %629 = vrot.lane.b32.xlu1 %v610_v31, %s1048_s20 }
 0x200   : > { %631 = vrot.lane.b32.xlu0 %v611_v32, %s1048_s20  ;;  %s1055_s20 = smov 90  }
 0x201   : > { %636 = vrot.lane.b32.xlu1 %v610_v31, %s1049_s21 }
 0x204   : > { %638 = vrot.lane.b32.xlu0 %v611_v32, %s1049_s21 }
 0x205   : > { %643 = vrot.lane.b32.xlu1 %v610_v31, %s1052_s18 }
 0x208   : > { %645 = vrot.lane.b32.xlu0 %v611_v32, %s1052_s18 }
 0x209   : > { %651 = vrot.lane.b32.xlu1 %v610_v31, %s1053_s19 }
 0x20c   : > { %653 = vrot.lane.b32.xlu0 %v611_v32, %s1053_s19 }
 0x20d   : > { %659 = vrot.lane.b32.xlu1 %v610_v31, %s1054_s24 }
 0x210   : > { %661 = vrot.lane.b32.xlu0 %v611_v32, %s1054_s24 }
 0x211   : > { %667 = vrot.lane.b32.xlu1 %v610_v31, %s1055_s20 }
 0x214   : > { %669 = vrot.lane.b32.xlu0 %v611_v32, %s1055_s20 }
 0x215   : > { %737 = vperm.xlu1 %1024, %v733_v34  }
 0x218   : > { %742 = vperm.xlu0 %1023, %v734_v36  }
 0x219   : > { %835 = vperm.xlu1 %1024, %v831_v37  }
 0x21c   : > { %840 = vperm.xlu0 %1023, %v832_v39  }
 0x21d   : > { %753 = vperm.xlu1 %1024, %v749_v41  }
 0x220   : > { %758 = vperm.xlu0 %1023, %v750_v43  }
 0x221   : > { %851 = vperm.xlu1 %1024, %v847_v44  }
 0x224   : > { %856 = vperm.xlu0 %1023, %v848_v45  }
 0x267   : > { %v615_v46 = vpop.permute.xlu1 %614 }
 0x26a   : > { %v617_v47 = vpop.permute.xlu0 %616 }
 0x26b   : > { %v622_v48 = vpop.permute.xlu1 %621  ;;  %692 = vmatprep.subr.bf16.mxu1 %v617_v47  ;;  %v618_v49 = vsel %vm382_vm1, %v615_v46, %v617_v47  ;;  %vm647_vm1 = vcmask 883712  }
 0x26c   : > { %693 = vmatpush1.bf16.msra.mxu1 %v618_v49 }
 0x26e   : > { %v624_v50 = vpop.permute.xlu0 %623 }
 0x26f   : > { %v630_v51 = vpop.permute.xlu1 %629  ;;  %694 = vmatprep.subr.bf16.mxu1 %v624_v50  ;;  %v626_v52 = vsel %vm625_vm7, %v622_v48, %v624_v50 }
 0x270   : > { %695 = vmatpush1.bf16.msra.mxu1 %v626_v52 }
 0x272   : > { %v632_v53 = vpop.permute.xlu0 %631 }
 0x273   : > { %v637_v54 = vpop.permute.xlu1 %636  ;;  %696 = vmatprep.subr.bf16.mxu1 %v632_v53  ;;  %v633_v55 = vsel %vm403_vm2, %v630_v51, %v632_v53  ;;  %vm663_vm2 = vcmask 744448  }
 0x274   : > { %697 = vmatpush1.bf16.msra.mxu1 %v633_v55 }
 0x276   : > { %v639_v56 = vpop.permute.xlu0 %638 }
 0x277   : > { %v644_v57 = vpop.permute.xlu1 %643  ;;  %698 = vmatprep.subr.bf16.mxu1 %v639_v56  ;;  %v640_v58 = vsel %vm414_vm3, %v637_v54, %v639_v56  ;;  %vm671_vm3 = vcmask 736256  }
 0x278   : > { %699 = vmatpush1.bf16.msra.mxu1 %v640_v58 }
 0x27a   : > { %v646_v59 = vpop.permute.xlu0 %645 }
 0x27b   : > { %v652_v60 = vpop.permute.xlu1 %651  ;;  %700 = vmatprep.subr.bf16.mxu1 %v646_v59  ;;  %v648_v61 = vsel %vm647_vm1, %v644_v57, %v646_v59 }
 0x27c   : > { %701 = vmatpush1.bf16.msra.mxu1 %v648_v61 }
 0x27e   : > { %v654_v62 = vpop.permute.xlu0 %653 }
 0x27f   : > { %702 = vmatprep.subr.bf16.mxu1 %v654_v62  ;;  %v656_v63 = vsel %vm655_vm8, %v652_v60, %v654_v62  ;;  %v660_v0 = vpop.permute.xlu1 %659 }
 0x280   : > { %703 = vmatpush1.bf16.msra.mxu1 %v656_v63 }
 0x282   : > { %v662_v1 = vpop.permute.xlu0 %661 }
 0x283   : > { %704 = vmatprep.subr.bf16.mxu1 %v662_v1  ;;  %v664_v2 = vsel %vm663_vm2, %v660_v0, %v662_v1  ;;  %v668_v3 = vpop.permute.xlu1 %667 }
 0x284   : > { %705 = vmatpush1.bf16.msra.mxu1 %v664_v2 }
 0x286   : > { %v670_v4 = vpop.permute.xlu0 %669 }
 0x287   : > { %706 = vmatprep.subr.bf16.mxu1 %v670_v4  ;;  %v672_v5 = vsel %vm671_vm3, %v668_v3, %v670_v4 }
 0x288   : > { %707 = vmatpush1.bf16.msra.mxu1 %v672_v5 }
 0x28b   : > { %723 = vmatmul.mubr.bf16.vlgmr.msra.gmra.mrb[0].mxu1 %v1035_v6 }
 0x294   : > { %v738_v7 = vpop.permute.xlu1 %737 }
 0x297   : > { %v743_v8 = vpop.permute.xlu0 %742 }
 0x298   : > { %v836_v9 = vpop.permute.xlu1 %835 }
 0x299   : > { %v843_v17 = vmul.f32 %v836_v9, %v1234_v35  ;;  %v844_v21 = vmul.f32 %v836_v9, %v1242_v38 }
 0x29b   : > { %v841_v10 = vpop.permute.xlu0 %840 }
 0x29c   : > { %v754_v12 = vpop.permute.xlu1 %753  ;;  %v845_v25 = vmul.f32 %v841_v10, %v1247_v40  ;;  %v846_v30 = vmul.f32 %v841_v10, %v1252_v42 }
 0x29f   : > { %v759_v13 = vpop.permute.xlu0 %758 }
 0x2a0   : > { %v852_v14 = vpop.permute.xlu1 %851 }
 0x2a1   : > { %v859_v26 = vadd.f32 %v852_v14, %v843_v17  ;;  %v860_v31 = vadd.f32 %v852_v14, %v844_v21 }
 0x2a3   : > { %v857_v22 = vpop.permute.xlu0 %856 }
 0x2a4   : > { %v861_v34 = vadd.f32 %v857_v22, %v845_v25  ;;  %v862_v37 = vadd.f32 %v857_v22, %v846_v30 }
 0x35e   : > { %v724_v15 = vpop.f32.mrb[0].mxu1 }
 0x35f   : > { %v745_v18 = vmul.f32 %v738_v7, %v724_v15  ;;  %v726_v19 = vpop.f32.mrb[1].mxu1 }
 0x360   : > { %v746_v23 = vmul.f32 %v738_v7, %v726_v19  ;;  %v728_v24 = vpop.f32.mrb[2].mxu1 }
 0x361   : > { %v761_v27 = vadd.f32 %v754_v12, %v745_v18  ;;  %v747_v28 = vmul.f32 %v743_v8, %v728_v24  ;;  %v730_v29 = vpop.f32.mrb[3].mxu1 }
 0x362   : > { %v762_v32 = vadd.f32 %v754_v12, %v746_v23  ;;  %v748_v33 = vmul.f32 %v743_v8, %v730_v29 }
 0x363   : > { %v863_v35 = vadd.f32 %v859_v26, %v761_v27  ;;  %v763_v36 = vadd.f32 %v759_v13, %v747_v28 }
 0x364   : > { %v864_v39 = vadd.f32 %v860_v31, %v762_v32  ;;  %v764_v38 = vadd.f32 %v759_v13, %v748_v33 }
 0x365   : > { %v867_v41 = vmax.f32 %v863_v35, 0.0  ;;  %v865_v43 = vadd.f32 %v861_v34, %v763_v36 }
 0x366   : > { %v868_v44 = vmax.f32 %v864_v39, 0.0  ;;  %v866_v45 = vadd.f32 %v862_v37, %v764_v38 }
 0x367   : > { %v869_v40 = vmax.f32 %v865_v43, 0.0  ;;  %v871_v46 = vsel %vm1202_vm13, %v867_v41, 0.0 }
 0x368   : > { %v870_v47 = vmax.f32 %v866_v45, 0.0  ;;  %v872_v42 = vsel %vm1206_vm14, %v868_v44, 0.0 }
 0x369   : > { %v999_v48 = vpack.c.bf16 %v872_v42, %v871_v46  ;;  %v873_v49 = vsel %vm1202_vm13, %v869_v40, 0.0 }
 0x36a   : > { %v874_v50 = vsel %vm1206_vm14, %v870_v47, 0.0 }
 0x36b   : > { %888 = vrot.lane.b32.xlu1 %v999_v48, %s1050_s16  ;;  %v1000_v51 = vpack.c.bf16 %v874_v50, %v873_v49 }
 0x36d   : > { %890 = vrot.lane.b32.xlu0 %v1000_v51, %s1050_s16 }
 0x3dd   : > { %v889_v52 = vpop.permute.xlu1 %888 }
 0x3de   : > { %v892_v53 = vrot.slane %v889_v52, 4 }
 0x3df   : > { %v891_v54 = vpop.permute.xlu0 %890 }
 0x3e0   : > { %v894_v16 = vsel %vm592_vm5, %v892_v53, %v889_v52  ;;  %v893_v55 = vrot.slane %v891_v54, 4 }
 0x3e1   : > { %901 = vst.msk [vmem:[%s1273_s28] sm:$0xff] %vm900_vm12, %v894_v16 }
 0x3e2   : > { %904 = vst.msk [vmem:[%s1273_s28 + $0x4] sm:$0xf] %vm903_vm15, %v1047_v11  ;;  %v895_v20 = vsel %vm592_vm5, %v893_v55, %v891_v54 }
 0x3e3   : > { %902 = vst.msk [vmem:[%s1273_s28 + $0x8] sm:$0xff] %vm900_vm12, %v895_v20 }
 0x3e4   : > { %905 = vst.msk [vmem:[%s1273_s28 + $0xc] sm:$0xf] %vm903_vm15, %v1047_v11 }
 0x3e5 PF: > { %s20_s13 = sadd.s32 1, %s1044_s13  }
 0x3e6   : > { %p17_p4 = scmp.ge.s32.totalorder %s20_s13, 4  }
 0x3e8   :  { %19 = sbr.rel (!%p17_p4) target bundleno = 1 (0x1), region = 93 }

// kernel: _lambda_.11
= control target key start
LH: loop header
LB: loop body
LE: loop exit
PB: predicated region body
PF: predicated region fallthrough
CT: control target
= control target key end

     0   :  { %s912_s24 = smov 0   ;;  %s1106_s0 = inlined_call_operand.vmem [shape: bf16[2,16,198], index: 0, kind: input, shape index: {}]   ;;  %s1107_s1 = inlined_call_operand.vmem [shape: bf16[1,16,144], index: 1, kind: input, shape index: {}]   ;;  %s1108_s2 = inlined_call_operand.vmem [shape: f32[16,1], index: 2, kind: input, shape index: {}]   ;;  %s1109_s3 = inlined_call_operand.vmem [shape: f32[16,1], index: 3, kind: input, shape index: {}]   ;;  %s1110_s4 = inlined_call_operand.vmem [shape: bf16[1,16,144], index: 4, kind: input, shape index: {}]   ;;  %s1111_s5 = inlined_call_operand.vmem [shape: f32[16,1], index: 5, kind: input, shape index: {}]   ;;  %s1112_s6 = inlined_call_operand.vmem [shape: f32[16,1], index: 6, kind: input, shape index: {}]   ;;  %s1113_s7 = inlined_call_operand.vmem [shape: bf16[2,16,198], index: 7, kind: output, shape index: {}]  }
   0x1 LB: > { %s787_s25 = sadd.s32 4294967295, %s860_s24   ;;  %p791_p0 = scmp.ge.s32.totalorder %s860_s24, 1  ;;  %s860_s24 = sphi %s912_s24, %s17_s24  }
   0x2   : > { %p237_p1 = scmp.lt.s32.totalorder %s860_s24, 3 }
   0x4   : > { %p238_p2 = pnand %p791_p0, %p237_p1 }
   0x5   : > { %p269_p3 = scmp.lt.s32.totalorder (!%p238_p2), %s787_s25, 1  ;;  %s862_s30 = smov (!%p238_p2), 126   ;;  %v850_v4 = vld [vmem:[%s1107_s1 + $0x4] ss:$8 sps:$4 sm:$0xff] (!%p238_p2)   ;;  %vm367_vm0 = vcmask (!%p238_p2), 130048   ;;  %v869_v5 = vmov (!%p238_p2), 0   ;;  %v450_v35 = vlaneseq (!%p238_p2) }
   0x6   : > { %241 = sbr.rel (%p238_p2) target bundleno = 1012 (0x3f4), region = 48  ;;  %s863_s8 = smov (!%p238_p2), 127   ;;  %800 = vmatprep.mubr.msk.bf16.mxu0 (!%p238_p2), %vm367_vm0, %v850_v4  ;;  %835 = vset.pattern.permute.xlu1 (!%p238_p2), %v869_v5  ;;  %v415_v6 = vld [vmem:[%s1108_s2 + $0x8] sm:$0xff] (!%p238_p2)  ;;  %v414_v7 = vld [vmem:[%s1108_s2] sm:$0xff] (!%p238_p2)  ;;  %vm296_vm1 = vcmask (!%p238_p2), 1039360   ;;  %vm304_vm2 = vcmask (!%p238_p2), 1031168  }
   0x7   : > { %s864_s9 = smov (!%p238_p2), 110   ;;  %s865_s10 = smov (!%p238_p2), 109   ;;  %834 = vset.pattern.permute.xlu0 (!%p238_p2), %v869_v5  ;;  %v430_v8 = vld [vmem:[%s1109_s3] sm:$0xff] (!%p238_p2)  ;;  %v431_v9 = vld [vmem:[%s1109_s3 + $0x8] sm:$0xff] (!%p238_p2)  ;;  %vm312_vm3 = vcmask (!%p238_p2), 900096   ;;  %vm320_vm4 = vcmask (!%p238_p2), 891904  }
   0x8   : > { %s866_s11 = smov (!%p238_p2), 108   ;;  %s867_s12 = smov (!%p238_p2), 92   ;;  %vm328_vm5 = vcmask (!%p238_p2), 883712   ;;  %vm336_vm6 = vcmask (!%p238_p2), 752640   ;;  %vm344_vm7 = vcmask (!%p238_p2), 744448   ;;  %vm352_vm8 = vcmask (!%p238_p2), 736256  }
   0x9   : > { %s868_s15 = smov (!%p238_p2), 91   ;;  %s870_s16 = smov (!%p238_p2), 90   ;;  %v848_v34 = vld [vmem:[%s1107_s1] ss:$8 sps:$4 sm:$0xff] (!%p238_p2)   ;;  %vm497_vm9 = vcmask (!%p238_p2), 154624   ;;  %v451_v36 = vand.u32 (!%p238_p2), 127, %v450_v35 }
   0xa   : > { %498 = vst.msk [vmem:[#allocation2] sm:$0xff] (!%p238_p2), %vm497_vm9, %v869_v5  ;;  %s871_s13 = smov (!%p238_p2), 19  }
   0xb   : > { %v452_v37 = vadd.s32 (!%p238_p2), 128, %v451_v36  ;;  %v983_v38 = vmul.u32.u64.low (!%p238_p2), 3817748708, %v451_v36  ;;  %v984_v39 = vmul.u32.u64.high 3817748708, %v451_v36, %v983_v38 }
   0xd   : > { %s1123_s25 = smov (!%p269_p3, %s787_s25), 1  ;;  %v986_v40 = vmul.u32.u64.low 3817748708, %v452_v37  ;;  %v987_v41 = vmul.u32.u64.high 3817748708, %v452_v37, %v986_v40  ;;  %v459_v42 = vshrl.u32 %v984_v39, 4 }
   0xe   : > { %s808_s26 = sshll.u32 %s1123_s25, 4 }
   0xf   : > { %s273_s29 = scalar_lea.vmem %s1106_s0, %s808_s26  ;;  %v470_v43 = vshrl.u32 %v987_v41, 4  ;;  %v460_v44 = vmul.u32 18, %v459_v42  ;;  %s1077_s22 = scalar_lea.vmem %s1113_s7, %s808_s26 }
  0x10   : > { %v928_v0 = vld [vmem:[%s273_s29] sm:$0xff]  ;;  %v930_v1 = vld [vmem:[%s273_s29 + $0x8] sm:$0xff] }
  0x11   : > { %v796_v2 = vcombine.low %v928_v0, %v930_v1  ;;  %v797_v3 = vcombine.high %v928_v0, %v930_v1  ;;  %v471_v45 = vmul.u32 18, %v470_v43  ;;  %v461_v46 = vsub.s32 %v451_v36, %v460_v44 }
  0x13   : > { %300 = vrot.lane.b32.xlu1 %v796_v2, %s862_s30  ;;  %292 = vrot.lane.b32.xlu0 %v796_v2, %s863_s8  ;;  %v472_v48 = vsub.s32 %v452_v37, %v471_v45  ;;  %vm475_vm10 = vcmp.ne.s32.totalorder %v461_v46, 0  ;;  %vm477_vm11 = vcmp.lt.s32.totalorder %v461_v46, 0  ;;  %v481_v50 = vadd.s32 18, %v461_v46 }
  0x14   : > { %371 = vmatprep.subr.bf16.mxu0 %v797_v3  ;;  %vm991_vm14 = vmand %vm477_vm11, %vm475_vm10 }
  0x15   : > { %372 = vmatpush1.bf16.msra.mxu0 %v796_v2  ;;  %vm476_vm12 = vcmp.ne.s32.totalorder %v472_v48, 0  ;;  %vm478_vm13 = vcmp.lt.s32.totalorder %v472_v48, 0  ;;  %v482_v54 = vadd.s32 18, %v472_v48  ;;  %v483_v60 = vsel %vm991_vm14, %v481_v50, %v461_v46 }
  0x16   : > { %vm995_vm15 = vmand %vm478_vm13, %vm476_vm12  ;;  %vm1003_vm10 = vcmp.lt.s32.totalorder %v483_v60, 16  ;;  %vm509_vm12 = vcmask 1047704   ;;  %vm511_vm13 = vcmask 285696   ;;  %vm513_vm14 = vcmask 572696  }
  0x17   : > { %302 = vrot.lane.b32.xlu1 %v797_v3, %s862_s30  ;;  %294 = vrot.lane.b32.xlu0 %v797_v3, %s863_s8 }
  0x1b   : > { %310 = vrot.lane.b32.xlu1 %v797_v3, %s864_s9  ;;  %308 = vrot.lane.b32.xlu0 %v796_v2, %s864_s9 }
  0x1f   : > { %318 = vrot.lane.b32.xlu1 %v797_v3, %s865_s10  ;;  %316 = vrot.lane.b32.xlu0 %v796_v2, %s865_s10 }
  0x23   : > { %326 = vrot.lane.b32.xlu1 %v797_v3, %s866_s11  ;;  %324 = vrot.lane.b32.xlu0 %v796_v2, %s866_s11 }
  0x27   : > { %334 = vrot.lane.b32.xlu1 %v797_v3, %s867_s12  ;;  %332 = vrot.lane.b32.xlu0 %v796_v2, %s867_s12 }
  0x2b   : > { %342 = vrot.lane.b32.xlu1 %v797_v3, %s868_s15  ;;  %340 = vrot.lane.b32.xlu0 %v796_v2, %s868_s15 }
  0x2f   : > { %350 = vrot.lane.b32.xlu1 %v797_v3, %s870_s16  ;;  %348 = vrot.lane.b32.xlu0 %v796_v2, %s870_s16 }
  0x33   : > { %423 = vperm.xlu1 %835, %v415_v6   ;;  %418 = vperm.xlu0 %834, %v414_v7   ;;  %v484_v6 = vsel %vm995_vm15, %v482_v54, %v472_v48 }
  0x34   : > { %vm1007_vm11 = vcmp.lt.s32.totalorder %v484_v6, 16 }
  0x37   : > { %434 = vperm.xlu1 %835, %v430_v8   ;;  %439 = vperm.xlu0 %834, %v431_v9  }
  0x85   : > { %v301_v10 = vpop.permute.xlu1 %300  ;;  %v293_v11 = vpop.permute.xlu0 %292 }
  0x89   : > { %v303_v12 = vpop.permute.xlu1 %302  ;;  %v295_v13 = vpop.permute.xlu0 %294 }
  0x8a   : > { %373 = vmatprep.subr.bf16.mxu0 %v295_v13  ;;  %v297_v14 = vsel %vm296_vm1, %v293_v11, %v295_v13  ;;  %v305_v17 = vsel %vm304_vm2, %v301_v10, %v303_v12 }
  0x8b   : > { %374 = vmatpush1.bf16.msra.mxu0 %v297_v14 }
  0x8c   : > { %375 = vmatprep.subr.bf16.mxu0 %v303_v12 }
  0x8d   : > { %v311_v15 = vpop.permute.xlu1 %310  ;;  %v309_v16 = vpop.permute.xlu0 %308 }
  0x8e   : > { %v313_v18 = vsel %vm312_vm3, %v309_v16, %v311_v15 }
  0x8f   : > { %376 = vmatpush1.bf16.msra.mxu0 %v305_v17 }
  0x90   : > { %377 = vmatprep.subr.bf16.mxu0 %v311_v15 }
  0x91   : > { %v319_v19 = vpop.permute.xlu1 %318  ;;  %v317_v20 = vpop.permute.xlu0 %316 }
  0x92   : > { %v321_v21 = vsel %vm320_vm4, %v317_v20, %v319_v19 }
  0x93   : > { %378 = vmatpush1.bf16.msra.mxu0 %v313_v18 }
  0x94   : > { %379 = vmatprep.subr.bf16.mxu0 %v319_v19 }
  0x95   : > { %v327_v22 = vpop.permute.xlu1 %326  ;;  %v325_v23 = vpop.permute.xlu0 %324 }
  0x96   : > { %v329_v24 = vsel %vm328_vm5, %v325_v23, %v327_v22 }
  0x97   : > { %380 = vmatpush1.bf16.msra.mxu0 %v321_v21 }
  0x98   : > { %381 = vmatprep.subr.bf16.mxu0 %v327_v22 }
  0x99   : > { %v335_v25 = vpop.permute.xlu1 %334  ;;  %v333_v26 = vpop.permute.xlu0 %332 }
  0x9a   : > { %v337_v27 = vsel %vm336_vm6, %v333_v26, %v335_v25  ;;  %v853_v26 = vld [vmem:[%s1110_s4 + $0x4] ss:$8 sps:$4 sm:$0xff]  }
  0x9b   : > { %382 = vmatpush1.bf16.msra.mxu0 %v329_v24  ;;  %803 = vmatprep.mubr.msk.bf16.mxu1 %vm367_vm0, %v853_v26  ;;  %vm703_vm0 = vcmask 150528  }
  0x9c   : > { %383 = vmatprep.subr.bf16.mxu0 %v335_v25  ;;  %704 = vst.msk [vmem:[%s1077_s22] sm:$0xf] %vm703_vm0, %v869_v5  ;;  %705 = vst.msk [vmem:[%s1077_s22 + $0x8] sm:$0xf] %vm703_vm0, %v869_v5 }
  0x9d   : > { %v343_v28 = vpop.permute.xlu1 %342  ;;  %v341_v29 = vpop.permute.xlu0 %340 }
  0x9e   : > { %v345_v30 = vsel %vm344_vm7, %v341_v29, %v343_v28  ;;  %v648_v29 = vld [vmem:[%s1112_s6] sm:$0xff] }
  0x9f   : > { %384 = vmatpush1.bf16.msra.mxu0 %v337_v27  ;;  %v632_v27 = vld [vmem:[%s1111_s5] sm:$0xff] }
  0xa0   : > { %385 = vmatprep.subr.bf16.mxu0 %v343_v28  ;;  %v633_v28 = vld [vmem:[%s1111_s5 + $0x8] sm:$0xff] }
  0xa1   : > { %v351_v31 = vpop.permute.xlu1 %350  ;;  %v349_v32 = vpop.permute.xlu0 %348 }
  0xa2   : > { %v353_v33 = vsel %vm352_vm8, %v349_v32, %v351_v31  ;;  %v667_v32 = vunpack.c.h.bf16 %v928_v0 }
  0xa3   : > { %386 = vmatpush1.bf16.msra.mxu0 %v345_v30  ;;  %v649_v30 = vld [vmem:[%s1112_s6 + $0x8] sm:$0xff] }
  0xa4   : > { %387 = vmatprep.subr.bf16.mxu0 %v351_v31  ;;  %v666_v31 = vunpack.c.l.bf16 %v928_v0 }
  0xa6   : > { %v836_v35 = vpack.i.bf16 %v667_v32, %v666_v31 }
  0xa7   : > { %388 = vmatpush1.bf16.msra.mxu0 %v353_v33  ;;  %v668_v33 = vunpack.c.l.bf16 %v930_v1 }
  0xaa   : > { %404 = vmatmul.mubr.bf16.vlgmr.msra.gmra.mrb[0].mxu0 %v848_v34  ;;  %v669_v34 = vunpack.c.h.bf16 %v930_v1 }
  0xac   : > { %v841_v36 = vpack.i.bf16 %v669_v34, %v668_v33 }
  0xb2   : > { %v424_v47 = vpop.permute.xlu1 %423  ;;  %v419_v49 = vpop.permute.xlu0 %418 }
  0xb6   : > { %v435_v53 = vpop.permute.xlu1 %434  ;;  %v440_v2 = vpop.permute.xlu0 %439 }
 0x17d   : > { %v405_v51 = vpop.f32.mrb[0].mxu0 }
 0x17e   : > { %v426_v55 = vmul.f32 %v419_v49, %v405_v51  ;;  %v407_v56 = vpop.f32.mrb[1].mxu0 }
 0x17f   : > { %v427_v58 = vmul.f32 %v419_v49, %v407_v56  ;;  %v409_v59 = vpop.f32.mrb[2].mxu0 }
 0x180   : > { %v442_v61 = vadd.f32 %v435_v53, %v426_v55  ;;  %v428_v62 = vmul.f32 %v424_v47, %v409_v59  ;;  %v411_v63 = vpop.f32.mrb[3].mxu0  ;;  %v851_v59 = vld [vmem:[%s1110_s4] ss:$8 sps:$4 sm:$0xff]  }
 0x181   : > { %v443_v3 = vadd.f32 %v435_v53, %v427_v58  ;;  %v429_v4 = vmul.f32 %v424_v47, %v411_v63 }
 0x182   : > { %v446_v7 = vmax.f32 %v442_v61, 0.0  ;;  %v444_v8 = vadd.f32 %v440_v2, %v428_v62 }
 0x183   : > { %v447_v10 = vmax.f32 %v443_v3, 0.0  ;;  %v445_v11 = vadd.f32 %v440_v2, %v429_v4 }
 0x184   : > { %v448_v12 = vmax.f32 %v444_v8, 0.0  ;;  %v491_v15 = vsel %vm1003_vm10, %v446_v7, 0.0 }
 0x185   : > { %v449_v14 = vmax.f32 %v445_v11, 0.0  ;;  %v492_v18 = vsel %vm1007_vm11, %v447_v10, 0.0 }
 0x186   : > { %v493_v16 = vsel %vm1003_vm10, %v448_v12, 0.0 }
 0x187   : > { %v495_v17 = vpack.c.bf16 %v493_v16, %v491_v15  ;;  %v494_v19 = vsel %vm1007_vm11, %v449_v14, 0.0 }
 0x188   : > { %v496_v20 = vpack.c.bf16 %v494_v19, %v492_v18 }
 0x189   : > { %501 = vrot.lane.b32.xlu1 %v495_v17, %s871_s13 }
 0x18a   : > { %503 = vrot.lane.b32.xlu0 %v496_v20, %s871_s13 }
 0x1fb   : > { %v502_v21 = vpop.permute.xlu1 %501 }
 0x1fc   : > { %510 = vst.msk [vmem:[#allocation2] sm:$0xff] %vm509_vm12, %v502_v21  ;;  %v504_v22 = vpop.permute.xlu0 %503 }
 0x1fd   : > { %v506_v23 = vsel %vm497_vm9, %v502_v21, %v504_v22 }
 0x1fe   : > { %512 = vst.msk [vmem:[#allocation2 + $0x8] sm:$0xff] %vm511_vm13, %v506_v23 }
 0x1ff   : > { %514 = vst.msk [vmem:[#allocation2 + $0x8] sm:$0xff] %vm513_vm14, %v869_v5 }
 0x203   : > { %v515_v24 = vld [vmem:[#allocation2] sm:$0xff] }
 0x204   : > { %519 = vrot.lane.b32.xlu1 %v515_v24, %s863_s8 }
 0x206   : > { %v516_v25 = vld [vmem:[#allocation2 + $0x8] sm:$0xff] }
 0x207   : > { %521 = vrot.lane.b32.xlu0 %v516_v25, %s863_s8  ;;  %589 = vmatprep.subr.bf16.mxu1 %v516_v25 }
 0x208   : > { %526 = vrot.lane.b32.xlu1 %v515_v24, %s862_s30  ;;  %590 = vmatpush1.bf16.msra.mxu1 %v515_v24 }
 0x20b   : > { %528 = vrot.lane.b32.xlu0 %v516_v25, %s862_s30 }
 0x20c   : > { %533 = vrot.lane.b32.xlu1 %v515_v24, %s864_s9 }
 0x20f   : > { %535 = vrot.lane.b32.xlu0 %v516_v25, %s864_s9 }
 0x210   : > { %540 = vrot.lane.b32.xlu1 %v515_v24, %s865_s10 }
 0x213   : > { %542 = vrot.lane.b32.xlu0 %v516_v25, %s865_s10 }
 0x214   : > { %547 = vrot.lane.b32.xlu1 %v515_v24, %s866_s11 }
 0x217   : > { %549 = vrot.lane.b32.xlu0 %v516_v25, %s866_s11 }
 0x218   : > { %554 = vrot.lane.b32.xlu1 %v515_v24, %s867_s12 }
 0x21b   : > { %556 = vrot.lane.b32.xlu0 %v516_v25, %s867_s12 }
 0x21c   : > { %561 = vrot.lane.b32.xlu1 %v515_v24, %s868_s15 }
 0x21f   : > { %563 = vrot.lane.b32.xlu0 %v516_v25, %s868_s15 }
 0x220   : > { %568 = vrot.lane.b32.xlu1 %v515_v24, %s870_s16 }
 0x223   : > { %570 = vrot.lane.b32.xlu0 %v516_v25, %s870_s16 }
 0x224   : > { %636 = vperm.xlu1 %835, %v632_v27  }
 0x227   : > { %641 = vperm.xlu0 %834, %v633_v28  }
 0x228   : > { %652 = vperm.xlu1 %835, %v648_v29  }
 0x22b   : > { %657 = vperm.xlu0 %834, %v649_v30  }
 0x22c   : > { %837 = vrot.lane.b32.xlu1 %v836_v35, %s865_s10 }
 0x22f   : > { %842 = vrot.lane.b32.xlu0 %v841_v36, %s865_s10 }
 0x276   : > { %v520_v37 = vpop.permute.xlu1 %519 }
 0x279   : > { %v522_v38 = vpop.permute.xlu0 %521 }
 0x27a   : > { %v527_v39 = vpop.permute.xlu1 %526  ;;  %591 = vmatprep.subr.bf16.mxu1 %v522_v38  ;;  %v523_v40 = vsel %vm296_vm1, %v520_v37, %v522_v38  ;;  %vm724_vm1 = vcmask 1043608  }
 0x27b   : > { %592 = vmatpush1.bf16.msra.mxu1 %v523_v40 }
 0x27d   : > { %v529_v41 = vpop.permute.xlu0 %528 }
 0x27e   : > { %v534_v0 = vpop.permute.xlu1 %533  ;;  %593 = vmatprep.subr.bf16.mxu1 %v529_v41  ;;  %v530_v42 = vsel %vm304_vm2, %v527_v39, %v529_v41  ;;  %vm725_vm2 = vcmask 285700  }
 0x27f   : > { %594 = vmatpush1.bf16.msra.mxu1 %v530_v42 }
 0x281   : > { %v536_v1 = vpop.permute.xlu0 %535 }
 0x282   : > { %v541_v43 = vpop.permute.xlu1 %540  ;;  %595 = vmatprep.subr.bf16.mxu1 %v536_v1  ;;  %v537_v44 = vsel %vm312_vm3, %v534_v0, %v536_v1  ;;  %vm726_vm3 = vmor %vm725_vm2, %vm724_vm1 }
 0x283   : > { %596 = vmatpush1.bf16.msra.mxu1 %v537_v44 }
 0x285   : > { %v543_v45 = vpop.permute.xlu0 %542 }
 0x286   : > { %v548_v46 = vpop.permute.xlu1 %547  ;;  %597 = vmatprep.subr.bf16.mxu1 %v543_v45  ;;  %v544_v47 = vsel %vm320_vm4, %v541_v43, %v543_v45 }
 0x287   : > { %598 = vmatpush1.bf16.msra.mxu1 %v544_v47 }
 0x289   : > { %v550_v48 = vpop.permute.xlu0 %549 }
 0x28a   : > { %v555_v49 = vpop.permute.xlu1 %554  ;;  %599 = vmatprep.subr.bf16.mxu1 %v550_v48  ;;  %v551_v50 = vsel %vm328_vm5, %v548_v46, %v550_v48 }
 0x28b   : > { %600 = vmatpush1.bf16.msra.mxu1 %v551_v50 }
 0x28d   : > { %v557_v51 = vpop.permute.xlu0 %556 }
 0x28e   : > { %601 = vmatprep.subr.bf16.mxu1 %v557_v51  ;;  %v558_v52 = vsel %vm336_vm6, %v555_v49, %v557_v51  ;;  %v562_v53 = vpop.permute.xlu1 %561 }
 0x28f   : > { %602 = vmatpush1.bf16.msra.mxu1 %v558_v52 }
 0x291   : > { %v564_v54 = vpop.permute.xlu0 %563 }
 0x292   : > { %603 = vmatprep.subr.bf16.mxu1 %v564_v54  ;;  %v565_v55 = vsel %vm344_vm7, %v562_v53, %v564_v54  ;;  %v569_v56 = vpop.permute.xlu1 %568 }
 0x293   : > { %604 = vmatpush1.bf16.msra.mxu1 %v565_v55 }
 0x295   : > { %v571_v57 = vpop.permute.xlu0 %570 }
 0x296   : > { %605 = vmatprep.subr.bf16.mxu1 %v571_v57  ;;  %v572_v58 = vsel %vm352_vm8, %v569_v56, %v571_v57 }
 0x297   : > { %606 = vmatpush1.bf16.msra.mxu1 %v572_v58 }
 0x29a   : > { %622 = vmatmul.mubr.bf16.vlgmr.msra.gmra.mrb[0].mxu1 %v851_v59 }
 0x2a3   : > { %v637_v60 = vpop.permute.xlu1 %636 }
 0x2a6   : > { %v642_v61 = vpop.permute.xlu0 %641 }
 0x2a7   : > { %v653_v62 = vpop.permute.xlu1 %652 }
 0x2aa   : > { %v658_v63 = vpop.permute.xlu0 %657 }
 0x2ab   : > { %v838_v2 = vpop.permute.xlu1 %837 }
 0x2ac   : > { %v840_v4 = vunpack.i.h.bf16 %v838_v2  ;;  %v839_v6 = vunpack.i.l.bf16 %v838_v2 }
 0x2ae   : > { %v843_v3 = vpop.permute.xlu0 %842  ;;  %v683_v14 = vsel %vm320_vm4, %v839_v6, %v840_v4 }
 0x2af   : > { %v845_v8 = vunpack.i.h.bf16 %v843_v3  ;;  %v844_v10 = vunpack.i.l.bf16 %v843_v3 }
 0x2b1   : > { %v684_v21 = vsel %vm320_vm4, %v844_v10, %v845_v8  ;;  %vm729_vm4 = vcmask 568600  }
 0x36d   : > { %v623_v7 = vpop.f32.mrb[0].mxu1 }
 0x36e   : > { %v644_v11 = vmul.f32 %v637_v60, %v623_v7  ;;  %v625_v12 = vpop.f32.mrb[1].mxu1 }
 0x36f   : > { %v645_v15 = vmul.f32 %v637_v60, %v625_v12  ;;  %v627_v16 = vpop.f32.mrb[2].mxu1 }
 0x370   : > { %v660_v17 = vadd.f32 %v653_v62, %v644_v11  ;;  %v646_v18 = vmul.f32 %v642_v61, %v627_v16  ;;  %v629_v19 = vpop.f32.mrb[3].mxu1 }
 0x371   : > { %v661_v20 = vadd.f32 %v653_v62, %v645_v15  ;;  %v647_v22 = vmul.f32 %v642_v61, %v629_v19 }
 0x372   : > { %v689_v23 = vadd.f32 %v683_v14, %v660_v17  ;;  %v662_v24 = vadd.f32 %v658_v63, %v646_v18 }
 0x373   : > { %v690_v25 = vadd.f32 %v840_v4, %v661_v20  ;;  %v663_v26 = vadd.f32 %v658_v63, %v647_v22 }
 0x374   : > { %v691_v27 = vadd.f32 %v684_v21, %v662_v24  ;;  %v693_v28 = vmax.f32 %v689_v23, 0.0 }
 0x375   : > { %v694_v29 = vmax.f32 %v690_v25, 0.0  ;;  %v692_v30 = vadd.f32 %v845_v8, %v663_v26 }
 0x376   : > { %v697_v31 = vsel %vm1003_vm10, %v693_v28, 0.0  ;;  %v695_v32 = vmax.f32 %v691_v27, 0.0 }
 0x377   : > { %v696_v33 = vmax.f32 %v692_v30, 0.0  ;;  %v698_v34 = vsel %vm1007_vm11, %v694_v29, 0.0 }
 0x378   : > { %v810_v35 = vpack.c.bf16 %v698_v34, %v697_v31  ;;  %v699_v36 = vsel %vm1003_vm10, %v695_v32, 0.0 }
 0x379   : > { %v700_v37 = vsel %vm1007_vm11, %v696_v33, 0.0 }
 0x37a   : > { %714 = vrot.lane.b32.xlu1 %v810_v35, %s871_s13  ;;  %v811_v38 = vpack.c.bf16 %v700_v37, %v699_v36 }
 0x37c   : > { %716 = vrot.lane.b32.xlu0 %v811_v38, %s871_s13 }
 0x3ec   : > { %v715_v39 = vpop.permute.xlu1 %714 }
 0x3ed   : > { %v718_v40 = vrot.slane %v715_v39, 4 }
 0x3ee   : > { %v717_v41 = vpop.permute.xlu0 %716 }
 0x3ef   : > { %v720_v9 = vsel %vm497_vm9, %v718_v40, %v715_v39  ;;  %v719_v0 = vrot.slane %v717_v41, 4 }
 0x3f0   : > { %727 = vst.msk [vmem:[%s1077_s22] sm:$0xff] %vm726_vm3, %v720_v9 }
 0x3f1   : > { %730 = vst.msk [vmem:[%s1077_s22 + $0x4] sm:$0xf] %vm729_vm4, %v869_v5  ;;  %v721_v13 = vsel %vm497_vm9, %v719_v0, %v717_v41 }
 0x3f2   : > { %728 = vst.msk [vmem:[%s1077_s22 + $0x8] sm:$0xff] %vm726_vm3, %v721_v13 }
 0x3f3   : > { %731 = vst.msk [vmem:[%s1077_s22 + $0xc] sm:$0xf] %vm729_vm4, %v869_v5 }
 0x3f4 PF: > { %s17_s24 = sadd.s32 1, %s860_s24  }
 0x3f5   : > { %p14_p4 = scmp.ge.s32.totalorder %s17_s24, 4  }
 0x3f7   :  { %16 = sbr.rel (!%p14_p4) target bundleno = 1 (0x1), region = 78 }

// kernel: _lambda_.12
= control target key start
LH: loop header
LB: loop body
LE: loop exit
PB: predicated region body
PF: predicated region fallthrough
CT: control target
= control target key end

     0   :  { %s1415_s13 = smov 0   ;;  %s1646_s0 = inlined_call_operand.vmem [shape: bf16[2,4,16,60], index: 0, kind: input, shape index: {}]   ;;  %s1647_s1 = inlined_call_operand.vmem [shape: bf16[1,32,144], index: 1, kind: input, shape index: {}]   ;;  %s1648_s2 = inlined_call_operand.vmem [shape: f32[32,1], index: 2, kind: input, shape index: {}]   ;;  %s1649_s3 = inlined_call_operand.vmem [shape: f32[32,1], index: 3, kind: input, shape index: {}]   ;;  %s1650_s4 = inlined_call_operand.vmem [shape: bf16[3,32,96], index: 4, kind: input, shape index: {}]   ;;  %s1651_s5 = inlined_call_operand.vmem [shape: f32[32,1], index: 5, kind: input, shape index: {}]   ;;  %s1652_s6 = inlined_call_operand.vmem [shape: f32[32,1], index: 6, kind: input, shape index: {}]   ;;  %s1653_s7 = inlined_call_operand.vmem [shape: bf16[32,16], index: 7, kind: input, shape index: {}]   ;;  %s1654_s8 = inlined_call_operand.vmem [shape: f32[32,1], index: 8, kind: input, shape index: {}]   ;;  %s1655_s9 = inlined_call_operand.vmem [shape: f32[32,1], index: 9, kind: input, shape index: {}]   ;;  %s1656_s10 = inlined_call_operand.vmem [shape: bf16[2,32,70], index: 10, kind: output, shape index: {}]  }
   0x1 LB: > { %s1154_s14 = sadd.s32 4294967295, %s1351_s13   ;;  %p1158_p0 = scmp.ge.s32.totalorder %s1351_s13, 1  ;;  %s1351_s13 = sphi %s1415_s13, %s20_s13  }
   0x2   : > { %p312_p1 = scmp.lt.s32.totalorder %s1351_s13, 3 }
   0x4   : > { %p313_p2 = pnand %p1158_p0, %p312_p1 }
   0x5   : > { %p350_p3 = scmp.lt.s32.totalorder (!%p313_p2), %s1154_s14, 1  ;;  %v1353_v0 = vmov (!%p313_p2), 0   ;;  %s1354_s19 = smov (!%p313_p2), 127   ;;  %v1332_v4 = vld [vmem:[%s1647_s1 + $0x4] ss:$8 sps:$4 sm:$0xff] (!%p313_p2)   ;;  %vm433_vm0 = vcmask (!%p313_p2), 130048   ;;  %v549_v22 = vlaneseq (!%p313_p2) }
   0x6   : > { %316 = sbr.rel (%p313_p2) target bundleno = 1111 (0x457), region = 60  ;;  %440 = vmatprep.subr.bf16.mxu0 (!%p313_p2), %v1353_v0  ;;  %1324 = vset.pattern.permute.xlu1 (!%p313_p2), %v1353_v0  ;;  %s1355_s20 = smov (!%p313_p2), 118   ;;  %v489_v5 = vld [vmem:[%s1648_s2] sm:$0xff] (!%p313_p2)  ;;  %v490_v6 = vld [vmem:[%s1648_s2 + $0x8] sm:$0xff] (!%p313_p2)  ;;  %v491_v8 = vld [vmem:[%s1648_s2 + $0x10] sm:$0xff] (!%p313_p2)  ;;  %vm576_vm1 = vcmask (!%p313_p2), 89088  }
   0x7   : > { %1325 = vset.pattern.permute.xlu0 (!%p313_p2), %v1353_v0  ;;  %s1356_s21 = smov (!%p313_p2), 117   ;;  %1177 = vmatprep.mubr.msk.bf16.mxu0 (!%p313_p2), %vm433_vm0, %v1332_v4  ;;  %v517_v7 = vld [vmem:[%s1649_s3] sm:$0xff] (!%p313_p2)  ;;  %v518_v9 = vld [vmem:[%s1649_s3 + $0x8] sm:$0xff] (!%p313_p2)  ;;  %v519_v10 = vld [vmem:[%s1649_s3 + $0x10] sm:$0xff] (!%p313_p2)  ;;  %577 = vst.msk [vmem:[#allocation2] sm:$0xff] (!%p313_p2), %vm576_vm1, %v1353_v0  ;;  %v550_v23 = vand.u32 (!%p313_p2), 127, %v549_v22 }
   0x8   : > { %v492_v11 = vld [vmem:[%s1648_s2 + $0x18] sm:$0xff] (!%p313_p2)  ;;  %v1330_v19 = vld [vmem:[%s1647_s1] ss:$8 sps:$4 sm:$0xff] (!%p313_p2)   ;;  %578 = vst.msk [vmem:[#allocation2 + $0x8] sm:$0xff] (!%p313_p2), %vm576_vm1, %v1353_v0  ;;  %s1357_s11 = smov (!%p313_p2), 11   ;;  %vm587_vm6 = vcmask (!%p313_p2), 416856  }
   0x9   : > { %v520_v12 = vld [vmem:[%s1649_s3 + $0x18] sm:$0xff] (!%p313_p2)  ;;  %v1490_v24 = vmul.u32.u64.low (!%p313_p2), 3435973837, %v550_v23  ;;  %v1491_v25 = vmul.u32.u64.high 3435973837, %v550_v23, %v1490_v24  ;;  %vm590_vm7 = vcmask (!%p313_p2), 572824   ;;  %s1358_s12 = smov (!%p313_p2), 126   ;;  %vm646_vm8 = vcmask (!%p313_p2), 785408  }
   0xa   : > { %v1333_v20 = vld [vmem:[%s1647_s1 + $0x14] ss:$8 sps:$4 sm:$0xff] (!%p313_p2)   ;;  %v1335_v21 = vld [vmem:[%s1647_s1 + $0x10] ss:$8 sps:$4 sm:$0xff] (!%p313_p2)   ;;  %v860_v22 = vld [vmem:[%s1651_s5 + $0x8] sm:$0xff] (!%p313_p2)  ;;  %vm1062_vm9 = vcmask (!%p313_p2), 84992  }
   0xb   : > { %v557_v26 = vshrl.u32 (!%p313_p2), %v1491_v25, 3  ;;  %v862_v24 = vld [vmem:[%s1651_s5 + $0x18] sm:$0xff] (!%p313_p2)  ;;  %v887_v25 = vld [vmem:[%s1652_s6] sm:$0xff] (!%p313_p2)  ;;  %vm1089_vm10 = vcmask (!%p313_p2), 412760   ;;  %vm1094_vm11 = vcmask (!%p313_p2), 568728  }
   0xd   : > { %s1660_s14 = smov (!%p350_p3, %s1154_s14), 1  ;;  %v558_v28 = vmul.u32 10, %v557_v26  ;;  %v993_v26 = vld [vmem:[%s1654_s8 + $0x8] sm:$0xff] }
   0xe   : > { %s1212_s15 = sshll.u32 %s1660_s14, 5  ;;  %s1213_s16 = sshll.u32 %s1660_s14, 4 }
   0xf   : > { %s1432_s18 = scalar_lea.vmem %s1646_s0, %s1212_s15  ;;  %v559_v29 = vsub.s32 %v550_v23, %v558_v28  ;;  %s1359_s15 = smov 108   ;;  %v994_v23 = vld [vmem:[%s1654_s8 + $0x10] sm:$0xff]  ;;  %v995_v28 = vld [vmem:[%s1654_s8 + $0x18] sm:$0xff] }
  0x10   : > { %v1326_v1 = vld [vmem:[%s1432_s18] sm:$0xff]   ;;  %v1327_v2 = vld [vmem:[%s1432_s18 + $0x10] sm:$0xff]   ;;  %v1328_v3 = vld [vmem:[%s1432_s18 + $0x8] sm:$0xff]  }
  0x11   : > { %384 = vrot.lane.b32.xlu0 %v1326_v1, %s1354_s19  ;;  %402 = vrot.lane.b32.xlu1 %v1326_v1, %s1355_s20  ;;  %v1329_v14 = vld [vmem:[%s1432_s18 + $0x18] sm:$0xff]   ;;  %vm562_vm2 = vcmp.ne.s32.totalorder %v559_v29, 0  ;;  %vm563_vm3 = vcmp.lt.s32.totalorder %v559_v29, 0  ;;  %v565_v32 = vadd.s32 10, %v559_v29 }
  0x12   : > { %441 = vmatpush1.bf16.msra.mxu0 %v1326_v1  ;;  %vm564_vm4 = vmand %vm563_vm3, %vm562_vm2 }
  0x13   : > { %442 = vmatprep.subr.bf16.mxu0 %v1353_v0  ;;  %v566_v41 = vsel %vm564_vm4, %v565_v32, %v559_v29  ;;  %v1020_v29 = vld [vmem:[%s1655_s9] sm:$0xff]  ;;  %v890_v32 = vld [vmem:[%s1652_s6 + $0x18] sm:$0xff] }
  0x14   : > { %vm1494_vm5 = vcmp.lt.s32.totalorder %v566_v41, 8  ;;  %v1340_v41 = vld [vmem:[%s1432_s18 + $0x18] sm:$0xff]  }
  0x15   : > { %399 = vrot.lane.b32.xlu0 %v1327_v2, %s1354_s19  ;;  %405 = vrot.lane.b32.xlu1 %v1328_v3, %s1355_s20 }
  0x16   : > { %443 = vmatpush1.bf16.msra.mxu0 %v1328_v3 }
  0x17   : > { %444 = vmatprep.subr.bf16.mxu0 %v1353_v0 }
  0x19   : > { %408 = vrot.lane.b32.xlu0 %v1326_v1, %s1356_s21  ;;  %495 = vperm.xlu1 %1324, %v489_v5  }
  0x1d   : > { %500 = vperm.xlu0 %1325, %v490_v6   ;;  %523 = vperm.xlu1 %1324, %v517_v7   ;;  %v1336_v7 = vld [vmem:[%s1650_s4] sm:$0xff]  }
  0x1e   : > { %1273 = vmatprep.mubr.msk.bf16.mxu1 %vm646_vm8, %v1336_v7 }
  0x21   : > { %505 = vperm.xlu0 %1325, %v491_v8   ;;  %528 = vperm.xlu1 %1324, %v518_v9  }
  0x25   : > { %533 = vperm.xlu0 %1325, %v519_v10   ;;  %510 = vperm.xlu1 %1324, %v492_v11  }
  0x29   : > { %538 = vperm.xlu1 %1324, %v520_v12   ;;  %v1341_v12 = vld [vmem:[%s1650_s4 + $0x10] sm:$0xff]  }
  0x83   : > { %v385_v13 = vpop.permute.xlu0 %384  ;;  %v403_v16 = vpop.permute.xlu1 %402 }
  0x84   : > { %445 = vmatpush1.bf16.msra.mxu0 %v385_v13 }
  0x85   : > { %446 = vmatprep.subr.bf16.mxu0 %v1353_v0 }
  0x87   : > { %v400_v15 = vpop.permute.xlu0 %399  ;;  %v406_v17 = vpop.permute.xlu1 %405 }
  0x88   : > { %447 = vmatpush1.bf16.msra.mxu0 %v1327_v2 }
  0x89   : > { %448 = vmatprep.subr.bf16.mxu0 %v1353_v0 }
  0x8b   : > { %v409_v18 = vpop.permute.xlu0 %408 }
  0x8c   : > { %449 = vmatpush1.bf16.msra.mxu0 %v1329_v14 }
  0x8d   : > { %450 = vmatprep.subr.bf16.mxu0 %v1353_v0 }
  0x90   : > { %451 = vmatpush1.bf16.msra.mxu0 %v400_v15  ;;  %v859_v15 = vld [vmem:[%s1651_s5] sm:$0xff] }
  0x91   : > { %452 = vmatprep.subr.bf16.mxu0 %v1353_v0 }
  0x94   : > { %453 = vmatpush1.bf16.msra.mxu0 %v403_v16 }
  0x95   : > { %454 = vmatprep.subr.bf16.mxu0 %v1353_v0 }
  0x98   : > { %455 = vmatpush1.bf16.msra.mxu0 %v406_v17  ;;  %v496_v27 = vpop.permute.xlu1 %495  ;;  %v861_v17 = vld [vmem:[%s1651_s5 + $0x10] sm:$0xff] }
  0x99   : > { %456 = vmatprep.subr.bf16.mxu0 %v1353_v0 }
  0x9c   : > { %457 = vmatpush1.bf16.msra.mxu0 %v409_v18  ;;  %v524_v30 = vpop.permute.xlu1 %523  ;;  %v501_v31 = vpop.permute.xlu0 %500  ;;  %v1337_v18 = vld [vmem:[%s1650_s4 + $0x8] sm:$0xff]  }
  0x9f   : > { %473 = vmatmul.mubr.bf16.vlgmr.msra.gmra.mrb[0].mxu0 %v1330_v19  ;;  %v1338_v19 = vld [vmem:[%s1650_s4 + $0x20] sm:$0xff]  }
  0xa0   : > { %1178 = vmatprep.mubr.msk.bf16.mxu0 %vm433_vm0, %v1333_v20  ;;  %v529_v33 = vpop.permute.xlu1 %528  ;;  %v506_v42 = vpop.permute.xlu0 %505 }
  0xa4   : > { %v511_v45 = vpop.permute.xlu1 %510  ;;  %v534_v53 = vpop.permute.xlu0 %533 }
  0xa7   : > { %481 = vmatmul.mubr.bf16.gmra.mrb[4].mxu0 %v1335_v21  ;;  %v992_v21 = vld [vmem:[%s1654_s8] sm:$0xff] }
  0xa8   : > { %v539_v59 = vpop.permute.xlu1 %538  ;;  %1257 = vmatprep.mubr.msk.bf16.mxu0 %vm646_vm8, %v1341_v12 }
 0x172   : > { %v474_v34 = vpop.f32.mrb[0].mxu0 }
 0x173   : > { %v513_v35 = vmul.f32 %v496_v27, %v474_v34  ;;  %v476_v36 = vpop.f32.mrb[1].mxu0  ;;  %v889_v27 = vld [vmem:[%s1652_s6 + $0x10] sm:$0xff]  ;;  %v1023_v34 = vld [vmem:[%s1655_s9 + $0x18] sm:$0xff] }
 0x174   : > { %v477_v37 = vpop.f32.mrb[2].mxu0 }
 0x175   : > { %v541_v38 = vadd.f32 %v524_v30, %v513_v35  ;;  %v514_v39 = vmul.f32 %v501_v31, %v477_v37  ;;  %v479_v40 = vpop.f32.mrb[3].mxu0  ;;  %v888_v30 = vld [vmem:[%s1652_s6 + $0x8] sm:$0xff]  ;;  %v1022_v31 = vld [vmem:[%s1655_s9 + $0x10] sm:$0xff] }
 0x177   : > { %v545_v43 = vmax.f32 %v541_v38, 0.0  ;;  %v542_v44 = vadd.f32 %v529_v33, %v514_v39  ;;  %v1021_v33 = vld [vmem:[%s1655_s9 + $0x8] sm:$0xff] }
 0x179   : > { %v546_v47 = vmax.f32 %v542_v44, 0.0  ;;  %v570_v51 = vsel %vm1494_vm5, %v545_v43, 0.0  ;;  %v1339_v43 = vld [vmem:[%s1650_s4 + $0x28] sm:$0xff]   ;;  %v1343_v44 = vld [vmem:[%s1653_s7] sm:$0xff]  }
 0x17a   : > { %v482_v48 = vpop.f32.mrb[4].mxu0 }
 0x17b   : > { %v515_v49 = vmul.f32 %v506_v42, %v482_v48  ;;  %v484_v50 = vpop.f32.mrb[5].mxu0  ;;  %v571_v52 = vsel %vm1494_vm5, %v546_v47, 0.0  ;;  %v1342_v47 = vld [vmem:[%s1650_s4 + $0x18] sm:$0xff]   ;;  %v1344_v48 = vld [vmem:[%s1653_s7 + $0x8] sm:$0xff]  }
 0x17c   : > { %v485_v54 = vpop.f32.mrb[6].mxu0  ;;  %v574_v55 = vpack.c.bf16 %v571_v52, %v570_v51 }
 0x17d   : > { %v543_v56 = vadd.f32 %v534_v53, %v515_v49  ;;  %v516_v57 = vmul.f32 %v511_v45, %v485_v54  ;;  %v487_v58 = vpop.f32.mrb[7].mxu0 }
 0x17e   : > { %581 = vrot.lane.b32.xlu0 %v574_v55, %s1357_s11 }
 0x17f   : > { %v547_v60 = vmax.f32 %v543_v56, 0.0  ;;  %v544_v61 = vadd.f32 %v539_v59, %v516_v57 }
 0x181   : > { %v548_v62 = vmax.f32 %v544_v61, 0.0  ;;  %v572_v63 = vsel %vm1494_vm5, %v547_v60, 0.0 }
 0x183   : > { %v573_v1 = vsel %vm1494_vm5, %v548_v62, 0.0 }
 0x184   : > { %v575_v2 = vpack.c.bf16 %v573_v1, %v572_v63 }
 0x186   : > { %583 = vrot.lane.b32.xlu1 %v575_v2, %s1357_s11 }
 0x1f0   : > { %v582_v3 = vpop.permute.xlu0 %581 }
 0x1f1   : > { %588 = vst.msk [vmem:[#allocation2] sm:$0xff] %vm587_vm6, %v582_v3 }
 0x1f2   : > { %591 = vst.msk [vmem:[#allocation2] sm:$0xff] %vm590_vm7, %v1353_v0 }
 0x1f8   : > { %v584_v4 = vpop.permute.xlu1 %583 }
 0x1f9   : > { %589 = vst.msk [vmem:[#allocation2 + $0x8] sm:$0xff] %vm587_vm6, %v584_v4  ;;  %v593_v5 = vld [vmem:[#allocation2] sm:$0xff] }
 0x1fa   : > { %592 = vst.msk [vmem:[#allocation2 + $0x8] sm:$0xff] %vm590_vm7, %v1353_v0  ;;  %597 = vrot.lane.b32.xlu0 %v593_v5, %s1354_s19  ;;  %1261 = vmatprep.subr.bf16.mxu1 %v593_v5 }
 0x1fb   : > { %1262 = vmatpush3.bf16.msra.mxu1 %v593_v5 }
 0x1fe   : > { %603 = vrot.lane.b32.xlu0 %v593_v5, %s1358_s12 }
 0x201   : > { %v594_v6 = vld [vmem:[#allocation2 + $0x8] sm:$0xff] }
 0x202   : > { %599 = vrot.lane.b32.xlu1 %v594_v6, %s1354_s19  ;;  %782 = vrot.lane.b32.xlu0 %v593_v5, %s1359_s15 }
 0x203   : > { %1263 = vmatprep.subr.bf16.mxu1 %v594_v6 }
 0x204   : > { %1264 = vmatpush3.bf16.msra.mxu1 %v594_v6 }
 0x206   : > { %605 = vrot.lane.b32.xlu1 %v594_v6, %s1358_s12  ;;  %628 = vrot.lane.b32.xlu0 %v593_v5, %s1355_s20 }
 0x20a   : > { %630 = vrot.lane.b32.xlu0 %v594_v6, %s1355_s20  ;;  %784 = vrot.lane.b32.xlu1 %v594_v6, %s1359_s15 }
 0x26c   : > { %v598_v8 = vpop.permute.xlu0 %597 }
 0x26d   : > { %632 = vrot.lane.b32.xlu0 %v598_v8, %s1355_s20  ;;  %786 = vrot.lane.b32.xlu1 %v598_v8, %s1359_s15 }
 0x26e   : > { %1265 = vmatprep.subr.bf16.mxu1 %v598_v8 }
 0x26f   : > { %1266 = vmatpush3.bf16.msra.mxu1 %v598_v8 }
 0x270   : > { %v604_v9 = vpop.permute.xlu0 %603 }
 0x274   : > { %v600_v10 = vpop.permute.xlu1 %599  ;;  %v783_v11 = vpop.permute.xlu0 %782 }
 0x275   : > { %634 = vrot.lane.b32.xlu0 %v600_v10, %s1355_s20  ;;  %788 = vrot.lane.b32.xlu1 %v600_v10, %s1359_s15 }
 0x276   : > { %1267 = vmatprep.subr.bf16.mxu1 %v600_v10 }
 0x277   : > { %1268 = vmatpush3.bf16.msra.mxu1 %v600_v10 }
 0x278   : > { %1269 = vmatprep.subr.bf16.mxu1 %v604_v9  ;;  %v629_v13 = vpop.permute.xlu0 %628  ;;  %v606_v14 = vpop.permute.xlu1 %605 }
 0x279   : > { %636 = vrot.lane.b32.xlu0 %v604_v9, %s1355_s20  ;;  %790 = vrot.lane.b32.xlu1 %v604_v9, %s1359_s15 }
 0x27a   : > { %1245 = vmatprep.subr.bf16.mxu0 %v629_v13 }
 0x27b   : > { %1270 = vmatpush3.bf16.msra.mxu1 %v604_v9  ;;  %1246 = vmatpush3.bf16.msra.mxu0 %v629_v13 }
 0x27c   : > { %1271 = vmatprep.subr.bf16.mxu1 %v606_v14  ;;  %v631_v16 = vpop.permute.xlu0 %630  ;;  %v785_v20 = vpop.permute.xlu1 %784 }
 0x27d   : > { %865 = vperm.xlu0 %1325, %v859_v15   ;;  %792 = vrot.lane.b32.xlu1 %v606_v14, %s1359_s15 }
 0x27e   : > { %1247 = vmatprep.subr.bf16.mxu0 %v631_v16 }
 0x27f   : > { %1272 = vmatpush3.bf16.msra.mxu1 %v606_v14  ;;  %1248 = vmatpush3.bf16.msra.mxu0 %v631_v16 }
 0x280   : > { %1277 = vmatprep.subr.bf16.mxu1 %v783_v11 }
 0x281   : > { %875 = vperm.xlu0 %1325, %v861_v17   ;;  %638 = vrot.lane.b32.xlu1 %v606_v14, %s1355_s20  ;;  %s1609_s20 = scalar_lea.vmem %s1656_s10, %s1213_s16 }
 0x282   : > { %1274 = vmatmul.mubr.msk.bf16.vlgmr.msra.gmra.mrb[0].mxu1 %vm646_vm8, %v1337_v18  ;;  %1063 = vst.msk [vmem:[%s1609_s20] sm:$0xf] %vm1062_vm9, %v1353_v0  ;;  %1064 = vst.msk [vmem:[%s1609_s20 + $0x4] sm:$0xf] %vm1062_vm9, %v1353_v0 }
 0x283   : > { %1278 = vmatpush3.bf16.msra.mxu1 %v783_v11  ;;  %1289 = vmatprep.mubr.msk.bf16.mxu1 %vm646_vm8, %v1338_v19  ;;  %1065 = vst.msk [vmem:[%s1609_s20 + $0x8] sm:$0xf] %vm1062_vm9, %v1353_v0  ;;  %1066 = vst.msk [vmem:[%s1609_s20 + $0xc] sm:$0xf] %vm1062_vm9, %v1353_v0 }
 0x284   : > { %1279 = vmatprep.subr.bf16.mxu1 %v785_v20 }
 0x285   : > { %998 = vperm.xlu0 %1325, %v992_v21   ;;  %870 = vperm.xlu1 %1324, %v860_v22  }
 0x287   : > { %1280 = vmatpush3.bf16.msra.mxu1 %v785_v20 }
 0x289   : > { %1008 = vperm.xlu0 %1325, %v994_v23   ;;  %880 = vperm.xlu1 %1324, %v862_v24  }
 0x28d   : > { %893 = vperm.xlu0 %1325, %v887_v25   ;;  %1003 = vperm.xlu1 %1324, %v993_v26  }
 0x291   : > { %903 = vperm.xlu0 %1325, %v889_v27   ;;  %1013 = vperm.xlu1 %1324, %v995_v28  }
 0x295   : > { %1026 = vperm.xlu0 %1325, %v1020_v29   ;;  %898 = vperm.xlu1 %1324, %v888_v30  }
 0x299   : > { %1036 = vperm.xlu0 %1325, %v1022_v31   ;;  %908 = vperm.xlu1 %1324, %v890_v32  }
 0x29d   : > { %1031 = vperm.xlu1 %1324, %v1021_v33  }
 0x2a1   : > { %1041 = vperm.xlu1 %1324, %v1023_v34  }
 0x2df   : > { %v633_v35 = vpop.permute.xlu0 %632  ;;  %v787_v36 = vpop.permute.xlu1 %786 }
 0x2e0   : > { %1249 = vmatprep.subr.bf16.mxu0 %v633_v35  ;;  %1281 = vmatprep.subr.bf16.mxu1 %v787_v36 }
 0x2e1   : > { %1250 = vmatpush3.bf16.msra.mxu0 %v633_v35  ;;  %1282 = vmatpush3.bf16.msra.mxu1 %v787_v36 }
 0x2e7   : > { %v635_v37 = vpop.permute.xlu0 %634  ;;  %v789_v38 = vpop.permute.xlu1 %788 }
 0x2e8   : > { %1251 = vmatprep.subr.bf16.mxu0 %v635_v37  ;;  %1283 = vmatprep.subr.bf16.mxu1 %v789_v38 }
 0x2e9   : > { %1252 = vmatpush3.bf16.msra.mxu0 %v635_v37  ;;  %1284 = vmatpush3.bf16.msra.mxu1 %v789_v38 }
 0x2eb   : > { %v637_v39 = vpop.permute.xlu0 %636  ;;  %v791_v40 = vpop.permute.xlu1 %790 }
 0x2ec   : > { %1253 = vmatprep.subr.bf16.mxu0 %v637_v39  ;;  %1285 = vmatprep.subr.bf16.mxu1 %v791_v40 }
 0x2ed   : > { %1254 = vmatpush3.bf16.msra.mxu0 %v637_v39  ;;  %1286 = vmatpush3.bf16.msra.mxu1 %v791_v40 }
 0x2ef   : > { %v793_v42 = vpop.permute.xlu1 %792 }
 0x2f0   : > { %1287 = vmatprep.subr.bf16.mxu1 %v793_v42 }
 0x2f1   : > { %1288 = vmatpush3.bf16.msra.mxu1 %v793_v42 }
 0x2f2   : > { %1293 = vmatprep.subr.bf16.mxu1 %v1340_v41 }
 0x2f3   : > { %v639_v45 = vpop.permute.xlu1 %638 }
 0x2f4   : > { %1255 = vmatprep.subr.bf16.mxu0 %v639_v45  ;;  %1290 = vmatmul.mubr.msk.bf16.vlgmr.msra.gmra.mrb[0].mxu1 %vm646_vm8, %v1339_v43 }
 0x2f5   : > { %1256 = vmatpush3.bf16.msra.mxu0 %v639_v45  ;;  %1294 = vmatpush3.bf16.msra.mxu1 %v1340_v41 }
 0x2f6   : > { %1295 = vmatprep.mubr.msk.bf16.mxu1 %vm433_vm0, %v1343_v44 }
 0x2f8   : > { %1258 = vmatmul.mubr.msk.bf16.vlgmr.msra.gmra.mrb[8].mxu0 %vm646_vm8, %v1342_v47 }
 0x2fc   : > { %1296 = vmatmul.mubr.msk.bf16.vlgmr.msra.gmra.mrb[4].mxu1 %vm433_vm0, %v1344_v48  ;;  %v866_v49 = vpop.permute.xlu0 %865 }
 0x300   : > { %v876_v51 = vpop.permute.xlu0 %875 }
 0x304   : > { %v871_v50 = vpop.permute.xlu1 %870  ;;  %v999_v53 = vpop.permute.xlu0 %998 }
 0x308   : > { %v881_v52 = vpop.permute.xlu1 %880  ;;  %v1009_v55 = vpop.permute.xlu0 %1008 }
 0x30c   : > { %v1004_v54 = vpop.permute.xlu1 %1003  ;;  %v894_v57 = vpop.permute.xlu0 %893 }
 0x310   : > { %v1014_v56 = vpop.permute.xlu1 %1013  ;;  %v904_v59 = vpop.permute.xlu0 %903 }
 0x314   : > { %v899_v58 = vpop.permute.xlu1 %898  ;;  %v1027_v2 = vpop.permute.xlu0 %1026 }
 0x318   : > { %v909_v60 = vpop.permute.xlu1 %908  ;;  %v1037_v18 = vpop.permute.xlu0 %1036 }
 0x31c   : > { %v1032_v6 = vpop.permute.xlu1 %1031 }
 0x320   : > { %v1042_v26 = vpop.permute.xlu1 %1041 }
 0x3c7   : > { %v1291_v61 = vpop.f32.mrb[0].mxu1 }
 0x3c8   : > { %v840_v62 = vpop.f32.mrb[1].mxu1 }
 0x3c9   : > { %v1292_v63 = vpop.f32.mrb[2].mxu1 }
 0x3ca   : > { %v843_v1 = vpop.f32.mrb[3].mxu1 }
 0x3cb   : > { %v1259_v3 = vpop.f32.mrb[8].mxu0 }
 0x3cc   : > { %v1299_v4 = vadd.f32 %v1291_v61, %v1259_v3  ;;  %v687_v5 = vpop.f32.mrb[9].mxu0 }
 0x3cd   : > { %v1300_v7 = vadd.f32 %v840_v62, %v687_v5  ;;  %v1260_v8 = vpop.f32.mrb[10].mxu0 }
 0x3ce   : > { %v885_v9 = vmul.f32 %v1299_v4, %v876_v51  ;;  %v1301_v10 = vadd.f32 %v1292_v63, %v1260_v8  ;;  %v690_v11 = vpop.f32.mrb[11].mxu0 }
 0x3cf   : > { %v883_v12 = vmul.f32 %v1300_v7, %v866_v49  ;;  %v1302_v13 = vadd.f32 %v843_v1, %v690_v11  ;;  %v1297_v14 = vpop.f32.mrb[4].mxu1 }
 0x3d0   : > { %v886_v15 = vmul.f32 %v1301_v10, %v881_v52  ;;  %v1018_v16 = vmul.f32 %v1297_v14, %v1009_v55  ;;  %v977_v17 = vpop.f32.mrb[5].mxu1  ;;  %v913_v22 = vadd.f32 %v904_v59, %v885_v9 }
 0x3d1   : > { %v884_v19 = vmul.f32 %v1302_v13, %v871_v50  ;;  %v1016_v20 = vmul.f32 %v999_v53, %v977_v17  ;;  %v1298_v21 = vpop.f32.mrb[6].mxu1  ;;  %v911_v27 = vadd.f32 %v894_v57, %v883_v12 }
 0x3d2   : > { %v1046_v23 = vadd.f32 %v1037_v18, %v1018_v16  ;;  %v1019_v24 = vmul.f32 %v1298_v21, %v1014_v56  ;;  %v980_v25 = vpop.f32.mrb[7].mxu1  ;;  %v914_v30 = vadd.f32 %v909_v60, %v886_v15 }
 0x3d3   : > { %v1044_v28 = vadd.f32 %v1027_v2, %v1016_v20  ;;  %v1017_v29 = vmul.f32 %v1004_v54, %v980_v25  ;;  %v912_v33 = vadd.f32 %v899_v58, %v884_v19 }
 0x3d4   : > { %v1050_v31 = vadd.f32 %v1046_v23, %v913_v22  ;;  %v1047_v32 = vadd.f32 %v1042_v26, %v1019_v24 }
 0x3d5   : > { %v1048_v34 = vadd.f32 %v1044_v28, %v911_v27  ;;  %v1045_v35 = vadd.f32 %v1032_v6, %v1017_v29 }
 0x3d6   : > { %v1051_v36 = vadd.f32 %v1047_v32, %v914_v30  ;;  %v1054_v37 = vmax.f32 %v1050_v31, 0.0 }
 0x3d7   : > { %v1052_v38 = vmax.f32 %v1048_v34, 0.0  ;;  %v1049_v39 = vadd.f32 %v1045_v35, %v912_v33 }
 0x3d8   : > { %v1055_v40 = vmax.f32 %v1051_v36, 0.0  ;;  %v1058_v45 = vsel %vm1494_vm5, %v1054_v37, 0.0 }
 0x3d9   : > { %v1053_v41 = vmax.f32 %v1049_v39, 0.0  ;;  %v1056_v42 = vsel %vm1494_vm5, %v1052_v38, 0.0  ;;  %v1216_v49 = vpack.c.bf16 %v1058_v45, %v1058_v45 }
 0x3da   : > { %v1214_v43 = vpack.c.bf16 %v1056_v42, %v1056_v42  ;;  %v1059_v48 = vsel %vm1494_vm5, %v1055_v40, 0.0 }
 0x3db   : > { %v1057_v44 = vsel %vm1494_vm5, %v1053_v41, 0.0  ;;  %v1217_v50 = vpack.c.bf16 %v1059_v48, %v1059_v48 }
 0x3dc   : > { %1077 = vrot.lane.b32.xlu0 %v1214_v43, %s1357_s11  ;;  %v1215_v47 = vpack.c.bf16 %v1057_v44, %v1057_v44 }
 0x3de   : > { %1079 = vrot.lane.b32.xlu1 %v1215_v47, %s1357_s11 }
 0x3e0   : > { %1081 = vrot.lane.b32.xlu0 %v1216_v49, %s1357_s11 }
 0x3e2   : > { %1083 = vrot.lane.b32.xlu1 %v1217_v50, %s1357_s11 }
 0x44e   : > { %v1078_v51 = vpop.permute.xlu0 %1077 }
 0x44f   : > { %1090 = vst.msk [vmem:[%s1609_s20] sm:$0xf] %vm1089_vm10, %v1078_v51 }
 0x450   : > { %1095 = vst.msk [vmem:[%s1609_s20] sm:$0xf] %vm1094_vm11, %v1353_v0  ;;  %v1080_v46 = vpop.permute.xlu1 %1079 }
 0x451   : > { %1091 = vst.msk [vmem:[%s1609_s20 + $0x4] sm:$0xf] %vm1089_vm10, %v1080_v46 }
 0x452   : > { %1096 = vst.msk [vmem:[%s1609_s20 + $0x4] sm:$0xf] %vm1094_vm11, %v1353_v0  ;;  %v1082_v52 = vpop.permute.xlu0 %1081 }
 0x453   : > { %1092 = vst.msk [vmem:[%s1609_s20 + $0x8] sm:$0xf] %vm1089_vm10, %v1082_v52 }
 0x454   : > { %1097 = vst.msk [vmem:[%s1609_s20 + $0x8] sm:$0xf] %vm1094_vm11, %v1353_v0  ;;  %v1084_v53 = vpop.permute.xlu1 %1083 }
 0x455   : > { %1093 = vst.msk [vmem:[%s1609_s20 + $0xc] sm:$0xf] %vm1089_vm10, %v1084_v53 }
 0x456   : > { %1098 = vst.msk [vmem:[%s1609_s20 + $0xc] sm:$0xf] %vm1094_vm11, %v1353_v0 }
 0x457 PF: > { %s20_s13 = sadd.s32 1, %s1351_s13  }
 0x458   : > { %p17_p4 = scmp.ge.s32.totalorder %s20_s13, 4  }
 0x45a   :  { %19 = sbr.rel (!%p17_p4) target bundleno = 1 (0x1), region = 95 }

// kernel: _lambda_.14
= control target key start
LH: loop header
LB: loop body
LE: loop exit
PB: predicated region body
PF: predicated region fallthrough
CT: control target
= control target key end

     0   :  { %s3302_s9 = smov 0   ;;  %s5663_s0 = inlined_call_operand.vmem [shape: bf16[2,64,5,6], index: 0, kind: input, shape index: {}]   ;;  %s5664_s1 = inlined_call_operand.vmem [shape: f32[2,64,2], index: 1, kind: output, shape index: {0}]   ;;  %s5665_s2 = inlined_call_operand.vmem [shape: f32[2,64,2], index: 2, kind: output, shape index: {1}]  }
   0x1 LB: > { %s2965_s10 = sadd.s32 4294967295, %s3284_s9   ;;  %p2969_p0 = scmp.ge.s32.totalorder %s3284_s9, 1  ;;  %s3284_s9 = sphi %s3302_s9, %s13_s9  }
   0x2   : > { %p115_p1 = scmp.lt.s32.totalorder %s3284_s9, 3 }
   0x4   : > { %p116_p2 = pnand %p2969_p0, %p115_p1 }
   0x6   : > { %119 = sbr.rel (%p116_p2) target bundleno = 815 (0x32f), region = 24 }
   0xd   : > { %p142_p3 = scmp.lt.s32.totalorder %s2965_s10, 1  ;;  %s3286_s15 = smov 127   ;;  %vm541_vm0 = vcmask 26625   ;;  %vm1825_vm1 = vcmask 1042434   ;;  %vm1827_vm2 = vcmask 1043459   ;;  %vm1829_vm3 = vcmask 1044484  }
   0xe   : > { %vm1831_vm4 = vcmask 1045509   ;;  %vm1833_vm5 = vcmask 1046534   ;;  %vm1835_vm6 = vcmask 1047559   ;;  %vm1896_vm7 = vcmask 15361  }
   0xf   : > { %s6052_s10 = smov (!%p142_p3, %s2965_s10), 1  ;;  %vm1837_vm8 = vcmask 1041409   ;;  %vm5792_vm9 = vcmask 15360   ;;  %vm5791_vm10 = vcmask 8192  }
  0x10   : > { %s2978_s11 = sshll.u32 %s6052_s10, 8  ;;  %s2979_s16 = sshll.u32 %s6052_s10, 6 }
  0x11   : > { %s3316_s14 = scalar_lea.vmem %s5663_s0, %s2978_s11  ;;  %s3757_s19 = scalar_lea.vmem %s5664_s1, %s2979_s16 }
  0x12   : > { %v157_v0 = vld [vmem:[%s3316_s14] sm:$0x3]  ;;  %v158_v1 = vld [vmem:[%s3316_s14 + $0x4] sm:$0x3]  ;;  %v161_v2 = vld [vmem:[%s3316_s14 + $0x10] sm:$0x3]  ;;  %s4744_s22 = scalar_lea.vmem %s5665_s2, %s2979_s16 }
  0x13   : > { %v3321_v3 = vunpack.c.l.bf16 %v157_v0  ;;  %v3323_v4 = vunpack.c.l.bf16 %v158_v1  ;;  %v162_v5 = vld [vmem:[%s3316_s14 + $0x14] sm:$0x3]  ;;  %v3326_v6 = vunpack.c.l.bf16 %v161_v2  ;;  %v159_v7 = vld [vmem:[%s3316_s14 + $0x8] sm:$0x3]  ;;  %v160_v8 = vld [vmem:[%s3316_s14 + $0xc] sm:$0x3] }
  0x14   : > { %v3330_v9 = vunpack.c.l.bf16 %v162_v5  ;;  %v3332_v10 = vunpack.c.l.bf16 %v159_v7  ;;  %v3334_v11 = vunpack.c.l.bf16 %v160_v8  ;;  %v163_v12 = vld [vmem:[%s3316_s14 + $0x18] sm:$0x3]  ;;  %v164_v13 = vld [vmem:[%s3316_s14 + $0x1c] sm:$0x3]  ;;  %v165_v14 = vld [vmem:[%s3316_s14 + $0x20] sm:$0x3] }
  0x15   : > { %v2990_v15 = vpack.i.bf16 %v3323_v4, %v3321_v3  ;;  %v3341_v16 = vunpack.c.l.bf16 %v163_v12  ;;  %v166_v17 = vld [vmem:[%s3316_s14 + $0x24] sm:$0x3]  ;;  %v167_v18 = vld [vmem:[%s3316_s14 + $0x28] sm:$0x3]  ;;  %v168_v19 = vld [vmem:[%s3316_s14 + $0x2c] sm:$0x3]  ;;  %v3348_v21 = vunpack.c.l.bf16 %v164_v13  ;;  %v3353_v23 = vunpack.c.l.bf16 %v165_v14 }
  0x16   : > { %v3000_v20 = vpack.i.bf16 %v3330_v9, %v3326_v6  ;;  %v2995_v22 = vpack.i.bf16 %v3334_v11, %v3332_v10  ;;  %v3355_v24 = vunpack.c.l.bf16 %v166_v17  ;;  %v3360_v26 = vunpack.c.l.bf16 %v167_v18  ;;  %v169_v28 = vld [vmem:[%s3316_s14 + $0x30] sm:$0x3]  ;;  %v170_v29 = vld [vmem:[%s3316_s14 + $0x34] sm:$0x3]  ;;  %v171_v30 = vld [vmem:[%s3316_s14 + $0x38] sm:$0x3] }
  0x17   : > { %2991 = vrot.lane.b32.xlu0 %v2990_v15, %s3286_s15  ;;  %v3005_v25 = vpack.i.bf16 %v3348_v21, %v3341_v16  ;;  %v3362_v27 = vunpack.c.l.bf16 %v168_v19  ;;  %v172_v31 = vld [vmem:[%s3316_s14 + $0x3c] sm:$0x3]  ;;  %v3371_v33 = vunpack.c.l.bf16 %v169_v28  ;;  %v3373_v34 = vunpack.c.l.bf16 %v170_v29  ;;  %v173_v38 = vld [vmem:[%s3316_s14 + $0x40] sm:$0x3]  ;;  %v174_v39 = vld [vmem:[%s3316_s14 + $0x44] sm:$0x3] }
  0x18   : > { %3001 = vrot.lane.b32.xlu1 %v3000_v20, %s3286_s15  ;;  %v3010_v32 = vpack.i.bf16 %v3355_v24, %v3353_v23  ;;  %v3378_v36 = vunpack.c.l.bf16 %v171_v30  ;;  %v3380_v37 = vunpack.c.l.bf16 %v172_v31  ;;  %v175_v40 = vld [vmem:[%s3316_s14 + $0x48] sm:$0x3]  ;;  %v176_v41 = vld [vmem:[%s3316_s14 + $0x4c] sm:$0x3]  ;;  %v3389_v43 = vunpack.c.l.bf16 %v173_v38  ;;  %v177_v48 = vld [vmem:[%s3316_s14 + $0x50] sm:$0x3] }
  0x19   : > { %v3015_v35 = vpack.i.bf16 %v3362_v27, %v3360_v26  ;;  %v3020_v42 = vpack.i.bf16 %v3373_v34, %v3371_v33  ;;  %v3391_v44 = vunpack.c.l.bf16 %v174_v39  ;;  %v3396_v46 = vunpack.c.l.bf16 %v175_v40  ;;  %v178_v49 = vld [vmem:[%s3316_s14 + $0x54] sm:$0x3]  ;;  %v179_v50 = vld [vmem:[%s3316_s14 + $0x58] sm:$0x3]  ;;  %v180_v51 = vld [vmem:[%s3316_s14 + $0x5c] sm:$0x3] }
  0x1a   : > { %v3025_v45 = vpack.i.bf16 %v3380_v37, %v3378_v36  ;;  %v3398_v47 = vunpack.c.l.bf16 %v176_v41  ;;  %v3407_v53 = vunpack.c.l.bf16 %v177_v48  ;;  %v3409_v54 = vunpack.c.l.bf16 %v178_v49  ;;  %v181_v58 = vld [vmem:[%s3316_s14 + $0x60] sm:$0x3]  ;;  %v182_v59 = vld [vmem:[%s3316_s14 + $0x64] sm:$0x3]  ;;  %v183_v60 = vld [vmem:[%s3316_s14 + $0x68] sm:$0x3] }
  0x1b   : > { %2996 = vrot.lane.b32.xlu0 %v2995_v22, %s3286_s15  ;;  %v3030_v52 = vpack.i.bf16 %v3391_v44, %v3389_v43  ;;  %v3414_v56 = vunpack.c.l.bf16 %v179_v50  ;;  %v3416_v57 = vunpack.c.l.bf16 %v180_v51  ;;  %v184_v61 = vld [vmem:[%s3316_s14 + $0x6c] sm:$0x3]  ;;  %v3425_v63 = vunpack.c.l.bf16 %v181_v58  ;;  %v185_v7 = vld [vmem:[%s3316_s14 + $0x70] sm:$0x3]  ;;  %v186_v8 = vld [vmem:[%s3316_s14 + $0x74] sm:$0x3] }
  0x1c   : > { %3006 = vrot.lane.b32.xlu1 %v3005_v25, %s3286_s15  ;;  %v3035_v55 = vpack.i.bf16 %v3398_v47, %v3396_v46  ;;  %v3040_v62 = vpack.i.bf16 %v3409_v54, %v3407_v53  ;;  %v3427_v0 = vunpack.c.l.bf16 %v182_v59  ;;  %v3432_v2 = vunpack.c.l.bf16 %v183_v60  ;;  %v187_v12 = vld [vmem:[%s3316_s14 + $0x78] sm:$0x3]  ;;  %v188_v13 = vld [vmem:[%s3316_s14 + $0x7c] sm:$0x3]  ;;  %v189_v22 = vld [vmem:[%s3316_s14 + $0x80] sm:$0x3] }
  0x1d   : > { %v3045_v1 = vpack.i.bf16 %v3416_v57, %v3414_v56  ;;  %v3434_v5 = vunpack.c.l.bf16 %v184_v61  ;;  %v3443_v15 = vunpack.c.l.bf16 %v185_v7  ;;  %v3445_v17 = vunpack.c.l.bf16 %v186_v8  ;;  %v190_v25 = vld [vmem:[%s3316_s14 + $0x84] sm:$0x3]  ;;  %v191_v28 = vld [vmem:[%s3316_s14 + $0x88] sm:$0x3]  ;;  %v192_v29 = vld [vmem:[%s3316_s14 + $0x8c] sm:$0x3] }
  0x1e   : > { %v3050_v14 = vpack.i.bf16 %v3427_v0, %v3425_v63  ;;  %v3450_v19 = vunpack.c.l.bf16 %v187_v12  ;;  %v3452_v20 = vunpack.c.l.bf16 %v188_v13  ;;  %v3461_v31 = vunpack.c.l.bf16 %v189_v22  ;;  %v193_v40 = vld [vmem:[%s3316_s14 + $0x90] sm:$0x3]  ;;  %v194_v41 = vld [vmem:[%s3316_s14 + $0x94] sm:$0x3]  ;;  %v197_v58 = vld [vmem:[%s3316_s14 + $0xa0] sm:$0x3] }
  0x1f   : > { %3011 = vrot.lane.b32.xlu0 %v3010_v32, %s3286_s15  ;;  %v3055_v18 = vpack.i.bf16 %v3434_v5, %v3432_v2  ;;  %v3060_v30 = vpack.i.bf16 %v3445_v17, %v3443_v15  ;;  %v3463_v32 = vunpack.c.l.bf16 %v190_v25  ;;  %v3468_v38 = vunpack.c.l.bf16 %v191_v28  ;;  %v198_v59 = vld [vmem:[%s3316_s14 + $0xa4] sm:$0x3]  ;;  %v199_v60 = vld [vmem:[%s3316_s14 + $0xa8] sm:$0x3]  ;;  %v200_v61 = vld [vmem:[%s3316_s14 + $0xac] sm:$0x3] }
  0x20   : > { %3016 = vrot.lane.b32.xlu1 %v3015_v35, %s3286_s15  ;;  %v3065_v35 = vpack.i.bf16 %v3452_v20, %v3450_v19  ;;  %v3470_v39 = vunpack.c.l.bf16 %v192_v29  ;;  %v3479_v49 = vunpack.c.l.bf16 %v193_v40  ;;  %v3481_v50 = vunpack.c.l.bf16 %v194_v41  ;;  %v203_v22 = vld [vmem:[%s3316_s14 + $0xb8] sm:$0x3]  ;;  %v204_v25 = vld [vmem:[%s3316_s14 + $0xbc] sm:$0x3] }
  0x21   : > { %v3070_v48 = vpack.i.bf16 %v3463_v32, %v3461_v31  ;;  %v3499_v7 = vunpack.c.l.bf16 %v198_v59  ;;  %v3504_v12 = vunpack.c.l.bf16 %v199_v60  ;;  %v3506_v13 = vunpack.c.l.bf16 %v200_v61 }
  0x22   : > { %v3075_v51 = vpack.i.bf16 %v3470_v39, %v3468_v38  ;;  %v3522_v40 = vunpack.c.l.bf16 %v203_v22  ;;  %v3524_v41 = vunpack.c.l.bf16 %v204_v25  ;;  %v211_v22 = vld [vmem:[%s3316_s14 + $0xd8] sm:$0x3]  ;;  %v212_v25 = vld [vmem:[%s3316_s14 + $0xdc] sm:$0x3] }
  0x23   : > { %3021 = vrot.lane.b32.xlu0 %v3020_v42, %s3286_s15  ;;  %v195_v42 = vld [vmem:[%s3316_s14 + $0x98] sm:$0x3] }
  0x24   : > { %3026 = vrot.lane.b32.xlu1 %v3025_v45, %s3286_s15  ;;  %v196_v45 = vld [vmem:[%s3316_s14 + $0x9c] sm:$0x3]  ;;  %5794 = vst [vmem:[#allocation3_spill] sm:$0xff] %v3522_v40  ;;  %5795 = vst [vmem:[#allocation4_spill] sm:$0xff] %v3524_v41  ;;  %v3105_v61 = vpack.i.bf16 %v3524_v41, %v3522_v40  ;;  %v214_v40 = vld [vmem:[%s3316_s14 + $0xe4] sm:$0x3] }
  0x25   : > { %v219_v41 = vld [vmem:[%s3316_s14 + $0xf8] sm:$0x3] }
  0x27   : > { %3031 = vrot.lane.b32.xlu0 %v3030_v52, %s3286_s15  ;;  %v3486_v52 = vunpack.c.l.bf16 %v195_v42  ;;  %v205_v42 = vld [vmem:[%s3316_s14 + $0xc0] sm:$0x3] }
  0x28   : > { %3036 = vrot.lane.b32.xlu1 %v3035_v55, %s3286_s15  ;;  %v3488_v55 = vunpack.c.l.bf16 %v196_v45  ;;  %v206_v45 = vld [vmem:[%s3316_s14 + $0xc4] sm:$0x3]  ;;  %v3533_v59 = vunpack.c.l.bf16 %v205_v42 }
  0x29   : > { %v3535_v60 = vunpack.c.l.bf16 %v206_v45 }
  0x2a   : > { %v3085_v8 = vpack.i.bf16 %v3488_v55, %v3486_v52  ;;  %5796 = vst [vmem:[#allocation5_spill] sm:$0xff] %v3533_v59 }
  0x2b   : > { %3041 = vrot.lane.b32.xlu0 %v3040_v62, %s3286_s15  ;;  %v3080_v62 = vpack.i.bf16 %v3481_v50, %v3479_v49  ;;  %5797 = vst [vmem:[#allocation6_spill] sm:$0xff] %v3535_v60 }
  0x2c   : > { %3046 = vrot.lane.b32.xlu1 %v3045_v1, %s3286_s15  ;;  %v3497_v1 = vunpack.c.l.bf16 %v197_v58 }
  0x2e   : > { %v3090_v28 = vpack.i.bf16 %v3499_v7, %v3497_v1 }
  0x2f   : > { %3051 = vrot.lane.b32.xlu0 %v3050_v14, %s3286_s15  ;;  %v201_v14 = vld [vmem:[%s3316_s14 + $0xb0] sm:$0x3] }
  0x30   : > { %3056 = vrot.lane.b32.xlu1 %v3055_v18, %s3286_s15  ;;  %v202_v18 = vld [vmem:[%s3316_s14 + $0xb4] sm:$0x3]  ;;  %v3515_v29 = vunpack.c.l.bf16 %v201_v14  ;;  %v209_v14 = vld [vmem:[%s3316_s14 + $0xd0] sm:$0x3] }
  0x32   : > { %5793 = vst [vmem:[#allocation2_spill] sm:$0xff] %v3515_v29 }
  0x33   : > { %3061 = vrot.lane.b32.xlu0 %v3060_v30, %s3286_s15  ;;  %v3517_v30 = vunpack.c.l.bf16 %v202_v18  ;;  %v210_v18 = vld [vmem:[%s3316_s14 + $0xd4] sm:$0x3] }
  0x34   : > { %3066 = vrot.lane.b32.xlu1 %v3065_v35, %s3286_s15  ;;  %v3095_v35 = vpack.i.bf16 %v3506_v13, %v3504_v12  ;;  %v3553_v42 = vunpack.c.l.bf16 %v210_v18 }
  0x35   : > { %v3100_v58 = vpack.i.bf16 %v3517_v30, %v3515_v29  ;;  %v218_v29 = vld [vmem:[%s3316_s14 + $0xf4] sm:$0x3] }
  0x36   : > { %5801 = vst [vmem:[#allocation10_spill] sm:$0xff] %v3553_v42 }
  0x37   : > { %3071 = vrot.lane.b32.xlu0 %v3070_v48, %s3286_s15  ;;  %v207_v48 = vld [vmem:[%s3316_s14 + $0xc8] sm:$0x3] }
  0x38   : > { %3076 = vrot.lane.b32.xlu1 %v3075_v51, %s3286_s15  ;;  %v208_v51 = vld [vmem:[%s3316_s14 + $0xcc] sm:$0x3] }
  0x3b   : > { %3081 = vrot.lane.b32.xlu0 %v3080_v62, %s3286_s15  ;;  %v3540_v62 = vunpack.c.l.bf16 %v207_v48  ;;  %v3558_v48 = vunpack.c.l.bf16 %v211_v22 }
  0x3c   : > { %3086 = vrot.lane.b32.xlu1 %v3085_v8, %s3286_s15  ;;  %v3542_v8 = vunpack.c.l.bf16 %v208_v51  ;;  %v3560_v51 = vunpack.c.l.bf16 %v212_v25 }
  0x3d   : > { %5798 = vst [vmem:[#allocation7_spill] sm:$0xff] %v3540_v62  ;;  %5802 = vst [vmem:[#allocation11_spill] sm:$0xff] %v3558_v48 }
  0x3e   : > { %5799 = vst [vmem:[#allocation8_spill] sm:$0xff] %v3542_v8  ;;  %v3115_v45 = vpack.i.bf16 %v3542_v8, %v3540_v62  ;;  %5803 = vst [vmem:[#allocation12_spill] sm:$0xff] %v3560_v51  ;;  %v3125_v22 = vpack.i.bf16 %v3560_v51, %v3558_v48  ;;  %v217_v8 = vld [vmem:[%s3316_s14 + $0xf0] sm:$0x3] }
  0x3f   : > { %3091 = vrot.lane.b32.xlu0 %v3090_v28, %s3286_s15  ;;  %v3110_v28 = vpack.i.bf16 %v3535_v60, %v3533_v59  ;;  %v215_v59 = vld [vmem:[%s3316_s14 + $0xe8] sm:$0x3]  ;;  %v3571_v60 = vunpack.c.l.bf16 %v214_v40  ;;  %v3587_v40 = vunpack.c.l.bf16 %v217_v8 }
  0x40   : > { %3096 = vrot.lane.b32.xlu1 %v3095_v35, %s3286_s15  ;;  %v3551_v35 = vunpack.c.l.bf16 %v209_v14  ;;  %v216_v14 = vld [vmem:[%s3316_s14 + $0xec] sm:$0x3]  ;;  %v3576_v25 = vunpack.c.l.bf16 %v215_v59 }
  0x41   : > { %5805 = vst [vmem:[#allocation14_spill] sm:$0xff] %v3571_v60  ;;  %v3578_v62 = vunpack.c.l.bf16 %v216_v14  ;;  %5808 = vst [vmem:[#allocation17_spill] sm:$0xff] %v3587_v40 }
  0x42   : > { %5800 = vst [vmem:[#allocation9_spill] sm:$0xff] %v3551_v35  ;;  %5806 = vst [vmem:[#allocation15_spill] sm:$0xff] %v3576_v25 }
  0x43   : > { %3101 = vrot.lane.b32.xlu0 %v3100_v58, %s3286_s15  ;;  %v213_v58 = vld [vmem:[%s3316_s14 + $0xe0] sm:$0x3]  ;;  %5807 = vst [vmem:[#allocation16_spill] sm:$0xff] %v3578_v62  ;;  %v3135_v59 = vpack.i.bf16 %v3578_v62, %v3576_v25 }
  0x44   : > { %3106 = vrot.lane.b32.xlu1 %v3105_v61, %s3286_s15  ;;  %v3120_v61 = vpack.i.bf16 %v3553_v42, %v3551_v35  ;;  %v3569_v18 = vunpack.c.l.bf16 %v213_v58  ;;  %v3589_v35 = vunpack.c.l.bf16 %v218_v29 }
  0x46   : > { %5804 = vst [vmem:[#allocation13_spill] sm:$0xff] %v3569_v18  ;;  %v3130_v58 = vpack.i.bf16 %v3571_v60, %v3569_v18  ;;  %5809 = vst [vmem:[#allocation18_spill] sm:$0xff] %v3589_v35 }
  0x47   : > { %3111 = vrot.lane.b32.xlu0 %v3110_v28, %s3286_s15  ;;  %v220_v28 = vld [vmem:[%s3316_s14 + $0xfc] sm:$0x3] }
  0x48   : > { %3116 = vrot.lane.b32.xlu1 %v3115_v45, %s3286_s15  ;;  %v3594_v45 = vunpack.c.l.bf16 %v219_v41  ;;  %v3596_v14 = vunpack.c.l.bf16 %v220_v28 }
  0x4a   : > { %5810 = vst [vmem:[#allocation19_spill] sm:$0xff] %v3594_v45  ;;  %5811 = vst [vmem:[#allocation20_spill] sm:$0xff] %v3596_v14  ;;  %v3145_v29 = vpack.i.bf16 %v3596_v14, %v3594_v45 }
  0x4b   : > { %3121 = vrot.lane.b32.xlu0 %v3120_v61, %s3286_s15  ;;  %v3140_v61 = vpack.i.bf16 %v3589_v35, %v3587_v40 }
  0x4c   : > { %3126 = vrot.lane.b32.xlu1 %v3125_v22, %s3286_s15 }
  0x4f   : > { %3131 = vrot.lane.b32.xlu0 %v3130_v58, %s3286_s15 }
  0x50   : > { %3136 = vrot.lane.b32.xlu1 %v3135_v59, %s3286_s15 }
  0x53   : > { %3141 = vrot.lane.b32.xlu0 %v3140_v61, %s3286_s15 }
  0x54   : > { %3146 = vrot.lane.b32.xlu1 %v3145_v29, %s3286_s15 }
  0x89   : > { %v2992_v8 = vpop.permute.xlu0 %2991 }
  0x8a   : > { %v3002_v41 = vpop.permute.xlu1 %3001  ;;  %v2994_v22 = vunpack.i.h.bf16 %v2992_v8  ;;  %v2993_v28 = vunpack.i.l.bf16 %v2992_v8 }
  0x8b   : > { %v3003_v62 = vunpack.i.l.bf16 %v3002_v41  ;;  %v3004_v25 = vunpack.i.h.bf16 %v3002_v41 }
  0x8c   : > { %v545_v58 = vsel %vm541_vm0, %v2994_v22, 0.0  ;;  %v542_v48 = vsel %vm541_vm0, %v2993_v28, 0.0 }
  0x8d   : > { %v2997_v35 = vpop.permute.xlu0 %2996  ;;  %546 = vadd.xlane.f32.xlu1 %v545_v58  ;;  %543 = vadd.xlane.f32.xlu0 %v542_v48  ;;  %v554_v45 = vsel %vm541_vm0, %v3003_v62, 0.0  ;;  %v557_v18 = vsel %vm541_vm0, %v3004_v25, 0.0 }
  0x8e   : > { %v3007_v59 = vpop.permute.xlu1 %3006  ;;  %v2998_v14 = vunpack.i.l.bf16 %v2997_v35  ;;  %v2999_v60 = vunpack.i.h.bf16 %v2997_v35 }
  0x8f   : > { %v3008_v61 = vunpack.i.l.bf16 %v3007_v59 }
  0x90   : > { %v548_v29 = vsel %vm541_vm0, %v2998_v14, 0.0  ;;  %v551_v28 = vsel %vm541_vm0, %v2999_v60, 0.0  ;;  %v3009_v14 = vunpack.i.h.bf16 %v3007_v59 }
  0x91   : > { %555 = vadd.xlane.f32.xlu1 %v554_v45  ;;  %549 = vadd.xlane.f32.xlu0 %v548_v29  ;;  %v3012_v40 = vpop.permute.xlu0 %3011  ;;  %v560_v8 = vsel %vm541_vm0, %v3008_v61, 0.0 }
  0x92   : > { %v3013_v51 = vunpack.i.l.bf16 %v3012_v40  ;;  %v3017_v22 = vpop.permute.xlu1 %3016  ;;  %v563_v29 = vsel %vm541_vm0, %v3009_v14, 0.0  ;;  %v3014_v42 = vunpack.i.h.bf16 %v3012_v40 }
  0x93   : > { %v3018_v62 = vunpack.i.l.bf16 %v3017_v22 }
  0x94   : > { %v566_v48 = vsel %vm541_vm0, %v3013_v51, 0.0 }
  0x95   : > { %561 = vadd.xlane.f32.xlu1 %v560_v8  ;;  %552 = vadd.xlane.f32.xlu0 %v551_v28  ;;  %v3022_v58 = vpop.permute.xlu0 %3021  ;;  %v572_v35 = vsel %vm541_vm0, %v3018_v62, 0.0  ;;  %v569_v8 = vsel %vm541_vm0, %v3014_v42, 0.0  ;;  %v3019_v28 = vunpack.i.h.bf16 %v3017_v22 }
  0x96   : > { %v3023_v45 = vunpack.i.l.bf16 %v3022_v58  ;;  %v3027_v61 = vpop.permute.xlu1 %3026  ;;  %v3024_v62 = vunpack.i.h.bf16 %v3022_v58 }
  0x97   : > { %v3028_v41 = vunpack.i.l.bf16 %v3027_v61 }
  0x98   : > { %v578_v60 = vsel %vm541_vm0, %v3023_v45, 0.0  ;;  %v581_v45 = vsel %vm541_vm0, %v3024_v62, 0.0 }
  0x99   : > { %567 = vadd.xlane.f32.xlu1 %v566_v48  ;;  %558 = vadd.xlane.f32.xlu0 %v557_v18  ;;  %v3032_v51 = vpop.permute.xlu0 %3031  ;;  %v584_v18 = vsel %vm541_vm0, %v3028_v41, 0.0  ;;  %v575_v48 = vsel %vm541_vm0, %v3019_v28, 0.0 }
  0x9a   : > { %v3033_v25 = vunpack.i.l.bf16 %v3032_v51  ;;  %v3037_v59 = vpop.permute.xlu1 %3036 }
  0x9b   : > { %v3038_v14 = vunpack.i.l.bf16 %v3037_v59 }
  0x9c   : > { %v590_v40 = vsel %vm541_vm0, %v3033_v25, 0.0 }
  0x9d   : > { %573 = vadd.xlane.f32.xlu1 %v572_v35  ;;  %564 = vadd.xlane.f32.xlu0 %v563_v29  ;;  %v3042_v35 = vpop.permute.xlu0 %3041  ;;  %v3029_v29 = vunpack.i.h.bf16 %v3027_v61  ;;  %v596_v42 = vsel %vm541_vm0, %v3038_v14, 0.0 }
  0x9e   : > { %v3043_v22 = vunpack.i.l.bf16 %v3042_v35 }
  0x9f   : > { %v587_v41 = vsel %vm541_vm0, %v3029_v29, 0.0 }
  0xa0   : > { %v602_v58 = vsel %vm541_vm0, %v3043_v22, 0.0 }
  0xa1   : > { %579 = vadd.xlane.f32.xlu1 %v578_v60  ;;  %570 = vadd.xlane.f32.xlu0 %v569_v8  ;;  %v3047_v60 = vpop.permute.xlu1 %3046  ;;  %v3034_v8 = vunpack.i.h.bf16 %v3032_v51 }
  0xa2   : > { %v3048_v28 = vunpack.i.l.bf16 %v3047_v60 }
  0xa3   : > { %v593_v25 = vsel %vm541_vm0, %v3034_v8, 0.0 }
  0xa4   : > { %v608_v61 = vsel %vm541_vm0, %v3048_v28, 0.0 }
  0xa5   : > { %585 = vadd.xlane.f32.xlu1 %v584_v18  ;;  %576 = vadd.xlane.f32.xlu0 %v575_v48  ;;  %v3052_v18 = vpop.permute.xlu0 %3051  ;;  %v3039_v48 = vunpack.i.h.bf16 %v3037_v59 }
  0xa6   : > { %v3053_v62 = vunpack.i.l.bf16 %v3052_v18  ;;  %v3054_v28 = vunpack.i.h.bf16 %v3052_v18 }
  0xa7   : > { %v599_v14 = vsel %vm541_vm0, %v3039_v48, 0.0 }
  0xa8   : > { %v614_v51 = vsel %vm541_vm0, %v3053_v62, 0.0 }
  0xa9   : > { %591 = vadd.xlane.f32.xlu1 %v590_v40  ;;  %582 = vadd.xlane.f32.xlu0 %v581_v45  ;;  %v3057_v40 = vpop.permute.xlu1 %3056  ;;  %v3044_v45 = vunpack.i.h.bf16 %v3042_v35 }
  0xaa   : > { %v3058_v29 = vunpack.i.l.bf16 %v3057_v40 }
  0xab   : > { %v605_v22 = vsel %vm541_vm0, %v3044_v45, 0.0 }
  0xac   : > { %v620_v59 = vsel %vm541_vm0, %v3058_v29, 0.0 }
  0xad   : > { %597 = vadd.xlane.f32.xlu1 %v596_v42  ;;  %588 = vadd.xlane.f32.xlu0 %v587_v41  ;;  %v3062_v42 = vpop.permute.xlu0 %3061  ;;  %v3049_v41 = vunpack.i.h.bf16 %v3047_v60 }
  0xae   : > { %v3063_v8 = vunpack.i.l.bf16 %v3062_v42  ;;  %v3064_v29 = vunpack.i.h.bf16 %v3062_v42 }
  0xb0   : > { %v626_v35 = vsel %vm541_vm0, %v3063_v8, 0.0 }
  0xb1   : > { %603 = vadd.xlane.f32.xlu1 %v602_v58  ;;  %594 = vadd.xlane.f32.xlu0 %v593_v25  ;;  %v611_v58 = vsel %vm541_vm0, %v3049_v41, 0.0  ;;  %v3067_v25 = vpop.permute.xlu1 %3066  ;;  %v3072_v48 = vpop.permute.xlu0 %3071  ;;  %v629_v41 = vsel %vm541_vm0, %v3064_v29, 0.0 }
  0xb2   : > { %v3068_v62 = vunpack.i.l.bf16 %v3067_v25  ;;  %v3073_v60 = vunpack.i.l.bf16 %v3072_v48  ;;  %v3069_v8 = vunpack.i.h.bf16 %v3067_v25 }
  0xb4   : > { %v632_v45 = vsel %vm541_vm0, %v3068_v62, 0.0  ;;  %v638_v18 = vsel %vm541_vm0, %v3073_v60, 0.0 }
  0xb5   : > { %609 = vadd.xlane.f32.xlu1 %v608_v61  ;;  %600 = vadd.xlane.f32.xlu0 %v599_v14  ;;  %v617_v61 = vsel %vm541_vm0, %v3054_v28, 0.0  ;;  %v3059_v14 = vunpack.i.h.bf16 %v3057_v40  ;;  %v635_v28 = vsel %vm541_vm0, %v3069_v8, 0.0 }
  0xb9   : > { %615 = vadd.xlane.f32.xlu1 %v614_v51  ;;  %606 = vadd.xlane.f32.xlu0 %v605_v22  ;;  %v623_v51 = vsel %vm541_vm0, %v3059_v14, 0.0  ;;  %v3077_v22 = vpop.permute.xlu1 %3076 }
  0xbd   : > { %621 = vadd.xlane.f32.xlu1 %v620_v59  ;;  %612 = vadd.xlane.f32.xlu0 %v611_v58  ;;  %v3078_v59 = vunpack.i.l.bf16 %v3077_v22  ;;  %v3082_v58 = vpop.permute.xlu0 %3081  ;;  %v3087_v62 = vpop.permute.xlu1 %3086 }
  0xbe   : > { %v3088_v60 = vunpack.i.l.bf16 %v3087_v62 }
  0xbf   : > { %v644_v40 = vsel %vm541_vm0, %v3078_v59, 0.0 }
  0xc0   : > { %v656_v25 = vsel %vm541_vm0, %v3088_v60, 0.0 }
  0xc1   : > { %627 = vadd.xlane.f32.xlu1 %v626_v35  ;;  %618 = vadd.xlane.f32.xlu0 %v617_v61  ;;  %v3083_v35 = vunpack.i.l.bf16 %v3082_v58  ;;  %v3074_v61 = vunpack.i.h.bf16 %v3072_v48  ;;  %v3097_v59 = vpop.permute.xlu1 %3096 }
  0xc3   : > { %v650_v42 = vsel %vm541_vm0, %v3083_v35, 0.0  ;;  %v641_v14 = vsel %vm541_vm0, %v3074_v61, 0.0 }
  0xc5   : > { %633 = vadd.xlane.f32.xlu1 %v632_v45  ;;  %624 = vadd.xlane.f32.xlu0 %v623_v51  ;;  %v3079_v45 = vunpack.i.h.bf16 %v3077_v22  ;;  %v3092_v51 = vpop.permute.xlu0 %3091  ;;  %v3107_v60 = vpop.permute.xlu1 %3106 }
  0xc7   : > { %v647_v29 = vsel %vm541_vm0, %v3079_v45, 0.0 }
  0xc9   : > { %639 = vadd.xlane.f32.xlu1 %v638_v18  ;;  %630 = vadd.xlane.f32.xlu0 %v629_v41  ;;  %v3093_v18 = vunpack.i.l.bf16 %v3092_v51  ;;  %v3084_v41 = vunpack.i.h.bf16 %v3082_v58  ;;  %v3102_v35 = vpop.permute.xlu0 %3101 }
  0xcb   : > { %v662_v48 = vsel %vm541_vm0, %v3093_v18, 0.0  ;;  %v653_v8 = vsel %vm541_vm0, %v3084_v41, 0.0 }
  0xcd   : > { %645 = vadd.xlane.f32.xlu1 %v644_v40  ;;  %636 = vadd.xlane.f32.xlu0 %v635_v28  ;;  %v3098_v40 = vunpack.i.l.bf16 %v3097_v59  ;;  %v3089_v28 = vunpack.i.h.bf16 %v3087_v62  ;;  %v3112_v18 = vpop.permute.xlu0 %3111 }
  0xcf   : > { %v668_v22 = vsel %vm541_vm0, %v3098_v40, 0.0  ;;  %v659_v61 = vsel %vm541_vm0, %v3089_v28, 0.0  ;;  %v3117_v40 = vpop.permute.xlu1 %3116 }
  0xd1   : > { %651 = vadd.xlane.f32.xlu1 %v650_v42  ;;  %642 = vadd.xlane.f32.xlu0 %v641_v14  ;;  %v3103_v42 = vunpack.i.l.bf16 %v3102_v35  ;;  %v3094_v14 = vunpack.i.h.bf16 %v3092_v51 }
  0xd3   : > { %v674_v58 = vsel %vm541_vm0, %v3103_v42, 0.0  ;;  %v665_v45 = vsel %vm541_vm0, %v3094_v14, 0.0  ;;  %v3122_v42 = vpop.permute.xlu0 %3121 }
  0xd5   : > { %657 = vadd.xlane.f32.xlu1 %v656_v25  ;;  %648 = vadd.xlane.f32.xlu0 %v647_v29  ;;  %v3108_v25 = vunpack.i.l.bf16 %v3107_v60  ;;  %v3099_v29 = vunpack.i.h.bf16 %v3097_v59 }
  0xd7   : > { %v680_v62 = vsel %vm541_vm0, %v3108_v25, 0.0  ;;  %v671_v41 = vsel %vm541_vm0, %v3099_v29, 0.0  ;;  %v3127_v25 = vpop.permute.xlu1 %3126 }
  0xd9   : > { %663 = vadd.xlane.f32.xlu1 %v662_v48  ;;  %654 = vadd.xlane.f32.xlu0 %v653_v8  ;;  %v3113_v48 = vunpack.i.l.bf16 %v3112_v18  ;;  %v3104_v8 = vunpack.i.h.bf16 %v3102_v35 }
  0xdb   : > { %v686_v51 = vsel %vm541_vm0, %v3113_v48, 0.0  ;;  %v677_v28 = vsel %vm541_vm0, %v3104_v8, 0.0  ;;  %v3132_v48 = vpop.permute.xlu0 %3131 }
  0xdd   : > { %669 = vadd.xlane.f32.xlu1 %v668_v22  ;;  %660 = vadd.xlane.f32.xlu0 %v659_v61  ;;  %v3118_v22 = vunpack.i.l.bf16 %v3117_v40  ;;  %v3109_v61 = vunpack.i.h.bf16 %v3107_v60 }
  0xdf   : > { %v692_v59 = vsel %vm541_vm0, %v3118_v22, 0.0  ;;  %v683_v14 = vsel %vm541_vm0, %v3109_v61, 0.0  ;;  %v3137_v22 = vpop.permute.xlu1 %3136 }
  0xe1   : > { %675 = vadd.xlane.f32.xlu1 %v674_v58  ;;  %666 = vadd.xlane.f32.xlu0 %v665_v45  ;;  %v3123_v58 = vunpack.i.l.bf16 %v3122_v42  ;;  %v3114_v45 = vunpack.i.h.bf16 %v3112_v18 }
  0xe3   : > { %v698_v35 = vsel %vm541_vm0, %v3123_v58, 0.0  ;;  %v689_v29 = vsel %vm541_vm0, %v3114_v45, 0.0  ;;  %v3142_v58 = vpop.permute.xlu0 %3141 }
  0xe5   : > { %681 = vadd.xlane.f32.xlu1 %v680_v62  ;;  %672 = vadd.xlane.f32.xlu0 %v671_v41  ;;  %v3128_v62 = vunpack.i.l.bf16 %v3127_v25  ;;  %v3119_v41 = vunpack.i.h.bf16 %v3117_v40 }
  0xe7   : > { %v704_v60 = vsel %vm541_vm0, %v3128_v62, 0.0  ;;  %v695_v8 = vsel %vm541_vm0, %v3119_v41, 0.0  ;;  %v3147_v62 = vpop.permute.xlu1 %3146 }
  0xe9   : > { %687 = vadd.xlane.f32.xlu1 %v686_v51  ;;  %678 = vadd.xlane.f32.xlu0 %v677_v28  ;;  %v3133_v51 = vunpack.i.l.bf16 %v3132_v48  ;;  %v3124_v28 = vunpack.i.h.bf16 %v3122_v42 }
  0xeb   : > { %v710_v18 = vsel %vm541_vm0, %v3133_v51, 0.0  ;;  %v701_v61 = vsel %vm541_vm0, %v3124_v28, 0.0  ;;  %v3144_v28 = vunpack.i.h.bf16 %v3142_v58 }
  0xed   : > { %693 = vadd.xlane.f32.xlu1 %v692_v59  ;;  %684 = vadd.xlane.f32.xlu0 %v683_v14  ;;  %v3138_v59 = vunpack.i.l.bf16 %v3137_v22  ;;  %v3129_v14 = vunpack.i.h.bf16 %v3127_v25 }
  0xef   : > { %v716_v40 = vsel %vm541_vm0, %v3138_v59, 0.0  ;;  %v707_v45 = vsel %vm541_vm0, %v3129_v14, 0.0  ;;  %v1566_v59 = vlaneseq }
  0xf1   : > { %699 = vadd.xlane.f32.xlu1 %v698_v35  ;;  %690 = vadd.xlane.f32.xlu0 %v689_v29  ;;  %v3143_v35 = vunpack.i.l.bf16 %v3142_v58  ;;  %v3134_v29 = vunpack.i.h.bf16 %v3132_v48  ;;  %v725_v48 = vsel %vm541_vm0, %v3144_v28, 0.0  ;;  %v1567_v14 = vand.u32 127, %v1566_v59 }
  0xf3   : > { %v722_v42 = vsel %vm541_vm0, %v3143_v35, 0.0  ;;  %v713_v41 = vsel %vm541_vm0, %v3134_v29, 0.0  ;;  %v1568_v58 = vadd.s32 1, %v1567_v14 }
  0xf5   : > { %705 = vadd.xlane.f32.xlu1 %v704_v60  ;;  %696 = vadd.xlane.f32.xlu0 %v695_v8  ;;  %v3148_v60 = vunpack.i.l.bf16 %v3147_v62  ;;  %v3139_v8 = vunpack.i.h.bf16 %v3137_v22  ;;  %v734_v22 = vmul.f32 %v3321_v3, %v3321_v3 }
  0xf7   : > { %v728_v25 = vsel %vm541_vm0, %v3148_v60, 0.0  ;;  %v719_v51 = vsel %vm541_vm0, %v3139_v8, 0.0 }
  0xf9   : > { %711 = vadd.xlane.f32.xlu1 %v710_v18  ;;  %702 = vadd.xlane.f32.xlu0 %v701_v61  ;;  %v3149_v18 = vunpack.i.h.bf16 %v3147_v62  ;;  %v737_v62 = vmul.f32 %v3334_v11, %v3334_v11  ;;  %v735_v11 = vmul.f32 %v3323_v4, %v3323_v4  ;;  %v741_v4 = vmul.f32 %v3348_v21, %v3348_v21 }
  0xfb   : > { %v731_v61 = vsel %vm541_vm0, %v3149_v18, 0.0 }
  0xfd   : > { %717 = vadd.xlane.f32.xlu1 %v716_v40  ;;  %708 = vadd.xlane.f32.xlu0 %v707_v45  ;;  %v736_v40 = vmul.f32 %v3332_v10, %v3332_v10  ;;  %v1570_v45 = vshrl.u32 %v1566_v59, 7  ;;  %v739_v10 = vmul.f32 %v3330_v9, %v3330_v9 }
 0x101   : > { %723 = vadd.xlane.f32.xlu1 %v722_v42  ;;  %714 = vadd.xlane.f32.xlu0 %v713_v41  ;;  %v3682_v42 = vsub.s32 %v1568_v58, %v1570_v45 }
 0x103   : > { %5812 = vst [vmem:[#allocation21_spill] sm:$0xff] %v3682_v42 }
 0x105   : > { %729 = vadd.xlane.f32.xlu1 %v728_v25  ;;  %720 = vadd.xlane.f32.xlu0 %v719_v51 }
 0x109   : > { %726 = vadd.xlane.f32.xlu0 %v725_v48 }
 0x10d   : > { %732 = vadd.xlane.f32.xlu0 %v731_v61  ;;  %v738_v61 = vmul.f32 %v3326_v6, %v3326_v6 }
 0x116   : > { %862 = vrot.lane.b32.xlu1 %v734_v22, %s3286_s15 }
 0x11a   : > { %v3675_v35 = vpop.xlane.xlu1 %546  ;;  %v3677_v29 = vpop.xlane.xlu0 %543  ;;  %866 = vrot.lane.b32.xlu1 %v736_v40, %s3286_s15 }
 0x11b   : > { %v3685_v3 = vmul.f32 0.25, %v3675_v35  ;;  %v3688_v41 = vmul.f32 0.25, %v3677_v29 }
 0x11d   : > { %v1576_v51 = vrot.slane %v3685_v3, %v3682_v42  ;;  %v1572_v28 = vrot.slane %v3688_v41, %v3682_v42 }
 0x11e   : > { %v3692_v60 = vpop.xlane.xlu1 %555  ;;  %v3694_v8 = vpop.xlane.xlu0 %549  ;;  %868 = vrot.lane.b32.xlu1 %v737_v62, %s3286_s15  ;;  %v743_v62 = vmul.f32 %v3355_v24, %v3355_v24 }
 0x11f   : > { %v3700_v25 = vmul.f32 0.25, %v3694_v8  ;;  %v3722_v22 = vmul.f32 0.25, %v3692_v60  ;;  %v1826_v14 = vsel %vm1825_vm1, %v1576_v51, %v1572_v28  ;;  %v740_v51 = vmul.f32 %v3341_v16, %v3341_v16 }
 0x121   : > { %v1580_v9 = vrot.slane %v3700_v25, %v3682_v42  ;;  %v1588_v28 = vrot.slane %v3722_v22, %v3682_v42 }
 0x122   : > { %v3708_v48 = vpop.xlane.xlu1 %561  ;;  %v3710_v18 = vpop.xlane.xlu0 %552  ;;  %872 = vrot.lane.b32.xlu1 %v739_v10, %s3286_s15 }
 0x123   : > { %v3718_v59 = vmul.f32 0.25, %v3710_v18  ;;  %864 = vrot.lane.b32.xlu0 %v735_v11, %s3286_s15  ;;  %v1828_v21 = vsel %vm1827_vm2, %v1580_v9, %v1826_v14  ;;  %v3729_v58 = vmul.f32 0.25, %v3708_v48  ;;  %v745_v14 = vmul.f32 %v3362_v27, %v3362_v27 }
 0x125   : > { %v1584_v40 = vrot.slane %v3718_v59, %v3682_v42  ;;  %v1596_v9 = vrot.slane %v3729_v58, %v3682_v42 }
 0x126   : > { %v3731_v6 = vpop.xlane.xlu1 %567  ;;  %v3733_v45 = vpop.xlane.xlu0 %558  ;;  %876 = vrot.lane.b32.xlu1 %v741_v4, %s3286_s15 }
 0x127   : > { %v1830_v10 = vsel %vm1829_vm3, %v1584_v40, %v1828_v21  ;;  %v3741_v11 = vmul.f32 0.25, %v3733_v45  ;;  %870 = vrot.lane.b32.xlu0 %v738_v61, %s3286_s15 }
 0x128   : > { %v1832_v16 = vsel %vm1831_vm4, %v1588_v28, %v1830_v10  ;;  %v742_v10 = vmul.f32 %v3353_v23, %v3353_v23  ;;  %v3775_v28 = vmul.f32 0.25, %v3731_v6 }
 0x129   : > { %5813 = vst [vmem:[#allocation22_spill] sm:$0xff] %v3741_v11  ;;  %v1592_v24 = vrot.slane %v3741_v11, %v3682_v42 }
 0x12a   : > { %v3760_v4 = vpop.xlane.xlu1 %573  ;;  %v3762_v61 = vpop.xlane.xlu0 %564  ;;  %880 = vrot.lane.b32.xlu1 %v743_v62, %s3286_s15 }
 0x12b   : > { %v1834_v40 = vsel %vm1833_vm5, %v1592_v24, %v1832_v16  ;;  %v3769_v21 = vmul.f32 0.25, %v3762_v61  ;;  %874 = vrot.lane.b32.xlu0 %v740_v51, %s3286_s15  ;;  %v747_v51 = vmul.f32 %v3373_v34, %v3373_v34  ;;  %v3798_v16 = vmul.f32 0.25, %v3760_v4 }
 0x12c   : > { %v1836_v11 = vsel %vm1835_vm6, %v1596_v9, %v1834_v40  ;;  %v1604_v9 = vrot.slane %v3775_v28, %v3682_v42 }
 0x12d   : > { %5814 = vst [vmem:[#allocation23_spill] sm:$0xff] %v3769_v21  ;;  %1897 = vst.msk [vmem:[%s3757_s19 - $0x1] sm:$0xfe] %vm1896_vm7, %v1836_v11  ;;  %v1600_v27 = vrot.slane %v3769_v21, %v3682_v42  ;;  %v744_v11 = vmul.f32 %v3360_v26, %v3360_v26  ;;  %v749_v26 = vmul.f32 %v3380_v37, %v3380_v37 }
 0x12e   : > { %v3782_v62 = vpop.xlane.xlu1 %579  ;;  %v3784_v24 = vpop.xlane.xlu0 %570  ;;  %884 = vrot.lane.b32.xlu1 %v745_v14, %s3286_s15 }
 0x12f   : > { %5815 = vst [vmem:[#allocation24_spill] sm:$0xff] %v3782_v62  ;;  %5816 = vst [vmem:[#allocation25_spill] sm:$0xff] %v3784_v24  ;;  %v3790_v23 = vmul.f32 0.25, %v3784_v24  ;;  %878 = vrot.lane.b32.xlu0 %v742_v10, %s3286_s15  ;;  %v1838_v34 = vsel %vm1837_vm8, %v1604_v9, %v1600_v27  ;;  %v1612_v27 = vrot.slane %v3798_v16, %v3682_v42  ;;  %v3820_v9 = vmul.f32 0.25, %v3782_v62 }
 0x131   : > { %5817 = vst [vmem:[#allocation26_spill] sm:$0xff] %v3790_v23  ;;  %v1608_v14 = vrot.slane %v3790_v23, %v3682_v42  ;;  %v746_v23 = vmul.f32 %v3371_v33, %v3371_v33  ;;  %v751_v33 = vmul.f32 %v3391_v44, %v3391_v44 }
 0x132   : > { %v3803_v40 = vpop.xlane.xlu1 %585  ;;  %v3805_v24 = vpop.xlane.xlu0 %576  ;;  %888 = vrot.lane.b32.xlu1 %v747_v51, %s3286_s15 }
 0x133   : > { %5818 = vst [vmem:[#allocation27_spill] sm:$0xff] %v3803_v40  ;;  %5819 = vst [vmem:[#allocation28_spill] sm:$0xff] %v3805_v24  ;;  %v1839_v10 = vsel %vm1825_vm1, %v1608_v14, %v1838_v34  ;;  %v3812_v21 = vmul.f32 0.25, %v3805_v24  ;;  %882 = vrot.lane.b32.xlu0 %v744_v11, %s3286_s15  ;;  %v3825_v37 = vmul.f32 0.25, %v3803_v40  ;;  %v748_v40 = vmul.f32 %v3378_v36, %v3378_v36 }
 0x134   : > { %v1840_v14 = vsel %vm1827_vm2, %v1612_v27, %v1839_v10  ;;  %v1620_v10 = vrot.slane %v3820_v9, %v3682_v42  ;;  %v753_v36 = vmul.f32 %v3398_v47, %v3398_v47 }
 0x135   : > { %v1616_v51 = vrot.slane %v3812_v21, %v3682_v42  ;;  %v1628_v44 = vrot.slane %v3825_v37, %v3682_v42 }
 0x136   : > { %v3828_v34 = vpop.xlane.xlu1 %591  ;;  %v3830_v11 = vpop.xlane.xlu0 %582  ;;  %892 = vrot.lane.b32.xlu1 %v749_v26, %s3286_s15 }
 0x137   : > { %5820 = vst [vmem:[#allocation29_spill] sm:$0xff] %v3830_v11  ;;  %v1841_v24 = vsel %vm1829_vm3, %v1616_v51, %v1840_v14  ;;  %v3837_v62 = vmul.f32 0.25, %v3830_v11  ;;  %886 = vrot.lane.b32.xlu0 %v746_v23, %s3286_s15 }
 0x138   : > { %v1842_v27 = vsel %vm1831_vm4, %v1620_v10, %v1841_v24  ;;  %v750_v24 = vmul.f32 %v3389_v43, %v3389_v43  ;;  %v3864_v10 = vmul.f32 0.25, %v3828_v34 }
 0x139   : > { %5821 = vst [vmem:[#allocation30_spill] sm:$0xff] %v3837_v62  ;;  %v1624_v26 = vrot.slane %v3837_v62, %v3682_v42 }
 0x13a   : > { %v3849_v51 = vpop.xlane.xlu1 %597  ;;  %v3851_v14 = vpop.xlane.xlu0 %588  ;;  %896 = vrot.lane.b32.xlu1 %v751_v33, %s3286_s15 }
 0x13b   : > { %5822 = vst [vmem:[#allocation31_spill] sm:$0xff] %v3849_v51  ;;  %v1843_v23 = vsel %vm1833_vm5, %v1624_v26, %v1842_v27  ;;  %v3858_v11 = vmul.f32 0.25, %v3851_v14  ;;  %890 = vrot.lane.b32.xlu0 %v748_v40, %s3286_s15  ;;  %v755_v40 = vmul.f32 %v3409_v54, %v3409_v54  ;;  %v3887_v27 = vmul.f32 0.25, %v3849_v51 }
 0x13c   : > { %v1844_v62 = vsel %vm1835_vm6, %v1628_v44, %v1843_v23  ;;  %v1636_v44 = vrot.slane %v3864_v10, %v3682_v42 }
 0x13d   : > { %5823 = vst [vmem:[#allocation32_spill] sm:$0xff] %v3858_v11  ;;  %1899 = vst.msk [vmem:[%s3757_s19 + $0x7] sm:$0xff] %vm5792_vm9, %v1844_v62  ;;  %v1632_v47 = vrot.slane %v3858_v11, %v3682_v42  ;;  %v752_v62 = vmul.f32 %v3396_v46, %v3396_v46  ;;  %v757_v46 = vmul.f32 %v3416_v57, %v3416_v57 }
 0x13e   : > { %v3871_v33 = vpop.xlane.xlu1 %603  ;;  %v3873_v26 = vpop.xlane.xlu0 %594  ;;  %900 = vrot.lane.b32.xlu1 %v753_v36, %s3286_s15  ;;  %5827 = vst [vmem:[#allocation36_spill] sm:$0xff] %v3887_v27 }
 0x13f   : > { %5824 = vst [vmem:[#allocation33_spill] sm:$0xff] %v3871_v33  ;;  %5825 = vst [vmem:[#allocation34_spill] sm:$0xff] %v3873_v26  ;;  %v3879_v43 = vmul.f32 0.25, %v3873_v26  ;;  %894 = vrot.lane.b32.xlu0 %v750_v24, %s3286_s15  ;;  %v1845_v23 = vsel %vm1837_vm8, %v1636_v44, %v1632_v47  ;;  %v1644_v47 = vrot.slane %v3887_v27, %v3682_v42  ;;  %v3909_v44 = vmul.f32 0.25, %v3871_v33 }
 0x141   : > { %5826 = vst [vmem:[#allocation35_spill] sm:$0xff] %v3879_v43  ;;  %v1640_v36 = vrot.slane %v3879_v43, %v3682_v42  ;;  %v754_v43 = vmul.f32 %v3407_v53, %v3407_v53  ;;  %5831 = vst [vmem:[#allocation40_spill] sm:$0xff] %v3909_v44  ;;  %v759_v53 = vmul.f32 %v3427_v0, %v3427_v0 }
 0x142   : > { %v3892_v54 = vpop.xlane.xlu1 %609  ;;  %v3894_v26 = vpop.xlane.xlu0 %600  ;;  %904 = vrot.lane.b32.xlu1 %v755_v40, %s3286_s15 }
 0x143   : > { %5828 = vst [vmem:[#allocation37_spill] sm:$0xff] %v3892_v54  ;;  %5829 = vst [vmem:[#allocation38_spill] sm:$0xff] %v3894_v26  ;;  %v1846_v24 = vsel %vm1825_vm1, %v1640_v36, %v1845_v23  ;;  %v3901_v11 = vmul.f32 0.25, %v3894_v26  ;;  %898 = vrot.lane.b32.xlu0 %v752_v62, %s3286_s15  ;;  %v3914_v57 = vmul.f32 0.25, %v3892_v54 }
 0x144   : > { %v1847_v36 = vsel %vm1827_vm2, %v1644_v47, %v1846_v24  ;;  %v756_v24 = vmul.f32 %v3414_v56, %v3414_v56  ;;  %v1652_v47 = vrot.slane %v3909_v44, %v3682_v42  ;;  %v761_v56 = vmul.f32 %v3434_v5, %v3434_v5 }
 0x145   : > { %5830 = vst [vmem:[#allocation39_spill] sm:$0xff] %v3901_v11  ;;  %v1648_v40 = vrot.slane %v3901_v11, %v3682_v42  ;;  %5832 = vst [vmem:[#allocation41_spill] sm:$0xff] %v3914_v57  ;;  %v1660_v0 = vrot.slane %v3914_v57, %v3682_v42 }
 0x146   : > { %v3917_v23 = vpop.xlane.xlu1 %615  ;;  %v3919_v62 = vpop.xlane.xlu0 %606  ;;  %908 = vrot.lane.b32.xlu1 %v757_v46, %s3286_s15 }
 0x147   : > { %5833 = vst [vmem:[#allocation42_spill] sm:$0xff] %v3917_v23  ;;  %5834 = vst [vmem:[#allocation43_spill] sm:$0xff] %v3919_v62  ;;  %v1848_v26 = vsel %vm1829_vm3, %v1648_v40, %v1847_v36  ;;  %v3926_v33 = vmul.f32 0.25, %v3919_v62  ;;  %902 = vrot.lane.b32.xlu0 %v754_v43, %s3286_s15 }
 0x148   : > { %v1849_v40 = vsel %vm1831_vm4, %v1652_v47, %v1848_v26  ;;  %v3953_v26 = vmul.f32 0.25, %v3917_v23 }
 0x149   : > { %5835 = vst [vmem:[#allocation44_spill] sm:$0xff] %v3926_v33  ;;  %v1656_v46 = vrot.slane %v3926_v33, %v3682_v42  ;;  %v758_v33 = vmul.f32 %v3425_v63, %v3425_v63 }
 0x14a   : > { %v3938_v36 = vpop.xlane.xlu1 %621  ;;  %v3940_v62 = vpop.xlane.xlu0 %612  ;;  %912 = vrot.lane.b32.xlu1 %v759_v53, %s3286_s15  ;;  %5839 = vst [vmem:[#allocation48_spill] sm:$0xff] %v3953_v26 }
 0x14b   : > { %5836 = vst [vmem:[#allocation45_spill] sm:$0xff] %v3938_v36  ;;  %5837 = vst [vmem:[#allocation46_spill] sm:$0xff] %v3940_v62  ;;  %v1850_v43 = vsel %vm1833_vm5, %v1656_v46, %v1849_v40  ;;  %v3947_v54 = vmul.f32 0.25, %v3940_v62  ;;  %906 = vrot.lane.b32.xlu0 %v756_v24, %s3286_s15  ;;  %v763_v24 = vmul.f32 %v3445_v17, %v3445_v17 }
 0x14c   : > { %v1851_v47 = vsel %vm1835_vm6, %v1660_v0, %v1850_v43  ;;  %v760_v0 = vmul.f32 %v3432_v2, %v3432_v2  ;;  %v1668_v40 = vrot.slane %v3953_v26, %v3682_v42  ;;  %v3976_v43 = vmul.f32 0.25, %v3938_v36 }
 0x14d   : > { %5838 = vst [vmem:[#allocation47_spill] sm:$0xff] %v3947_v54  ;;  %1900 = vst.msk [vmem:[%s3757_s19 + $0xf] sm:$0xff] %vm5792_vm9, %v1851_v47  ;;  %v1664_v5 = vrot.slane %v3947_v54, %v3682_v42  ;;  %v765_v2 = vmul.f32 %v3452_v20, %v3452_v20 }
 0x14e   : > { %v3960_v53 = vpop.xlane.xlu1 %627  ;;  %v3962_v46 = vpop.xlane.xlu0 %618  ;;  %916 = vrot.lane.b32.xlu1 %v761_v56, %s3286_s15  ;;  %5843 = vst [vmem:[#allocation52_spill] sm:$0xff] %v3976_v43 }
 0x14f   : > { %5840 = vst [vmem:[#allocation49_spill] sm:$0xff] %v3960_v53  ;;  %5841 = vst [vmem:[#allocation50_spill] sm:$0xff] %v3962_v46  ;;  %v3968_v63 = vmul.f32 0.25, %v3962_v46  ;;  %910 = vrot.lane.b32.xlu0 %v758_v33, %s3286_s15  ;;  %v1852_v47 = vsel %vm1837_vm8, %v1668_v40, %v1664_v5  ;;  %v1676_v5 = vrot.slane %v3976_v43, %v3682_v42  ;;  %v3998_v40 = vmul.f32 0.25, %v3960_v53 }
 0x151   : > { %5842 = vst [vmem:[#allocation51_spill] sm:$0xff] %v3968_v63  ;;  %v1672_v56 = vrot.slane %v3968_v63, %v3682_v42  ;;  %v762_v63 = vmul.f32 %v3443_v15, %v3443_v15  ;;  %5847 = vst [vmem:[#allocation56_spill] sm:$0xff] %v3998_v40  ;;  %v767_v15 = vmul.f32 %v3463_v32, %v3463_v32 }
 0x152   : > { %v3981_v17 = vpop.xlane.xlu1 %633  ;;  %v3983_v46 = vpop.xlane.xlu0 %624  ;;  %920 = vrot.lane.b32.xlu1 %v763_v24, %s3286_s15 }
 0x153   : > { %5844 = vst [vmem:[#allocation53_spill] sm:$0xff] %v3981_v17  ;;  %5845 = vst [vmem:[#allocation54_spill] sm:$0xff] %v3983_v46  ;;  %v1853_v33 = vsel %vm1825_vm1, %v1672_v56, %v1852_v47  ;;  %v3990_v26 = vmul.f32 0.25, %v3983_v46  ;;  %914 = vrot.lane.b32.xlu0 %v760_v0, %s3286_s15  ;;  %v4003_v20 = vmul.f32 0.25, %v3981_v17 }
 0x154   : > { %v1854_v56 = vsel %vm1827_vm2, %v1676_v5, %v1853_v33  ;;  %v764_v33 = vmul.f32 %v3450_v19, %v3450_v19  ;;  %v1684_v5 = vrot.slane %v3998_v40, %v3682_v42  ;;  %v769_v19 = vmul.f32 %v3470_v39, %v3470_v39 }
 0x155   : > { %5846 = vst [vmem:[#allocation55_spill] sm:$0xff] %v3990_v26  ;;  %v1680_v24 = vrot.slane %v3990_v26, %v3682_v42  ;;  %5848 = vst [vmem:[#allocation57_spill] sm:$0xff] %v4003_v20  ;;  %v1692_v32 = vrot.slane %v4003_v20, %v3682_v42 }
 0x156   : > { %v4006_v47 = vpop.xlane.xlu1 %639  ;;  %v4008_v0 = vpop.xlane.xlu0 %630  ;;  %924 = vrot.lane.b32.xlu1 %v765_v2, %s3286_s15 }
 0x157   : > { %5849 = vst [vmem:[#allocation58_spill] sm:$0xff] %v4006_v47  ;;  %5850 = vst [vmem:[#allocation59_spill] sm:$0xff] %v4008_v0  ;;  %v1855_v46 = vsel %vm1829_vm3, %v1680_v24, %v1854_v56  ;;  %v4015_v53 = vmul.f32 0.25, %v4008_v0  ;;  %918 = vrot.lane.b32.xlu0 %v762_v63, %s3286_s15 }
 0x158   : > { %v1856_v24 = vsel %vm1831_vm4, %v1684_v5, %v1855_v46  ;;  %v4042_v46 = vmul.f32 0.25, %v4006_v47 }
 0x159   : > { %5851 = vst [vmem:[#allocation60_spill] sm:$0xff] %v4015_v53  ;;  %v1688_v2 = vrot.slane %v4015_v53, %v3682_v42  ;;  %v766_v53 = vmul.f32 %v3461_v31, %v3461_v31 }
 0x15a   : > { %v4027_v56 = vpop.xlane.xlu1 %645  ;;  %v4029_v0 = vpop.xlane.xlu0 %636  ;;  %928 = vrot.lane.b32.xlu1 %v767_v15, %s3286_s15  ;;  %5855 = vst [vmem:[#allocation64_spill] sm:$0xff] %v4042_v46 }
 0x15b   : > { %5852 = vst [vmem:[#allocation61_spill] sm:$0xff] %v4027_v56  ;;  %5853 = vst [vmem:[#allocation62_spill] sm:$0xff] %v4029_v0  ;;  %v1857_v63 = vsel %vm1833_vm5, %v1688_v2, %v1856_v24  ;;  %v4036_v17 = vmul.f32 0.25, %v4029_v0  ;;  %922 = vrot.lane.b32.xlu0 %v764_v33, %s3286_s15  ;;  %v771_v33 = vmul.f32 %v3481_v50, %v3481_v50 }
 0x15c   : > { %v1858_v5 = vsel %vm1835_vm6, %v1692_v32, %v1857_v63  ;;  %v768_v32 = vmul.f32 %v3468_v38, %v3468_v38  ;;  %v1700_v24 = vrot.slane %v4042_v46, %v3682_v42  ;;  %v4065_v63 = vmul.f32 0.25, %v4027_v56 }
 0x15d   : > { %5854 = vst [vmem:[#allocation63_spill] sm:$0xff] %v4036_v17  ;;  %1901 = vst.msk [vmem:[%s3757_s19 + $0x17] sm:$0xff] %vm5792_vm9, %v1858_v5  ;;  %v1696_v39 = vrot.slane %v4036_v17, %v3682_v42  ;;  %v773_v38 = vmul.f32 %v3488_v55, %v3488_v55  ;;  %v770_v56 = vmul.f32 %v3479_v49, %v3479_v49 }
 0x15e   : > { %v4049_v15 = vpop.xlane.xlu1 %651  ;;  %v4051_v2 = vpop.xlane.xlu0 %642  ;;  %932 = vrot.lane.b32.xlu1 %v769_v19, %s3286_s15  ;;  %5859 = vst [vmem:[#allocation68_spill] sm:$0xff] %v4065_v63  ;;  %v775_v49 = vmul.f32 %v3499_v7, %v3499_v7 }
 0x15f   : > { %5856 = vst [vmem:[#allocation65_spill] sm:$0xff] %v4049_v15  ;;  %5857 = vst [vmem:[#allocation66_spill] sm:$0xff] %v4051_v2  ;;  %v4057_v31 = vmul.f32 0.25, %v4051_v2  ;;  %926 = vrot.lane.b32.xlu0 %v766_v53, %s3286_s15  ;;  %v1859_v5 = vsel %vm1837_vm8, %v1700_v24, %v1696_v39  ;;  %v1708_v39 = vrot.slane %v4065_v63, %v3682_v42  ;;  %v4087_v24 = vmul.f32 0.25, %v4049_v15 }
 0x161   : > { %5858 = vst [vmem:[#allocation67_spill] sm:$0xff] %v4057_v31  ;;  %v1704_v19 = vrot.slane %v4057_v31, %v3682_v42  ;;  %5863 = vst [vmem:[#allocation72_spill] sm:$0xff] %v4087_v24 }
 0x162   : > { %v4070_v50 = vpop.xlane.xlu1 %657  ;;  %v4072_v2 = vpop.xlane.xlu0 %648  ;;  %936 = vrot.lane.b32.xlu1 %v771_v33, %s3286_s15 }
 0x163   : > { %5860 = vst [vmem:[#allocation69_spill] sm:$0xff] %v4070_v50  ;;  %5861 = vst [vmem:[#allocation70_spill] sm:$0xff] %v4072_v2  ;;  %v1860_v53 = vsel %vm1825_vm1, %v1704_v19, %v1859_v5  ;;  %v4079_v20 = vmul.f32 0.25, %v4072_v2  ;;  %930 = vrot.lane.b32.xlu0 %v768_v32, %s3286_s15  ;;  %v4092_v55 = vmul.f32 0.25, %v4070_v50 }
 0x164   : > { %v1861_v19 = vsel %vm1827_vm2, %v1708_v39, %v1860_v53  ;;  %v772_v53 = vmul.f32 %v3486_v52, %v3486_v52  ;;  %v1716_v39 = vrot.slane %v4087_v24, %v3682_v42  ;;  %v777_v52 = vmul.f32 %v3506_v13, %v3506_v13 }
 0x165   : > { %5862 = vst [vmem:[#allocation71_spill] sm:$0xff] %v4079_v20  ;;  %v1712_v33 = vrot.slane %v4079_v20, %v3682_v42  ;;  %5864 = vst [vmem:[#allocation73_spill] sm:$0xff] %v4092_v55  ;;  %v1724_v7 = vrot.slane %v4092_v55, %v3682_v42 }
 0x166   : > { %v4095_v5 = vpop.xlane.xlu1 %663  ;;  %v4097_v32 = vpop.xlane.xlu0 %654  ;;  %940 = vrot.lane.b32.xlu1 %v773_v38, %s3286_s15 }
 0x167   : > { %5865 = vst [vmem:[#allocation74_spill] sm:$0xff] %v4095_v5  ;;  %5866 = vst [vmem:[#allocation75_spill] sm:$0xff] %v4097_v32  ;;  %v1862_v2 = vsel %vm1829_vm3, %v1712_v33, %v1861_v19  ;;  %v4104_v15 = vmul.f32 0.25, %v4097_v32  ;;  %934 = vrot.lane.b32.xlu0 %v770_v56, %s3286_s15 }
 0x168   : > { %v1863_v33 = vsel %vm1831_vm4, %v1716_v39, %v1862_v2  ;;  %v4131_v2 = vmul.f32 0.25, %v4095_v5 }
 0x169   : > { %5867 = vst [vmem:[#allocation76_spill] sm:$0xff] %v4104_v15  ;;  %v1720_v38 = vrot.slane %v4104_v15, %v3682_v42  ;;  %v774_v15 = vmul.f32 %v3497_v1, %v3497_v1 }
 0x16a   : > { %v4116_v19 = vpop.xlane.xlu1 %669  ;;  %v4118_v32 = vpop.xlane.xlu0 %660  ;;  %944 = vrot.lane.b32.xlu1 %v775_v49, %s3286_s15  ;;  %5871 = vst [vmem:[#allocation80_spill] sm:$0xff] %v4131_v2 }
 0x16b   : > { %5868 = vst [vmem:[#allocation77_spill] sm:$0xff] %v4116_v19  ;;  %5869 = vst [vmem:[#allocation78_spill] sm:$0xff] %v4118_v32  ;;  %v1864_v56 = vsel %vm1833_vm5, %v1720_v38, %v1863_v33  ;;  %v4125_v50 = vmul.f32 0.25, %v4118_v32  ;;  %938 = vrot.lane.b32.xlu0 %v772_v53, %s3286_s15  ;;  %v779_v53 = vmul.f32 %v3517_v30, %v3517_v30 }
 0x16c   : > { %v1865_v39 = vsel %vm1835_vm6, %v1724_v7, %v1864_v56  ;;  %v776_v7 = vmul.f32 %v3504_v12, %v3504_v12  ;;  %v1732_v33 = vrot.slane %v4131_v2, %v3682_v42  ;;  %v4154_v56 = vmul.f32 0.25, %v4116_v19  ;;  %v5880_v19 = vld [vmem:[#allocation2_spill] sm:$0xff] }
 0x16d   : > { %5870 = vst [vmem:[#allocation79_spill] sm:$0xff] %v4125_v50  ;;  %1902 = vst.msk [vmem:[%s3757_s19 + $0x1f] sm:$0xff] %vm5792_vm9, %v1865_v39  ;;  %v1728_v13 = vrot.slane %v4125_v50, %v3682_v42 }
 0x16e   : > { %v4138_v49 = vpop.xlane.xlu1 %675  ;;  %v4140_v38 = vpop.xlane.xlu0 %666  ;;  %948 = vrot.lane.b32.xlu1 %v777_v52, %s3286_s15  ;;  %5875 = vst [vmem:[#allocation84_spill] sm:$0xff] %v4154_v56 }
 0x16f   : > { %5872 = vst [vmem:[#allocation81_spill] sm:$0xff] %v4138_v49  ;;  %5873 = vst [vmem:[#allocation82_spill] sm:$0xff] %v4140_v38  ;;  %v4146_v1 = vmul.f32 0.25, %v4140_v38  ;;  %942 = vrot.lane.b32.xlu0 %v774_v15, %s3286_s15  ;;  %v1866_v39 = vsel %vm1837_vm8, %v1732_v33, %v1728_v13  ;;  %v5878_v15 = vld [vmem:[#allocation4_spill] sm:$0xff]  ;;  %v1740_v13 = vrot.slane %v4154_v56, %v3682_v42  ;;  %v4176_v33 = vmul.f32 0.25, %v4138_v49 }
 0x170   : > { %v781_v12 = vmul.f32 %v5878_v15, %v5878_v15 }
 0x171   : > { %5874 = vst [vmem:[#allocation83_spill] sm:$0xff] %v4146_v1  ;;  %v1736_v52 = vrot.slane %v4146_v1, %v3682_v42  ;;  %v778_v1 = vmul.f32 %v5880_v19, %v5880_v19  ;;  %5881 = vst [vmem:[#allocation2_spill] sm:$0xff] %v4176_v33  ;;  %v5885_v19 = vld [vmem:[#allocation6_spill] sm:$0xff] }
 0x172   : > { %v4159_v30 = vpop.xlane.xlu1 %681  ;;  %v4161_v38 = vpop.xlane.xlu0 %672  ;;  %952 = vrot.lane.b32.xlu1 %v779_v53, %s3286_s15 }
 0x173   : > { %5876 = vst [vmem:[#allocation85_spill] sm:$0xff] %v4159_v30  ;;  %5877 = vst [vmem:[#allocation86_spill] sm:$0xff] %v4161_v38  ;;  %v1867_v55 = vsel %vm1825_vm1, %v1736_v52, %v1866_v39  ;;  %v4168_v20 = vmul.f32 0.25, %v4161_v38  ;;  %946 = vrot.lane.b32.xlu0 %v776_v7, %s3286_s15  ;;  %v4181_v15 = vmul.f32 0.25, %v4159_v30  ;;  %v783_v38 = vmul.f32 %v5885_v19, %v5885_v19  ;;  %v5887_v30 = vld [vmem:[#allocation3_spill] sm:$0xff] }
 0x174   : > { %v1868_v52 = vsel %vm1827_vm2, %v1740_v13, %v1867_v55  ;;  %v780_v55 = vmul.f32 %v5887_v30, %v5887_v30  ;;  %v1748_v13 = vrot.slane %v4176_v33, %v3682_v42 }
 0x175   : > { %5879 = vst [vmem:[#allocation4_spill] sm:$0xff] %v4168_v20  ;;  %v1744_v53 = vrot.slane %v4168_v20, %v3682_v42  ;;  %5882 = vst [vmem:[#allocation87_spill] sm:$0xff] %v4181_v15  ;;  %v1756_v19 = vrot.slane %v4181_v15, %v3682_v42 }
 0x176   : > { %v4184_v39 = vpop.xlane.xlu1 %687  ;;  %v4186_v7 = vpop.xlane.xlu0 %678  ;;  %956 = vrot.lane.b32.xlu1 %v781_v12, %s3286_s15 }
 0x177   : > { %5883 = vst [vmem:[#allocation88_spill] sm:$0xff] %v4184_v39  ;;  %5884 = vst [vmem:[#allocation89_spill] sm:$0xff] %v4186_v7  ;;  %v1869_v49 = vsel %vm1829_vm3, %v1744_v53, %v1868_v52  ;;  %v4193_v56 = vmul.f32 0.25, %v4186_v7  ;;  %950 = vrot.lane.b32.xlu0 %v778_v1, %s3286_s15  ;;  %v5890_v1 = vld [vmem:[#allocation8_spill] sm:$0xff] }
 0x178   : > { %v1870_v53 = vsel %vm1831_vm4, %v1748_v13, %v1869_v49  ;;  %v785_v30 = vmul.f32 %v5890_v1, %v5890_v1  ;;  %v4220_v49 = vmul.f32 0.25, %v4184_v39 }
 0x179   : > { %5886 = vst [vmem:[#allocation6_spill] sm:$0xff] %v4193_v56  ;;  %v1752_v12 = vrot.slane %v4193_v56, %v3682_v42  ;;  %v5892_v56 = vld [vmem:[#allocation5_spill] sm:$0xff] }
 0x17a   : > { %v4205_v52 = vpop.xlane.xlu1 %693  ;;  %v4207_v7 = vpop.xlane.xlu0 %684  ;;  %960 = vrot.lane.b32.xlu1 %v783_v38, %s3286_s15  ;;  %v782_v15 = vmul.f32 %v5892_v56, %v5892_v56  ;;  %5893 = vst [vmem:[#allocation5_spill] sm:$0xff] %v4220_v49 }
 0x17b   : > { %5888 = vst [vmem:[#allocation3_spill] sm:$0xff] %v4205_v52  ;;  %5889 = vst [vmem:[#allocation90_spill] sm:$0xff] %v4207_v7  ;;  %v1871_v20 = vsel %vm1833_vm5, %v1752_v12, %v1870_v53  ;;  %v4214_v33 = vmul.f32 0.25, %v4207_v7  ;;  %954 = vrot.lane.b32.xlu0 %v780_v55, %s3286_s15  ;;  %v5896_v55 = vld [vmem:[#allocation10_spill] sm:$0xff]  ;;  %v4243_v39 = vmul.f32 0.25, %v4205_v52  ;;  %v5904_v52 = vld [vmem:[#allocation9_spill] sm:$0xff] }
 0x17c   : > { %v1872_v13 = vsel %vm1835_vm6, %v1756_v19, %v1871_v20  ;;  %v787_v53 = vmul.f32 %v5896_v55, %v5896_v55  ;;  %v5898_v20 = vld [vmem:[#allocation7_spill] sm:$0xff] }
 0x17d   : > { %5891 = vst [vmem:[#allocation8_spill] sm:$0xff] %v4214_v33  ;;  %1903 = vst.msk [vmem:[%s3757_s19 + $0x27] sm:$0xff] %vm5792_vm9, %v1872_v13  ;;  %v1760_v38 = vrot.slane %v4214_v33, %v3682_v42  ;;  %v784_v19 = vmul.f32 %v5898_v20, %v5898_v20  ;;  %v1764_v13 = vrot.slane %v4220_v49, %v3682_v42 }
 0x17e   : > { %v4227_v1 = vpop.xlane.xlu1 %699  ;;  %v4229_v12 = vpop.xlane.xlu0 %690  ;;  %964 = vrot.lane.b32.xlu1 %v785_v30, %s3286_s15  ;;  %5899 = vst [vmem:[#allocation7_spill] sm:$0xff] %v4243_v39 }
 0x17f   : > { %5894 = vst [vmem:[#allocation91_spill] sm:$0xff] %v4227_v1  ;;  %5895 = vst [vmem:[#allocation92_spill] sm:$0xff] %v4229_v12  ;;  %v4235_v56 = vmul.f32 0.25, %v4229_v12  ;;  %958 = vrot.lane.b32.xlu0 %v782_v15, %s3286_s15  ;;  %v1873_v33 = vsel %vm1837_vm8, %v1764_v13, %v1760_v38  ;;  %v5902_v15 = vld [vmem:[#allocation13_spill] sm:$0xff]  ;;  %v1772_v38 = vrot.slane %v4243_v39, %v3682_v42  ;;  %v4265_v13 = vmul.f32 0.25, %v4227_v1 }
 0x180   : > { %v790_v20 = vmul.f32 %v5902_v15, %v5902_v15 }
 0x181   : > { %5897 = vst [vmem:[#allocation10_spill] sm:$0xff] %v4235_v56  ;;  %v1768_v30 = vrot.slane %v4235_v56, %v3682_v42  ;;  %v786_v56 = vmul.f32 %v5904_v52, %v5904_v52  ;;  %5905 = vst [vmem:[#allocation9_spill] sm:$0xff] %v4265_v13  ;;  %v5909_v52 = vld [vmem:[#allocation15_spill] sm:$0xff] }
 0x182   : > { %v4248_v55 = vpop.xlane.xlu1 %705  ;;  %v4250_v12 = vpop.xlane.xlu0 %696  ;;  %968 = vrot.lane.b32.xlu1 %v787_v53, %s3286_s15 }
 0x183   : > { %5900 = vst [vmem:[#allocation93_spill] sm:$0xff] %v4248_v55  ;;  %5901 = vst [vmem:[#allocation94_spill] sm:$0xff] %v4250_v12  ;;  %v1874_v7 = vsel %vm1825_vm1, %v1768_v30, %v1873_v33  ;;  %v4257_v49 = vmul.f32 0.25, %v4250_v12  ;;  %962 = vrot.lane.b32.xlu0 %v784_v19, %s3286_s15  ;;  %v4270_v15 = vmul.f32 0.25, %v4248_v55  ;;  %v792_v12 = vmul.f32 %v5909_v52, %v5909_v52  ;;  %v5911_v55 = vld [vmem:[#allocation12_spill] sm:$0xff] }
 0x184   : > { %v1875_v33 = vsel %vm1827_vm2, %v1772_v38, %v1874_v7  ;;  %v789_v7 = vmul.f32 %v5911_v55, %v5911_v55  ;;  %v1780_v38 = vrot.slane %v4265_v13, %v3682_v42 }
 0x185   : > { %5903 = vst [vmem:[#allocation13_spill] sm:$0xff] %v4257_v49  ;;  %v1776_v53 = vrot.slane %v4257_v49, %v3682_v42  ;;  %5906 = vst [vmem:[#allocation95_spill] sm:$0xff] %v4270_v15  ;;  %v1788_v52 = vrot.slane %v4270_v15, %v3682_v42 }
 0x186   : > { %v4273_v30 = vpop.xlane.xlu1 %711  ;;  %v4275_v19 = vpop.xlane.xlu0 %702  ;;  %974 = vrot.lane.b32.xlu1 %v790_v20, %s3286_s15 }
 0x187   : > { %5907 = vst [vmem:[#allocation96_spill] sm:$0xff] %v4273_v30  ;;  %5908 = vst [vmem:[#allocation97_spill] sm:$0xff] %v4275_v19  ;;  %v1876_v1 = vsel %vm1829_vm3, %v1776_v53, %v1875_v33  ;;  %v4282_v39 = vmul.f32 0.25, %v4275_v19  ;;  %966 = vrot.lane.b32.xlu0 %v786_v56, %s3286_s15  ;;  %v5914_v56 = vld [vmem:[#allocation17_spill] sm:$0xff] }
 0x188   : > { %v1877_v53 = vsel %vm1831_vm4, %v1780_v38, %v1876_v1  ;;  %v794_v55 = vmul.f32 %v5914_v56, %v5914_v56  ;;  %v4309_v1 = vmul.f32 0.25, %v4273_v30 }
 0x189   : > { %5910 = vst [vmem:[#allocation15_spill] sm:$0xff] %v4282_v39  ;;  %v1784_v20 = vrot.slane %v4282_v39, %v3682_v42  ;;  %v5916_v39 = vld [vmem:[#allocation14_spill] sm:$0xff] }
 0x18a   : > { %v4294_v33 = vpop.xlane.xlu1 %717  ;;  %v4296_v19 = vpop.xlane.xlu0 %708  ;;  %978 = vrot.lane.b32.xlu1 %v792_v12, %s3286_s15  ;;  %v791_v15 = vmul.f32 %v5916_v39, %v5916_v39  ;;  %5917 = vst [vmem:[#allocation14_spill] sm:$0xff] %v4309_v1 }
 0x18b   : > { %5912 = vst [vmem:[#allocation12_spill] sm:$0xff] %v4294_v33  ;;  %5913 = vst [vmem:[#allocation98_spill] sm:$0xff] %v4296_v19  ;;  %v1878_v49 = vsel %vm1833_vm5, %v1784_v20, %v1877_v53  ;;  %v4303_v13 = vmul.f32 0.25, %v4296_v19  ;;  %972 = vrot.lane.b32.xlu0 %v789_v7, %s3286_s15  ;;  %v5920_v7 = vld [vmem:[#allocation11_spill] sm:$0xff] }
 0x18c   : > { %v1879_v38 = vsel %vm1835_vm6, %v1788_v52, %v1878_v49  ;;  %v788_v53 = vmul.f32 %v5920_v7, %v5920_v7  ;;  %v5922_v49 = vld [vmem:[#allocation16_spill] sm:$0xff] }
 0x18d   : > { %5915 = vst [vmem:[#allocation17_spill] sm:$0xff] %v4303_v13  ;;  %1904 = vst.msk [vmem:[%s3757_s19 + $0x2f] sm:$0xff] %vm5792_vm9, %v1879_v38  ;;  %v1792_v12 = vrot.slane %v4303_v13, %v3682_v42  ;;  %v793_v52 = vmul.f32 %v5922_v49, %v5922_v49  ;;  %v1796_v38 = vrot.slane %v4309_v1, %v3682_v42  ;;  %v4332_v13 = vmul.f32 0.25, %v4294_v33  ;;  %v5928_v33 = vld [vmem:[#allocation18_spill] sm:$0xff] }
 0x18e   : > { %v4316_v56 = vpop.xlane.xlu1 %723  ;;  %v4318_v20 = vpop.xlane.xlu0 %714  ;;  %982 = vrot.lane.b32.xlu1 %v794_v55, %s3286_s15 }
 0x18f   : > { %5918 = vst [vmem:[#allocation99_spill] sm:$0xff] %v4316_v56  ;;  %5919 = vst [vmem:[#allocation100_spill] sm:$0xff] %v4318_v20  ;;  %v4324_v39 = vmul.f32 0.25, %v4318_v20  ;;  %976 = vrot.lane.b32.xlu0 %v791_v15, %s3286_s15  ;;  %v1880_v19 = vsel %vm1837_vm8, %v1796_v38, %v1792_v12  ;;  %v5926_v15 = vld [vmem:[#allocation20_spill] sm:$0xff]  ;;  %v1804_v12 = vrot.slane %v4332_v13, %v3682_v42  ;;  %v4354_v38 = vmul.f32 0.25, %v4316_v56  ;;  %v5933_v56 = vld [vmem:[#allocation19_spill] sm:$0xff] }
 0x190   : > { %5923 = vst [vmem:[#allocation16_spill] sm:$0xff] %v4332_v13  ;;  %v797_v49 = vmul.f32 %v5926_v15, %v5926_v15 }
 0x191   : > { %5921 = vst [vmem:[#allocation11_spill] sm:$0xff] %v4324_v39  ;;  %v1800_v55 = vrot.slane %v4324_v39, %v3682_v42  ;;  %v795_v39 = vmul.f32 %v5928_v33, %v5928_v33  ;;  %5929 = vst [vmem:[#allocation18_spill] sm:$0xff] %v4354_v38 }
 0x192   : > { %v4337_v7 = vpop.xlane.xlu1 %729  ;;  %v4339_v20 = vpop.xlane.xlu0 %720  ;;  %970 = vrot.lane.b32.xlu1 %v788_v53, %s3286_s15 }
 0x193   : > { %5924 = vst [vmem:[#allocation101_spill] sm:$0xff] %v4337_v7  ;;  %5925 = vst [vmem:[#allocation102_spill] sm:$0xff] %v4339_v20  ;;  %v1881_v30 = vsel %vm1825_vm1, %v1800_v55, %v1880_v19  ;;  %v4346_v1 = vmul.f32 0.25, %v4339_v20  ;;  %980 = vrot.lane.b32.xlu0 %v793_v52, %s3286_s15  ;;  %v4359_v15 = vmul.f32 0.25, %v4337_v7 }
 0x194   : > { %v1882_v19 = vsel %vm1827_vm2, %v1804_v12, %v1881_v30  ;;  %v1812_v30 = vrot.slane %v4354_v38, %v3682_v42 }
 0x195   : > { %5927 = vst [vmem:[#allocation20_spill] sm:$0xff] %v4346_v1  ;;  %v1808_v53 = vrot.slane %v4346_v1, %v3682_v42  ;;  %5930 = vst [vmem:[#allocation103_spill] sm:$0xff] %v4359_v15  ;;  %v796_v1 = vmul.f32 %v5933_v56, %v5933_v56 }
 0x196   : > { %v4362_v55 = vpop.xlane.xlu0 %726  ;;  %988 = vrot.lane.b32.xlu1 %v797_v49, %s3286_s15  ;;  %v863_v52 = vpop.permute.xlu1 %862  ;;  %v1820_v49 = vrot.slane %v4359_v15, %v3682_v42 }
 0x197   : > { %5931 = vst [vmem:[#allocation104_spill] sm:$0xff] %v4362_v55  ;;  %v1883_v33 = vsel %vm1829_vm3, %v1808_v53, %v1882_v19  ;;  %v4367_v20 = vmul.f32 0.25, %v4362_v55  ;;  %984 = vrot.lane.b32.xlu0 %v795_v39, %s3286_s15  ;;  %v1054_v31 = vsel %vm541_vm0, %v863_v52, 0.0 }
 0x198   : > { %v1884_v53 = vsel %vm1831_vm4, %v1812_v30, %v1883_v33 }
 0x199   : > { %5932 = vst [vmem:[#allocation105_spill] sm:$0xff] %v4367_v20  ;;  %v1816_v12 = vrot.slane %v4367_v20, %v3682_v42 }
 0x19a   : > { %v4379_v19 = vpop.xlane.xlu0 %732  ;;  %v867_v7 = vpop.permute.xlu1 %866 }
 0x19b   : > { %5934 = vst [vmem:[#allocation19_spill] sm:$0xff] %v4379_v19  ;;  %v1885_v39 = vsel %vm1833_vm5, %v1816_v12, %v1884_v53  ;;  %v4383_v55 = vmul.f32 0.25, %v4379_v19  ;;  %986 = vrot.lane.b32.xlu0 %v796_v1, %s3286_s15  ;;  %v1060_v5 = vsel %vm541_vm0, %v867_v7, 0.0 }
 0x19c   : > { %v1886_v56 = vsel %vm1835_vm6, %v1820_v49, %v1885_v39 }
 0x19d   : > { %5935 = vst [vmem:[#allocation106_spill] sm:$0xff] %v4383_v55  ;;  %1905 = vst.msk [vmem:[%s3757_s19 + $0x37] sm:$0xff] %vm5792_vm9, %v1886_v56  ;;  %v1824_v15 = vrot.slane %v4383_v55, %v3682_v42 }
 0x19e   : > { %v865_v20 = vpop.permute.xlu0 %864  ;;  %v869_v33 = vpop.permute.xlu1 %868 }
 0x19f   : > { %1907 = vst.msk [vmem:[%s3757_s19 + $0x3f] sm:$0x1] %vm5791_vm10, %v1824_v15  ;;  %v1057_v55 = vsel %vm541_vm0, %v865_v20, 0.0  ;;  %v1063_v20 = vsel %vm541_vm0, %v869_v33, 0.0 }
 0x1a2   : > { %v871_v30 = vpop.permute.xlu0 %870  ;;  %v873_v38 = vpop.permute.xlu1 %872 }
 0x1a3   : > { %v1066_v2 = vsel %vm541_vm0, %v871_v30, 0.0  ;;  %v1069_v7 = vsel %vm541_vm0, %v873_v38, 0.0 }
 0x1a6   : > { %v875_v12 = vpop.permute.xlu0 %874  ;;  %v877_v53 = vpop.permute.xlu1 %876 }
 0x1a7   : > { %v1072_v46 = vsel %vm541_vm0, %v875_v12, 0.0  ;;  %v1075_v12 = vsel %vm541_vm0, %v877_v53, 0.0 }
 0x1aa   : > { %v879_v19 = vpop.permute.xlu0 %878  ;;  %v881_v13 = vpop.permute.xlu1 %880 }
 0x1ae   : > { %v883_v24 = vpop.permute.xlu0 %882  ;;  %v885_v1 = vpop.permute.xlu1 %884 }
 0x1b2   : > { %v4393_v63 = vpop.permute.xlu0 %886  ;;  %v4395_v49 = vpop.permute.xlu1 %888 }
 0x1b6   : > { %v4397_v39 = vpop.permute.xlu0 %890  ;;  %v893_v56 = vpop.permute.xlu1 %892 }
 0x1b7   : > { %v1099_v47 = vsel %vm541_vm0, %v893_v56, 0.0 }
 0x1ba   : > { %v895_v15 = vpop.permute.xlu0 %894  ;;  %1058 = vadd.xlane.f32.xlu1 %v1057_v55  ;;  %1055 = vadd.xlane.f32.xlu0 %v1054_v31  ;;  %v4401_v26 = vpop.permute.xlu1 %896  ;;  %v1078_v55 = vsel %vm541_vm0, %v879_v19, 0.0 }
 0x1be   : > { %v4405_v50 = vpop.permute.xlu0 %898  ;;  %1067 = vadd.xlane.f32.xlu1 %v1066_v2  ;;  %1061 = vadd.xlane.f32.xlu0 %v1060_v5  ;;  %v4407_v32 = vpop.permute.xlu1 %900  ;;  %v1084_v2 = vsel %vm541_vm0, %v883_v24, 0.0 }
 0x1c2   : > { %v4411_v52 = vpop.permute.xlu0 %902  ;;  %1073 = vadd.xlane.f32.xlu1 %v1072_v46  ;;  %1064 = vadd.xlane.f32.xlu0 %v1063_v20  ;;  %v4413_v31 = vpop.permute.xlu1 %904  ;;  %v1081_v20 = vsel %vm541_vm0, %v881_v13, 0.0  ;;  %v1102_v13 = vsel %vm541_vm0, %v895_v15, 0.0 }
 0x1c6   : > { %v4417_v30 = vpop.permute.xlu0 %906  ;;  %1079 = vadd.xlane.f32.xlu1 %v1078_v55  ;;  %1070 = vadd.xlane.f32.xlu0 %v1069_v7  ;;  %v909_v5 = vpop.permute.xlu1 %908  ;;  %v1087_v55 = vsel %vm541_vm0, %v885_v1, 0.0 }
 0x1c7   : > { %v1123_v24 = vsel %vm541_vm0, %v909_v5, 0.0 }
 0x1ca   : > { %v911_v33 = vpop.permute.xlu0 %910  ;;  %1085 = vadd.xlane.f32.xlu1 %v1084_v2  ;;  %1076 = vadd.xlane.f32.xlu0 %v1075_v12  ;;  %v913_v46 = vpop.permute.xlu1 %912 }
 0x1cb   : > { %v1126_v12 = vsel %vm541_vm0, %v911_v33, 0.0 }
 0x1ce   : > { %v4423_v19 = vpop.permute.xlu0 %914  ;;  %1082 = vadd.xlane.f32.xlu0 %v1081_v20  ;;  %1100 = vadd.xlane.f32.xlu1 %v1099_v47  ;;  %v4425_v38 = vpop.permute.xlu1 %916 }
 0x1d2   : > { %v4429_v7 = vpop.permute.xlu0 %918  ;;  %1088 = vadd.xlane.f32.xlu0 %v1087_v55  ;;  %1124 = vadd.xlane.f32.xlu1 %v1123_v24  ;;  %v4431_v53 = vpop.permute.xlu1 %920 }
 0x1d6   : > { %v4434_v2 = vpop.permute.xlu0 %922  ;;  %1103 = vadd.xlane.f32.xlu0 %v1102_v13  ;;  %v925_v56 = vpop.permute.xlu1 %924 }
 0x1d7   : > { %v1147_v47 = vsel %vm541_vm0, %v925_v56, 0.0 }
 0x1d8   : > { %1148 = vadd.xlane.f32.xlu1 %v1147_v47 }
 0x1da   : > { %v927_v1 = vpop.permute.xlu0 %926  ;;  %1127 = vadd.xlane.f32.xlu0 %v1126_v12  ;;  %v929_v5 = vpop.permute.xlu1 %928 }
 0x1db   : > { %v1150_v20 = vsel %vm541_vm0, %v927_v1, 0.0 }
 0x1de   : > { %v931_v55 = vpop.permute.xlu0 %930  ;;  %1151 = vadd.xlane.f32.xlu0 %v1150_v20  ;;  %v4439_v24 = vpop.permute.xlu1 %932 }
 0x1e2   : > { %v4441_v40 = vpop.permute.xlu0 %934  ;;  %v4443_v15 = vpop.permute.xlu1 %936 }
 0x1e6   : > { %v4445_v13 = vpop.permute.xlu0 %938  ;;  %v941_v42 = vpop.permute.xlu1 %940 }
 0x1e7   : > { %v1171_v56 = vsel %vm541_vm0, %v941_v42, 0.0 }
 0x1e8   : > { %1172 = vadd.xlane.f32.xlu1 %v1171_v56 }
 0x1ea   : > { %v943_v33 = vpop.permute.xlu0 %942  ;;  %v945_v47 = vpop.permute.xlu1 %944 }
 0x1eb   : > { %v1174_v12 = vsel %vm541_vm0, %v943_v33, 0.0  ;;  %v1177_v51 = vsel %vm541_vm0, %v945_v47, 0.0 }
 0x1ec   : > { %1175 = vadd.xlane.f32.xlu0 %v1174_v12 }
 0x1ee   : > { %v947_v1 = vpop.permute.xlu0 %946  ;;  %v949_v17 = vpop.permute.xlu1 %948 }
 0x1f2   : > { %v4449_v20 = vpop.permute.xlu0 %950  ;;  %v4451_v0 = vpop.permute.xlu1 %952 }
 0x1f6   : > { %v4453_v43 = vpop.permute.xlu0 %954  ;;  %v957_v36 = vpop.permute.xlu1 %956 }
 0x1f7   : > { %5936 = vst [vmem:[#allocation107_spill] sm:$0xff] %v4453_v43  ;;  %v1195_v23 = vsel %vm541_vm0, %v957_v36, 0.0  ;;  %v1129_v36 = vsel %vm541_vm0, %v913_v46, 0.0  ;;  %v1156_v46 = vsel %vm541_vm0, %v931_v55, 0.0  ;;  %v1159_v55 = vsel %vm541_vm0, %v4439_v24, 0.0 }
 0x1f8   : > { %1196 = vadd.xlane.f32.xlu1 %v1195_v23  ;;  %v1105_v23 = vsel %vm541_vm0, %v4401_v26, 0.0  ;;  %v1132_v26 = vsel %vm541_vm0, %v4423_v19, 0.0  ;;  %v1135_v19 = vsel %vm541_vm0, %v4425_v38, 0.0  ;;  %v1114_v38 = vsel %vm541_vm0, %v4411_v52, 0.0 }
 0x1f9   : > { %v1138_v24 = vsel %vm541_vm0, %v4429_v7, 0.0  ;;  %v1093_v52 = vsel %vm541_vm0, %v4395_v49, 0.0  ;;  %v1141_v7 = vsel %vm541_vm0, %v4431_v53, 0.0  ;;  %v1310_v53 = vmul.f32 %v3688_v41, %v3677_v29 }
 0x1fa   : > { %v959_v54 = vpop.permute.xlu0 %958  ;;  %v961_v42 = vpop.permute.xlu1 %960  ;;  %v1314_v29 = vmul.f32 %v3722_v22, %v3692_v60  ;;  %v1120_v41 = vsel %vm541_vm0, %v4417_v30, 0.0  ;;  %v5937_v60 = vld [vmem:[#allocation22_spill] sm:$0xff]  ;;  %v1318_v30 = vmul.f32 %v3775_v28, %v3731_v6  ;;  %v1168_v6 = vsel %vm541_vm0, %v4445_v13, 0.0 }
 0x1fb   : > { %v1198_v56 = vsel %vm541_vm0, %v959_v54, 0.0  ;;  %v1315_v22 = vmul.f32 %v5937_v60, %v3733_v45  ;;  %v4567_v13 = vmul.f32 %v3864_v10, %v3828_v34  ;;  %v5960_v60 = vld [vmem:[#allocation42_spill] sm:$0xff] }
 0x1fc   : > { %1199 = vadd.xlane.f32.xlu0 %v1198_v56  ;;  %v1153_v56 = vsel %vm541_vm0, %v929_v5, 0.0  ;;  %v1180_v5 = vsel %vm541_vm0, %v947_v1, 0.0  ;;  %v1183_v1 = vsel %vm541_vm0, %v949_v17, 0.0  ;;  %v1162_v17 = vsel %vm541_vm0, %v4441_v40, 0.0 }
 0x1fe   : > { %v963_v62 = vpop.permute.xlu0 %962  ;;  %v965_v33 = vpop.permute.xlu1 %964 }
 0x1ff   : > { %v1204_v47 = vsel %vm541_vm0, %v963_v62, 0.0  ;;  %v1207_v62 = vsel %vm541_vm0, %v965_v33, 0.0  ;;  %v1186_v33 = vsel %vm541_vm0, %v4449_v20, 0.0  ;;  %v1117_v20 = vsel %vm541_vm0, %v4413_v31, 0.0 }
 0x200   : > { %v1311_v31 = vmul.f32 %v3685_v3, %v3675_v35 }
 0x202   : > { %v967_v12 = vpop.permute.xlu0 %966  ;;  %v4457_v57 = vpop.permute.xlu1 %968 }
 0x206   : > { %v973_v11 = vpop.permute.xlu0 %972  ;;  %v975_v44 = vpop.permute.xlu1 %974 }
 0x207   : > { %v1219_v27 = vsel %vm541_vm0, %v973_v11, 0.0  ;;  %v1222_v43 = vsel %vm541_vm0, %v975_v44, 0.0  ;;  %v1201_v44 = vsel %vm541_vm0, %v961_v42, 0.0 }
 0x208   : > { %1220 = vadd.xlane.f32.xlu1 %v1219_v27  ;;  %1223 = vadd.xlane.f32.xlu0 %v1222_v43  ;;  %v1108_v27 = vsel %vm541_vm0, %v4405_v50, 0.0  ;;  %v1111_v50 = vsel %vm541_vm0, %v4407_v32, 0.0  ;;  %v1090_v32 = vsel %vm541_vm0, %v4393_v63, 0.0 }
 0x20a   : > { %v977_v54 = vpop.permute.xlu0 %976  ;;  %v979_v43 = vpop.permute.xlu1 %978 }
 0x20b   : > { %v1225_v11 = vsel %vm541_vm0, %v977_v54, 0.0 }
 0x20c   : > { %1106 = vadd.xlane.f32.xlu1 %v1105_v23  ;;  %1130 = vadd.xlane.f32.xlu0 %v1129_v36  ;;  %v1210_v36 = vsel %vm541_vm0, %v967_v12, 0.0  ;;  %v1165_v12 = vsel %vm541_vm0, %v4443_v15, 0.0 }
 0x20e   : > { %v981_v42 = vpop.permute.xlu0 %980  ;;  %v983_v54 = vpop.permute.xlu1 %982 }
 0x20f   : > { %v1231_v23 = vsel %vm541_vm0, %v981_v42, 0.0  ;;  %v1234_v63 = vsel %vm541_vm0, %v983_v54, 0.0  ;;  %v5945_v54 = vld [vmem:[#allocation31_spill] sm:$0xff] }
 0x210   : > { %1154 = vadd.xlane.f32.xlu1 %v1153_v56  ;;  %1178 = vadd.xlane.f32.xlu0 %v1177_v51  ;;  %v1228_v51 = vsel %vm541_vm0, %v979_v43, 0.0 }
 0x212   : > { %v985_v40 = vpop.permute.xlu0 %984  ;;  %v4499_v56 = vpop.permute.xlu1 %970 }
 0x213   : > { %v1237_v15 = vsel %vm541_vm0, %v985_v40, 0.0  ;;  %v5948_v40 = vld [vmem:[#allocation30_spill] sm:$0xff] }
 0x214   : > { %1202 = vadd.xlane.f32.xlu1 %v1201_v44  ;;  %1226 = vadd.xlane.f32.xlu0 %v1225_v11  ;;  %v1189_v11 = vsel %vm541_vm0, %v4451_v0, 0.0 }
 0x216   : > { %v4509_v49 = vpop.permute.xlu0 %986  ;;  %v4511_v44 = vpop.permute.xlu1 %988 }
 0x218   : > { %1109 = vadd.xlane.f32.xlu1 %v1108_v27  ;;  %1133 = vadd.xlane.f32.xlu0 %v1132_v26  ;;  %v1213_v27 = vsel %vm541_vm0, %v4457_v57, 0.0  ;;  %v1096_v57 = vsel %vm541_vm0, %v4397_v39, 0.0  ;;  %v5938_v39 = vld [vmem:[#allocation23_spill] sm:$0xff] }
 0x219   : > { %v4538_v42 = vmul.f32 %v5938_v39, %v3762_v61 }
 0x21c   : > { %1157 = vadd.xlane.f32.xlu1 %v1156_v46  ;;  %1181 = vadd.xlane.f32.xlu0 %v1180_v5 }
 0x220   : > { %1205 = vadd.xlane.f32.xlu1 %v1204_v47  ;;  %1229 = vadd.xlane.f32.xlu0 %v1228_v51  ;;  %v1312_v47 = vmul.f32 %v3700_v25, %v3694_v8 }
 0x224   : > { %1112 = vadd.xlane.f32.xlu1 %v1111_v50  ;;  %1136 = vadd.xlane.f32.xlu0 %v1135_v19  ;;  %v1313_v50 = vmul.f32 %v3718_v59, %v3710_v18  ;;  %v1316_v19 = vmul.f32 %v3729_v58, %v3708_v48  ;;  %v4542_v18 = vmul.f32 %v3798_v16, %v3760_v4  ;;  %v5941_v4 = vld [vmem:[#allocation24_spill] sm:$0xff] }
 0x225   : > { %v4558_v16 = vmul.f32 %v3820_v9, %v5941_v4  ;;  %v5944_v9 = vld [vmem:[#allocation32_spill] sm:$0xff] }
 0x228   : > { %1160 = vadd.xlane.f32.xlu1 %v1159_v55  ;;  %1184 = vadd.xlane.f32.xlu0 %v1183_v1 }
 0x22c   : > { %1208 = vadd.xlane.f32.xlu1 %v1207_v62  ;;  %1232 = vadd.xlane.f32.xlu0 %v1231_v23  ;;  %v5939_v62 = vld [vmem:[#allocation25_spill] sm:$0xff]  ;;  %v5940_v23 = vld [vmem:[#allocation26_spill] sm:$0xff] }
 0x230   : > { %1091 = vadd.xlane.f32.xlu1 %v1090_v32  ;;  %1115 = vadd.xlane.f32.xlu0 %v1114_v38  ;;  %v4550_v32 = vmul.f32 %v5940_v23, %v5939_v62  ;;  %v1144_v38 = vsel %vm541_vm0, %v4434_v2, 0.0  ;;  %v4576_v2 = vmul.f32 %v5944_v9, %v3851_v14  ;;  %v1240_v23 = vsel %vm541_vm0, %v4509_v49, 0.0 }
 0x234   : > { %1139 = vadd.xlane.f32.xlu1 %v1138_v24  ;;  %1163 = vadd.xlane.f32.xlu0 %v1162_v17  ;;  %v5942_v17 = vld [vmem:[#allocation28_spill] sm:$0xff] }
 0x235   : > { %v4563_v24 = vmul.f32 %v3812_v21, %v5942_v17  ;;  %v5947_v21 = vld [vmem:[#allocation29_spill] sm:$0xff] }
 0x238   : > { %1187 = vadd.xlane.f32.xlu1 %v1186_v33  ;;  %1211 = vadd.xlane.f32.xlu0 %v1210_v36  ;;  %v5943_v33 = vld [vmem:[#allocation27_spill] sm:$0xff] }
 0x239   : > { %v4571_v36 = vmul.f32 %v3825_v37, %v5943_v33  ;;  %v5949_v37 = vld [vmem:[#allocation107_spill] sm:$0xff] }
 0x23c   : > { %1094 = vadd.xlane.f32.xlu0 %v1093_v52  ;;  %1235 = vadd.xlane.f32.xlu1 %v1234_v63  ;;  %v5946_v63 = vld [vmem:[#allocation36_spill] sm:$0xff] }
 0x23d   : > { %v4580_v52 = vmul.f32 %v5946_v63, %v5945_v54 }
 0x240   : > { %1142 = vadd.xlane.f32.xlu0 %v1141_v7  ;;  %1118 = vadd.xlane.f32.xlu1 %v1117_v20  ;;  %v4584_v7 = vmul.f32 %v5948_v40, %v5947_v21  ;;  %v5966_v21 = vld [vmem:[#allocation62_spill] sm:$0xff] }
 0x244   : > { %1190 = vadd.xlane.f32.xlu0 %v1189_v11  ;;  %1166 = vadd.xlane.f32.xlu1 %v1165_v12  ;;  %v1192_v11 = vsel %vm541_vm0, %v5949_v37, 0.0 }
 0x247   : > { %v1056_v26 = vpop.xlane.xlu0 %1055  ;;  %v1059_v43 = vpop.xlane.xlu1 %1058 }
 0x248   : > { %v1374_v0 = vsub.f32 %v1056_v26, %v1310_v53  ;;  %v1375_v46 = vsub.f32 %v1059_v43, %v1311_v31  ;;  %1238 = vadd.xlane.f32.xlu0 %v1237_v15  ;;  %1214 = vadd.xlane.f32.xlu1 %v1213_v27  ;;  %v1216_v53 = vsel %vm541_vm0, %v4499_v56, 0.0  ;;  %v5950_v27 = vld [vmem:[#allocation34_spill] sm:$0xff]  ;;  %v5951_v15 = vld [vmem:[#allocation35_spill] sm:$0xff]  ;;  %v5952_v43 = vld [vmem:[#allocation33_spill] sm:$0xff] }
 0x249   : > { %v4592_v26 = vmul.f32 %v5951_v15, %v5950_v27 }
 0x24a   : > { %v1438_v5 = vmul.f32 0.33333334, %v1374_v0  ;;  %v1439_v51 = vmul.f32 0.33333334, %v1375_v46  ;;  %v5953_v0 = vld [vmem:[#allocation40_spill] sm:$0xff] }
 0x24b   : > { %v1062_v35 = vpop.xlane.xlu0 %1061  ;;  %v1068_v3 = vpop.xlane.xlu1 %1067  ;;  %v4596_v46 = vmul.f32 %v5953_v0, %v5952_v43 }
 0x24c   : > { %v1908_v55 = vmax.f32 %v1438_v5, 0.0  ;;  %v1909_v1 = vmax.f32 %v1439_v51, 0.0  ;;  %v1376_v8 = vsub.f32 %v1062_v35, %v1312_v47  ;;  %v1378_v25 = vsub.f32 %v1068_v3, %v1314_v29  ;;  %1121 = vadd.xlane.f32.xlu0 %v1120_v41  ;;  %1097 = vadd.xlane.f32.xlu1 %v1096_v57  ;;  %v5954_v3 = vld [vmem:[#allocation38_spill] sm:$0xff]  ;;  %v5955_v41 = vld [vmem:[#allocation39_spill] sm:$0xff] }
 0x24d   : > { %v4604_v57 = vmul.f32 %v5955_v41, %v5954_v3  ;;  %v5970_v3 = vld [vmem:[#allocation21_spill] sm:$0xff] }
 0x24e   : > { %v4544_v48 = vadd.f32 1e-07, %v1908_v55  ;;  %v4546_v59 = vadd.f32 1e-07, %v1909_v1  ;;  %v1440_v58 = vmul.f32 0.33333334, %v1376_v8 }
 0x24f   : > { %v1442_v45 = vmul.f32 0.33333334, %v1378_v25  ;;  %v1065_v28 = vpop.xlane.xlu0 %1064  ;;  %v1074_v61 = vpop.xlane.xlu1 %1073  ;;  %v5958_v1 = vld [vmem:[#allocation46_spill] sm:$0xff]  ;;  %v5959_v8 = vld [vmem:[#allocation47_spill] sm:$0xff] }
 0x250   : > { %3150 = vrsqrt.f32 %v4544_v48  ;;  %1169 = vadd.xlane.f32.xlu0 %v1168_v6  ;;  %1145 = vadd.xlane.f32.xlu1 %v1144_v38  ;;  %v1910_v34 = vmax.f32 %v1440_v58, 0.0  ;;  %v1377_v20 = vsub.f32 %v1065_v28, %v1313_v50  ;;  %v1380_v12 = vsub.f32 %v1074_v61, %v1316_v19  ;;  %v5956_v50 = vld [vmem:[#allocation37_spill] sm:$0xff]  ;;  %v5962_v58 = vld [vmem:[#allocation43_spill] sm:$0xff]  ;;  %v5965_v38 = vld [vmem:[#allocation52_spill] sm:$0xff] }
 0x251   : > { %3152 = vrsqrt.f32 %v4546_v59  ;;  %v1912_v10 = vmax.f32 %v1442_v45, 0.0  ;;  %v5957_v19 = vld [vmem:[#allocation41_spill] sm:$0xff]  ;;  %v4613_v25 = vmul.f32 %v5959_v8, %v5958_v1  ;;  %v1243_v6 = vsel %vm541_vm0, %v4511_v44, 0.0  ;;  %v5967_v44 = vld [vmem:[#allocation63_spill] sm:$0xff] }
 0x252   : > { %v4598_v5 = vadd.f32 1e-07, %v1910_v34  ;;  %v1441_v47 = vmul.f32 0.33333334, %v1377_v20  ;;  %v1444_v35 = vmul.f32 0.33333334, %v1380_v12  ;;  %v4608_v55 = vmul.f32 %v5957_v19, %v5956_v50 }
 0x253   : > { %v1071_v14 = vpop.xlane.xlu0 %1070  ;;  %v1080_v31 = vpop.xlane.xlu1 %1079  ;;  %v4600_v51 = vadd.f32 1e-07, %v1912_v10  ;;  %v5964_v61 = vld [vmem:[#allocation45_spill] sm:$0xff]  ;;  %v4636_v40 = vmul.f32 %v5967_v44, %v5966_v21  ;;  %v5968_v34 = vld [vmem:[#allocation50_spill] sm:$0xff]  ;;  %v5969_v10 = vld [vmem:[#allocation51_spill] sm:$0xff]  ;;  %vm2038_vm11 = vcmp.eq.f32.partialorder %v4544_v48, inf }
 0x254   : > { %v1379_v29 = vsub.f32 %v1071_v14, %v1315_v22  ;;  %1193 = vadd.xlane.f32.xlu1 %v1192_v11  ;;  %1217 = vadd.xlane.f32.xlu0 %v1216_v53  ;;  %v1382_v56 = vsub.f32 %v1080_v31, %v1318_v30  ;;  %3154 = vrsqrt.f32 %v4598_v5  ;;  %v5961_v22 = vld [vmem:[#allocation48_spill] sm:$0xff]  ;;  %v4630_v4 = vmul.f32 %v5965_v38, %v5964_v61 }
 0x255   : > { %v4617_v39 = vmul.f32 %v5961_v22, %v5960_v60  ;;  %v5963_v30 = vld [vmem:[#allocation44_spill] sm:$0xff]  ;;  %3156 = vrsqrt.f32 %v4600_v51  ;;  %v1911_v17 = vmax.f32 %v1441_v47, 0.0  ;;  %v1914_v33 = vmax.f32 %v1444_v35, 0.0 }
 0x256   : > { %v4621_v62 = vmul.f32 %v5963_v30, %v5962_v58  ;;  %v1443_v9 = vmul.f32 0.33333334, %v1379_v29  ;;  %v1446_v54 = vmul.f32 0.33333334, %v1382_v56  ;;  %v4640_v20 = vmul.f32 %v5969_v10, %v5968_v34 }
 0x257   : > { %v1077_v45 = vpop.xlane.xlu0 %1076  ;;  %v1086_v28 = vpop.xlane.xlu1 %1085  ;;  %vm2040_vm12 = vcmp.eq.f32.partialorder %v4544_v48, 0.0  ;;  %v4644_v37 = vadd.f32 1e-07, %v1911_v17  ;;  %v4646_v11 = vadd.f32 1e-07, %v1914_v33  ;;  %v2041_v53 = vand.u32 2147483648, %v4544_v48 }
 0x258   : > { %1241 = vadd.xlane.f32.xlu1 %v1240_v23  ;;  %1244 = vadd.xlane.f32.xlu0 %v1243_v6  ;;  %v1381_v63 = vsub.f32 %v1077_v45, %v4538_v42  ;;  %v1384_v49 = vsub.f32 %v1086_v28, %v4542_v18  ;;  %v1913_v14 = vmax.f32 %v1443_v9, 0.0  ;;  %v1916_v31 = vmax.f32 %v1446_v54, 0.0 }
 0x259   : > { %3158 = vrsqrt.f32 %v4644_v37  ;;  %vm2045_vm13 = vcmp.eq.f32.partialorder %v4546_v59, inf  ;;  %v2048_v29 = vand.u32 2147483648, %v4546_v59  ;;  %vm2047_vm14 = vcmp.eq.f32.partialorder %v4546_v59, 0.0 }
 0x25a   : > { %v3151_v12 = vpop.eup %3150  ;;  %v1445_v43 = vmul.f32 0.33333334, %v1381_v63  ;;  %v1448_v0 = vmul.f32 0.33333334, %v1384_v49  ;;  %3160 = vrsqrt.f32 %v4646_v11  ;;  %vm2052_vm15 = vcmp.eq.f32.partialorder %v4598_v5, inf }
 0x25b   : > { %v3153_v42 = vpop.eup %3152  ;;  %v2037_v18 = vmul.f32 %v3151_v12, %v4544_v48  ;;  %v1083_v27 = vpop.xlane.xlu0 %1082  ;;  %v4662_v19 = vadd.f32 1e-07, %v1913_v14  ;;  %v4664_v1 = vadd.f32 1e-07, %v1916_v31  ;;  %vm2054_vm0 = vcmp.eq.f32.partialorder %v4598_v5, 0.0 }
 0x25c   : > { %v2044_v15 = vmul.f32 %v3153_v42, %v4546_v59  ;;  %v1915_v22 = vmax.f32 %v1445_v43, 0.0  ;;  %v1918_v58 = vmax.f32 %v1448_v0, 0.0  ;;  %v1101_v6 = vpop.xlane.xlu1 %1100  ;;  %v2069_v38 = vand.u32 2147483648, %v4600_v51 }
 0x25d   : > { %v2039_v47 = vsel %vm2038_vm11, %v4544_v48, %v2037_v18  ;;  %v1383_v48 = vsub.f32 %v1083_v27, %v4550_v32  ;;  %3162 = vrsqrt.f32 %v4662_v19  ;;  %vm2066_vm11 = vcmp.eq.f32.partialorder %v4600_v51, inf }
 0x25e   : > { %v2042_v35 = vsel %vm2040_vm12, %v2041_v53, %v2039_v47  ;;  %v2046_v56 = vsel %vm2045_vm13, %v4546_v59, %v2044_v15  ;;  %v3155_v8 = vpop.eup %3154  ;;  %v2055_v59 = vand.u32 2147483648, %v4598_v5  ;;  %3164 = vrsqrt.f32 %v4664_v1 }
 0x25f   : > { %v2551_v41 = vrot.slane %v2042_v35, %v5970_v3  ;;  %v2049_v50 = vsel %vm2047_vm14, %v2048_v29, %v2046_v56  ;;  %v3157_v30 = vpop.eup %3156  ;;  %v2051_v23 = vmul.f32 %v3155_v8, %v4598_v5  ;;  %v1089_v45 = vpop.xlane.xlu0 %1088  ;;  %vm2068_vm12 = vcmp.eq.f32.partialorder %v4600_v51, 0.0 }
 0x260   : > { %v2555_v60 = vrot.slane %v2049_v50, %v5970_v3  ;;  %v2065_v61 = vmul.f32 %v3157_v30, %v4600_v51  ;;  %vm2059_vm13 = vcmp.eq.f32.partialorder %v4644_v37, inf  ;;  %vm2061_vm14 = vcmp.eq.f32.partialorder %v4644_v37, 0.0  ;;  %v1125_v18 = vpop.xlane.xlu1 %1124 }
 0x261   : > { %v2053_v32 = vsel %vm2052_vm15, %v4598_v5, %v2051_v23  ;;  %v4683_v33 = vadd.f32 1e-07, %v1915_v22  ;;  %v4685_v9 = vadd.f32 1e-07, %v1918_v58  ;;  %v1447_v49 = vmul.f32 0.33333334, %v1383_v48 }
 0x262   : > { %v2804_v28 = vsel %vm1825_vm1, %v2555_v60, %v2551_v41  ;;  %v2056_v17 = vsel %vm2054_vm0, %v2055_v59, %v2053_v32  ;;  %v2067_v63 = vsel %vm2066_vm11, %v4600_v51, %v2065_v61  ;;  %v1389_v5 = vsub.f32 %v1101_v6, %v4576_v2 }
 0x263   : > { %v2559_v54 = vrot.slane %v2056_v17, %v5970_v3  ;;  %v3159_v21 = vpop.eup %3158  ;;  %v2062_v44 = vand.u32 2147483648, %v4644_v37  ;;  %vm2080_vm15 = vcmp.eq.f32.partialorder %v4646_v11, inf  ;;  %vm2082_vm0 = vcmp.eq.f32.partialorder %v4646_v11, 0.0  ;;  %v1104_v2 = vpop.xlane.xlu0 %1103 }
 0x264   : > { %3166 = vrsqrt.f32 %v4683_v33  ;;  %v3161_v34 = vpop.eup %3160  ;;  %v2058_v12 = vmul.f32 %v3159_v21, %v4644_v37  ;;  %v2083_v42 = vand.u32 2147483648, %v4646_v11  ;;  %v2070_v53 = vsel %vm2068_vm12, %v2069_v38, %v2067_v63 }
 0x265   : > { %v2805_v10 = vsel %vm1827_vm2, %v2559_v54, %v2804_v28  ;;  %3168 = vrsqrt.f32 %v4685_v9  ;;  %v2079_v14 = vmul.f32 %v3161_v34, %v4646_v11  ;;  %vm2073_vm11 = vcmp.eq.f32.partialorder %v4662_v19, inf }
 0x266   : > { %vm2075_vm10 = vcmp.eq.f32.partialorder %v4662_v19, 0.0  ;;  %v2060_v31 = vsel %vm2059_vm13, %v4644_v37, %v2058_v12  ;;  %v1917_v27 = vmax.f32 %v1447_v49, 0.0  ;;  %v1453_v15 = vmul.f32 0.33333334, %v1389_v5  ;;  %v1149_v5 = vpop.xlane.xlu1 %1148 }
 0x267   : > { %v1385_v43 = vsub.f32 %v1089_v45, %v4563_v24  ;;  %v2063_v0 = vsel %vm2061_vm14, %v2062_v44, %v2060_v31  ;;  %v2076_v51 = vand.u32 2147483648, %v4662_v19  ;;  %v1397_v47 = vsub.f32 %v1125_v18, %v4613_v25  ;;  %v3163_v35 = vpop.eup %3162  ;;  %v1128_v17 = vpop.xlane.xlu0 %1127  ;;  %v5972_v31 = vld [vmem:[#allocation56_spill] sm:$0xff] }
 0x268   : > { %v1390_v29 = vsub.f32 %v1104_v2, %v4567_v13  ;;  %v2563_v56 = vrot.slane %v2063_v0, %v5970_v3  ;;  %v2081_v41 = vsel %vm2080_vm15, %v4646_v11, %v2079_v14  ;;  %v4716_v50 = vadd.f32 1e-07, %v1917_v27  ;;  %v3165_v24 = vpop.eup %3164  ;;  %v5973_v0 = vld [vmem:[#allocation58_spill] sm:$0xff] }
 0x269   : > { %v1923_v8 = vmax.f32 %v1453_v15, 0.0  ;;  %v2567_v37 = vrot.slane %v2070_v53, %v5970_v3  ;;  %v2072_v60 = vmul.f32 %v3163_v35, %v4662_v19  ;;  %vm2094_vm12 = vcmp.eq.f32.partialorder %v4664_v1, inf  ;;  %v5976_v35 = vld [vmem:[#allocation79_spill] sm:$0xff] }
 0x26a   : > { %v1449_v25 = vmul.f32 0.33333334, %v1385_v43  ;;  %v2806_v13 = vsel %vm1829_vm3, %v2563_v56, %v2805_v10  ;;  %v2093_v22 = vmul.f32 %v3165_v24, %v4664_v1  ;;  %3170 = vrsqrt.f32 %v4716_v50 }
 0x26b   : > { %v1461_v58 = vmul.f32 0.33333334, %v1397_v47  ;;  %v2084_v48 = vsel %vm2082_vm0, %v2083_v42, %v2081_v41  ;;  %v2074_v30 = vsel %vm2073_vm11, %v4662_v19, %v2072_v60  ;;  %v2807_v23 = vsel %vm1831_vm4, %v2567_v37, %v2806_v13 }
 0x26c   : > { %vm2096_vm13 = vcmp.eq.f32.partialorder %v4664_v1, 0.0  ;;  %v2077_v59 = vsel %vm2075_vm10, %v2076_v51, %v2074_v30  ;;  %v2095_v6 = vsel %vm2094_vm12, %v4664_v1, %v2093_v22  ;;  %v4734_v45 = vadd.f32 1e-07, %v1923_v8  ;;  %v5974_v51 = vld [vmem:[#allocation64_spill] sm:$0xff] }
 0x26d   : > { %v1919_v28 = vmax.f32 %v1449_v25, 0.0  ;;  %v2571_v11 = vrot.slane %v2077_v59, %v5970_v3  ;;  %v2097_v32 = vand.u32 2147483648, %v4664_v1  ;;  %vm2087_vm14 = vcmp.eq.f32.partialorder %v4683_v33, inf  ;;  %v5971_v1 = vld [vmem:[#allocation49_spill] sm:$0xff] }
 0x26e   : > { %v3167_v61 = vpop.eup %3166  ;;  %v1454_v38 = vmul.f32 0.33333334, %v1390_v29  ;;  %v2575_v19 = vrot.slane %v2084_v48, %v5970_v3  ;;  %vm2089_vm10 = vcmp.eq.f32.partialorder %v4683_v33, 0.0  ;;  %v1931_v49 = vmax.f32 %v1461_v58, 0.0  ;;  %v5975_v29 = vld [vmem:[#allocation78_spill] sm:$0xff] }
 0x26f   : > { %v3169_v54 = vpop.eup %3168  ;;  %v2086_v63 = vmul.f32 %v3167_v61, %v4683_v33  ;;  %v2808_v21 = vsel %vm1833_vm5, %v2571_v11, %v2807_v23  ;;  %v2098_v44 = vsel %vm2096_vm13, %v2097_v32, %v2095_v6  ;;  %v2090_v34 = vand.u32 2147483648, %v4683_v33 }
 0x270   : > { %3172 = vrsqrt.f32 %v4734_v45  ;;  %v2809_v10 = vsel %vm1835_vm6, %v2575_v19, %v2808_v21  ;;  %v2107_v42 = vmul.f32 %v3169_v54, %v4685_v9  ;;  %v4757_v18 = vadd.f32 1e-07, %v1919_v28 }
 0x271   : > { %v2088_v12 = vsel %vm2087_vm14, %v4683_v33, %v2086_v63  ;;  %2868 = vst.msk [vmem:[%s4744_s22 - $0x1] sm:$0xfe] %vm1896_vm7, %v2809_v10  ;;  %v1924_v53 = vmax.f32 %v1454_v38, 0.0  ;;  %v1405_v14 = vsub.f32 %v1149_v5, %v4636_v40  ;;  %v4764_v27 = vmul.f32 %v5972_v31, %v5971_v1  ;;  %v1152_v40 = vpop.xlane.xlu0 %1151  ;;  %v5978_v38 = vld [vmem:[#allocation80_spill] sm:$0xff]  ;;  %v5980_v5 = vld [vmem:[#allocation55_spill] sm:$0xff] }
 0x272   : > { %v2091_v2 = vsel %vm2089_vm10, %v2090_v34, %v2088_v12  ;;  %v2583_v15 = vrot.slane %v2098_v44, %v5970_v3  ;;  %3174 = vrsqrt.f32 %v4757_v18  ;;  %v4769_v33 = vadd.f32 1e-07, %v1931_v49 }
 0x273   : > { %v2579_v43 = vrot.slane %v2091_v2, %v5970_v3  ;;  %vm2108_vm15 = vcmp.eq.f32.partialorder %v4685_v9, inf  ;;  %vm2110_vm7 = vcmp.eq.f32.partialorder %v4685_v9, 0.0  ;;  %v1342_v47 = vmul.f32 %v5974_v51, %v5973_v0  ;;  %v5983_v0 = vld [vmem:[#allocation59_spill] sm:$0xff]  ;;  %v5984_v51 = vld [vmem:[#allocation60_spill] sm:$0xff] }
 0x274   : > { %v1349_v56 = vmul.f32 %v5976_v35, %v5975_v29  ;;  %v3171_v8 = vpop.eup %3170  ;;  %v2109_v37 = vsel %vm2108_vm15, %v4685_v9, %v2107_v42  ;;  %v2111_v60 = vand.u32 2147483648, %v4685_v9  ;;  %vm2101_vm0 = vcmp.eq.f32.partialorder %v4716_v50, inf  ;;  %v5979_v9 = vld [vmem:[#allocation54_spill] sm:$0xff]  ;;  %v5986_v35 = vld [vmem:[#allocation67_spill] sm:$0xff] }
 0x275   : > { %v1173_v41 = vpop.xlane.xlu1 %1172  ;;  %v2810_v24 = vsel %vm1837_vm8, %v2583_v15, %v2579_v43  ;;  %v2100_v25 = vmul.f32 %v3171_v8, %v4716_v50  ;;  %v4782_v13 = vadd.f32 1e-07, %v1924_v53  ;;  %v1469_v22 = vmul.f32 0.33333334, %v1405_v14  ;;  %v5981_v53 = vld [vmem:[#allocation53_spill] sm:$0xff]  ;;  %v5985_v29 = vld [vmem:[#allocation66_spill] sm:$0xff] }
 0x276   : > { %v1398_v58 = vsub.f32 %v1128_v17, %v4617_v39  ;;  %v2104_v48 = vand.u32 2147483648, %v4716_v50  ;;  %3176 = vrsqrt.f32 %v4769_v33  ;;  %v1406_v30 = vsub.f32 %v1152_v40, %v1342_v47  ;;  %v5977_v39 = vld [vmem:[#allocation74_spill] sm:$0xff]  ;;  %v5982_v14 = vld [vmem:[#allocation57_spill] sm:$0xff]  ;;  %v5988_v8 = vld [vmem:[#allocation68_spill] sm:$0xff] }
 0x277   : > { %v1413_v23 = vsub.f32 %v1173_v41, %v1349_v56  ;;  %v2112_v59 = vsel %vm2110_vm7, %v2111_v60, %v2109_v37  ;;  %v2102_v6 = vsel %vm2101_vm0, %v4716_v50, %v2100_v25  ;;  %vm2103_vm11 = vcmp.eq.f32.partialorder %v4716_v50, 0.0  ;;  %v5987_v41 = vld [vmem:[#allocation61_spill] sm:$0xff]  ;;  %v5990_v60 = vld [vmem:[#allocation72_spill] sm:$0xff] }
 0x278   : > { %3178 = vrsqrt.f32 %v4782_v13  ;;  %v2105_v61 = vsel %vm2103_vm11, %v2104_v48, %v2102_v6  ;;  %v1939_v11 = vmax.f32 %v1469_v22, 0.0  ;;  %v1462_v32 = vmul.f32 0.33333334, %v1398_v58  ;;  %v5989_v37 = vld [vmem:[#allocation65_spill] sm:$0xff] }
 0x279   : > { %v1176_v28 = vpop.xlane.xlu0 %1175  ;;  %v1350_v17 = vmul.f32 %v5978_v38, %v5977_v39  ;;  %v2587_v19 = vrot.slane %v2105_v61, %v5970_v3  ;;  %v1470_v63 = vmul.f32 0.33333334, %v1406_v30  ;;  %v1477_v49 = vmul.f32 0.33333334, %v1413_v23  ;;  %v5991_v61 = vld [vmem:[#allocation70_spill] sm:$0xff] }
 0x27a   : > { %v3173_v54 = vpop.eup %3172  ;;  %v4797_v21 = vmul.f32 %v5980_v5, %v5979_v9  ;;  %v2591_v50 = vrot.slane %v2112_v59, %v5970_v3  ;;  %v4800_v44 = vadd.f32 1e-07, %v1939_v11  ;;  %v1932_v34 = vmax.f32 %v1462_v32, 0.0  ;;  %v5992_v11 = vld [vmem:[#allocation71_spill] sm:$0xff] }
 0x27b   : > { %v1414_v10 = vsub.f32 %v1176_v28, %v1350_v17  ;;  %v2811_v12 = vsel %vm1825_vm1, %v2587_v19, %v2810_v24  ;;  %v1940_v42 = vmax.f32 %v1470_v63, 0.0  ;;  %v1947_v2 = vmax.f32 %v1477_v49, 0.0  ;;  %v5993_v19 = vld [vmem:[#allocation90_spill] sm:$0xff] }
 0x27c   : > { %v4805_v1 = vmul.f32 %v5982_v14, %v5981_v53  ;;  %v3175_v31 = vpop.eup %3174  ;;  %v2142_v15 = vmul.f32 %v3173_v54, %v4734_v45  ;;  %v2812_v43 = vsel %vm1827_vm2, %v2591_v50, %v2811_v12  ;;  %3180 = vrsqrt.f32 %v4800_v44 }
 0x27d   : > { %v4812_v47 = vmul.f32 %v5984_v51, %v5983_v0  ;;  %v2114_v40 = vmul.f32 %v3175_v31, %v4757_v18  ;;  %v4817_v56 = vmul.f32 %v5986_v35, %v5985_v29  ;;  %v4821_v24 = vmul.f32 %v5988_v8, %v5987_v41  ;;  %v5999_v41 = vld [vmem:[#allocation75_spill] sm:$0xff] }
 0x27e   : > { %v4825_v25 = vmul.f32 %v5990_v60, %v5989_v37  ;;  %vm2115_vm12 = vcmp.eq.f32.partialorder %v4757_v18, inf  ;;  %v2118_v22 = vand.u32 2147483648, %v4757_v18  ;;  %v4829_v58 = vadd.f32 1e-07, %v1932_v34 }
 0x27f   : > { %v4831_v48 = vadd.f32 1e-07, %v1940_v42  ;;  %vm2143_vm13 = vcmp.eq.f32.partialorder %v4734_v45, inf  ;;  %v2116_v30 = vsel %vm2115_vm12, %v4757_v18, %v2114_v40  ;;  %vm2117_vm14 = vcmp.eq.f32.partialorder %v4757_v18, 0.0  ;;  %v5994_v18 = vld [vmem:[#allocation8_spill] sm:$0xff]  ;;  %v5996_v42 = vld [vmem:[#allocation73_spill] sm:$0xff] }
 0x280   : > { %v4836_v23 = vadd.f32 1e-07, %v1947_v2  ;;  %v3177_v59 = vpop.eup %3176  ;;  %v2144_v6 = vsel %vm2143_vm13, %v4734_v45, %v2142_v15  ;;  %v2119_v28 = vsel %vm2117_vm14, %v2118_v22, %v2116_v30  ;;  %3182 = vrsqrt.f32 %v4829_v58  ;;  %v5997_v15 = vld [vmem:[#allocation88_spill] sm:$0xff] }
 0x281   : > { %v4842_v32 = vmul.f32 %v5992_v11, %v5991_v61  ;;  %v2146_v38 = vand.u32 2147483648, %v4734_v45  ;;  %v2595_v17 = vrot.slane %v2119_v28, %v5970_v3  ;;  %v1478_v54 = vmul.f32 0.33333334, %v1414_v10  ;;  %v6001_v28 = vld [vmem:[#allocation82_spill] sm:$0xff]  ;;  %v6002_v61 = vld [vmem:[#allocation83_spill] sm:$0xff] }
 0x282   : > { %v3179_v39 = vpop.eup %3178  ;;  %v1357_v63 = vmul.f32 %v5994_v18, %v5993_v19  ;;  %vm2145_vm10 = vcmp.eq.f32.partialorder %v4734_v45, 0.0  ;;  %vm2150_vm15 = vcmp.eq.f32.partialorder %v4782_v13, inf  ;;  %3184 = vrsqrt.f32 %v4831_v48  ;;  %v5995_v45 = vld [vmem:[#allocation69_spill] sm:$0xff] }
 0x283   : > { %v2149_v49 = vmul.f32 %v3179_v39, %v4782_v13  ;;  %v2147_v5 = vsel %vm2145_vm10, %v2146_v38, %v2144_v6  ;;  %v4853_v50 = vsel %vm1829_vm3, %v2595_v17, %v2812_v43  ;;  %v2153_v34 = vand.u32 2147483648, %v4782_v13  ;;  %v5998_v43 = vld [vmem:[#allocation5_spill] sm:$0xff]  ;;  %v6004_v38 = vld [vmem:[#allocation84_spill] sm:$0xff] }
 0x284   : > { %3186 = vrsqrt.f32 %v4836_v23  ;;  %v2198_v10 = vmul.f32 %v3177_v59, %v4769_v33  ;;  %vm2152_vm7 = vcmp.eq.f32.partialorder %v4782_v13, 0.0  ;;  %v4862_v2 = vmul.f32 %v5996_v42, %v5995_v45  ;;  %v6003_v39 = vld [vmem:[#allocation77_spill] sm:$0xff] }
 0x285   : > { %v1197_v9 = vpop.xlane.xlu1 %1196  ;;  %v2151_v12 = vsel %vm2150_vm15, %v4782_v13, %v2149_v49  ;;  %v1948_v14 = vmax.f32 %v1478_v54, 0.0  ;;  %v1358_v0 = vmul.f32 %v5998_v43, %v5997_v15  ;;  %v2611_v40 = vrot.slane %v2147_v5, %v5970_v3  ;;  %v6000_v13 = vld [vmem:[#allocation76_spill] sm:$0xff] }
 0x286   : > { %v2154_v53 = vsel %vm2152_vm7, %v2153_v34, %v2151_v12  ;;  %v1421_v31 = vsub.f32 %v1197_v9, %v1357_v63  ;;  %v3181_v51 = vpop.eup %3180  ;;  %vm2199_vm0 = vcmp.eq.f32.partialorder %v4769_v33, inf  ;;  %v4871_v8 = vmul.f32 %v6000_v13, %v5999_v41  ;;  %v6005_v41 = vld [vmem:[#allocation96_spill] sm:$0xff]  ;;  %v6006_v13 = vld [vmem:[#allocation14_spill] sm:$0xff] }
 0x287   : > { %v2615_v29 = vrot.slane %v2154_v53, %v5970_v3  ;;  %v2254_v37 = vmul.f32 %v3181_v51, %v4800_v44  ;;  %v4874_v60 = vadd.f32 1e-07, %v1948_v14  ;;  %v2200_v59 = vsel %vm2199_vm0, %v4769_v33, %v2198_v10 }
 0x288   : > { %v1485_v22 = vmul.f32 0.33333334, %v1421_v31  ;;  %v4882_v11 = vmul.f32 %v6002_v61, %v6001_v28  ;;  %v4886_v17 = vmul.f32 %v6004_v38, %v6003_v39  ;;  %vm2201_vm11 = vcmp.eq.f32.partialorder %v4769_v33, 0.0 }
 0x289   : > { %v1200_v35 = vpop.xlane.xlu0 %1199  ;;  %v4878_v6 = vsel %vm1837_vm8, %v2615_v29, %v2611_v40  ;;  %v2202_v54 = vand.u32 2147483648, %v4769_v33  ;;  %vm2255_vm12 = vcmp.eq.f32.partialorder %v4800_v44, inf  ;;  %3188 = vrsqrt.f32 %v4874_v60 }
 0x28a   : > { %v1422_v30 = vsub.f32 %v1200_v35, %v1358_v0  ;;  %v3183_v19 = vpop.eup %3182  ;;  %vm2257_vm13 = vcmp.eq.f32.partialorder %v4800_v44, 0.0  ;;  %v2258_v18 = vand.u32 2147483648, %v4800_v44  ;;  %v1955_v63 = vmax.f32 %v1485_v22, 0.0  ;;  %v6008_v22 = vld [vmem:[#allocation17_spill] sm:$0xff] }
 0x28b   : > { %v2203_v9 = vsel %vm2201_vm11, %v2202_v54, %v2200_v59  ;;  %v2256_v5 = vsel %vm2255_vm12, %v4800_v44, %v2254_v37  ;;  %v2205_v34 = vmul.f32 %v3183_v19, %v4829_v58  ;;  %vm2206_vm14 = vcmp.eq.f32.partialorder %v4829_v58, inf  ;;  %v6007_v37 = vld [vmem:[#allocation98_spill] sm:$0xff]  ;;  %v6010_v19 = vld [vmem:[#allocation4_spill] sm:$0xff] }
 0x28c   : > { %v1486_v49 = vmul.f32 0.33333334, %v1422_v30  ;;  %v3185_v10 = vpop.eup %3184  ;;  %vm2208_vm10 = vcmp.eq.f32.partialorder %v4829_v58, 0.0  ;;  %v2209_v33 = vand.u32 2147483648, %v4829_v58  ;;  %v4899_v12 = vadd.f32 1e-07, %v1955_v63 }
 0x28d   : > { %v2207_v53 = vsel %vm2206_vm14, %v4829_v58, %v2205_v34  ;;  %v2261_v14 = vmul.f32 %v3185_v10, %v4831_v48  ;;  %vm2262_vm15 = vcmp.eq.f32.partialorder %v4831_v48, inf  ;;  %v2265_v31 = vand.u32 2147483648, %v4831_v48  ;;  %v6009_v54 = vld [vmem:[#allocation86_spill] sm:$0xff]  ;;  %v6011_v63 = vld [vmem:[#allocation81_spill] sm:$0xff] }
 0x28e   : > { %v1956_v45 = vmax.f32 %v1486_v49, 0.0  ;;  %v3187_v42 = vpop.eup %3186  ;;  %v2259_v15 = vsel %vm2257_vm13, %v2258_v18, %v2256_v5  ;;  %v2210_v43 = vsel %vm2208_vm10, %v2209_v33, %v2207_v53  ;;  %3190 = vrsqrt.f32 %v4899_v12  ;;  %v6012_v49 = vld [vmem:[#allocation2_spill] sm:$0xff]  ;;  %v6013_v53 = vld [vmem:[#allocation85_spill] sm:$0xff] }
 0x28f   : > { %v2310_v0 = vmul.f32 %v3187_v42, %v4836_v23  ;;  %v2643_v51 = vrot.slane %v2203_v9, %v5970_v3  ;;  %v2647_v40 = vrot.slane %v2210_v43, %v5970_v3  ;;  %v2263_v58 = vsel %vm2262_vm15, %v4831_v48, %v2261_v14  ;;  %v6014_v14 = vld [vmem:[#allocation87_spill] sm:$0xff] }
 0x290   : > { %vm2264_vm7 = vcmp.eq.f32.partialorder %v4831_v48, 0.0  ;;  %v4913_v35 = vadd.f32 1e-07, %v1956_v45  ;;  %v1366_v44 = vmul.f32 %v6006_v13, %v6005_v41  ;;  %v1365_v30 = vmul.f32 %v6008_v22, %v6007_v37  ;;  %v6016_v41 = vld [vmem:[#allocation7_spill] sm:$0xff]  ;;  %v6018_v37 = vld [vmem:[#allocation6_spill] sm:$0xff] }
 0x291   : > { %v2266_v29 = vsel %vm2264_vm7, %v2265_v31, %v2263_v58  ;;  %v2675_v59 = vrot.slane %v2259_v15, %v5970_v3  ;;  %v4921_v28 = vsel %vm1837_vm8, %v2647_v40, %v2643_v51  ;;  %vm2311_vm0 = vcmp.eq.f32.partialorder %v4836_v23, inf }
 0x292   : > { %v2679_v61 = vrot.slane %v2266_v29, %v5970_v3  ;;  %v2312_v48 = vsel %vm2311_vm0, %v4836_v23, %v2310_v0  ;;  %3192 = vrsqrt.f32 %v4913_v35  ;;  %v4929_v18 = vmul.f32 %v6010_v19, %v6009_v54  ;;  %v6019_v19 = vld [vmem:[#allocation92_spill] sm:$0xff] }
 0x293   : > { %v4933_v9 = vmul.f32 %v6012_v49, %v6011_v63  ;;  %v3189_v5 = vpop.eup %3188  ;;  %v2314_v10 = vand.u32 2147483648, %v4836_v23  ;;  %vm2313_vm11 = vcmp.eq.f32.partialorder %v4836_v23, 0.0  ;;  %vm2318_vm12 = vcmp.eq.f32.partialorder %v4874_v60, inf  ;;  %v6015_v23 = vld [vmem:[#allocation3_spill] sm:$0xff]  ;;  %v6020_v63 = vld [vmem:[#allocation10_spill] sm:$0xff] }
 0x294   : > { %v4936_v34 = vsel %vm1837_vm8, %v2679_v61, %v2675_v59  ;;  %v2317_v42 = vmul.f32 %v3189_v5, %v4874_v60  ;;  %v4944_v31 = vmul.f32 %v6014_v14, %v6013_v53  ;;  %v2321_v43 = vand.u32 2147483648, %v4874_v60 }
 0x295   : > { %v1224_v39 = vpop.xlane.xlu0 %1223  ;;  %v1221_v38 = vpop.xlane.xlu1 %1220  ;;  %v2315_v15 = vsel %vm2313_vm11, %v2314_v10, %v2312_v48  ;;  %vm2320_vm13 = vcmp.eq.f32.partialorder %v4874_v60, 0.0  ;;  %v4951_v13 = vmul.f32 %v6016_v41, %v6015_v23  ;;  %v1359_v49 = vmul.f32 %v6020_v63, %v6019_v19  ;;  %v6024_v23 = vld [vmem:[#allocation11_spill] sm:$0xff] }
 0x296   : > { %v1430_v33 = vsub.f32 %v1224_v39, %v1366_v44  ;;  %v1429_v45 = vsub.f32 %v1221_v38, %v1365_v30  ;;  %v2319_v40 = vsel %vm2318_vm12, %v4874_v60, %v2317_v42  ;;  %v6017_v44 = vld [vmem:[#allocation89_spill] sm:$0xff]  ;;  %v2707_v38 = vrot.slane %v2315_v15, %v5970_v3 }
 0x297   : > { %v4955_v22 = vmul.f32 %v6018_v37, %v6017_v44  ;;  %v2322_v30 = vsel %vm2320_vm13, %v2321_v43, %v2319_v40  ;;  %vm2367_vm14 = vcmp.eq.f32.partialorder %v4899_v12, inf  ;;  %vm2369_vm10 = vcmp.eq.f32.partialorder %v4899_v12, 0.0  ;;  %v6021_v43 = vld [vmem:[#allocation91_spill] sm:$0xff]  ;;  %v6025_v44 = vld [vmem:[#allocation94_spill] sm:$0xff]  ;;  %v6026_v37 = vld [vmem:[#allocation13_spill] sm:$0xff] }
 0x298   : > { %v1494_v0 = vmul.f32 0.33333334, %v1430_v33  ;;  %v1493_v51 = vmul.f32 0.33333334, %v1429_v45  ;;  %v3191_v39 = vpop.eup %3190  ;;  %v2711_v60 = vrot.slane %v2322_v30, %v5970_v3  ;;  %v2370_v45 = vand.u32 2147483648, %v4899_v12 }
 0x299   : > { %v1131_v58 = vpop.xlane.xlu0 %1130  ;;  %v1107_v29 = vpop.xlane.xlu1 %1106  ;;  %v2366_v5 = vmul.f32 %v3191_v39, %v4899_v12  ;;  %v4985_v30 = vmul.f32 %v6026_v37, %v6025_v44  ;;  %vm2374_vm15 = vcmp.eq.f32.partialorder %v4913_v35, inf  ;;  %vm2376_vm7 = vcmp.eq.f32.partialorder %v4913_v35, 0.0  ;;  %v6032_v44 = vld [vmem:[#allocation95_spill] sm:$0xff] }
 0x29a   : > { %v1964_v59 = vmax.f32 %v1494_v0, 0.0  ;;  %v1963_v61 = vmax.f32 %v1493_v51, 0.0  ;;  %v1399_v48 = vsub.f32 %v1131_v58, %v4640_v20  ;;  %v1391_v54 = vsub.f32 %v1107_v29, %v4592_v26  ;;  %v6022_v0 = vld [vmem:[#allocation9_spill] sm:$0xff]  ;;  %v6023_v29 = vld [vmem:[#allocation100_spill] sm:$0xff] }
 0x29b   : > { %v4970_v20 = vsel %vm1837_vm8, %v2711_v60, %v2707_v38  ;;  %v2368_v15 = vsel %vm2367_vm14, %v4899_v12, %v2366_v5  ;;  %v4978_v51 = vmul.f32 %v6022_v0, %v6021_v43  ;;  %v1367_v41 = vmul.f32 %v6024_v23, %v6023_v29 }
 0x29c   : > { %v4965_v10 = vadd.f32 1e-07, %v1964_v59  ;;  %v4967_v33 = vadd.f32 1e-07, %v1963_v61  ;;  %v1463_v42 = vmul.f32 0.33333334, %v1399_v48  ;;  %v3193_v40 = vpop.eup %3192  ;;  %v2371_v58 = vsel %vm2369_vm10, %v2370_v45, %v2368_v15 }
 0x29d   : > { %v1455_v53 = vmul.f32 0.33333334, %v1391_v54  ;;  %v1179_v14 = vpop.xlane.xlu0 %1178  ;;  %v1155_v26 = vpop.xlane.xlu1 %1154  ;;  %v2373_v59 = vmul.f32 %v3193_v40, %v4913_v35  ;;  %v2377_v12 = vand.u32 2147483648, %v4913_v35  ;;  %v2739_v19 = vrot.slane %v2371_v58, %v5970_v3  ;;  %v6028_v58 = vld [vmem:[#allocation16_spill] sm:$0xff] }
 0x29e   : > { %3194 = vrsqrt.f32 %v4965_v10  ;;  %v1933_v61 = vmax.f32 %v1463_v42, 0.0  ;;  %v1415_v39 = vsub.f32 %v1179_v14, %v4882_v11  ;;  %v1407_v38 = vsub.f32 %v1155_v26, %v4817_v56  ;;  %v6027_v26 = vld [vmem:[#allocation12_spill] sm:$0xff] }
 0x29f   : > { %3196 = vrsqrt.f32 %v4967_v33  ;;  %v1925_v48 = vmax.f32 %v1455_v53, 0.0  ;;  %v2375_v63 = vsel %vm2374_vm15, %v4913_v35, %v2373_v59  ;;  %v5003_v29 = vmul.f32 %v6028_v58, %v6027_v26  ;;  %v6029_v35 = vld [vmem:[#allocation97_spill] sm:$0xff] }
 0x2a0   : > { %v2378_v15 = vsel %vm2376_vm7, %v2377_v12, %v2375_v63  ;;  %v4995_v43 = vadd.f32 1e-07, %v1933_v61  ;;  %v1479_v40 = vmul.f32 0.33333334, %v1415_v39  ;;  %v1471_v53 = vmul.f32 0.33333334, %v1407_v38 }
 0x2a1   : > { %v1227_v60 = vpop.xlane.xlu0 %1226  ;;  %v1203_v54 = vpop.xlane.xlu1 %1202  ;;  %v4997_v0 = vadd.f32 1e-07, %v1925_v48  ;;  %v2743_v42 = vrot.slane %v2378_v15, %v5970_v3  ;;  %vm2430_vm0 = vcmp.eq.f32.partialorder %v4965_v10, inf  ;;  %v6033_v61 = vld [vmem:[#allocation99_spill] sm:$0xff]  ;;  %v6034_v48 = vld [vmem:[#allocation18_spill] sm:$0xff]  ;;  %vm2432_vm11 = vcmp.eq.f32.partialorder %v4965_v10, 0.0 }
 0x2a2   : > { %v1431_v5 = vsub.f32 %v1227_v60, %v1367_v41  ;;  %v1423_v45 = vsub.f32 %v1203_v54, %v1359_v49  ;;  %3198 = vrsqrt.f32 %v4995_v43  ;;  %v6030_v49 = vld [vmem:[#allocation15_spill] sm:$0xff]  ;;  %v6031_v41 = vld [vmem:[#allocation93_spill] sm:$0xff]  ;;  %v5020_v39 = vmul.f32 %v6034_v48, %v6033_v61 }
 0x2a3   : > { %v5007_v23 = vmul.f32 %v6030_v49, %v6029_v35  ;;  %v5011_v37 = vmul.f32 %v6032_v44, %v6031_v41  ;;  %v5014_v59 = vsel %vm1837_vm8, %v2743_v42, %v2739_v19  ;;  %3200 = vrsqrt.f32 %v4997_v0 }
 0x2a4   : > { %v1495_v11 = vmul.f32 0.33333334, %v1431_v5  ;;  %v1487_v14 = vmul.f32 0.33333334, %v1423_v45  ;;  %v1949_v38 = vmax.f32 %v1479_v40, 0.0  ;;  %v1941_v60 = vmax.f32 %v1471_v53, 0.0 }
 0x2a5   : > { %v1134_v56 = vpop.xlane.xlu0 %1133  ;;  %v1110_v12 = vpop.xlane.xlu1 %1109  ;;  %v2433_v5 = vand.u32 2147483648, %v4965_v10  ;;  %vm2423_vm12 = vcmp.eq.f32.partialorder %v4967_v33, inf  ;;  %vm2425_vm13 = vcmp.eq.f32.partialorder %v4967_v33, 0.0  ;;  %v2426_v53 = vand.u32 2147483648, %v4967_v33 }
 0x2a6   : > { %v1965_v54 = vmax.f32 %v1495_v11, 0.0  ;;  %v1957_v19 = vmax.f32 %v1487_v14, 0.0  ;;  %v1400_v45 = vsub.f32 %v1134_v56, %v4630_v4  ;;  %v5027_v26 = vadd.f32 1e-07, %v1949_v38 }
 0x2a7   : > { %v5029_v58 = vadd.f32 1e-07, %v1941_v60  ;;  %v1392_v35 = vsub.f32 %v1110_v12, %v4580_v52  ;;  %vm2213_vm14 = vcmp.eq.f32.partialorder %v4995_v43, inf  ;;  %vm2215_vm10 = vcmp.eq.f32.partialorder %v4995_v43, 0.0 }
 0x2a8   : > { %v3195_v63 = vpop.eup %3194  ;;  %v5035_v11 = vadd.f32 1e-07, %v1965_v54  ;;  %3202 = vrsqrt.f32 %v5027_v26  ;;  %v5042_v14 = vadd.f32 1e-07, %v1957_v19  ;;  %v1464_v12 = vmul.f32 0.33333334, %v1400_v45 }
 0x2a9   : > { %v3197_v15 = vpop.eup %3196  ;;  %v2429_v42 = vmul.f32 %v3195_v63, %v4965_v10  ;;  %3204 = vrsqrt.f32 %v5029_v58  ;;  %v1182_v49 = vpop.xlane.xlu0 %1181  ;;  %v1456_v61 = vmul.f32 0.33333334, %v1392_v35  ;;  %v2216_v38 = vand.u32 2147483648, %v4995_v43 }
 0x2aa   : > { %v2422_v40 = vmul.f32 %v3197_v15, %v4967_v33  ;;  %vm2157_vm15 = vcmp.eq.f32.partialorder %v4997_v0, inf  ;;  %3206 = vrsqrt.f32 %v5035_v11  ;;  %vm2159_vm7 = vcmp.eq.f32.partialorder %v4997_v0, 0.0  ;;  %v1158_v60 = vpop.xlane.xlu1 %1157 }
 0x2ab   : > { %v2431_v4 = vsel %vm2430_vm0, %v4965_v10, %v2429_v42  ;;  %vm2325_vm0 = vcmp.eq.f32.partialorder %v5027_v26, inf  ;;  %3208 = vrsqrt.f32 %v5042_v14  ;;  %v2328_v19 = vand.u32 2147483648, %v5027_v26 }
 0x2ac   : > { %v2434_v52 = vsel %vm2432_vm11, %v2433_v5, %v2431_v4  ;;  %v2424_v56 = vsel %vm2423_vm12, %v4967_v33, %v2422_v40  ;;  %v3199_v10 = vpop.eup %3198  ;;  %v2160_v33 = vand.u32 2147483648, %v4997_v0  ;;  %vm2327_vm11 = vcmp.eq.f32.partialorder %v5027_v26, 0.0 }
 0x2ad   : > { %v2775_v41 = vrot.slane %v2434_v52, %v5970_v3  ;;  %v2427_v44 = vsel %vm2425_vm13, %v2426_v53, %v2424_v56  ;;  %v3201_v54 = vpop.eup %3200  ;;  %v2212_v5 = vmul.f32 %v3199_v10, %v4995_v43  ;;  %vm2269_vm12 = vcmp.eq.f32.partialorder %v5029_v58, inf  ;;  %v1230_v52 = vpop.xlane.xlu0 %1229 }
 0x2ae   : > { %v2771_v48 = vrot.slane %v2427_v44, %v5970_v3  ;;  %v2156_v45 = vmul.f32 %v3201_v54, %v4997_v0  ;;  %vm2271_vm13 = vcmp.eq.f32.partialorder %v5029_v58, 0.0  ;;  %v1934_v15 = vmax.f32 %v1464_v12, 0.0 }
 0x2af   : > { %v1926_v42 = vmax.f32 %v1456_v61, 0.0  ;;  %v1416_v35 = vsub.f32 %v1182_v49, %v4886_v17  ;;  %v2214_v40 = vsel %vm2213_vm14, %v4995_v43, %v2212_v5  ;;  %v2272_v53 = vand.u32 2147483648, %v5029_v58 }
 0x2b0   : > { %v5061_v63 = vsel %vm1837_vm8, %v2775_v41, %v2771_v48  ;;  %vm2437_vm8 = vcmp.eq.f32.partialorder %v5035_v11, inf  ;;  %v1408_v4 = vsub.f32 %v1158_v60, %v4821_v24  ;;  %v2217_v56 = vsel %vm2215_vm10, %v2216_v38, %v2214_v40  ;;  %v1206_v60 = vpop.xlane.xlu1 %1205 }
 0x2b1   : > { %v2158_v41 = vsel %vm2157_vm15, %v4997_v0, %v2156_v45  ;;  %vm2439_vm9 = vcmp.eq.f32.partialorder %v5035_v11, 0.0  ;;  %v5082_v17 = vadd.f32 1e-07, %v1934_v15  ;;  %v5084_v49 = vadd.f32 1e-07, %v1926_v42 }
 0x2b2   : > { %v2651_v44 = vrot.slane %v2217_v56, %v5970_v3  ;;  %v2161_v12 = vsel %vm2159_vm7, %v2160_v33, %v2158_v41  ;;  %v1480_v24 = vmul.f32 0.33333334, %v1416_v35  ;;  %v1472_v61 = vmul.f32 0.33333334, %v1408_v4  ;;  %v3203_v48 = vpop.eup %3202  ;;  %v1137_v4 = vpop.xlane.xlu0 %1136 }
 0x2b3   : > { %v2619_v43 = vrot.slane %v2161_v12, %v5970_v3  ;;  %v2440_v38 = vand.u32 2147483648, %v5035_v11  ;;  %3210 = vrsqrt.f32 %v5082_v17  ;;  %v1432_v10 = vsub.f32 %v1230_v52, %v5003_v29  ;;  %v3205_v54 = vpop.eup %3204 }
 0x2b4   : > { %v5095_v5 = vsel %vm1825_vm1, %v2651_v44, %v4921_v28  ;;  %v2324_v0 = vmul.f32 %v3203_v48, %v5027_v26  ;;  %vm2381_vm14 = vcmp.eq.f32.partialorder %v5042_v14, inf  ;;  %3212 = vrsqrt.f32 %v5084_v49  ;;  %v3207_v15 = vpop.eup %3206 }
 0x2b5   : > { %v5102_v33 = vsel %vm1825_vm1, %v2619_v43, %v4878_v6  ;;  %v2268_v45 = vmul.f32 %v3205_v54, %v5029_v58  ;;  %vm2383_vm10 = vcmp.eq.f32.partialorder %v5042_v14, 0.0  ;;  %v2384_v29 = vand.u32 2147483648, %v5042_v14  ;;  %v3209_v52 = vpop.eup %3208 }
 0x2b6   : > { %v2326_v28 = vsel %vm2325_vm0, %v5027_v26, %v2324_v0  ;;  %v1950_v42 = vmax.f32 %v1480_v24, 0.0  ;;  %v1942_v35 = vmax.f32 %v1472_v61, 0.0  ;;  %v1424_v40 = vsub.f32 %v1206_v60, %v4951_v13 }
 0x2b7   : > { %v2329_v6 = vsel %vm2327_vm11, %v2328_v19, %v2326_v28  ;;  %v2270_v56 = vsel %vm2269_vm12, %v5029_v58, %v2268_v45  ;;  %v2436_v41 = vmul.f32 %v3207_v15, %v5035_v11  ;;  %v1496_v44 = vmul.f32 0.33333334, %v1432_v10  ;;  %v6035_v45 = vld [vmem:[#allocation102_spill] sm:$0xff]  ;;  %v6036_v15 = vld [vmem:[#allocation20_spill] sm:$0xff]  ;;  %v1185_v28 = vpop.xlane.xlu0 %1184 }
 0x2b8   : > { %v2715_v12 = vrot.slane %v2329_v6, %v5970_v3  ;;  %v2273_v24 = vsel %vm2271_vm13, %v2272_v53, %v2270_v56  ;;  %v2380_v61 = vmul.f32 %v3209_v52, %v5042_v14  ;;  %v5121_v13 = vadd.f32 1e-07, %v1950_v42  ;;  %v6037_v42 = vld [vmem:[#allocation104_spill] sm:$0xff]  ;;  %v6040_v6 = vld [vmem:[#allocation103_spill] sm:$0xff] }
 0x2b9   : > { %v2683_v48 = vrot.slane %v2273_v24, %v5970_v3  ;;  %v2438_v26 = vsel %vm2437_vm8, %v5035_v11, %v2436_v41  ;;  %v5127_v19 = vadd.f32 1e-07, %v1942_v35  ;;  %v1966_v43 = vmax.f32 %v1496_v44, 0.0  ;;  %v6038_v35 = vld [vmem:[#allocation105_spill] sm:$0xff] }
 0x2ba   : > { %v5131_v10 = vsel %vm1825_vm1, %v2715_v12, %v4970_v20  ;;  %v2441_v58 = vsel %vm2439_vm9, %v2440_v38, %v2438_v26  ;;  %v2382_v53 = vsel %vm2381_vm14, %v5042_v14, %v2380_v61  ;;  %3214 = vrsqrt.f32 %v5121_v13  ;;  %v1113_v20 = vpop.xlane.xlu1 %1112 }
 0x2bb   : > { %v5141_v60 = vsel %vm1825_vm1, %v2683_v48, %v4936_v34  ;;  %v2779_v54 = vrot.slane %v2441_v58, %v5970_v3  ;;  %v2385_v0 = vsel %vm2383_vm10, %v2384_v29, %v2382_v53  ;;  %v5148_v11 = vmul.f32 %v6036_v15, %v6035_v45  ;;  %v6039_v34 = vld [vmem:[#allocation101_spill] sm:$0xff] }
 0x2bc   : > { %v2747_v38 = vrot.slane %v2385_v0, %v5970_v3  ;;  %3216 = vrsqrt.f32 %v5127_v19  ;;  %v5154_v52 = vmul.f32 %v6038_v35, %v6037_v42  ;;  %v5158_v56 = vmul.f32 %v6040_v6, %v6039_v34 }
 0x2bd   : > { %v3211_v14 = vpop.eup %3210  ;;  %v5162_v29 = vsel %vm1825_vm1, %v2779_v54, %v5061_v63  ;;  %vm2220_vm9 = vcmp.eq.f32.partialorder %v5082_v17, inf  ;;  %vm2222_vm15 = vcmp.eq.f32.partialorder %v5082_v17, 0.0  ;;  %v2223_v41 = vand.u32 2147483648, %v5082_v17 }
 0x2be   : > { %v3213_v44 = vpop.eup %3212  ;;  %v5169_v12 = vsel %vm1825_vm1, %v2747_v38, %v5014_v59  ;;  %v2219_v24 = vmul.f32 %v3211_v14, %v5082_v17  ;;  %v5172_v61 = vadd.f32 1e-07, %v1966_v43  ;;  %v1488_v48 = vmul.f32 0.33333334, %v1424_v40  ;;  %v1161_v45 = vpop.xlane.xlu1 %1160 }
 0x2bf   : > { %v2163_v26 = vmul.f32 %v3213_v44, %v5084_v49  ;;  %v1401_v63 = vsub.f32 %v1137_v4, %v4797_v21  ;;  %v1393_v58 = vsub.f32 %v1113_v20, %v4604_v57  ;;  %v1417_v53 = vsub.f32 %v1185_v28, %v4929_v18  ;;  %v1233_v38 = vpop.xlane.xlu0 %1232 }
 0x2c0   : > { %v2221_v54 = vsel %vm2220_vm9, %v5082_v17, %v2219_v24  ;;  %vm2164_vm7 = vcmp.eq.f32.partialorder %v5084_v49, inf  ;;  %v2167_v59 = vand.u32 2147483648, %v5084_v49  ;;  %3218 = vrsqrt.f32 %v5172_v61 }
 0x2c1   : > { %v2224_v0 = vsel %vm2222_vm15, %v2223_v41, %v2221_v54  ;;  %v2165_v43 = vsel %vm2164_vm7, %v5084_v49, %v2163_v26  ;;  %vm2166_vm1 = vcmp.eq.f32.partialorder %v5084_v49, 0.0  ;;  %v1958_v40 = vmax.f32 %v1488_v48, 0.0 }
 0x2c2   : > { %v2655_v21 = vrot.slane %v2224_v0, %v5970_v3  ;;  %v2168_v57 = vsel %vm2166_vm1, %v2167_v59, %v2165_v43  ;;  %v1465_v4 = vmul.f32 0.33333334, %v1401_v63  ;;  %v1457_v18 = vmul.f32 0.33333334, %v1393_v58  ;;  %v1209_v54 = vpop.xlane.xlu1 %1208 }
 0x2c3   : > { %v2623_v17 = vrot.slane %v2168_v57, %v5970_v3  ;;  %vm2332_vm0 = vcmp.eq.f32.partialorder %v5121_v13, inf  ;;  %v5187_v20 = vadd.f32 1e-07, %v1958_v40  ;;  %v1481_v15 = vmul.f32 0.33333334, %v1417_v53 }
 0x2c4   : > { %v3215_v28 = vpop.eup %3214  ;;  %v5191_v42 = vsel %vm1827_vm2, %v2655_v21, %v5095_v5  ;;  %v1935_v49 = vmax.f32 %v1465_v4, 0.0  ;;  %v1927_v35 = vmax.f32 %v1457_v18, 0.0  ;;  %v1409_v34 = vsub.f32 %v1161_v45, %v4842_v32 }
 0x2c5   : > { %v5196_v6 = vsel %vm1827_vm2, %v2623_v17, %v5102_v33  ;;  %v2331_v14 = vmul.f32 %v3215_v28, %v5121_v13  ;;  %vm2334_vm11 = vcmp.eq.f32.partialorder %v5121_v13, 0.0  ;;  %3220 = vrsqrt.f32 %v5187_v20 }
 0x2c6   : > { %v3217_v41 = vpop.eup %3216  ;;  %v2335_v44 = vand.u32 2147483648, %v5121_v13  ;;  %vm2276_vm12 = vcmp.eq.f32.partialorder %v5127_v19, inf  ;;  %v5203_v5 = vadd.f32 1e-07, %v1935_v49  ;;  %v5205_v24 = vadd.f32 1e-07, %v1927_v35 }
 0x2c7   : > { %v2333_v32 = vsel %vm2332_vm0, %v5121_v13, %v2331_v14  ;;  %v2275_v33 = vmul.f32 %v3217_v41, %v5127_v19  ;;  %v2279_v48 = vand.u32 2147483648, %v5127_v19  ;;  %v1951_v26 = vmax.f32 %v1481_v15, 0.0  ;;  %v1116_v13 = vpop.xlane.xlu0 %1115 }
 0x2c8   : > { %v2336_v63 = vsel %vm2334_vm11, %v2335_v44, %v2333_v32  ;;  %3222 = vrsqrt.f32 %v5203_v5  ;;  %v1473_v58 = vmul.f32 0.33333334, %v1409_v34  ;;  %v1433_v53 = vsub.f32 %v1233_v38, %v5148_v11 }
 0x2c9   : > { %v2719_v59 = vrot.slane %v2336_v63, %v5970_v3  ;;  %v2277_v0 = vsel %vm2276_vm12, %v5127_v19, %v2275_v33  ;;  %vm2278_vm13 = vcmp.eq.f32.partialorder %v5127_v19, 0.0  ;;  %3224 = vrsqrt.f32 %v5205_v24 }
 0x2ca   : > { %v3219_v43 = vpop.eup %3218  ;;  %v2280_v40 = vsel %vm2278_vm13, %v2279_v48, %v2277_v0  ;;  %vm2444_vm8 = vcmp.eq.f32.partialorder %v5172_v61, inf  ;;  %vm2446_vm14 = vcmp.eq.f32.partialorder %v5172_v61, 0.0  ;;  %v2447_v45 = vand.u32 2147483648, %v5172_v61 }
 0x2cb   : > { %v5223_v11 = vsel %vm1827_vm2, %v2719_v59, %v5131_v10  ;;  %v2687_v21 = vrot.slane %v2280_v40, %v5970_v3  ;;  %v2443_v57 = vmul.f32 %v3219_v43, %v5172_v61  ;;  %v5227_v19 = vadd.f32 1e-07, %v1951_v26  ;;  %v1164_v44 = vpop.xlane.xlu0 %1163 }
 0x2cc   : > { %v1943_v4 = vmax.f32 %v1473_v58, 0.0  ;;  %v1497_v18 = vmul.f32 0.33333334, %v1433_v53  ;;  %v1425_v17 = vsub.f32 %v1209_v54, %v4985_v30  ;;  %v1394_v15 = vsub.f32 %v1116_v13, %v4596_v46  ;;  %v1092_v30 = vpop.xlane.xlu1 %1091 }
 0x2cd   : > { %v5233_v38 = vsel %vm1827_vm2, %v2687_v21, %v5141_v60  ;;  %v2445_v28 = vsel %vm2444_vm8, %v5172_v61, %v2443_v57  ;;  %vm2388_vm10 = vcmp.eq.f32.partialorder %v5187_v20, inf  ;;  %3226 = vrsqrt.f32 %v5227_v19 }
 0x2ce   : > { %v2448_v10 = vsel %vm2446_vm14, %v2447_v45, %v2445_v28  ;;  %vm2390_vm9 = vcmp.eq.f32.partialorder %v5187_v20, 0.0  ;;  %v2391_v49 = vand.u32 2147483648, %v5187_v20  ;;  %v5240_v35 = vadd.f32 1e-07, %v1943_v4 }
 0x2cf   : > { %v3221_v34 = vpop.eup %3220  ;;  %v2783_v46 = vrot.slane %v2448_v10, %v5970_v3  ;;  %v1967_v14 = vmax.f32 %v1497_v18, 0.0  ;;  %v1489_v60 = vmul.f32 0.33333334, %v1425_v17  ;;  %v1458_v41 = vmul.f32 0.33333334, %v1394_v15  ;;  %v1212_v15 = vpop.xlane.xlu0 %1211 }
 0x2d0   : > { %v2387_v61 = vmul.f32 %v3221_v34, %v5187_v20  ;;  %vm2227_vm15 = vcmp.eq.f32.partialorder %v5203_v5, inf  ;;  %vm2229_vm7 = vcmp.eq.f32.partialorder %v5203_v5, 0.0  ;;  %3228 = vrsqrt.f32 %v5240_v35  ;;  %v1140_v21 = vpop.xlane.xlu1 %1139 }
 0x2d1   : > { %v5249_v32 = vsel %vm1827_vm2, %v2783_v46, %v5162_v29  ;;  %v2230_v33 = vand.u32 2147483648, %v5203_v5  ;;  %v5252_v48 = vadd.f32 1e-07, %v1967_v14  ;;  %v1959_v26 = vmax.f32 %v1489_v60, 0.0 }
 0x2d2   : > { %v3223_v63 = vpop.eup %3222  ;;  %v2389_v58 = vsel %vm2388_vm10, %v5187_v20, %v2387_v61  ;;  %vm2171_vm1 = vcmp.eq.f32.partialorder %v5205_v24, inf  ;;  %v1928_v53 = vmax.f32 %v1458_v41, 0.0  ;;  %v1386_v54 = vsub.f32 %v1092_v30, %v4558_v16 }
 0x2d3   : > { %v3225_v59 = vpop.eup %3224  ;;  %v2392_v29 = vsel %vm2390_vm9, %v2391_v49, %v2389_v58  ;;  %v2226_v0 = vmul.f32 %v3223_v63, %v5203_v5  ;;  %3230 = vrsqrt.f32 %v5252_v48  ;;  %v1410_v13 = vsub.f32 %v1164_v44, %v4825_v25 }
 0x2d4   : > { %v2751_v43 = vrot.slane %v2392_v29, %v5970_v3  ;;  %v2170_v40 = vmul.f32 %v3225_v59, %v5205_v24  ;;  %vm2173_vm0 = vcmp.eq.f32.partialorder %v5205_v24, 0.0  ;;  %v2174_v45 = vand.u32 2147483648, %v5205_v24 }
 0x2d5   : > { %v2228_v16 = vsel %vm2227_vm15, %v5203_v5, %v2226_v0  ;;  %vm2339_vm11 = vcmp.eq.f32.partialorder %v5227_v19, inf  ;;  %v5272_v20 = vadd.f32 1e-07, %v1959_v26  ;;  %v5274_v57 = vadd.f32 1e-07, %v1928_v53  ;;  %v1095_v53 = vpop.xlane.xlu0 %1094 }
 0x2d6   : > { %v5278_v25 = vsel %vm1827_vm2, %v2751_v43, %v5169_v12  ;;  %v2231_v4 = vsel %vm2229_vm7, %v2230_v33, %v2228_v16  ;;  %v2172_v18 = vsel %vm2171_vm1, %v5205_v24, %v2170_v40  ;;  %v1450_v17 = vmul.f32 0.33333334, %v1386_v54 }
 0x2d7   : > { %v3227_v28 = vpop.eup %3226  ;;  %v2659_v10 = vrot.slane %v2231_v4, %v5970_v3  ;;  %v2175_v49 = vsel %vm2173_vm0, %v2174_v45, %v2172_v18  ;;  %3232 = vrsqrt.f32 %v5272_v20  ;;  %v1474_v30 = vmul.f32 0.33333334, %v1410_v13 }
 0x2d8   : > { %v2627_v34 = vrot.slane %v2175_v49, %v5970_v3  ;;  %v2338_v12 = vmul.f32 %v3227_v28, %v5227_v19  ;;  %vm2341_vm2 = vcmp.eq.f32.partialorder %v5227_v19, 0.0  ;;  %v2342_v5 = vand.u32 2147483648, %v5227_v19 }
 0x2d9   : > { %v5293_v24 = vsel %vm1829_vm3, %v2659_v10, %v5191_v42  ;;  %vm2283_vm12 = vcmp.eq.f32.partialorder %v5240_v35, inf  ;;  %vm2285_vm13 = vcmp.eq.f32.partialorder %v5240_v35, 0.0  ;;  %3234 = vrsqrt.f32 %v5274_v57  ;;  %v1188_v42 = vpop.xlane.xlu1 %1187 }
 0x2da   : > { %v3229_v46 = vpop.eup %3228  ;;  %v5300_v14 = vsel %vm1829_vm3, %v2627_v34, %v5196_v6  ;;  %v2340_v60 = vsel %vm2339_vm11, %v5227_v19, %v2338_v12  ;;  %v2286_v41 = vand.u32 2147483648, %v5240_v35  ;;  %v1920_v61 = vmax.f32 %v1450_v17, 0.0  ;;  %v1143_v12 = vpop.xlane.xlu0 %1142 }
 0x2db   : > { %v2343_v44 = vsel %vm2341_vm2, %v2342_v5, %v2340_v60  ;;  %v2282_v33 = vmul.f32 %v3229_v46, %v5240_v35  ;;  %v1944_v26 = vmax.f32 %v1474_v30, 0.0  ;;  %v1402_v63 = vsub.f32 %v1140_v21, %v4764_v27 }
 0x2dc   : > { %v2723_v58 = vrot.slane %v2343_v44, %v5970_v3  ;;  %vm2451_vm8 = vcmp.eq.f32.partialorder %v5252_v48, inf  ;;  %vm2453_vm14 = vcmp.eq.f32.partialorder %v5252_v48, 0.0  ;;  %v5311_v6 = vadd.f32 1e-07, %v1920_v61 }
 0x2dd   : > { %v3231_v19 = vpop.eup %3230  ;;  %v2284_v54 = vsel %vm2283_vm12, %v5240_v35, %v2282_v33  ;;  %v5316_v59 = vadd.f32 1e-07, %v1944_v26  ;;  %v1466_v29 = vmul.f32 0.33333334, %v1402_v63  ;;  %v1426_v0 = vsub.f32 %v1212_v15, %v4978_v51 }
 0x2de   : > { %v5321_v27 = vsel %vm1829_vm3, %v2723_v58, %v5223_v11  ;;  %v2287_v13 = vsel %vm2285_vm13, %v2286_v41, %v2284_v54  ;;  %v2450_v43 = vmul.f32 %v3231_v19, %v5252_v48  ;;  %3236 = vrsqrt.f32 %v5311_v6  ;;  %v1236_v11 = vpop.xlane.xlu1 %1235 }
 0x2df   : > { %v2691_v40 = vrot.slane %v2287_v13, %v5970_v3  ;;  %v2454_v45 = vand.u32 2147483648, %v5252_v48  ;;  %v1418_v21 = vsub.f32 %v1188_v42, %v4933_v9  ;;  %v1387_v16 = vsub.f32 %v1095_v53, %v4584_v7 }
 0x2e0   : > { %v2452_v51 = vsel %vm2451_vm8, %v5252_v48, %v2450_v43  ;;  %vm2395_vm10 = vcmp.eq.f32.partialorder %v5272_v20, inf  ;;  %vm2397_vm9 = vcmp.eq.f32.partialorder %v5272_v20, 0.0  ;;  %3238 = vrsqrt.f32 %v5316_v59 }
 0x2e1   : > { %v3233_v35 = vpop.eup %3232  ;;  %v5339_v4 = vsel %vm1829_vm3, %v2691_v40, %v5233_v38  ;;  %v2455_v9 = vsel %vm2453_vm14, %v2454_v45, %v2452_v51  ;;  %v2398_v7 = vand.u32 2147483648, %v5272_v20  ;;  %v1936_v18 = vmax.f32 %v1466_v29, 0.0 }
 0x2e2   : > { %v2787_v17 = vrot.slane %v2455_v9, %v5970_v3  ;;  %v2394_v15 = vmul.f32 %v3233_v35, %v5272_v20  ;;  %vm2178_vm15 = vcmp.eq.f32.partialorder %v5274_v57, inf  ;;  %v1490_v28 = vmul.f32 0.33333334, %v1426_v0 }
 0x2e3   : > { %v3235_v10 = vpop.eup %3234  ;;  %v5347_v49 = vadd.f32 1e-07, %v1936_v18  ;;  %v1482_v30 = vmul.f32 0.33333334, %v1418_v21  ;;  %v1451_v34 = vmul.f32 0.33333334, %v1387_v16  ;;  %v1434_v38 = vsub.f32 %v1236_v11, %v5020_v39  ;;  %v1191_v16 = vpop.xlane.xlu0 %1190 }
 0x2e4   : > { %v5352_v48 = vsel %vm1829_vm3, %v2787_v17, %v5249_v32  ;;  %v2396_v5 = vsel %vm2395_vm10, %v5272_v20, %v2394_v15  ;;  %v2177_v46 = vmul.f32 %v3235_v10, %v5274_v57  ;;  %v1960_v60 = vmax.f32 %v1490_v28, 0.0 }
 0x2e5   : > { %v2399_v41 = vsel %vm2397_vm9, %v2398_v7, %v2396_v5  ;;  %vm2180_vm7 = vcmp.eq.f32.partialorder %v5274_v57, 0.0  ;;  %v2181_v61 = vand.u32 2147483648, %v5274_v57  ;;  %3240 = vrsqrt.f32 %v5347_v49 }
 0x2e6   : > { %v2755_v39 = vrot.slane %v2399_v41, %v5970_v3  ;;  %v2179_v32 = vsel %vm2178_vm15, %v5274_v57, %v2177_v46  ;;  %v5367_v42 = vadd.f32 1e-07, %v1960_v60  ;;  %v1403_v44 = vsub.f32 %v1143_v12, %v4812_v47  ;;  %v1119_v57 = vpop.xlane.xlu1 %1118 }
 0x2e7   : > { %v2182_v33 = vsel %vm2180_vm7, %v2181_v61, %v2179_v32  ;;  %v1952_v26 = vmax.f32 %v1482_v30, 0.0  ;;  %v1921_v20 = vmax.f32 %v1451_v34, 0.0  ;;  %v1498_v63 = vmul.f32 0.33333334, %v1434_v38 }
 0x2e8   : > { %v3237_v58 = vpop.eup %3236  ;;  %v5372_v53 = vsel %vm1829_vm3, %v2755_v39, %v5278_v25  ;;  %v2631_v19 = vrot.slane %v2182_v33, %v5970_v3  ;;  %vm2122_vm1 = vcmp.eq.f32.partialorder %v5311_v6, inf  ;;  %3242 = vrsqrt.f32 %v5367_v42 }
 0x2e9   : > { %v2121_v54 = vmul.f32 %v3237_v58, %v5311_v6  ;;  %vm2124_vm0 = vcmp.eq.f32.partialorder %v5311_v6, 0.0  ;;  %v2125_v47 = vand.u32 2147483648, %v5311_v6  ;;  %v5380_v29 = vadd.f32 1e-07, %v1952_v26 }
 0x2ea   : > { %v3239_v0 = vpop.eup %3238  ;;  %v5384_v25 = vsel %vm1831_vm4, %v2631_v19, %v5300_v14  ;;  %v5386_v13 = vadd.f32 1e-07, %v1921_v20  ;;  %v1968_v43 = vmax.f32 %v1498_v63, 0.0  ;;  %v1467_v40 = vmul.f32 0.33333334, %v1403_v44  ;;  %v1167_v17 = vpop.xlane.xlu1 %1166 }
 0x2eb   : > { %v2123_v45 = vsel %vm2122_vm1, %v5311_v6, %v2121_v54  ;;  %v2289_v21 = vmul.f32 %v3239_v0, %v5316_v59  ;;  %vm2290_vm3 = vcmp.eq.f32.partialorder %v5316_v59, inf  ;;  %3244 = vrsqrt.f32 %v5380_v29 }
 0x2ec   : > { %v2126_v51 = vsel %vm2124_vm0, %v2125_v47, %v2123_v45  ;;  %vm2292_vm11 = vcmp.eq.f32.partialorder %v5316_v59, 0.0  ;;  %v2293_v11 = vand.u32 2147483648, %v5316_v59  ;;  %3246 = vrsqrt.f32 %v5386_v13 }
 0x2ed   : > { %v2599_v14 = vrot.slane %v2126_v51, %v5970_v3  ;;  %v2291_v35 = vsel %vm2290_vm3, %v5316_v59, %v2289_v21  ;;  %vm2234_vm2 = vcmp.eq.f32.partialorder %v5347_v49, inf  ;;  %vm2236_vm12 = vcmp.eq.f32.partialorder %v5347_v49, 0.0 }
 0x2ee   : > { %v2294_v6 = vsel %vm2292_vm11, %v2293_v11, %v2291_v35  ;;  %v2237_v9 = vand.u32 2147483648, %v5347_v49  ;;  %v5400_v7 = vadd.f32 1e-07, %v1968_v43  ;;  %v1937_v18 = vmax.f32 %v1467_v40, 0.0  ;;  %v1215_v26 = vpop.xlane.xlu1 %1214 }
 0x2ef   : > { %v3241_v15 = vpop.eup %3240  ;;  %v5404_v28 = vsel %vm1831_vm4, %v2599_v14, %v4853_v50  ;;  %v2695_v10 = vrot.slane %v2294_v6, %v5970_v3  ;;  %v1395_v59 = vsub.f32 %v1119_v57, %v4621_v62  ;;  %v1419_v30 = vsub.f32 %v1191_v16, %v4955_v22  ;;  %v1239_v62 = vpop.xlane.xlu0 %1238 }
 0x2f0   : > { %v2233_v34 = vmul.f32 %v3241_v15, %v5347_v49  ;;  %vm2402_vm13 = vcmp.eq.f32.partialorder %v5367_v42, inf  ;;  %vm2404_vm8 = vcmp.eq.f32.partialorder %v5367_v42, 0.0  ;;  %3248 = vrsqrt.f32 %v5400_v7 }
 0x2f1   : > { %v5415_v38 = vsel %vm1831_vm4, %v2695_v10, %v5339_v4  ;;  %v2405_v50 = vand.u32 2147483648, %v5367_v42  ;;  %v5418_v12 = vadd.f32 1e-07, %v1937_v18  ;;  %v1459_v5 = vmul.f32 0.33333334, %v1395_v59 }
 0x2f2   : > { %v3243_v46 = vpop.eup %3242  ;;  %v2235_v22 = vsel %vm2234_vm2, %v5347_v49, %v2233_v34  ;;  %vm2346_vm14 = vcmp.eq.f32.partialorder %v5380_v29, inf  ;;  %v1483_v60 = vmul.f32 0.33333334, %v1419_v30  ;;  %v1411_v41 = vsub.f32 %v1167_v17, %v4871_v8 }
 0x2f3   : > { %v2238_v4 = vsel %vm2236_vm12, %v2237_v9, %v2235_v22  ;;  %v2401_v61 = vmul.f32 %v3243_v46, %v5367_v42  ;;  %vm2348_vm10 = vcmp.eq.f32.partialorder %v5380_v29, 0.0  ;;  %3250 = vrsqrt.f32 %v5418_v12  ;;  %v1122_v21 = vpop.xlane.xlu0 %1121  ;;  %v1098_v9 = vpop.xlane.xlu1 %1097 }
 0x2f4   : > { %v2663_v39 = vrot.slane %v2238_v4, %v5970_v3  ;;  %v2349_v32 = vand.u32 2147483648, %v5380_v29  ;;  %v1929_v44 = vmax.f32 %v1459_v5, 0.0  ;;  %v1435_v33 = vsub.f32 %v1239_v62, %v5154_v52 }
 0x2f5   : > { %v3245_v20 = vpop.eup %3244  ;;  %v2403_v8 = vsel %vm2402_vm13, %v5367_v42, %v2401_v61  ;;  %vm2129_vm9 = vcmp.eq.f32.partialorder %v5386_v13, inf  ;;  %v1953_v49 = vmax.f32 %v1483_v60, 0.0  ;;  %v1475_v63 = vmul.f32 0.33333334, %v1411_v41 }
 0x2f6   : > { %v3247_v58 = vpop.eup %3246  ;;  %v5439_v19 = vsel %vm1831_vm4, %v2663_v39, %v5293_v24  ;;  %v2406_v57 = vsel %vm2404_vm8, %v2405_v50, %v2403_v8  ;;  %v2345_v52 = vmul.f32 %v3245_v20, %v5380_v29  ;;  %v5444_v54 = vadd.f32 1e-07, %v1929_v44 }
 0x2f7   : > { %v2759_v47 = vrot.slane %v2406_v57, %v5970_v3  ;;  %v2128_v0 = vmul.f32 %v3247_v58, %v5386_v13  ;;  %v2132_v43 = vand.u32 2147483648, %v5386_v13  ;;  %v5449_v40 = vadd.f32 1e-07, %v1953_v49  ;;  %v1170_v46 = vpop.xlane.xlu0 %1169 }
 0x2f8   : > { %v2347_v24 = vsel %vm2346_vm14, %v5380_v29, %v2345_v52  ;;  %3252 = vrsqrt.f32 %v5444_v54  ;;  %v1945_v42 = vmax.f32 %v1475_v63, 0.0  ;;  %v1499_v45 = vmul.f32 0.33333334, %v1435_v33 }
 0x2f9   : > { %v5457_v16 = vsel %vm1831_vm4, %v2759_v47, %v5372_v53  ;;  %v2350_v51 = vsel %vm2348_vm10, %v2349_v32, %v2347_v24  ;;  %v2130_v11 = vsel %vm2129_vm9, %v5386_v13, %v2128_v0  ;;  %vm2131_vm15 = vcmp.eq.f32.partialorder %v5386_v13, 0.0 }
 0x2fa   : > { %v3249_v14 = vpop.eup %3248  ;;  %v2727_v35 = vrot.slane %v2350_v51, %v5970_v3  ;;  %v2133_v6 = vsel %vm2131_vm15, %v2132_v43, %v2130_v11  ;;  %vm2458_vm7 = vcmp.eq.f32.partialorder %v5400_v7, inf  ;;  %3254 = vrsqrt.f32 %v5449_v40 }
 0x2fb   : > { %v2603_v53 = vrot.slane %v2133_v6, %v5970_v3  ;;  %v2457_v29 = vmul.f32 %v3249_v14, %v5400_v7  ;;  %vm2460_vm1 = vcmp.eq.f32.partialorder %v5400_v7, 0.0  ;;  %v2461_v18 = vand.u32 2147483648, %v5400_v7  ;;  %v1218_v58 = vpop.xlane.xlu0 %1217 }
 0x2fc   : > { %v5474_v13 = vsel %vm1831_vm4, %v2727_v35, %v5321_v27  ;;  %v5476_v17 = vadd.f32 1e-07, %v1945_v42  ;;  %v1969_v15 = vmax.f32 %v1499_v45, 0.0  ;;  %v1427_v10 = vsub.f32 %v1215_v26, %v5007_v23  ;;  %v1146_v26 = vpop.xlane.xlu1 %1145 }
 0x2fd   : > { %v3251_v59 = vpop.eup %3250  ;;  %v5481_v30 = vsel %vm1833_vm5, %v2603_v53, %v5404_v28  ;;  %v2459_v34 = vsel %vm2458_vm7, %v5400_v7, %v2457_v29  ;;  %v1396_v50 = vsub.f32 %v1122_v21, %v4608_v55  ;;  %v1388_v5 = vsub.f32 %v1098_v9, %v4571_v36 }
 0x2fe   : > { %v2462_v62 = vsel %vm2460_vm1, %v2461_v18, %v2459_v34  ;;  %v2240_v27 = vmul.f32 %v3251_v59, %v5418_v12  ;;  %vm2241_vm0 = vcmp.eq.f32.partialorder %v5418_v12, inf  ;;  %3256 = vrsqrt.f32 %v5476_v17 }
 0x2ff   : > { %v2791_v23 = vrot.slane %v2462_v62, %v5970_v3  ;;  %vm2243_vm3 = vcmp.eq.f32.partialorder %v5418_v12, 0.0  ;;  %v2244_v28 = vand.u32 2147483648, %v5418_v12  ;;  %v5492_v22 = vadd.f32 1e-07, %v1969_v15 }
 0x300   : > { %v2242_v55 = vsel %vm2241_vm0, %v5418_v12, %v2240_v27  ;;  %v1491_v7 = vmul.f32 0.33333334, %v1427_v10  ;;  %v1460_v36 = vmul.f32 0.33333334, %v1396_v50  ;;  %v1452_v60 = vmul.f32 0.33333334, %v1388_v5 }
 0x301   : > { %v5497_v41 = vsel %vm1831_vm4, %v2791_v23, %v5352_v48  ;;  %v2245_v4 = vsel %vm2243_vm3, %v2244_v28, %v2242_v55  ;;  %vm2185_vm11 = vcmp.eq.f32.partialorder %v5444_v54, inf  ;;  %3258 = vrsqrt.f32 %v5492_v22  ;;  %v1245_v23 = vpop.xlane.xlu0 %1244 }
 0x302   : > { %v3253_v61 = vpop.eup %3252  ;;  %v2667_v39 = vrot.slane %v2245_v4, %v5970_v3  ;;  %vm2187_vm2 = vcmp.eq.f32.partialorder %v5444_v54, 0.0  ;;  %v2188_v32 = vand.u32 2147483648, %v5444_v54  ;;  %v1961_v12 = vmax.f32 %v1491_v7, 0.0 }
 0x303   : > { %v2184_v44 = vmul.f32 %v3253_v61, %v5444_v54  ;;  %vm2353_vm12 = vcmp.eq.f32.partialorder %v5449_v40, inf  ;;  %v1930_v33 = vmax.f32 %v1460_v36, 0.0  ;;  %v1922_v48 = vmax.f32 %v1452_v60, 0.0 }
 0x304   : > { %v3255_v20 = vpop.eup %3254  ;;  %v5508_v8 = vsel %vm1833_vm5, %v2667_v39, %v5439_v19  ;;  %vm2355_vm4 = vcmp.eq.f32.partialorder %v5449_v40, 0.0  ;;  %v2356_v49 = vand.u32 2147483648, %v5449_v40  ;;  %v5512_v63 = vadd.f32 1e-07, %v1961_v12 }
 0x305   : > { %v2186_v57 = vsel %vm2185_vm11, %v5444_v54, %v2184_v44  ;;  %v2352_v52 = vmul.f32 %v3255_v20, %v5449_v40  ;;  %v5518_v47 = vadd.f32 1e-07, %v1930_v33  ;;  %v5520_v0 = vadd.f32 1e-07, %v1922_v48 }
 0x306   : > { %v2189_v19 = vsel %vm2187_vm2, %v2188_v32, %v2186_v57  ;;  %3260 = vrsqrt.f32 %v5512_v63  ;;  %v1412_v43 = vsub.f32 %v1170_v46, %v4862_v2  ;;  %v1404_v24 = vsub.f32 %v1146_v26, %v4805_v1  ;;  %v6041_v2 = vld [vmem:[#allocation19_spill] sm:$0xff]  ;;  %v6042_v1 = vld [vmem:[#allocation106_spill] sm:$0xff] }
 0x307   : > { %v2635_v42 = vrot.slane %v2189_v19, %v5970_v3  ;;  %v2354_v45 = vsel %vm2353_vm12, %v5449_v40, %v2352_v52  ;;  %3262 = vrsqrt.f32 %v5518_v47  ;;  %v1428_v21 = vsub.f32 %v1218_v58, %v5011_v37  ;;  %v1194_v37 = vpop.xlane.xlu1 %1193 }
 0x308   : > { %v3257_v51 = vpop.eup %3256  ;;  %v2357_v54 = vsel %vm2355_vm4, %v2356_v49, %v2354_v45  ;;  %vm2297_vm13 = vcmp.eq.f32.partialorder %v5476_v17, inf  ;;  %vm2299_vm8 = vcmp.eq.f32.partialorder %v5476_v17, 0.0  ;;  %v1373_v11 = vmul.f32 %v6042_v1, %v6041_v2 }
 0x309   : > { %v5541_v14 = vsel %vm1833_vm5, %v2635_v42, %v5384_v25  ;;  %v2731_v35 = vrot.slane %v2357_v54, %v5970_v3  ;;  %v2296_v6 = vmul.f32 %v3257_v51, %v5476_v17  ;;  %3264 = vrsqrt.f32 %v5520_v0 }
 0x30a   : > { %v2300_v40 = vand.u32 2147483648, %v5476_v17  ;;  %vm2465_vm14 = vcmp.eq.f32.partialorder %v5492_v22, inf  ;;  %vm2467_vm10 = vcmp.eq.f32.partialorder %v5492_v22, 0.0  ;;  %v1476_v9 = vmul.f32 0.33333334, %v1412_v43 }
 0x30b   : > { %v3259_v53 = vpop.eup %3258  ;;  %v5551_v29 = vsel %vm1833_vm5, %v2731_v35, %v5474_v13  ;;  %v2298_v25 = vsel %vm2297_vm13, %v5476_v17, %v2296_v6  ;;  %v1468_v18 = vmul.f32 0.33333334, %v1404_v24  ;;  %v1492_v15 = vmul.f32 0.33333334, %v1428_v21  ;;  %v1242_v36 = vpop.xlane.xlu1 %1241 }
 0x30c   : > { %v2301_v10 = vsel %vm2299_vm8, %v2300_v40, %v2298_v25  ;;  %v2464_v59 = vmul.f32 %v3259_v53, %v5492_v22  ;;  %v2468_v34 = vand.u32 2147483648, %v5492_v22  ;;  %v1946_v50 = vmax.f32 %v1476_v9, 0.0 }
 0x30d   : > { %v2699_v5 = vrot.slane %v2301_v10, %v5970_v3  ;;  %v1938_v62 = vmax.f32 %v1468_v18, 0.0  ;;  %v1962_v27 = vmax.f32 %v1492_v15, 0.0  ;;  %v1420_v46 = vsub.f32 %v1194_v37, %v4944_v31 }
 0x30e   : > { %v2466_v13 = vsel %vm2465_vm14, %v5492_v22, %v2464_v59  ;;  %vm2409_vm9 = vcmp.eq.f32.partialorder %v5512_v63, inf  ;;  %vm2411_vm15 = vcmp.eq.f32.partialorder %v5512_v63, 0.0  ;;  %v5565_v17 = vadd.f32 1e-07, %v1946_v50 }
 0x30f   : > { %v5569_v28 = vsel %vm1833_vm5, %v2699_v5, %v5415_v38  ;;  %v2469_v55 = vsel %vm2467_vm10, %v2468_v34, %v2466_v13  ;;  %v5573_v7 = vadd.f32 1e-07, %v1938_v62  ;;  %v5575_v31 = vadd.f32 1e-07, %v1962_v27 }
 0x310   : > { %v3261_v60 = vpop.eup %3260  ;;  %v2795_v4 = vrot.slane %v2469_v55, %v5970_v3  ;;  %v2412_v61 = vand.u32 2147483648, %v5512_v63  ;;  %vm2192_vm7 = vcmp.eq.f32.partialorder %v5518_v47, inf  ;;  %3266 = vrsqrt.f32 %v5565_v17 }
 0x311   : > { %v3263_v39 = vpop.eup %3262  ;;  %v2408_v38 = vmul.f32 %v3261_v60, %v5512_v63  ;;  %3268 = vrsqrt.f32 %v5573_v7  ;;  %v1484_v22 = vmul.f32 0.33333334, %v1420_v46  ;;  %v1437_v32 = vsub.f32 %v1245_v23, %v1373_v11 }
 0x312   : > { %v5585_v12 = vsel %vm1833_vm5, %v2795_v4, %v5497_v41  ;;  %v2191_v44 = vmul.f32 %v3263_v39, %v5518_v47  ;;  %vm2194_vm1 = vcmp.eq.f32.partialorder %v5518_v47, 0.0  ;;  %v1436_v33 = vsub.f32 %v1242_v36, %v5158_v56 }
 0x313   : > { %v3265_v48 = vpop.eup %3264  ;;  %v2410_v26 = vsel %vm2409_vm9, %v5512_v63, %v2408_v38  ;;  %v2195_v20 = vand.u32 2147483648, %v5518_v47  ;;  %vm2136_vm0 = vcmp.eq.f32.partialorder %v5520_v0, inf  ;;  %3270 = vrsqrt.f32 %v5575_v31 }
 0x314   : > { %v2413_v41 = vsel %vm2411_vm15, %v2412_v61, %v2410_v26  ;;  %v2193_v49 = vsel %vm2192_vm7, %v5518_v47, %v2191_v44  ;;  %v2135_v56 = vmul.f32 %v3265_v48, %v5520_v0  ;;  %v2139_v58 = vand.u32 2147483648, %v5520_v0 }
 0x315   : > { %v2763_v57 = vrot.slane %v2413_v41, %v5970_v3  ;;  %v2196_v52 = vsel %vm2194_vm1, %v2195_v20, %v2193_v49  ;;  %v1954_v19 = vmax.f32 %v1484_v22, 0.0  ;;  %v1501_v43 = vmul.f32 0.33333334, %v1437_v32 }
 0x316   : > { %v2639_v24 = vrot.slane %v2196_v52, %v5970_v3  ;;  %v2137_v42 = vsel %vm2136_vm0, %v5520_v0, %v2135_v56  ;;  %vm2138_vm3 = vcmp.eq.f32.partialorder %v5520_v0, 0.0  ;;  %v1500_v63 = vmul.f32 0.33333334, %v1436_v33 }
 0x317   : > { %v2850_v47 = vsel %vm1833_vm5, %v2763_v57, %v5457_v16  ;;  %v2140_v45 = vsel %vm2138_vm3, %v2139_v58, %v2137_v42  ;;  %v2018_v21 = vadd.f32 1e-07, %v1954_v19  ;;  %v1971_v51 = vmax.f32 %v1501_v43, 0.0 }
 0x318   : > { %v2823_v54 = vsel %vm1835_vm6, %v2639_v24, %v5541_v14  ;;  %v2607_v2 = vrot.slane %v2140_v45, %v5970_v3  ;;  %v1970_v1 = vmax.f32 %v1500_v63, 0.0  ;;  %vm6043_vm11 = vcmask 15360  }
 0x319   : > { %2870 = vst.msk [vmem:[%s4744_s22 + $0xf] sm:$0xff] %vm6043_vm11, %v2823_v54  ;;  %3272 = vrsqrt.f32 %v2018_v21  ;;  %v2035_v35 = vadd.f32 1e-07, %v1971_v51  ;;  %vm6044_vm5 = vmmov %vm6043_vm11  ;;  %vm2304_vm2 = vcmp.eq.f32.partialorder %v5565_v17, inf  ;;  %vm2306_vm12 = vcmp.eq.f32.partialorder %v5565_v17, 0.0 }
 0x31a   : > { %v3267_v11 = vpop.eup %3266  ;;  %v2816_v0 = vsel %vm1835_vm6, %v2607_v2, %v5481_v30  ;;  %v2034_v6 = vadd.f32 1e-07, %v1970_v1  ;;  %v2307_v14 = vand.u32 2147483648, %v5565_v17  ;;  %vm2248_vm4 = vcmp.eq.f32.partialorder %v5573_v7, inf  ;;  %vm6045_vm10 = vmmov %vm6044_vm5 }
 0x31b   : > { %v3269_v37 = vpop.eup %3268  ;;  %2869 = vst.msk [vmem:[%s4744_s22 + $0x7] sm:$0xff] %vm6044_vm5, %v2816_v0  ;;  %v2303_v16 = vmul.f32 %v3267_v11, %v5565_v17  ;;  %3274 = vrsqrt.f32 %v2035_v35  ;;  %v2251_v30 = vand.u32 2147483648, %v5573_v7  ;;  %vm2250_vm13 = vcmp.eq.f32.partialorder %v5573_v7, 0.0  ;;  %vm6046_vm9 = vmmov %vm6044_vm5 }
 0x31c   : > { %v2247_v40 = vmul.f32 %v3269_v37, %v5573_v7  ;;  %3276 = vrsqrt.f32 %v2034_v6  ;;  %vm2416_vm8 = vcmp.eq.f32.partialorder %v5575_v31, inf  ;;  %v2419_v34 = vand.u32 2147483648, %v5575_v31  ;;  %vm6047_vm15 = vmmov %vm6044_vm5 }
 0x31d   : > { %v3271_v9 = vpop.eup %3270  ;;  %v2305_v53 = vsel %vm2304_vm2, %v5565_v17, %v2303_v16  ;;  %vm2418_vm14 = vcmp.eq.f32.partialorder %v5575_v31, 0.0  ;;  %vm2360_vm7 = vcmp.eq.f32.partialorder %v2018_v21, inf  ;;  %vm2362_vm1 = vcmp.eq.f32.partialorder %v2018_v21, 0.0  ;;  %vm6048_vm2 = vmmov %vm6046_vm9 }
 0x31e   : > { %v2308_v25 = vsel %vm2306_vm12, %v2307_v14, %v2305_v53  ;;  %v2249_v18 = vsel %vm2248_vm4, %v5573_v7, %v2247_v40  ;;  %v2415_v15 = vmul.f32 %v3271_v9, %v5575_v31  ;;  %v2363_v7 = vand.u32 2147483648, %v2018_v21  ;;  %vm6050_vm4 = vmmov %vm6048_vm2 }
 0x31f   : > { %v2703_v10 = vrot.slane %v2308_v25, %v5970_v3  ;;  %v2252_v59 = vsel %vm2250_vm13, %v2251_v30, %v2249_v18  ;;  %vm2479_vm0 = vcmp.eq.f32.partialorder %v2035_v35, inf  ;;  %v2482_v61 = vand.u32 2147483648, %v2035_v35 }
 0x320   : > { %v2671_v50 = vrot.slane %v2252_v59, %v5970_v3  ;;  %v2417_v5 = vsel %vm2416_vm8, %v5575_v31, %v2415_v15  ;;  %vm2481_vm3 = vcmp.eq.f32.partialorder %v2035_v35, 0.0  ;;  %vm2472_vm11 = vcmp.eq.f32.partialorder %v2034_v6, inf }
 0x321   : > { %v2837_v62 = vsel %vm1835_vm6, %v2703_v10, %v5569_v28  ;;  %v2420_v27 = vsel %vm2418_vm14, %v2419_v34, %v2417_v5  ;;  %v2475_v22 = vand.u32 2147483648, %v2034_v6  ;;  %vm2474_vm5 = vcmp.eq.f32.partialorder %v2034_v6, 0.0 }
 0x322   : > { %2872 = vst.msk [vmem:[%s4744_s22 + $0x1f] sm:$0xff] %vm6045_vm10, %v2837_v62  ;;  %v2830_v46 = vsel %vm1835_vm6, %v2671_v50, %v5508_v8  ;;  %v2767_v13 = vrot.slane %v2420_v27, %v5970_v3  ;;  %vm6049_vm12 = vcmask 8192  }
 0x323   : > { %v3273_v17 = vpop.eup %3272  ;;  %2871 = vst.msk [vmem:[%s4744_s22 + $0x17] sm:$0xff] %vm6046_vm9, %v2830_v46 }
 0x324   : > { %v2851_v23 = vsel %vm1835_vm6, %v2767_v13, %v2850_v47  ;;  %v2359_v55 = vmul.f32 %v3273_v17, %v2018_v21 }
 0x325   : > { %2874 = vst.msk [vmem:[%s4744_s22 + $0x2f] sm:$0xff] %vm6047_vm15, %v2851_v23  ;;  %v3275_v31 = vpop.eup %3274 }
 0x326   : > { %v2361_v28 = vsel %vm2360_vm7, %v2018_v21, %v2359_v55  ;;  %v3277_v36 = vpop.eup %3276  ;;  %v2478_v4 = vmul.f32 %v3275_v31, %v2035_v35 }
 0x327   : > { %v2364_v60 = vsel %vm2362_vm1, %v2363_v7, %v2361_v28  ;;  %v2471_v39 = vmul.f32 %v3277_v36, %v2034_v6 }
 0x328   : > { %v2735_v8 = vrot.slane %v2364_v60, %v5970_v3  ;;  %v2480_v38 = vsel %vm2479_vm0, %v2035_v35, %v2478_v4 }
 0x329   : > { %v2483_v44 = vsel %vm2481_vm3, %v2482_v61, %v2480_v38  ;;  %v2473_v33 = vsel %vm2472_vm11, %v2034_v6, %v2471_v39 }
 0x32a   : > { %v2844_v32 = vsel %vm1835_vm6, %v2735_v8, %v5551_v29  ;;  %v2803_v48 = vrot.slane %v2483_v44, %v5970_v3  ;;  %v2476_v26 = vsel %vm2474_vm5, %v2475_v22, %v2473_v33 }
 0x32b   : > { %2873 = vst.msk [vmem:[%s4744_s22 + $0x27] sm:$0xff] %vm6048_vm2, %v2844_v32  ;;  %v2799_v20 = vrot.slane %v2476_v26, %v5970_v3 }
 0x32c   : > { %2876 = vst.msk [vmem:[%s4744_s22 + $0x3f] sm:$0x1] %vm6049_vm12, %v2803_v48 }
 0x32d   : > { %v2858_v41 = vsel %vm1835_vm6, %v2799_v20, %v5585_v12 }
 0x32e   : > { %2875 = vst.msk [vmem:[%s4744_s22 + $0x37] sm:$0xff] %vm6050_vm4, %v2858_v41 }
 0x32f PF: > { %s13_s9 = sadd.s32 1, %s3284_s9  }
 0x330   : > { %p10_p4 = scmp.ge.s32.totalorder %s13_s9, 4  }
 0x332   :  { %12 = sbr.rel (!%p10_p4) target bundleno = 1 (0x1), region = 66 }

// kernel: _lambda_.13
= control target key start
LH: loop header
LB: loop body
LE: loop exit
PB: predicated region body
PF: predicated region fallthrough
CT: control target
= control target key end

     0   :  { %s2424_s13 = smov 0   ;;  %s3101_s0 = inlined_call_operand.vmem [shape: bf16[2,4,32,24], index: 0, kind: input, shape index: {}]   ;;  %s3102_s1 = inlined_call_operand.vmem [shape: bf16[3,64,96], index: 1, kind: input, shape index: {}]   ;;  %s3103_s2 = inlined_call_operand.vmem [shape: f32[64,1], index: 2, kind: input, shape index: {}]   ;;  %s3104_s3 = inlined_call_operand.vmem [shape: f32[64,1], index: 3, kind: input, shape index: {}]   ;;  %s3105_s4 = inlined_call_operand.vmem [shape: bf16[3,64,192], index: 4, kind: input, shape index: {}]   ;;  %s3106_s5 = inlined_call_operand.vmem [shape: f32[64,1], index: 5, kind: input, shape index: {}]   ;;  %s3107_s6 = inlined_call_operand.vmem [shape: f32[64,1], index: 6, kind: input, shape index: {}]   ;;  %s3108_s7 = inlined_call_operand.vmem [shape: bf16[64,32], index: 7, kind: input, shape index: {}]   ;;  %s3109_s8 = inlined_call_operand.vmem [shape: f32[64,1], index: 8, kind: input, shape index: {}]   ;;  %s3110_s9 = inlined_call_operand.vmem [shape: f32[64,1], index: 9, kind: input, shape index: {}]   ;;  %s3111_s10 = inlined_call_operand.vmem [shape: bf16[2,64,30], index: 10, kind: output, shape index: {}]  }
   0x1 LB: > { %s1946_s14 = sadd.s32 4294967295, %s2361_s13   ;;  %p1950_p0 = scmp.ge.s32.totalorder %s2361_s13, 1  ;;  %s2361_s13 = sphi %s2424_s13, %s20_s13  }
   0x2   : > { %p312_p1 = scmp.lt.s32.totalorder %s2361_s13, 3 }
   0x4   : > { %p313_p2 = pnand %p1950_p0, %p312_p1 }
   0x5   : > { %p350_p3 = scmp.lt.s32.totalorder (!%p313_p2), %s1946_s14, 1  ;;  %v2301_v0 = vld [vmem:[%s3102_s1 + $0x20] sm:$0xff] (!%p313_p2)   ;;  %vm477_vm0 = vcmask (!%p313_p2), 785408   ;;  %s2363_s21 = smov (!%p313_p2), 127   ;;  %v2302_v13 = vld [vmem:[%s3102_s1 + $0x28] sm:$0xff] (!%p313_p2)   ;;  %v2303_v14 = vld [vmem:[%s3102_s1 + $0x30] sm:$0xff] (!%p313_p2)   ;;  %v904_v48 = vlaneseq (!%p313_p2) }
   0x6   : > { %316 = sbr.rel (%p313_p2) target bundleno = 1304 (0x518), region = 60  ;;  %2149 = vmatprep.mubr.msk.bf16.mxu0 (!%p313_p2), %vm477_vm0, %v2301_v0  ;;  %s2364_s22 = smov (!%p313_p2), 122   ;;  %v784_v15 = vld [vmem:[%s3103_s2] sm:$0xff] (!%p313_p2)  ;;  %v2365_v16 = vmov (!%p313_p2), 0   ;;  %v785_v17 = vld [vmem:[%s3103_s2 + $0x8] sm:$0xff] (!%p313_p2)  ;;  %v2304_v20 = vld [vmem:[%s3102_s1 + $0x38] sm:$0xff] (!%p313_p2)  }
   0x7   : > { %2292 = vset.pattern.permute.xlu1 (!%p313_p2), %v2365_v16  ;;  %2291 = vset.pattern.permute.xlu0 (!%p313_p2), %v2365_v16  ;;  %v841_v18 = vld [vmem:[%s3104_s3 + $0x8] sm:$0xff] (!%p313_p2)  ;;  %v840_v19 = vld [vmem:[%s3104_s3] sm:$0xff] (!%p313_p2)  ;;  %v787_v22 = vld [vmem:[%s3103_s2 + $0x18] sm:$0xff] (!%p313_p2)  ;;  %vm937_vm1 = vcmask (!%p313_p2), 56320   ;;  %v905_v50 = vand.u32 (!%p313_p2), 127, %v904_v48  ;;  %s2366_s12 = smov (!%p313_p2), 7  }
   0x8   : > { %1102 = vmatprep.subr.bf16.mxu1 (!%p313_p2), %v2365_v16  ;;  %v2305_v21 = vld [vmem:[%s3102_s1] sm:$0xff] (!%p313_p2)   ;;  %v786_v23 = vld [vmem:[%s3103_s2 + $0x10] sm:$0xff] (!%p313_p2)  ;;  %v843_v24 = vld [vmem:[%s3104_s3 + $0x18] sm:$0xff] (!%p313_p2)  ;;  %939 = vst.msk [vmem:[#allocation2 + $0x8] sm:$0xff] (!%p313_p2), %vm937_vm1, %v2365_v16  ;;  %vm958_vm6 = vcmask (!%p313_p2), 154680   ;;  %vm963_vm7 = vcmask (!%p313_p2), 244888  }
   0x9   : > { %v842_v25 = vld [vmem:[%s3104_s3 + $0x10] sm:$0xff] (!%p313_p2)  ;;  %v789_v26 = vld [vmem:[%s3103_s2 + $0x28] sm:$0xff] (!%p313_p2)  ;;  %v788_v27 = vld [vmem:[%s3103_s2 + $0x20] sm:$0xff] (!%p313_p2)  ;;  %938 = vst.msk [vmem:[#allocation2] sm:$0xff] (!%p313_p2), %vm937_vm1, %v2365_v16  ;;  %v2562_v53 = vmul.u32.u64.low (!%p313_p2), 2863311531, %v905_v50  ;;  %v2563_v54 = vmul.u32.u64.high 2863311531, %v905_v50, %v2562_v53 }
   0xa   : > { %v845_v28 = vld [vmem:[%s3104_s3 + $0x28] sm:$0xff] (!%p313_p2)  ;;  %v844_v30 = vld [vmem:[%s3104_s3 + $0x20] sm:$0xff] (!%p313_p2)  ;;  %v2307_v32 = vld [vmem:[%s3102_s1 + $0x10] sm:$0xff] (!%p313_p2)   ;;  %940 = vst.msk [vmem:[#allocation2 + $0x10] sm:$0xff] (!%p313_p2), %vm937_vm1, %v2365_v16  ;;  %s2367_s15 = smov (!%p313_p2), 126   ;;  %vm1089_vm8 = vcmask (!%p313_p2), 523264  }
   0xb   : > { %v2306_v31 = vld [vmem:[%s3102_s1 + $0x8] sm:$0xff] (!%p313_p2)   ;;  %v791_v33 = vld [vmem:[%s3103_s2 + $0x38] sm:$0xff] (!%p313_p2)  ;;  %v790_v35 = vld [vmem:[%s3103_s2 + $0x30] sm:$0xff] (!%p313_p2)  ;;  %941 = vst.msk [vmem:[#allocation2 + $0x18] sm:$0xff] (!%p313_p2), %vm937_vm1, %v2365_v16  ;;  %v912_v57 = vshrl.u32 (!%p313_p2), %v2563_v54, 2  ;;  %vm1602_vm9 = vcmask (!%p313_p2), 261120  }
   0xc   : > { %v847_v36 = vld [vmem:[%s3104_s3 + $0x38] sm:$0xff] (!%p313_p2)  ;;  %v846_v38 = vld [vmem:[%s3104_s3 + $0x30] sm:$0xff] (!%p313_p2)  ;;  %v2309_v40 = vld [vmem:[%s3102_s1 + $0x40] sm:$0xff] (!%p313_p2)   ;;  %vm1820_vm10 = vcmask (!%p313_p2), 52224   ;;  %vm1873_vm11 = vcmask (!%p313_p2), 150584   ;;  %vm1882_vm12 = vcmask (!%p313_p2), 240792  }
   0xd   : > { %s3117_s14 = smov (!%p350_p3, %s1946_s14), 1  ;;  %v2308_v39 = vld [vmem:[%s3102_s1 + $0x18] sm:$0xff]   ;;  %v2310_v44 = vld [vmem:[%s3102_s1 + $0x48] sm:$0xff]   ;;  %v2311_v45 = vld [vmem:[%s3102_s1 + $0x50] sm:$0xff]   ;;  %v913_v60 = vmul.u32 6, %v912_v57 }
   0xe   : > { %s2091_s17 = sshll.u32 %s3117_s14, 6  ;;  %v2312_v46 = vld [vmem:[%s3102_s1 + $0x58] sm:$0xff]   ;;  %s2092_s24 = sshll.u32 %s3117_s14, 5 }
   0xf   : > { %s2442_s20 = scalar_lea.vmem %s3101_s0, %s2091_s17  ;;  %v914_v62 = vsub.s32 %v905_v50, %v913_v60  ;;  %s2368_s17 = smov 116  }
  0x10   : > { %v2293_v1 = vld [vmem:[%s2442_s20 + $0x20] sm:$0xff]   ;;  %v2295_v3 = vld [vmem:[%s2442_s20 + $0x28] sm:$0xff]   ;;  %v2298_v5 = vld [vmem:[%s2442_s20 + $0x30] sm:$0xff]   ;;  %s2980_s27 = scalar_lea.vmem %s3111_s10, %s2092_s24 }
  0x11   : > { %v2294_v2 = vld [vmem:[%s2442_s20] sm:$0xff]   ;;  %442 = vrot.lane.b32.xlu1 %v2293_v1, %s2363_s21  ;;  %2137 = vmatprep.subr.bf16.mxu0 %v2293_v1  ;;  %v2296_v4 = vld [vmem:[%s2442_s20 + $0x8] sm:$0xff]   ;;  %v2300_v6 = vld [vmem:[%s2442_s20 + $0x38] sm:$0xff]   ;;  %vm917_vm2 = vcmp.ne.s32.totalorder %v914_v62, 0  ;;  %vm918_vm3 = vcmp.lt.s32.totalorder %v914_v62, 0 }
  0x12   : > { %394 = vrot.lane.b32.xlu0 %v2294_v2, %s2363_s21  ;;  %2138 = vmatpush3.bf16.msra.mxu0 %v2293_v1  ;;  %v2299_v7 = vld [vmem:[%s2442_s20 + $0x18] sm:$0xff]   ;;  %v2297_v8 = vld [vmem:[%s2442_s20 + $0x10] sm:$0xff]   ;;  %v920_v1 = vadd.s32 6, %v914_v62  ;;  %vm2566_vm4 = vmand %vm918_vm3, %vm917_vm2  ;;  %1821 = vst.msk [vmem:[%s2980_s27] sm:$0xf] %vm1820_vm10, %v2365_v16 }
  0x13   : > { %2139 = vmatprep.subr.bf16.mxu0 %v2295_v3  ;;  %1822 = vst.msk [vmem:[%s2980_s27 + $0x4] sm:$0xf] %vm1820_vm10, %v2365_v16  ;;  %1823 = vst.msk [vmem:[%s2980_s27 + $0x8] sm:$0xf] %vm1820_vm10, %v2365_v16 }
  0x14   : > { %1824 = vst.msk [vmem:[%s2980_s27 + $0xc] sm:$0xf] %vm1820_vm10, %v2365_v16  ;;  %1825 = vst.msk [vmem:[%s2980_s27 + $0x10] sm:$0xf] %vm1820_vm10, %v2365_v16 }
  0x15   : > { %444 = vrot.lane.b32.xlu1 %v2295_v3, %s2363_s21  ;;  %1826 = vst.msk [vmem:[%s2980_s27 + $0x14] sm:$0xf] %vm1820_vm10, %v2365_v16  ;;  %1827 = vst.msk [vmem:[%s2980_s27 + $0x18] sm:$0xf] %vm1820_vm10, %v2365_v16 }
  0x16   : > { %396 = vrot.lane.b32.xlu0 %v2296_v4, %s2363_s21  ;;  %2140 = vmatpush3.bf16.msra.mxu0 %v2295_v3  ;;  %1828 = vst.msk [vmem:[%s2980_s27 + $0x1c] sm:$0xf] %vm1820_vm10, %v2365_v16 }
  0x17   : > { %2141 = vmatprep.subr.bf16.mxu0 %v2298_v5 }
  0x19   : > { %683 = vrot.lane.b32.xlu1 %v2296_v4, %s2364_s22 }
  0x1a   : > { %681 = vrot.lane.b32.xlu0 %v2294_v2, %s2364_s22  ;;  %2142 = vmatpush3.bf16.msra.mxu0 %v2298_v5 }
  0x1b   : > { %2143 = vmatprep.subr.bf16.mxu0 %v2300_v6 }
  0x1d   : > { %687 = vrot.lane.b32.xlu1 %v2299_v7, %s2364_s22 }
  0x1e   : > { %685 = vrot.lane.b32.xlu0 %v2297_v8, %s2364_s22  ;;  %2144 = vmatpush3.bf16.msra.mxu0 %v2300_v6 }
  0x83   : > { %v443_v9 = vpop.permute.xlu1 %442 }
  0x84   : > { %v395_v10 = vpop.permute.xlu0 %394  ;;  %2145 = vmatprep.subr.bf16.mxu0 %v443_v9 }
  0x85   : > { %689 = vrot.lane.b32.xlu0 %v395_v10, %s2364_s22  ;;  %2146 = vmatpush3.bf16.msra.mxu0 %v443_v9 }
  0x87   : > { %v445_v11 = vpop.permute.xlu1 %444 }
  0x88   : > { %v397_v12 = vpop.permute.xlu0 %396  ;;  %2147 = vmatprep.subr.bf16.mxu0 %v445_v11 }
  0x89   : > { %691 = vrot.lane.b32.xlu1 %v397_v12, %s2364_s22  ;;  %2148 = vmatpush3.bf16.msra.mxu0 %v445_v11 }
  0x8a   : > { %2157 = vmatprep.subr.bf16.mxu0 %v2294_v2  ;;  %794 = vperm.xlu0 %2291, %v784_v15  }
  0x8b   : > { %v684_v34 = vpop.permute.xlu1 %683 }
  0x8c   : > { %2150 = vmatmul.mubr.msk.bf16.vlgmr.msra.gmra.mrb[0].mxu0 %vm477_vm0, %v2302_v13  ;;  %v682_v29 = vpop.permute.xlu0 %681 }
  0x8d   : > { %2158 = vmatpush3.bf16.msra.mxu0 %v2294_v2  ;;  %2153 = vmatprep.mubr.msk.bf16.mxu0 %vm477_vm0, %v2303_v14 }
  0x8e   : > { %2159 = vmatprep.subr.bf16.mxu0 %v2296_v4  ;;  %799 = vperm.xlu1 %2292, %v785_v17  }
  0x8f   : > { %855 = vperm.xlu0 %2291, %v841_v18   ;;  %v688_v41 = vpop.permute.xlu1 %687 }
  0x90   : > { %v686_v37 = vpop.permute.xlu0 %685 }
  0x91   : > { %2160 = vmatpush3.bf16.msra.mxu0 %v2296_v4 }
  0x92   : > { %2161 = vmatprep.subr.bf16.mxu0 %v2297_v8  ;;  %850 = vperm.xlu1 %2292, %v840_v19  }
  0x93   : > { %809 = vperm.xlu0 %2291, %v787_v22  }
  0x94   : > { %2154 = vmatmul.mubr.msk.bf16.gmra.mrb[4].mxu0 %vm477_vm0, %v2304_v20 }
  0x95   : > { %2162 = vmatpush3.bf16.msra.mxu0 %v2297_v8  ;;  %2169 = vmatprep.mubr.msk.bf16.mxu0 %vm477_vm0, %v2305_v21 }
  0x96   : > { %2163 = vmatprep.subr.bf16.mxu0 %v2299_v7  ;;  %804 = vperm.xlu1 %2292, %v786_v23  }
  0x97   : > { %865 = vperm.xlu0 %2291, %v843_v24  }
  0x99   : > { %2164 = vmatpush3.bf16.msra.mxu0 %v2299_v7 }
  0x9a   : > { %2165 = vmatprep.subr.bf16.mxu0 %v395_v10  ;;  %860 = vperm.xlu1 %2292, %v842_v25  }
  0x9b   : > { %819 = vperm.xlu0 %2291, %v789_v26  }
  0x9d   : > { %2166 = vmatpush3.bf16.msra.mxu0 %v395_v10 }
  0x9e   : > { %2167 = vmatprep.subr.bf16.mxu0 %v397_v12  ;;  %814 = vperm.xlu1 %2292, %v788_v27  }
  0x9f   : > { %875 = vperm.xlu0 %2291, %v845_v28  }
  0xa1   : > { %2168 = vmatpush3.bf16.msra.mxu0 %v397_v12  ;;  %v921_v12 = vsel %vm2566_vm4, %v920_v1, %v914_v62 }
  0xa2   : > { %2177 = vmatprep.subr.bf16.mxu0 %v682_v29  ;;  %870 = vperm.xlu1 %2292, %v844_v30   ;;  %vm2572_vm5 = vcmp.lt.s32.totalorder %v921_v12, 4  ;;  %v1447_v12 = vld [vmem:[%s3106_s5 + $0x8] sm:$0xff] }
  0xa3   : > { %829 = vperm.xlu0 %2291, %v791_v33  }
  0xa4   : > { %2170 = vmatmul.mubr.msk.bf16.vlgmr.msra.gmra.mrb[0].mxu0 %vm477_vm0, %v2306_v31 }
  0xa5   : > { %2178 = vmatpush3.bf16.msra.mxu0 %v682_v29  ;;  %2173 = vmatprep.mubr.msk.bf16.mxu0 %vm477_vm0, %v2307_v32 }
  0xa6   : > { %2179 = vmatprep.subr.bf16.mxu0 %v684_v34  ;;  %824 = vperm.xlu1 %2292, %v790_v35  }
  0xa7   : > { %885 = vperm.xlu0 %2291, %v847_v36  }
  0xa9   : > { %2180 = vmatpush3.bf16.msra.mxu0 %v684_v34 }
  0xaa   : > { %2181 = vmatprep.subr.bf16.mxu0 %v686_v37  ;;  %880 = vperm.xlu1 %2292, %v846_v38  }
  0xac   : > { %2174 = vmatmul.mubr.msk.bf16.gmra.mrb[4].mxu0 %vm477_vm0, %v2308_v39 }
  0xad   : > { %2182 = vmatpush3.bf16.msra.mxu0 %v686_v37  ;;  %2189 = vmatprep.mubr.msk.bf16.mxu0 %vm477_vm0, %v2309_v40 }
  0xae   : > { %2183 = vmatprep.subr.bf16.mxu0 %v688_v41 }
  0xb1   : > { %2184 = vmatpush3.bf16.msra.mxu0 %v688_v41 }
  0xf7   : > { %v690_v42 = vpop.permute.xlu0 %689 }
  0xf8   : > { %2185 = vmatprep.subr.bf16.mxu0 %v690_v42 }
  0xf9   : > { %2186 = vmatpush3.bf16.msra.mxu0 %v690_v42 }
  0xfb   : > { %v692_v43 = vpop.permute.xlu1 %691 }
  0xfc   : > { %2187 = vmatprep.subr.bf16.mxu0 %v692_v43 }
  0xfd   : > { %2188 = vmatpush3.bf16.msra.mxu0 %v692_v43 }
  0xfe   : > { %1373 = vmatprep.subr.bf16.mxu0 %v2365_v16 }
 0x100   : > { %2190 = vmatmul.mubr.msk.bf16.vlgmr.msra.gmra.mrb[0].mxu0 %vm477_vm0, %v2310_v44 }
 0x101   : > { %2193 = vmatprep.mubr.msk.bf16.mxu0 %vm477_vm0, %v2311_v45 }
 0x108   : > { %2194 = vmatmul.mubr.msk.bf16.gmra.mrb[4].mxu0 %vm477_vm0, %v2312_v46 }
 0x109   : > { %v795_v49 = vpop.permute.xlu0 %794 }
 0x10d   : > { %v800_v47 = vpop.permute.xlu1 %799 }
 0x10e   : > { %v856_v52 = vpop.permute.xlu0 %855 }
 0x111   : > { %v851_v51 = vpop.permute.xlu1 %850 }
 0x112   : > { %v810_v56 = vpop.permute.xlu0 %809 }
 0x115   : > { %v805_v55 = vpop.permute.xlu1 %804 }
 0x116   : > { %v866_v59 = vpop.permute.xlu0 %865 }
 0x119   : > { %v861_v58 = vpop.permute.xlu1 %860 }
 0x11a   : > { %v820_v63 = vpop.permute.xlu0 %819 }
 0x11d   : > { %v815_v61 = vpop.permute.xlu1 %814 }
 0x11e   : > { %v876_v2 = vpop.permute.xlu0 %875 }
 0x121   : > { %v871_v0 = vpop.permute.xlu1 %870 }
 0x122   : > { %v830_v19 = vpop.permute.xlu0 %829 }
 0x125   : > { %v825_v13 = vpop.permute.xlu1 %824 }
 0x126   : > { %v886_v40 = vpop.permute.xlu0 %885 }
 0x129   : > { %v881_v30 = vpop.permute.xlu1 %880 }
 0x1d3   : > { %v2191_v3 = vpop.f32.mrb[0].mxu0 }
 0x1d4   : > { %v834_v5 = vmul.f32 %v2191_v3, %v805_v55  ;;  %v745_v6 = vpop.f32.mrb[1].mxu0 }
 0x1d5   : > { %v832_v7 = vmul.f32 %v795_v49, %v745_v6  ;;  %v2192_v8 = vpop.f32.mrb[2].mxu0 }
 0x1d6   : > { %v890_v9 = vadd.f32 %v861_v58, %v834_v5  ;;  %v835_v10 = vmul.f32 %v2192_v8, %v810_v56  ;;  %v748_v11 = vpop.f32.mrb[3].mxu0 }
 0x1d7   : > { %v888_v14 = vadd.f32 %v851_v51, %v832_v7  ;;  %v833_v15 = vmul.f32 %v800_v47, %v748_v11  ;;  %v2315_v7 = vld [vmem:[%s3105_s4 + $0x44] ss:$8 sps:$4 sm:$0xff]  }
 0x1d8   : > { %v898_v17 = vmax.f32 %v890_v9, 0.0  ;;  %v891_v18 = vadd.f32 %v866_v59, %v835_v10  ;;  %2031 = vmatprep.mubr.msk.bf16.mxu1 %vm1089_vm8, %v2315_v7  ;;  %v2316_v7 = vld [vmem:[%s3105_s4 + $0x54] ss:$8 sps:$4 sm:$0xff]  }
 0x1d9   : > { %v896_v20 = vmax.f32 %v888_v14, 0.0  ;;  %v889_v21 = vadd.f32 %v856_v52, %v833_v15  ;;  %v1449_v14 = vld [vmem:[%s3106_s5 + $0x18] sm:$0xff]  ;;  %v1448_v15 = vld [vmem:[%s3106_s5 + $0x10] sm:$0xff] }
 0x1da   : > { %v899_v23 = vmax.f32 %v891_v18, 0.0  ;;  %v927_v28 = vsel %vm2572_vm5, %v898_v17, 0.0  ;;  %v1451_v17 = vld [vmem:[%s3106_s5 + $0x28] sm:$0xff]  ;;  %v1450_v18 = vld [vmem:[%s3106_s5 + $0x20] sm:$0xff] }
 0x1db   : > { %v897_v24 = vmax.f32 %v889_v21, 0.0  ;;  %v2195_v25 = vpop.f32.mrb[4].mxu0  ;;  %v925_v34 = vsel %vm2572_vm5, %v896_v20, 0.0  ;;  %v1453_v20 = vld [vmem:[%s3106_s5 + $0x38] sm:$0xff]  ;;  %v1452_v21 = vld [vmem:[%s3106_s5 + $0x30] sm:$0xff] }
 0x1dc   : > { %v838_v26 = vmul.f32 %v2195_v25, %v825_v13  ;;  %v761_v27 = vpop.f32.mrb[5].mxu0  ;;  %v928_v29 = vsel %vm2572_vm5, %v899_v23, 0.0  ;;  %v1446_v13 = vld [vmem:[%s3106_s5] sm:$0xff]  ;;  %v1681_v23 = vld [vmem:[%s3109_s8 + $0x8] sm:$0xff]  ;;  %v1683_v25 = vld [vmem:[%s3109_s8 + $0x18] sm:$0xff] }
 0x1dd   : > { %v836_v31 = vmul.f32 %v815_v61, %v761_v27  ;;  %v2196_v32 = vpop.f32.mrb[6].mxu0  ;;  %v934_v33 = vpack.c.bf16 %v928_v29, %v927_v28  ;;  %v926_v35 = vsel %vm2572_vm5, %v897_v24, 0.0  ;;  %v1680_v24 = vld [vmem:[%s3109_s8] sm:$0xff]  ;;  %v1685_v27 = vld [vmem:[%s3109_s8 + $0x28] sm:$0xff]  ;;  %v1687_v29 = vld [vmem:[%s3109_s8 + $0x38] sm:$0xff] }
 0x1de   : > { %v894_v36 = vadd.f32 %v881_v30, %v838_v26  ;;  %v839_v37 = vmul.f32 %v2196_v32, %v830_v19  ;;  %v764_v38 = vpop.f32.mrb[7].mxu0  ;;  %v933_v39 = vpack.c.bf16 %v926_v35, %v925_v34  ;;  %v2324_v19 = vld [vmem:[%s3105_s4 + $0x84] ss:$8 sps:$4 sm:$0xff]   ;;  %v1682_v26 = vld [vmem:[%s3109_s8 + $0x10] sm:$0xff] }
 0x1df   : > { %v892_v41 = vadd.f32 %v871_v0, %v836_v31  ;;  %v837_v42 = vmul.f32 %v820_v63, %v764_v38  ;;  %948 = vrot.lane.b32.xlu0 %v934_v33, %s2366_s12  ;;  %2063 = vmatprep.mubr.msk.bf16.mxu0 %vm1089_vm8, %v2324_v19  ;;  %v1684_v28 = vld [vmem:[%s3109_s8 + $0x20] sm:$0xff]  ;;  %v1686_v30 = vld [vmem:[%s3109_s8 + $0x30] sm:$0xff]  ;;  %v1503_v31 = vld [vmem:[%s3107_s6 + $0x8] sm:$0xff] }
 0x1e0   : > { %v902_v43 = vmax.f32 %v894_v36, 0.0  ;;  %v895_v44 = vadd.f32 %v886_v40, %v839_v37  ;;  %946 = vrot.lane.b32.xlu1 %v933_v39, %s2366_s12  ;;  %v1502_v32 = vld [vmem:[%s3107_s6] sm:$0xff]  ;;  %v1505_v33 = vld [vmem:[%s3107_s6 + $0x18] sm:$0xff]  ;;  %v1504_v34 = vld [vmem:[%s3107_s6 + $0x10] sm:$0xff] }
 0x1e1   : > { %v900_v45 = vmax.f32 %v892_v41, 0.0  ;;  %v893_v46 = vadd.f32 %v876_v2, %v837_v42  ;;  %v1507_v35 = vld [vmem:[%s3107_s6 + $0x28] sm:$0xff]  ;;  %v1506_v36 = vld [vmem:[%s3107_s6 + $0x20] sm:$0xff]  ;;  %v1509_v37 = vld [vmem:[%s3107_s6 + $0x38] sm:$0xff] }
 0x1e2   : > { %v903_v47 = vmax.f32 %v895_v44, 0.0  ;;  %v931_v49 = vsel %vm2572_vm5, %v902_v43, 0.0  ;;  %v1508_v38 = vld [vmem:[%s3107_s6 + $0x30] sm:$0xff]  ;;  %v1737_v39 = vld [vmem:[%s3110_s9 + $0x8] sm:$0xff]  ;;  %v1736_v40 = vld [vmem:[%s3110_s9] sm:$0xff] }
 0x1e3   : > { %v901_v48 = vmax.f32 %v893_v46, 0.0  ;;  %v929_v52 = vsel %vm2572_vm5, %v900_v45, 0.0  ;;  %v1739_v41 = vld [vmem:[%s3110_s9 + $0x18] sm:$0xff]  ;;  %v1738_v42 = vld [vmem:[%s3110_s9 + $0x10] sm:$0xff]  ;;  %v1741_v43 = vld [vmem:[%s3110_s9 + $0x28] sm:$0xff] }
 0x1e4   : > { %v932_v50 = vsel %vm2572_vm5, %v903_v47, 0.0  ;;  %v1740_v44 = vld [vmem:[%s3110_s9 + $0x20] sm:$0xff]  ;;  %v1743_v45 = vld [vmem:[%s3110_s9 + $0x38] sm:$0xff]  ;;  %v1742_v46 = vld [vmem:[%s3110_s9 + $0x30] sm:$0xff] }
 0x1e5   : > { %v936_v51 = vpack.c.bf16 %v932_v50, %v931_v49  ;;  %v930_v53 = vsel %vm2572_vm5, %v901_v48, 0.0  ;;  %v2341_v19 = vld [vmem:[%s2442_s20 + $0x38] sm:$0xff]  }
 0x1e6   : > { %v935_v54 = vpack.c.bf16 %v930_v53, %v929_v52 }
 0x1e7   : > { %952 = vrot.lane.b32.xlu0 %v936_v51, %s2366_s12 }
 0x1e8   : > { %950 = vrot.lane.b32.xlu1 %v935_v54, %s2366_s12 }
 0x251   : > { %v949_v55 = vpop.permute.xlu0 %948 }
 0x252   : > { %960 = vst.msk [vmem:[#allocation2 + $0x8] sm:$0xff] %vm958_vm6, %v949_v55  ;;  %v947_v56 = vpop.permute.xlu1 %946 }
 0x253   : > { %965 = vst.msk [vmem:[#allocation2 + $0x8] sm:$0xff] %vm963_vm7, %v2365_v16 }
 0x254   : > { %959 = vst.msk [vmem:[#allocation2] sm:$0xff] %vm958_vm6, %v947_v56 }
 0x255   : > { %964 = vst.msk [vmem:[#allocation2] sm:$0xff] %vm963_vm7, %v2365_v16 }
 0x259   : > { %v953_v57 = vpop.permute.xlu0 %952 }
 0x25a   : > { %962 = vst.msk [vmem:[#allocation2 + $0x18] sm:$0xff] %vm958_vm6, %v953_v57  ;;  %v951_v58 = vpop.permute.xlu1 %950  ;;  %v2598_v59 = vld [vmem:[#allocation2 + $0x8] sm:$0xff] }
 0x25b   : > { %967 = vst.msk [vmem:[#allocation2 + $0x18] sm:$0xff] %vm963_vm7, %v2365_v16  ;;  %978 = vrot.lane.b32.xlu0 %v2598_v59, %s2363_s21 }
 0x25c   : > { %961 = vst.msk [vmem:[#allocation2 + $0x10] sm:$0xff] %vm958_vm6, %v951_v58  ;;  %v2601_v60 = vld [vmem:[#allocation2] sm:$0xff] }
 0x25d   : > { %966 = vst.msk [vmem:[#allocation2 + $0x10] sm:$0xff] %vm963_vm7, %v2365_v16  ;;  %976 = vrot.lane.b32.xlu1 %v2601_v60, %s2363_s21  ;;  %v2313_v58 = vld [vmem:[%s3105_s4 + $0x40] ss:$8 sps:$4 sm:$0xff]  }
 0x262   : > { %v2608_v61 = vld [vmem:[#allocation2 + $0x18] sm:$0xff] }
 0x263   : > { %982 = vrot.lane.b32.xlu0 %v2608_v61, %s2363_s21 }
 0x264   : > { %v2612_v62 = vld [vmem:[#allocation2 + $0x10] sm:$0xff] }
 0x265   : > { %980 = vrot.lane.b32.xlu1 %v2612_v62, %s2363_s21 }
 0x267   : > { %990 = vrot.lane.b32.xlu0 %v2598_v59, %s2367_s15 }
 0x269   : > { %988 = vrot.lane.b32.xlu1 %v2601_v60, %s2367_s15 }
 0x26b   : > { %994 = vrot.lane.b32.xlu0 %v2608_v61, %s2367_s15 }
 0x26d   : > { %992 = vrot.lane.b32.xlu1 %v2612_v62, %s2367_s15 }
 0x26f   : > { %1055 = vrot.lane.b32.xlu0 %v2598_v59, %s2364_s22 }
 0x271   : > { %1053 = vrot.lane.b32.xlu1 %v2601_v60, %s2364_s22 }
 0x273   : > { %1059 = vrot.lane.b32.xlu0 %v2608_v61, %s2364_s22 }
 0x275   : > { %1057 = vrot.lane.b32.xlu1 %v2612_v62, %s2364_s22 }
 0x2cd   : > { %v2628_v63 = vpop.permute.xlu0 %978 }
 0x2ce   : > { %1063 = vrot.lane.b32.xlu0 %v2628_v63, %s2364_s22 }
 0x2cf   : > { %v2630_v0 = vpop.permute.xlu1 %976 }
 0x2d0   : > { %1061 = vrot.lane.b32.xlu1 %v2630_v0, %s2364_s22 }
 0x2d5   : > { %v2636_v1 = vpop.permute.xlu0 %982 }
 0x2d6   : > { %1067 = vrot.lane.b32.xlu0 %v2636_v1, %s2364_s22 }
 0x2d7   : > { %v2640_v2 = vpop.permute.xlu1 %980 }
 0x2d8   : > { %1065 = vrot.lane.b32.xlu1 %v2640_v2, %s2364_s22 }
 0x2d9   : > { %v2644_v3 = vpop.permute.xlu0 %990 }
 0x2da   : > { %1071 = vrot.lane.b32.xlu0 %v2644_v3, %s2364_s22 }
 0x2db   : > { %v2648_v4 = vpop.permute.xlu1 %988 }
 0x2dc   : > { %1069 = vrot.lane.b32.xlu1 %v2648_v4, %s2364_s22 }
 0x2dd   : > { %v2652_v5 = vpop.permute.xlu0 %994 }
 0x2de   : > { %1075 = vrot.lane.b32.xlu0 %v2652_v5, %s2364_s22 }
 0x2df   : > { %v2656_v6 = vpop.permute.xlu1 %992 }
 0x2e0   : > { %1073 = vrot.lane.b32.xlu1 %v2656_v6, %s2364_s22 }
 0x2e1   : > { %v1056_v9 = vpop.permute.xlu0 %1055 }
 0x2e2   : > { %1327 = vrot.lane.b32.xlu0 %v2598_v59, %s2368_s17 }
 0x2e3   : > { %v1054_v8 = vpop.permute.xlu1 %1053 }
 0x2e4   : > { %1325 = vrot.lane.b32.xlu1 %v2601_v60, %s2368_s17  ;;  %1103 = vmatpush1.bf16.msra.mxu1 %v1054_v8 }
 0x2e5   : > { %1104 = vmatprep.subr.bf16.mxu1 %v2365_v16  ;;  %v1060_v11 = vpop.permute.xlu0 %1059 }
 0x2e6   : > { %1331 = vrot.lane.b32.xlu0 %v2608_v61, %s2368_s17 }
 0x2e7   : > { %v1058_v10 = vpop.permute.xlu1 %1057 }
 0x2e8   : > { %1329 = vrot.lane.b32.xlu1 %v2612_v62, %s2368_s17  ;;  %1105 = vmatpush1.bf16.msra.mxu1 %v1056_v9 }
 0x2e9   : > { %1106 = vmatprep.subr.bf16.mxu1 %v2365_v16 }
 0x2ea   : > { %1335 = vrot.lane.b32.xlu0 %v2628_v63, %s2368_s17 }
 0x2ec   : > { %1333 = vrot.lane.b32.xlu1 %v2630_v0, %s2368_s17  ;;  %1107 = vmatpush1.bf16.msra.mxu1 %v1058_v10  ;;  %v2318_v10 = vld [vmem:[%s3105_s4 + $0x50] ss:$8 sps:$4 sm:$0xff]  }
 0x2ed   : > { %1108 = vmatprep.subr.bf16.mxu1 %v2365_v16 }
 0x2ee   : > { %1339 = vrot.lane.b32.xlu0 %v2636_v1, %s2368_s17 }
 0x2f0   : > { %1337 = vrot.lane.b32.xlu1 %v2640_v2, %s2368_s17  ;;  %1109 = vmatpush1.bf16.msra.mxu1 %v1060_v11 }
 0x2f1   : > { %1110 = vmatprep.subr.bf16.mxu1 %v2365_v16 }
 0x2f2   : > { %1343 = vrot.lane.b32.xlu0 %v2644_v3, %s2368_s17 }
 0x2f4   : > { %1341 = vrot.lane.b32.xlu1 %v2648_v4, %s2368_s17 }
 0x2f6   : > { %1347 = vrot.lane.b32.xlu0 %v2652_v5, %s2368_s17 }
 0x2f8   : > { %1345 = vrot.lane.b32.xlu1 %v2656_v6, %s2368_s17 }
 0x2fa   : > { %1461 = vperm.xlu0 %2291, %v1447_v12   ;;  %v2321_v12 = vld [vmem:[%s3105_s4 + $0x60] ss:$8 sps:$4 sm:$0xff]  }
 0x2fc   : > { %1456 = vperm.xlu1 %2292, %v1446_v13  }
 0x2fe   : > { %1471 = vperm.xlu0 %2291, %v1449_v14   ;;  %v2327_v14 = vld [vmem:[%s3105_s4 + $0x70] ss:$8 sps:$4 sm:$0xff]  }
 0x300   : > { %1466 = vperm.xlu1 %2292, %v1448_v15  }
 0x302   : > { %1481 = vperm.xlu0 %2291, %v1451_v17  }
 0x304   : > { %1476 = vperm.xlu1 %2292, %v1450_v18   ;;  %v2322_v18 = vld [vmem:[%s3105_s4 + $0x80] ss:$8 sps:$4 sm:$0xff]  }
 0x306   : > { %1491 = vperm.xlu0 %2291, %v1453_v20   ;;  %v2334_v20 = vld [vmem:[%s3105_s4 + $0xa4] ss:$8 sps:$4 sm:$0xff]  }
 0x308   : > { %1486 = vperm.xlu1 %2292, %v1452_v21   ;;  %v2336_v21 = vld [vmem:[%s3105_s4 + $0xa0] ss:$8 sps:$4 sm:$0xff]  }
 0x30a   : > { %1695 = vperm.xlu0 %2291, %v1681_v23   ;;  %v2340_v23 = vld [vmem:[%s3105_s4 + $0x10] ss:$8 sps:$4 sm:$0xff]  }
 0x30c   : > { %1690 = vperm.xlu1 %2292, %v1680_v24   ;;  %v2344_v24 = vld [vmem:[%s3105_s4 + $0x24] ss:$8 sps:$4 sm:$0xff]  }
 0x30e   : > { %1705 = vperm.xlu0 %2291, %v1683_v25   ;;  %v2343_v25 = vld [vmem:[%s3108_s7 + $0x8] sm:$0xff]  }
 0x310   : > { %1700 = vperm.xlu1 %2292, %v1682_v26   ;;  %v2347_v26 = vld [vmem:[%s3108_s7 + $0x10] sm:$0xff]  }
 0x312   : > { %1715 = vperm.xlu0 %2291, %v1685_v27   ;;  %v2346_v27 = vld [vmem:[%s3105_s4 + $0x20] ss:$8 sps:$4 sm:$0xff]  }
 0x314   : > { %1710 = vperm.xlu1 %2292, %v1684_v28   ;;  %v2349_v28 = vld [vmem:[%s3105_s4 + $0x34] ss:$8 sps:$4 sm:$0xff]  }
 0x316   : > { %1725 = vperm.xlu0 %2291, %v1687_v29   ;;  %v2348_v29 = vld [vmem:[%s3108_s7 + $0x18] sm:$0xff]  }
 0x318   : > { %1720 = vperm.xlu1 %2292, %v1686_v30   ;;  %v2351_v30 = vld [vmem:[%s3105_s4 + $0x30] ss:$8 sps:$4 sm:$0xff]  }
 0x31a   : > { %1517 = vperm.xlu0 %2291, %v1503_v31   ;;  %v2354_v31 = vld [vmem:[%s3105_s4 + $0xb4] ss:$8 sps:$4 sm:$0xff]  }
 0x31c   : > { %1512 = vperm.xlu1 %2292, %v1502_v32   ;;  %v2352_v32 = vld [vmem:[%s3105_s4 + $0xb0] ss:$8 sps:$4 sm:$0xff]  }
 0x31e   : > { %1527 = vperm.xlu0 %2291, %v1505_v33  }
 0x320   : > { %1522 = vperm.xlu1 %2292, %v1504_v34  }
 0x322   : > { %1537 = vperm.xlu0 %2291, %v1507_v35  }
 0x324   : > { %1532 = vperm.xlu1 %2292, %v1506_v36  }
 0x326   : > { %1547 = vperm.xlu0 %2291, %v1509_v37  }
 0x328   : > { %1542 = vperm.xlu1 %2292, %v1508_v38  }
 0x32a   : > { %1751 = vperm.xlu0 %2291, %v1737_v39  }
 0x32c   : > { %1746 = vperm.xlu1 %2292, %v1736_v40  }
 0x32e   : > { %1761 = vperm.xlu0 %2291, %v1739_v41  }
 0x330   : > { %1756 = vperm.xlu1 %2292, %v1738_v42  }
 0x332   : > { %1771 = vperm.xlu0 %2291, %v1741_v43  }
 0x334   : > { %1766 = vperm.xlu1 %2292, %v1740_v44  }
 0x336   : > { %1781 = vperm.xlu0 %2291, %v1743_v45  }
 0x338   : > { %1776 = vperm.xlu1 %2292, %v1742_v46  }
 0x340   : > { %v1064_v48 = vpop.permute.xlu0 %1063 }
 0x342   : > { %v1062_v47 = vpop.permute.xlu1 %1061 }
 0x343   : > { %1111 = vmatpush1.bf16.msra.mxu1 %v1062_v47 }
 0x344   : > { %1112 = vmatprep.subr.bf16.mxu1 %v2365_v16 }
 0x347   : > { %1113 = vmatpush1.bf16.msra.mxu1 %v1064_v48 }
 0x348   : > { %1114 = vmatprep.subr.bf16.mxu1 %v2365_v16  ;;  %v1068_v49 = vpop.permute.xlu0 %1067 }
 0x34a   : > { %v1066_v50 = vpop.permute.xlu1 %1065 }
 0x34b   : > { %1115 = vmatpush1.bf16.msra.mxu1 %v1066_v50 }
 0x34c   : > { %1116 = vmatprep.subr.bf16.mxu1 %v2365_v16  ;;  %v1072_v51 = vpop.permute.xlu0 %1071 }
 0x34e   : > { %v1070_v52 = vpop.permute.xlu1 %1069 }
 0x34f   : > { %1117 = vmatpush1.bf16.msra.mxu1 %v1068_v49 }
 0x350   : > { %1118 = vmatprep.subr.bf16.mxu1 %v2365_v16  ;;  %v1076_v54 = vpop.permute.xlu0 %1075 }
 0x352   : > { %v1074_v53 = vpop.permute.xlu1 %1073 }
 0x353   : > { %1119 = vmatpush1.bf16.msra.mxu1 %v1070_v52 }
 0x354   : > { %1120 = vmatprep.subr.bf16.mxu1 %v2365_v16  ;;  %v2790_v56 = vpop.permute.xlu0 %1327 }
 0x356   : > { %v2785_v55 = vpop.permute.xlu1 %1325 }
 0x357   : > { %1121 = vmatpush1.bf16.msra.mxu1 %v1072_v51  ;;  %1374 = vmatpush1.bf16.msra.mxu0 %v2785_v55 }
 0x358   : > { %1122 = vmatprep.subr.bf16.mxu1 %v2365_v16  ;;  %1375 = vmatprep.subr.bf16.mxu0 %v2365_v16  ;;  %v2806_v8 = vpop.permute.xlu0 %1331 }
 0x35a   : > { %v2795_v57 = vpop.permute.xlu1 %1329 }
 0x35b   : > { %1123 = vmatpush1.bf16.msra.mxu1 %v1074_v53  ;;  %1376 = vmatpush1.bf16.msra.mxu0 %v2790_v56 }
 0x35c   : > { %1124 = vmatprep.subr.bf16.mxu1 %v2365_v16  ;;  %1377 = vmatprep.subr.bf16.mxu0 %v2365_v16  ;;  %v2825_v11 = vpop.permute.xlu0 %1335 }
 0x35e   : > { %v2813_v9 = vpop.permute.xlu1 %1333 }
 0x35f   : > { %1125 = vmatpush1.bf16.msra.mxu1 %v1076_v54  ;;  %1378 = vmatpush1.bf16.msra.mxu0 %v2795_v57 }
 0x360   : > { %1215 = vmatprep.subr.bf16.mxu1 %v2365_v16  ;;  %1379 = vmatprep.subr.bf16.mxu0 %v2365_v16  ;;  %v2844_v13 = vpop.permute.xlu0 %1339 }
 0x362   : > { %1135 = vmatmul.mubr.bf16.vlgmr.msra.gmra.mrb[0].mxu1 %v2313_v58 }
 0x363   : > { %1216 = vmatpush1.bf16.msra.mxu1 %v2601_v60  ;;  %1380 = vmatpush1.bf16.msra.mxu0 %v2806_v8  ;;  %v2319_v60 = vld [vmem:[%s3105_s4 + $0x64] ss:$8 sps:$4 sm:$0xff]  }
 0x364   : > { %1217 = vmatprep.subr.bf16.mxu1 %v2365_v16  ;;  %1381 = vmatprep.subr.bf16.mxu0 %v2365_v16  ;;  %v2863_v15 = vpop.permute.xlu0 %1343 }
 0x365   : > { %2032 = vmatprep.mubr.msk.bf16.mxu1 %vm1089_vm8, %v2316_v7 }
 0x367   : > { %1218 = vmatpush1.bf16.msra.mxu1 %v2598_v59  ;;  %1382 = vmatpush1.bf16.msra.mxu0 %v2813_v9  ;;  %v2832_v59 = vpop.permute.xlu1 %1337 }
 0x368   : > { %1219 = vmatprep.subr.bf16.mxu1 %v2365_v16  ;;  %1383 = vmatprep.subr.bf16.mxu0 %v2365_v16  ;;  %v2877_v17 = vpop.permute.xlu0 %1347 }
 0x36a   : > { %1143 = vmatmul.mubr.bf16.gmra.mrb[4].mxu1 %v2318_v10 }
 0x36b   : > { %1220 = vmatpush1.bf16.msra.mxu1 %v2612_v62  ;;  %1384 = vmatpush1.bf16.msra.mxu0 %v2825_v11  ;;  %v2325_v62 = vld [vmem:[%s3105_s4 + $0x74] ss:$8 sps:$4 sm:$0xff]  }
 0x36c   : > { %1221 = vmatprep.subr.bf16.mxu1 %v2365_v16  ;;  %1385 = vmatprep.subr.bf16.mxu0 %v2365_v16 }
 0x36d   : > { %2033 = vmatprep.mubr.msk.bf16.mxu1 %vm1089_vm8, %v2319_v60 }
 0x36f   : > { %1222 = vmatpush1.bf16.msra.mxu1 %v2608_v61  ;;  %1386 = vmatpush1.bf16.msra.mxu0 %v2832_v59  ;;  %v2851_v61 = vpop.permute.xlu1 %1341 }
 0x370   : > { %1223 = vmatprep.subr.bf16.mxu1 %v2365_v16  ;;  %1387 = vmatprep.subr.bf16.mxu0 %v2365_v16 }
 0x372   : > { %1151 = vmatmul.mubr.bf16.gmra.mrb[8].mxu1 %v2321_v12 }
 0x373   : > { %1224 = vmatpush1.bf16.msra.mxu1 %v2630_v0  ;;  %1388 = vmatpush1.bf16.msra.mxu0 %v2844_v13  ;;  %v2333_v0 = vld [vmem:[%s3105_s4 + $0x4] ss:$8 sps:$4 sm:$0xff]  }
 0x374   : > { %1225 = vmatprep.subr.bf16.mxu1 %v2365_v16  ;;  %1389 = vmatprep.subr.bf16.mxu0 %v2365_v16 }
 0x375   : > { %2034 = vmatprep.mubr.msk.bf16.mxu1 %vm1089_vm8, %v2325_v62 }
 0x377   : > { %1226 = vmatpush1.bf16.msra.mxu1 %v2628_v63  ;;  %1390 = vmatpush1.bf16.msra.mxu0 %v2851_v61  ;;  %v2870_v63 = vpop.permute.xlu1 %1345 }
 0x378   : > { %1227 = vmatprep.subr.bf16.mxu1 %v2365_v16  ;;  %1391 = vmatprep.subr.bf16.mxu0 %v2365_v16 }
 0x379   : > { %v1462_v34 = vpop.permute.xlu0 %1461 }
 0x37a   : > { %1159 = vmatmul.mubr.bf16.gmra.mrb[12].mxu1 %v2327_v14 }
 0x37b   : > { %1228 = vmatpush1.bf16.msra.mxu1 %v2640_v2  ;;  %1392 = vmatpush1.bf16.msra.mxu0 %v2863_v15  ;;  %v2337_v2 = vld [vmem:[%s2442_s20 + $0x30] sm:$0xff]   ;;  %v1457_v33 = vpop.permute.xlu1 %1456 }
 0x37c   : > { %1229 = vmatprep.subr.bf16.mxu1 %v2365_v16  ;;  %1393 = vmatprep.subr.bf16.mxu0 %v2365_v16 }
 0x37d   : > { %2043 = vmatprep.mubr.msk.bf16.mxu1 %vm1089_vm8, %v2333_v0  ;;  %v1472_v36 = vpop.permute.xlu0 %1471 }
 0x37f   : > { %1230 = vmatpush1.bf16.msra.mxu1 %v2636_v1  ;;  %1394 = vmatpush1.bf16.msra.mxu0 %v2870_v63  ;;  %v2328_v1 = vld [vmem:[%s3105_s4 + $0x94] ss:$8 sps:$4 sm:$0xff]   ;;  %v1467_v35 = vpop.permute.xlu1 %1466 }
 0x380   : > { %1231 = vmatprep.subr.bf16.mxu1 %v2365_v16  ;;  %1395 = vmatprep.subr.bf16.mxu0 %v2365_v16 }
 0x381   : > { %v3000_v38 = vpop.permute.xlu0 %1481 }
 0x383   : > { %1232 = vmatpush1.bf16.msra.mxu1 %v2648_v4  ;;  %1396 = vmatpush1.bf16.msra.mxu0 %v2877_v17  ;;  %v2330_v4 = vld [vmem:[%s3105_s4 + $0x90] ss:$8 sps:$4 sm:$0xff]   ;;  %v2998_v37 = vpop.permute.xlu1 %1476 }
 0x384   : > { %1233 = vmatprep.subr.bf16.mxu1 %v2365_v16  ;;  %2197 = vmatprep.subr.bf16.mxu0 %v2337_v2 }
 0x385   : > { %v3004_v40 = vpop.permute.xlu0 %1491 }
 0x386   : > { %1406 = vmatmul.mubr.bf16.vlgmr.msra.gmra.mrb[8].mxu0 %v2322_v18 }
 0x387   : > { %1234 = vmatpush1.bf16.msra.mxu1 %v2644_v3  ;;  %2064 = vmatprep.mubr.msk.bf16.mxu0 %vm1089_vm8, %v2328_v1  ;;  %v2331_v3 = vld [vmem:[%s3105_s4] ss:$8 sps:$4 sm:$0xff]   ;;  %v3002_v39 = vpop.permute.xlu1 %1486 }
 0x388   : > { %1235 = vmatprep.subr.bf16.mxu1 %v2365_v16  ;;  %2198 = vmatpush3.bf16.msra.mxu0 %v2337_v2 }
 0x389   : > { %2199 = vmatprep.subr.bf16.mxu0 %v2341_v19  ;;  %v1696_v42 = vpop.permute.xlu0 %1695 }
 0x38b   : > { %1236 = vmatpush1.bf16.msra.mxu1 %v2656_v6  ;;  %v2338_v6 = vld [vmem:[%s3105_s4 + $0x14] ss:$8 sps:$4 sm:$0xff]   ;;  %v1691_v41 = vpop.permute.xlu1 %1690 }
 0x38c   : > { %1237 = vmatprep.subr.bf16.mxu1 %v2365_v16  ;;  %2200 = vmatpush3.bf16.msra.mxu0 %v2341_v19 }
 0x38d   : > { %v1706_v44 = vpop.permute.xlu0 %1705 }
 0x38e   : > { %1414 = vmatmul.mubr.bf16.gmra.mrb[12].mxu0 %v2330_v4 }
 0x38f   : > { %1238 = vmatpush1.bf16.msra.mxu1 %v2652_v5  ;;  %2065 = vmatprep.mubr.msk.bf16.mxu0 %vm1089_vm8, %v2334_v20  ;;  %v2342_v5 = vld [vmem:[%s3108_s7] sm:$0xff]   ;;  %v1701_v43 = vpop.permute.xlu1 %1700 }
 0x390   : > { %2209 = vmatprep.subr.bf16.mxu1 %v2365_v16 }
 0x391   : > { %v3008_v46 = vpop.permute.xlu0 %1715 }
 0x392   : > { %1248 = vmatmul.mubr.bf16.vlgmr.msra.gmra.mrb[0].mxu1 %v2331_v3 }
 0x393   : > { %2221 = vmatpush1.bf16.msra.mxu1 %v2785_v55  ;;  %2044 = vmatprep.mubr.msk.bf16.mxu1 %vm1089_vm8, %v2338_v6  ;;  %v3006_v45 = vpop.permute.xlu1 %1710 }
 0x394   : > { %2210 = vmatprep.subr.bf16.mxu1 %v2365_v16 }
 0x395   : > { %v3012_v48 = vpop.permute.xlu0 %1725 }
 0x396   : > { %1422 = vmatmul.mubr.bf16.gmra.mrb[16].mxu0 %v2336_v21 }
 0x397   : > { %2222 = vmatpush1.bf16.msra.mxu1 %v2790_v56  ;;  %2201 = vmatprep.mubr.msk.bf16.mxu0 %vm1602_vm9, %v2342_v5  ;;  %v3010_v47 = vpop.permute.xlu1 %1720 }
 0x398   : > { %2211 = vmatprep.subr.bf16.mxu1 %v2365_v16 }
 0x399   : > { %v1518_v50 = vpop.permute.xlu0 %1517 }
 0x39a   : > { %1256 = vmatmul.mubr.bf16.gmra.mrb[4].mxu1 %v2340_v23 }
 0x39b   : > { %2223 = vmatpush1.bf16.msra.mxu1 %v2795_v57  ;;  %2045 = vmatprep.mubr.msk.bf16.mxu1 %vm1089_vm8, %v2344_v24  ;;  %v1513_v49 = vpop.permute.xlu1 %1512 }
 0x39c   : > { %2212 = vmatprep.subr.bf16.mxu1 %v2365_v16 }
 0x39d   : > { %v1528_v56 = vpop.permute.xlu0 %1527 }
 0x39e   : > { %2202 = vmatmul.mubr.msk.bf16.vlgmr.msra.gmra.mrb[20].mxu0 %vm1602_vm9, %v2343_v25 }
 0x39f   : > { %2224 = vmatpush1.bf16.msra.mxu1 %v2806_v8  ;;  %2205 = vmatprep.mubr.msk.bf16.mxu0 %vm1602_vm9, %v2347_v26  ;;  %v1523_v53 = vpop.permute.xlu1 %1522 }
 0x3a0   : > { %2213 = vmatprep.subr.bf16.mxu1 %v2365_v16 }
 0x3a1   : > { %v3016_v8 = vpop.permute.xlu0 %1537 }
 0x3a2   : > { %1264 = vmatmul.mubr.bf16.gmra.mrb[8].mxu1 %v2346_v27 }
 0x3a3   : > { %2225 = vmatpush1.bf16.msra.mxu1 %v2813_v9  ;;  %2046 = vmatprep.mubr.msk.bf16.mxu1 %vm1089_vm8, %v2349_v28  ;;  %v3014_v57 = vpop.permute.xlu1 %1532 }
 0x3a4   : > { %2214 = vmatprep.subr.bf16.mxu1 %v2365_v16 }
 0x3a5   : > { %v3020_v14 = vpop.permute.xlu0 %1547 }
 0x3a6   : > { %2206 = vmatmul.mubr.msk.bf16.gmra.mrb[24].mxu0 %vm1602_vm9, %v2348_v29 }
 0x3a7   : > { %2226 = vmatpush1.bf16.msra.mxu1 %v2825_v11  ;;  %v3018_v12 = vpop.permute.xlu1 %1542 }
 0x3a8   : > { %2215 = vmatprep.subr.bf16.mxu1 %v2365_v16 }
 0x3a9   : > { %v1752_v4 = vpop.permute.xlu0 %1751 }
 0x3aa   : > { %1272 = vmatmul.mubr.bf16.gmra.mrb[12].mxu1 %v2351_v30 }
 0x3ab   : > { %2227 = vmatpush1.bf16.msra.mxu1 %v2832_v59  ;;  %2066 = vmatprep.mubr.msk.bf16.mxu1 %vm1089_vm8, %v2354_v31 }
 0x3ac   : > { %2216 = vmatprep.subr.bf16.mxu1 %v2365_v16 }
 0x3af   : > { %2228 = vmatpush1.bf16.msra.mxu1 %v2844_v13 }
 0x3b0   : > { %2217 = vmatprep.subr.bf16.mxu1 %v2365_v16 }
 0x3b3   : > { %2229 = vmatpush1.bf16.msra.mxu1 %v2851_v61 }
 0x3b4   : > { %2218 = vmatprep.subr.bf16.mxu1 %v2365_v16 }
 0x3b7   : > { %2230 = vmatpush1.bf16.msra.mxu1 %v2863_v15 }
 0x3b8   : > { %2219 = vmatprep.subr.bf16.mxu1 %v2365_v16 }
 0x3bb   : > { %2231 = vmatpush1.bf16.msra.mxu1 %v2870_v63 }
 0x3bc   : > { %2220 = vmatprep.subr.bf16.mxu1 %v2365_v16 }
 0x3bf   : > { %2232 = vmatpush1.bf16.msra.mxu1 %v2877_v17  ;;  %v1747_v17 = vpop.permute.xlu1 %1746 }
 0x3c2   : > { %1430 = vmatmul.mubr.bf16.vlgmr.msra.gmra.mrb[12].mxu1 %v2352_v32 }
 0x3c3   : > { %v1757_v27 = vpop.permute.xlu1 %1756 }
 0x459   : > { %v1407_v51 = vpop.f32.mrb[8].mxu0 }
 0x45a   : > { %v1409_v52 = vpop.f32.mrb[9].mxu0 }
 0x45b   : > { %v1410_v54 = vpop.f32.mrb[10].mxu0 }
 0x45c   : > { %v1412_v55 = vpop.f32.mrb[11].mxu0 }
 0x461   : > { %v1415_v58 = vpop.f32.mrb[12].mxu0 }
 0x462   : > { %v1417_v7 = vpop.f32.mrb[13].mxu0 }
 0x463   : > { %v1418_v9 = vpop.f32.mrb[14].mxu0 }
 0x464   : > { %v1420_v10 = vpop.f32.mrb[15].mxu0 }
 0x465   : > { %v1249_v60 = vpop.f32.mrb[0].mxu1 }
 0x466   : > { %v2233_v11 = vadd.f32 %v1407_v51, %v1249_v60  ;;  %v1251_v59 = vpop.f32.mrb[1].mxu1 }
 0x467   : > { %v1252_v62 = vpop.f32.mrb[2].mxu1 }
 0x468   : > { %v2234_v13 = vadd.f32 %v1410_v54, %v1252_v62  ;;  %v1254_v61 = vpop.f32.mrb[3].mxu1  ;;  %v1494_v5 = vmul.f32 %v2233_v11, %v1457_v33  ;;  %v1762_v54 = vpop.permute.xlu0 %1761 }
 0x469   : > { %v1423_v0 = vpop.f32.mrb[16].mxu0 }
 0x46a   : > { %v1425_v15 = vpop.f32.mrb[17].mxu0  ;;  %v1495_v28 = vmul.f32 %v2234_v13, %v1462_v34  ;;  %v1550_v55 = vadd.f32 %v1513_v49, %v1494_v5 }
 0x46b   : > { %v1426_v63 = vpop.f32.mrb[18].mxu0 }
 0x46c   : > { %v1428_v2 = vpop.f32.mrb[19].mxu0 }
 0x46d   : > { %v1257_v18 = vpop.f32.mrb[4].mxu1 }
 0x46e   : > { %v2235_v1 = vadd.f32 %v1415_v58, %v1257_v18  ;;  %v1259_v19 = vpop.f32.mrb[5].mxu1 }
 0x46f   : > { %v1260_v20 = vpop.f32.mrb[6].mxu1 }
 0x470   : > { %v1496_v3 = vmul.f32 %v2235_v1, %v1467_v35  ;;  %v2236_v6 = vadd.f32 %v1418_v9, %v1260_v20  ;;  %v1262_v21 = vpop.f32.mrb[7].mxu1  ;;  %v1767_v1 = vpop.permute.xlu1 %1766 }
 0x471   : > { %v2203_v23 = vpop.f32.mrb[20].mxu0 }
 0x472   : > { %v1497_v24 = vmul.f32 %v2236_v6, %v1472_v36  ;;  %v1730_v25 = vmul.f32 %v2203_v23, %v1701_v43  ;;  %v1649_v26 = vpop.f32.mrb[21].mxu0  ;;  %v1552_v31 = vadd.f32 %v1523_v53, %v1496_v3  ;;  %v1551_v43 = vadd.f32 %v1518_v50, %v1495_v28  ;;  %v1772_v6 = vpop.permute.xlu0 %1771 }
 0x473   : > { %v1728_v29 = vmul.f32 %v1691_v41, %v1649_v26  ;;  %v2204_v30 = vpop.f32.mrb[22].mxu0 }
 0x474   : > { %v1786_v32 = vadd.f32 %v1757_v27, %v1730_v25  ;;  %v1731_v51 = vmul.f32 %v2204_v30, %v1706_v44  ;;  %v1652_v52 = vpop.f32.mrb[23].mxu0  ;;  %v1553_v9 = vadd.f32 %v1528_v56, %v1497_v24 }
 0x475   : > { %v1784_v58 = vadd.f32 %v1747_v17, %v1728_v29  ;;  %v1729_v7 = vmul.f32 %v1696_v42, %v1652_v52  ;;  %v1265_v35 = vpop.f32.mrb[8].mxu1 }
 0x476   : > { %v1794_v10 = vadd.f32 %v1786_v32, %v1552_v31  ;;  %v1787_v33 = vadd.f32 %v1762_v54, %v1731_v51  ;;  %v2237_v60 = vadd.f32 %v1423_v0, %v1265_v35  ;;  %v1267_v36 = vpop.f32.mrb[9].mxu1 }
 0x477   : > { %v1792_v11 = vadd.f32 %v1784_v58, %v1550_v55  ;;  %v1785_v59 = vadd.f32 %v1752_v4, %v1729_v7  ;;  %v1268_v34 = vpop.f32.mrb[10].mxu1  ;;  %v1777_v55 = vpop.permute.xlu1 %1776 }
 0x478   : > { %v1795_v41 = vadd.f32 %v1787_v33, %v1553_v9  ;;  %v1498_v53 = vmul.f32 %v2237_v60, %v2998_v37  ;;  %v2238_v62 = vadd.f32 %v1426_v63, %v1268_v34  ;;  %v1270_v44 = vpop.f32.mrb[11].mxu1  ;;  %v1802_v13 = vmax.f32 %v1794_v10, 0.0  ;;  %v1782_v33 = vpop.permute.xlu0 %1781 }
 0x479   : > { %v1800_v61 = vmax.f32 %v1792_v11, 0.0  ;;  %v1793_v49 = vadd.f32 %v1785_v59, %v1551_v43  ;;  %v2207_v15 = vpop.f32.mrb[24].mxu0 }
 0x47a   : > { %v1803_v42 = vmax.f32 %v1795_v41, 0.0  ;;  %v1665_v2 = vpop.f32.mrb[25].mxu0  ;;  %v1499_v17 = vmul.f32 %v2238_v62, %v3000_v38  ;;  %v1554_v37 = vadd.f32 %v3014_v57, %v1498_v53  ;;  %v1810_v38 = vsel %vm2572_vm5, %v1802_v13, 0.0 }
 0x47b   : > { %v1801_v56 = vmax.f32 %v1793_v49, 0.0  ;;  %v1732_v0 = vmul.f32 %v3006_v45, %v1665_v2  ;;  %v2208_v50 = vpop.f32.mrb[26].mxu0  ;;  %v1808_v18 = vsel %vm2572_vm5, %v1800_v61, 0.0  ;;  %v1734_v31 = vmul.f32 %v2207_v15, %v3010_v47 }
 0x47c   : > { %v1668_v63 = vpop.f32.mrb[27].mxu0  ;;  %v2093_v19 = vpack.c.bf16 %v1808_v18, %v1808_v18  ;;  %v1555_v21 = vadd.f32 %v3016_v8, %v1499_v17  ;;  %v1811_v57 = vsel %vm2572_vm5, %v1803_v42, 0.0  ;;  %v1735_v51 = vmul.f32 %v2208_v50, %v3012_v48 }
 0x47d   : > { %v1788_v4 = vadd.f32 %v1767_v1, %v1732_v0  ;;  %v1733_v20 = vmul.f32 %v3008_v46, %v1668_v63  ;;  %v1809_v3 = vsel %vm2572_vm5, %v1801_v56, 0.0  ;;  %v2095_v46 = vpack.c.bf16 %v1810_v38, %v1810_v38 }
 0x47e   : > { %1849 = vrot.lane.b32.xlu1 %v2093_v19, %s2366_s12  ;;  %v2094_v45 = vpack.c.bf16 %v1809_v3, %v1809_v3  ;;  %v2096_v26 = vpack.c.bf16 %v1811_v57, %v1811_v57  ;;  %v1790_v7 = vadd.f32 %v1777_v55, %v1734_v31  ;;  %v1791_v60 = vadd.f32 %v1782_v33, %v1735_v51 }
 0x47f   : > { %v1796_v5 = vadd.f32 %v1788_v4, %v1554_v37  ;;  %v1789_v23 = vadd.f32 %v1772_v6, %v1733_v20 }
 0x480   : > { %1851 = vrot.lane.b32.xlu0 %v2094_v45, %s2366_s12 }
 0x481   : > { %v1804_v24 = vmax.f32 %v1796_v5, 0.0  ;;  %v1797_v25 = vadd.f32 %v1789_v23, %v1555_v21 }
 0x482   : > { %1853 = vrot.lane.b32.xlu1 %v2095_v46, %s2366_s12 }
 0x483   : > { %v1812_v27 = vsel %vm2572_vm5, %v1804_v24, 0.0  ;;  %v1805_v28 = vmax.f32 %v1797_v25, 0.0 }
 0x484   : > { %v2097_v29 = vpack.c.bf16 %v1812_v27, %v1812_v27  ;;  %1855 = vrot.lane.b32.xlu0 %v2096_v26, %s2366_s12 }
 0x485   : > { %v1813_v8 = vsel %vm2572_vm5, %v1805_v28, 0.0 }
 0x486   : > { %v2098_v30 = vpack.c.bf16 %v1813_v8, %v1813_v8  ;;  %1857 = vrot.lane.b32.xlu1 %v2097_v29, %s2366_s12 }
 0x488   : > { %1859 = vrot.lane.b32.xlu0 %v2098_v30, %s2366_s12 }
 0x495   : > { %v1431_v32 = vpop.f32.mrb[12].mxu1 }
 0x496   : > { %v1500_v52 = vmul.f32 %v3002_v39, %v1431_v32  ;;  %v1433_v54 = vpop.f32.mrb[13].mxu1 }
 0x497   : > { %v1434_v58 = vpop.f32.mrb[14].mxu1 }
 0x498   : > { %v1556_v35 = vadd.f32 %v3018_v12, %v1500_v52  ;;  %v1501_v9 = vmul.f32 %v3004_v40, %v1434_v58  ;;  %v1436_v10 = vpop.f32.mrb[15].mxu1 }
 0x49a   : > { %v1798_v36 = vadd.f32 %v1790_v7, %v1556_v35  ;;  %v1557_v47 = vadd.f32 %v3020_v14, %v1501_v9 }
 0x49c   : > { %v1806_v48 = vmax.f32 %v1798_v36, 0.0  ;;  %v1799_v39 = vadd.f32 %v1791_v60, %v1557_v47 }
 0x49e   : > { %v1814_v43 = vsel %vm2572_vm5, %v1806_v48, 0.0  ;;  %v1807_v11 = vmax.f32 %v1799_v39, 0.0 }
 0x49f   : > { %v2099_v12 = vpack.c.bf16 %v1814_v43, %v1814_v43 }
 0x4a0   : > { %v1815_v40 = vsel %vm2572_vm5, %v1807_v11, 0.0 }
 0x4a1   : > { %v2100_v59 = vpack.c.bf16 %v1815_v40, %v1815_v40  ;;  %1861 = vrot.lane.b32.xlu1 %v2099_v12, %s2366_s12 }
 0x4a3   : > { %1863 = vrot.lane.b32.xlu0 %v2100_v59, %s2366_s12 }
 0x4f0   : > { %v1850_v14 = vpop.permute.xlu1 %1849 }
 0x4f1   : > { %1874 = vst.msk [vmem:[%s2980_s27] sm:$0xf] %vm1873_vm11, %v1850_v14 }
 0x4f2   : > { %1883 = vst.msk [vmem:[%s2980_s27] sm:$0xf] %vm1882_vm12, %v2365_v16  ;;  %v1852_v22 = vpop.permute.xlu0 %1851 }
 0x4f3   : > { %1875 = vst.msk [vmem:[%s2980_s27 + $0x4] sm:$0xf] %vm1873_vm11, %v1852_v22 }
 0x4f4   : > { %1884 = vst.msk [vmem:[%s2980_s27 + $0x4] sm:$0xf] %vm1882_vm12, %v2365_v16  ;;  %v1854_v34 = vpop.permute.xlu1 %1853 }
 0x4f5   : > { %1876 = vst.msk [vmem:[%s2980_s27 + $0x8] sm:$0xf] %vm1873_vm11, %v1854_v34 }
 0x4f6   : > { %1885 = vst.msk [vmem:[%s2980_s27 + $0x8] sm:$0xf] %vm1882_vm12, %v2365_v16  ;;  %v1856_v41 = vpop.permute.xlu0 %1855 }
 0x4f7   : > { %1877 = vst.msk [vmem:[%s2980_s27 + $0xc] sm:$0xf] %vm1873_vm11, %v1856_v41 }
 0x4f8   : > { %1886 = vst.msk [vmem:[%s2980_s27 + $0xc] sm:$0xf] %vm1882_vm12, %v2365_v16  ;;  %v1858_v53 = vpop.permute.xlu1 %1857 }
 0x4f9   : > { %1878 = vst.msk [vmem:[%s2980_s27 + $0x10] sm:$0xf] %vm1873_vm11, %v1858_v53 }
 0x4fa   : > { %1887 = vst.msk [vmem:[%s2980_s27 + $0x10] sm:$0xf] %vm1882_vm12, %v2365_v16  ;;  %v1860_v62 = vpop.permute.xlu0 %1859 }
 0x4fb   : > { %1879 = vst.msk [vmem:[%s2980_s27 + $0x14] sm:$0xf] %vm1873_vm11, %v1860_v62 }
 0x4fc   : > { %1888 = vst.msk [vmem:[%s2980_s27 + $0x14] sm:$0xf] %vm1882_vm12, %v2365_v16 }
 0x513   : > { %v1862_v44 = vpop.permute.xlu1 %1861 }
 0x514   : > { %1880 = vst.msk [vmem:[%s2980_s27 + $0x18] sm:$0xf] %vm1873_vm11, %v1862_v44 }
 0x515   : > { %1889 = vst.msk [vmem:[%s2980_s27 + $0x18] sm:$0xf] %vm1882_vm12, %v2365_v16  ;;  %v1864_v13 = vpop.permute.xlu0 %1863 }
 0x516   : > { %1881 = vst.msk [vmem:[%s2980_s27 + $0x1c] sm:$0xf] %vm1873_vm11, %v1864_v13 }
 0x517   : > { %1890 = vst.msk [vmem:[%s2980_s27 + $0x1c] sm:$0xf] %vm1882_vm12, %v2365_v16 }
 0x518 PF: > { %s20_s13 = sadd.s32 1, %s2361_s13  }
 0x519   : > { %p17_p4 = scmp.ge.s32.totalorder %s20_s13, 4  }
 0x51b   :  { %19 = sbr.rel (!%p17_p4) target bundleno = 1 (0x1), region = 97 }

// kernel: _lambda_.15
= control target key start
LH: loop header
LB: loop body
LE: loop exit
PB: predicated region body
PF: predicated region fallthrough
CT: control target
= control target key end

     0   :  { %v459_v2 = vmov 0.0   ;;  %v80_v10 = vlaneseq  ;;  %v460_v15 = vmov 1966171168   ;;  %s590_s0 = inlined_call_operand.vmem [shape: bf16[2,256], index: 0, kind: input, shape index: {}]   ;;  %s591_s1 = inlined_call_operand.vmem [shape: bf16[256,64], index: 1, kind: input, shape index: {}]   ;;  %s592_s2 = inlined_call_operand.vmem [shape: f32[1,64], index: 2, kind: input, shape index: {}]   ;;  %s593_s3 = inlined_call_operand.vmem [shape: f32[1,64], index: 3, kind: input, shape index: {}]   ;;  %s594_s4 = inlined_call_operand.vmem [shape: f32[1,64], index: 4, kind: input, shape index: {}]   ;;  %s595_s5 = inlined_call_operand.vmem [shape: bf16[64,64], index: 5, kind: input, shape index: {}]   ;;  %s596_s6 = inlined_call_operand.vmem [shape: f32[1,64], index: 6, kind: input, shape index: {}]   ;;  %s597_s7 = inlined_call_operand.hbm [shape: f32[2,64], index: 7, kind: output, shape index: {}]  }
   0x1   :  { %v415_v0 = vld [vmem:[%s591_s1 + $0x40] sm:$0xff]   ;;  %399 = vmatprep.subr.bf16.mxu1 %v459_v2  ;;  %v417_v3 = vld [vmem:[%s591_s1 + $0x48] sm:$0xff]   ;;  %v419_v5 = vld [vmem:[%s591_s1 + $0x50] sm:$0xff]   ;;  %v78_v16 = vunpack.c.l.s4 %v460_v15 }
   0x2   :  { %v416_v1 = vld [vmem:[%s591_s1] sm:$0xff]   ;;  %372 = vmatprep.subr.bf16.mxu0 %v415_v0  ;;  %v418_v4 = vld [vmem:[%s591_s1 + $0x8] sm:$0xff]   ;;  %v420_v6 = vld [vmem:[%s591_s1 + $0x10] sm:$0xff]   ;;  %v81_v17 = vshrl.u32 %v80_v10, 7 }
   0x3   :  { %373 = vmatpush3.bf16.msra.mxu0 %v416_v1  ;;  %v421_v7 = vld [vmem:[%s591_s1 + $0x58] sm:$0xff]   ;;  %v423_v9 = vld [vmem:[%s591_s1 + $0x60] sm:$0xff]   ;;  %v425_v12 = vld [vmem:[%s591_s1 + $0x68] sm:$0xff]   ;;  %v79_v20 = vunpack.c.0.s8 %v78_v16 }
   0x4   :  { %374 = vmatprep.subr.bf16.mxu0 %v417_v3  ;;  %v422_v8 = vld [vmem:[%s591_s1 + $0x18] sm:$0xff]   ;;  %v424_v11 = vld [vmem:[%s591_s1 + $0x20] sm:$0xff]   ;;  %v426_v14 = vld [vmem:[%s591_s1 + $0x28] sm:$0xff]  }
   0x5   :  { %v347_v13 = vld.sshfl [vmem:[%s590_s0] sm:$0x11 pattern:$0x75316420]  ;;  %v427_v21 = vld [vmem:[%s591_s1 + $0x70] sm:$0xff]  }
   0x6   :  { %v431_v18 = vld [vmem:[%s595_s5] sm:$0xff]   ;;  %v76_v19 = vcombine.high %v347_v13, %v347_v13 }
   0x7   :  { %375 = vmatpush3.bf16.msra.mxu0 %v418_v4  ;;  %400 = vmatpush3.bf16.msra.mxu1 %v431_v18 }
   0x8   :  { %376 = vmatprep.subr.bf16.mxu0 %v419_v5  ;;  %401 = vmatprep.subr.bf16.mxu1 %v459_v2 }
   0xb   :  { %377 = vmatpush3.bf16.msra.mxu0 %v420_v6 }
   0xc   :  { %378 = vmatprep.subr.bf16.mxu0 %v421_v7 }
   0xf   :  { %379 = vmatpush3.bf16.msra.mxu0 %v422_v8 }
  0x10   :  { %380 = vmatprep.subr.bf16.mxu0 %v423_v9 }
  0x13   :  { %381 = vmatpush3.bf16.msra.mxu0 %v424_v11 }
  0x14   :  { %382 = vmatprep.subr.bf16.mxu0 %v425_v12 }
  0x15   :  { %12 = vsyncpa [#allocation3], 0  ;;  %v82_v22 = vsub.s32 %v79_v20, %v81_v17  ;;  %v428_v23 = vld [vmem:[%s591_s1 + $0x30] sm:$0xff]   ;;  %v429_v25 = vld [vmem:[%s591_s1 + $0x78] sm:$0xff]   ;;  %vm461_vm0 = vmmov 0   ;;  %vm286_vm1 = vcmask 523264  }
  0x16   :  { %v430_v26 = vld [vmem:[%s591_s1 + $0x38] sm:$0xff]   ;;  %v432_v28 = vld [vmem:[%s595_s5 + $0x8] sm:$0xff]   ;;  %v433_v29 = vld [vmem:[%s595_s5 + $0x10] sm:$0xff]   ;;  %407 = vmatprep.mubr.msk.bf16.mxu1 %vm461_vm0, %v459_v2  ;;  %s462_s24 = smov [#allocation2]   ;;  %vm330_vm2 = vcmask 517120  }
  0x17   :  { %383 = vmatpush3.bf16.msra.mxu0 %v426_v14  ;;  %v90_v24 = vrot.slane %v76_v19, %v82_v22  ;;  %v83_v27 = vrot.slane %v347_v13, %v82_v22  ;;  %402 = vmatpush3.bf16.msra.mxu1 %v432_v28  ;;  %v434_v30 = vld [vmem:[%s595_s5 + $0x18] sm:$0xff]   ;;  %v346_v32 = vld [vmem:[%s592_s2] ss:$0 sm:$0xff]  ;;  %s338_s25 = sshll.u32 %s462_s24, 4  ;;  %s339_s25 = int_to_ptr.vmem [resolvable:$true] %s338_s25 }
  0x18   :  { %384 = vmatprep.subr.bf16.mxu0 %v427_v21  ;;  %403 = vmatprep.subr.bf16.mxu1 %v459_v2  ;;  %v364_v38 = vld [vmem:[%s593_s3] ss:$0 sm:$0xff]  ;;  %s435_s3 = scalar_lea.vmem %s339_s25, 32  ;;  %p440_p1 = scmp.lt.s32.totalorder %s339_s25, %s339_s25 }
  0x19   :  { %221 = vmatprep.mubr.bf16.mxu0 %v90_v24  ;;  %v365_v40 = vld [vmem:[%s594_s4] ss:$0 sm:$0xff]  ;;  %p436_p0 = scmp.ne.s32.totalorder %s339_s25, %s435_s3  ;;  %p441_p2 = scmp.lt.s32.totalorder %s435_s3, %s435_s3 }
  0x1a   :  { %v366_v44 = vld [vmem:[%s596_s6] ss:$0 sm:$0xff] }
  0x1b   :  { %385 = vmatpush3.bf16.msra.mxu0 %v428_v23  ;;  %404 = vmatpush3.bf16.msra.mxu1 %v433_v29  ;;  %p442_p3 = por %p441_p2, %p440_p1 }
  0x1c   :  { %386 = vmatprep.subr.bf16.mxu0 %v429_v25  ;;  %405 = vmatprep.subr.bf16.mxu1 %v459_v2 }
  0x1d   :  { %p443_p4 = pnand %p442_p3, %p436_p0 }
  0x1f   :  { %387 = vmatpush3.bf16.msra.mxu0 %v430_v26  ;;  %406 = vmatpush3.bf16.msra.mxu1 %v434_v30 }
  0x22   :  { %222 = vmatmul.mubr.bf16.vlgmr.msra.gmra.mrb[0].mxu0 %v83_v27 }
  0xf5   :  { %v388_v31 = vpop.f32.mrb[0].mxu0 }
  0xf6   :  { %v389_v33 = vpop.f32.mrb[1].mxu0 }
  0xf7   :  { %v390_v34 = vadd.f32 %v389_v33, %v388_v31  ;;  %v391_v35 = vpop.f32.mrb[2].mxu0 }
  0xf8   :  { %v392_v36 = vpop.f32.mrb[3].mxu0 }
  0xf9   :  { %v224_v37 = vadd.f32 %v390_v34, %v346_v32 }
  0xfb   :  { %v229_v39 = vmax.f32 %v224_v37, 0.0 }
  0xfd   :  { %v237_v41 = vmul.f32 %v364_v38, %v229_v39 }
  0xff   :  { %v245_v42 = vadd.f32 %v365_v40, %v237_v41 }
 0x101   :  { %v246_v43 = vpack.c.bf16 %v245_v42, %v245_v42 }
 0x103   :  { %408 = vmatmul.mubr.msk.bf16.vlgmr.msra.gmra.mrb[0].mxu1 %vm286_vm1, %v246_v43 }
 0x1d6   :  { %v324_v45 = vpop.f32.mrb[0].mxu1 }
 0x1d7   :  { %v325_v46 = vadd.f32 %v366_v44, %v324_v45  ;;  %v409_v47 = vpop.f32.mrb[1].mxu1 }
 0x1d8   :  { %v327_v48 = vpop.f32.mrb[2].mxu1 }
 0x1d9   :  { %v410_v49 = vpop.f32.mrb[3].mxu1  ;;  %331 = vst.msk [vmem:[#allocation2] sm:$0x3] %vm330_vm2, %v325_v46 }
 0x1da   :  { %446 = shalt.err (!%p443_p4)
}
 0x1db   :  { %s447_s6 = scalar_lea.hbm %s597_s7, 32 }
 0x1dc   :  { %p448_p5 = scmp.ne.s32.totalorder %s597_s7, %s447_s6  ;;  %p451_p6 = scmp.lt.u32.totalorder %s447_s6, %s597_s7 }
 0x1de   :  { %p453_p7 = pnand %p451_p6, %p448_p5 }
 0x1e0   :  { %456 = shalt.err (!%p453_p7)
}
 0x1e1   :  { %341 = dma.vmem_to_hbm [thread:$0]  %s339_s25, 32, %s597_s7, [#allocation3]  }
 0x1e2   :  { %457 = dma.done.wait [#allocation3], 32  }
 0x1e3   :  { %458 = vsyncadd [#allocation3], 4294967264 }
 0x1e4   :  { %345 = vsyncpa [#allocation3], 1 }

</bundles_post_ra>
